<compile_context>
chip_gen: v7x
topology: tpu7x:2x2x1
jax: 0.10.0
libtpu: 0.0.40
codegen_flags: <defaults>
</compile_context>

<pallas_src>
import functools

import jax
import jax.numpy as jnp
from jax.experimental import pallas as pl
from jax.experimental.pallas import tpu as pltpu

_EPS = 1e-5
_LANES = 128
_SUBLANES = 8
_F32 = jnp.float32
_BF16 = jnp.bfloat16


def _round_up(v, m):
    return (v + m - 1) // m * m


def _relu(v):
    return jnp.maximum(v, 0.0)


def _zero_border(pad_ref, *, H, W, d, off_w):
    """Zero only the ring around the conv interior (the interior is always fully overwritten)."""
    _, Hp, Wp, Cp = pad_ref.shape
    dt = pad_ref.dtype
    pad_ref[:, :d, :, :] = jnp.zeros((1, d, Wp, Cp), dt)                            # top rows
    pad_ref[:, d + H:, :, :] = jnp.zeros((1, Hp - d - H, Wp, Cp), dt)               # bottom rows
    pad_ref[:, d:d + H, :off_w, :] = jnp.zeros((1, H, off_w, Cp), dt)               # left (aligned)
    pad_ref[:, d:d + H, off_w + W:, :] = jnp.zeros((1, H, Wp - off_w - W, Cp), dt)  # right (aligned)


def _conv3x3(pad_ref, w_ref, bias, *, H, W, Cp, d, off_w):
    """SAME 3x3 dilated conv as 9 accumulating MXU dots over shifted taps (no im2col buffer)."""
    HW = H * W
    acc = jnp.zeros((HW, Cp), _F32)
    for ky in range(3):
        for kx in range(3):
            tap = pad_ref[0,
                          ky * d: ky * d + H,
                          off_w + (kx - 1) * d: off_w + (kx - 1) * d + W,
                          :].reshape(HW, Cp)
            acc = acc + jnp.dot(tap, w_ref[ky * 3 + kx], preferred_element_type=_F32)
    return acc + bias


# ------------------------------ pass 1 ----------------------------------------
# fused 1x1 (main | shortcut) + ReLU, 3x3 conv #1 + ReLU, per-tile BN1 / BNs partial stats.
def _pass1_kernel(x_ref, w1s_ref, b1s_ref, w2_ref, b2_ref,
                  h1_ref, s0_ref, st_ref, pad_ref, *, dilation):
    _, H, W, Cin = x_ref.shape
    Cp = h1_ref.shape[-1]
    d = dilation
    off_w = _round_up(d, _SUBLANES)
    HW = H * W

    _zero_border(pad_ref, H=H, W=W, d=d, off_w=off_w)

    # fused 1x1 conv (main | shortcut) + ReLU : one MXU pass over K = Cin
    x2d = x_ref[...].reshape(HW, Cin)
    y01 = _relu(jnp.dot(x2d, w1s_ref[...], preferred_element_type=_F32) + b1s_ref[...])
    h0, s0 = y01[:, :Cp], y01[:, Cp:]

    # main branch: 3x3 conv #1 + ReLU (pre-BN1); interior write is sublane-aligned (off_w % 8 == 0)
    pad_ref[:, d:d + H, off_w:off_w + W, :] = h0.reshape(1, H, W, Cp).astype(_BF16)
    h1 = _relu(_conv3x3(pad_ref, w2_ref, b2_ref[...], H=H, W=W, Cp=Cp, d=d, off_w=off_w))

    h1b, s0b = h1.astype(_BF16), s0.astype(_BF16)
    h1_ref[...] = h1b.reshape(1, H, W, Cp)
    s0_ref[...] = s0b.reshape(1, H, W, Cp)

    # per-tile partial BN statistics (sum / sum-of-squares) in f32, computed on the
    # bf16-rounded values that the later passes will actually normalize.
    h1f, s0f = h1b.astype(_F32), s0b.astype(_F32)
    st = jnp.concatenate([jnp.sum(h1f, axis=0, keepdims=True),
                          jnp.sum(h1f * h1f, axis=0, keepdims=True),
                          jnp.sum(s0f, axis=0, keepdims=True),
                          jnp.sum(s0f * s0f, axis=0, keepdims=True)], axis=0)
    st_ref[...] = st.reshape(1, 4, Cp)


# ------------------------------ pass 2 ----------------------------------------
# BN1 (folded scale/shift) -> 3x3 conv #2 + ReLU, per-tile BN2 partial stats.
def _pass2_kernel(h1_ref, sc1_ref, sh1_ref, w3_ref, b3_ref,
                  h2_ref, st_ref, pad_ref, *, dilation):
    _, H, W, Cp = h1_ref.shape
    d = dilation
    off_w = _round_up(d, _SUBLANES)
    HW = H * W

    _zero_border(pad_ref, H=H, W=W, d=d, off_w=off_w)

    # BN1 as one per-channel FMA, written straight into the conv pad interior.
    z = h1_ref[...].reshape(HW, Cp).astype(_F32) * sc1_ref[...] + sh1_ref[...]
    pad_ref[:, d:d + H, off_w:off_w + W, :] = z.reshape(1, H, W, Cp).astype(_BF16)

    h2 = _relu(_conv3x3(pad_ref, w3_ref, b3_ref[...], H=H, W=W, Cp=Cp, d=d, off_w=off_w))
    h2b = h2.astype(_BF16)
    h2_ref[...] = h2b.reshape(1, H, W, Cp)

    h2f = h2b.astype(_F32)
    st = jnp.concatenate([jnp.sum(h2f, axis=0, keepdims=True),
                          jnp.sum(h2f * h2f, axis=0, keepdims=True)], axis=0)
    st_ref[...] = st.reshape(1, 2, Cp)


# ------------------------------ pass 3 ----------------------------------------
# BN2(main) + BNs(shortcut) residual add: one per-channel FMA pass.
def _pass3_kernel(h2_ref, s0_ref, sc2_ref, scs_ref, shift_ref, o_ref):
    _, H, W, Cp = h2_ref.shape
    HW = H * W
    h2 = h2_ref[...].reshape(HW, Cp).astype(_F32)
    s0 = s0_ref[...].reshape(HW, Cp).astype(_F32)
    o = h2 * sc2_ref[...] + s0 * scs_ref[...] + shift_ref[...]
    o_ref[...] = o.reshape(1, H, W, Cp).astype(o_ref.dtype)


# ------------------------------ wrapper ----------------------------------------

def resnet_block(x, p, dilation=1):
    """x is NHWC (the PyTorch NCHW input would be x.transpose(0, 2, 3, 1))."""
    N, H, W, Cin = x.shape
    Co = p["w1"].shape[1]
    Cp = max(_LANES, _round_up(Co, _LANES))     # lane-dense channels; padding sliced off below
    d = dilation
    off_w = _round_up(d, _SUBLANES)             # sublane-aligned left pad
    Wp = _round_up(off_w + W + d, _SUBLANES)
    Hp = H + 2 * d
    NHW = N * H * W

    def pad_lane(a):
        return jnp.pad(a, [(0, 0)] * (a.ndim - 1) + [(0, Cp - a.shape[-1])])

    # Padded lanes MUST carry zero weight/bias/gamma/beta so the dead lanes stay exactly zero
    # through BN (var=0 -> scale=gamma*rsqrt(eps)=0).  Never pad gamma with ones.
    w1s = jnp.concatenate([pad_lane(p["w1"]), pad_lane(p["ws"])], axis=-1).astype(_BF16)
    b1s = jnp.concatenate([pad_lane(p["b1"]), pad_lane(p["bs"])], axis=-1).astype(_F32)

    def pack3x3(w):                             # (9, Co, Co) -> (9, Cp, Cp) per-tap weight slices
        return jnp.pad(w, ((0, 0), (0, Cp - Co), (0, Cp - Co))).astype(_BF16)

    w2, b2 = pack3x3(p["w2"]), pad_lane(p["b2"]).astype(_F32)
    w3, b3 = pack3x3(p["w3"]), pad_lane(p["b3"]).astype(_F32)
    g1, bb1 = pad_lane(p["bn1_g"]).astype(_F32), pad_lane(p["bn1_b"]).astype(_F32)
    g2, bb2 = pad_lane(p["bn2_g"]).astype(_F32), pad_lane(p["bn2_b"]).astype(_F32)
    gs, bbs = pad_lane(p["bns_g"]).astype(_F32), pad_lane(p["bns_b"]).astype(_F32)

    x_bf = x.astype(_BF16)                      # bf16 activations: halves the x HBM->VMEM DMA

    def tile_spec(C):                           # one batch element per grid step (no conv halos)
        return pl.BlockSpec((1, H, W, C), lambda i: (i, 0, 0, 0))

    def full_spec(a):                           # grid-invariant: weights / BN params stay resident
        return pl.BlockSpec(a.shape, lambda i, nd=a.ndim: (0,) * nd)

    # Actual footprint at these tiles is a few MiB; keep the limit small so it also fits
    # comfortably on v7x (64 MiB/TC), not a blanket 48 MiB.
    cparams = pltpu.CompilerParams(dimension_semantics=("parallel",),
                                   vmem_limit_bytes=16 * 1024 * 1024)
    pad_scratch = pltpu.VMEM((1, Hp, Wp, Cp), _BF16)

    # ---- pass 1 ---------------------------------------------------------------
    h1, s0, st1 = pl.pallas_call(
        functools.partial(_pass1_kernel, dilation=d),
        grid=(N,),
        in_specs=[tile_spec(Cin), full_spec(w1s), full_spec(b1s), full_spec(w2), full_spec(b2)],
        out_specs=(tile_spec(Cp), tile_spec(Cp), pl.BlockSpec((1, 4, Cp), lambda i: (i, 0, 0))),
        out_shape=(jax.ShapeDtypeStruct((N, H, W, Cp), _BF16),
                   jax.ShapeDtypeStruct((N, H, W, Cp), _BF16),
                   jax.ShapeDtypeStruct((N, 4, Cp), _F32)),
        scratch_shapes=[pad_scratch],
        compiler_params=cparams,
    )(x_bf, w1s, b1s, w2, b2)

    # tiny XLA glue: reduce per-tile partials, fold BN into per-channel scale/shift.
    # (one-pass E[x^2]-E[x]^2 in f32; fine at these sizes — switch to chunked/Welford for huge NHW)
    def scale_shift(ssum, ssq, gamma, beta):
        mean = ssum / NHW
        var = jnp.maximum(ssq / NHW - mean * mean, 0.0)
        scale = gamma * jax.lax.rsqrt(var + _EPS)
        return scale, beta - mean * scale

    tot1 = jnp.sum(st1, axis=0)                 # (4, Cp)
    sc1, sh1 = scale_shift(tot1[0:1], tot1[1:2], g1, bb1)
    scs, shs = scale_shift(tot1[2:3], tot1[3:4], gs, bbs)

    # ---- pass 2 ---------------------------------------------------------------
    h2, st2 = pl.pallas_call(
        functools.partial(_pass2_kernel, dilation=d),
        grid=(N,),
        in_specs=[tile_spec(Cp), full_spec(sc1), full_spec(sh1), full_spec(w3), full_spec(b3)],
        out_specs=(tile_spec(Cp), pl.BlockSpec((1, 2, Cp), lambda i: (i, 0, 0))),
        out_shape=(jax.ShapeDtypeStruct((N, H, W, Cp), _BF16),
                   jax.ShapeDtypeStruct((N, 2, Cp), _F32)),
        scratch_shapes=[pad_scratch],
        compiler_params=cparams,
    )(h1, sc1, sh1, w3, b3)

    tot2 = jnp.sum(st2, axis=0)                 # (2, Cp)
    sc2, sh2 = scale_shift(tot2[0:1], tot2[1:2], g2, bb2)
    shift = sh2 + shs                           # the two BN shifts fold into one constant

    # ---- pass 3 ---------------------------------------------------------------
    out = pl.pallas_call(
        _pass3_kernel,
        grid=(N,),
        in_specs=[tile_spec(Cp), tile_spec(Cp), full_spec(sc2), full_spec(scs), full_spec(shift)],
        out_specs=tile_spec(Cp),
        out_shape=jax.ShapeDtypeStruct((N, H, W, Cp), _BF16),
        compiler_params=cparams,
    )(h2, s0, sc2, scs, shift)

    return out[..., :Co].astype(_F32)           # strip lane padding (XLA-side plumbing)


# ---------------------------- plain-JAX f32 reference ----------------------------

def _conv_ref(x, w_hwio, b, dil):
    y = jax.lax.conv_general_dilated(
        x, w_hwio, window_strides=(1, 1), padding="SAME",
        rhs_dilation=(dil, dil),
        dimension_numbers=("NHWC", "HWIO", "NHWC"))
    return y + b.reshape(1, 1, 1, -1)


def _bn_ref(h, gamma, beta):
    mean = jnp.mean(h, axis=(0, 1, 2), keepdims=True)
    var = jnp.mean((h - mean) ** 2, axis=(0, 1, 2), keepdims=True)
    return ((h - mean) / jnp.sqrt(var + _EPS)) * gamma.reshape(1, 1, 1, -1) \
        + beta.reshape(1, 1, 1, -1)


def resnet_block_ref(x, p, dilation=1):
    Cin = x.shape[-1]
    Co = p["w1"].shape[1]
    relu = lambda v: jnp.maximum(v, 0.0)

    h = relu(_conv_ref(x, p["w1"].reshape(1, 1, Cin, Co), p["b1"], dilation))
    h = relu(_conv_ref(h, p["w2"].reshape(3, 3, Co, Co), p["b2"], dilation))
    h = _bn_ref(h, p["bn1_g"], p["bn1_b"])
    h = relu(_conv_ref(h, p["w3"].reshape(3, 3, Co, Co), p["b3"], dilation))
    h = _bn_ref(h, p["bn2_g"], p["bn2_b"])

    s = relu(_conv_ref(x, p["ws"].reshape(1, 1, Cin, Co), p["bs"], 1))
    s = _bn_ref(s, p["bns_g"], p["bns_b"])
    return h + s


# ------------------------------- param setup ---------------------------------

def make_params(key, cin, cout):
    ks = jax.random.split(key, 16)
    n = lambda k, shape, s=0.2: (s * jax.random.normal(k, shape)).astype(jnp.float32)
    return {
        "w1": n(ks[0], (cin, cout)),        "b1": n(ks[1], (1, cout)),
        "w2": n(ks[2], (9, cout, cout)),    "b2": n(ks[3], (1, cout)),
        "bn1_g": 1.0 + n(ks[4], (1, cout), 0.1), "bn1_b": n(ks[5], (1, cout), 0.1),
        "w3": n(ks[6], (9, cout, cout)),    "b3": n(ks[7], (1, cout)),
        "bn2_g": 1.0 + n(ks[8], (1, cout), 0.1), "bn2_b": n(ks[9], (1, cout), 0.1),
        "ws": n(ks[10], (cin, cout)),       "bs": n(ks[11], (1, cout)),
        "bns_g": 1.0 + n(ks[12], (1, cout), 0.1), "bns_b": n(ks[13], (1, cout), 0.1),
    }


if __name__ == "__main__":
    key = jax.random.PRNGKey(0)
    k_x, k_p = jax.random.split(key)

    N, H, W, Cin, Cout = 2, 16, 16, 4, 8
    x = jax.random.normal(k_x, (N, H, W, Cin), dtype=jnp.float32)
    params = make_params(k_p, Cin, Cout)

    fn = jax.jit(resnet_block, static_argnames=("dilation",))
    for dil in (1, 2):
        out = jax.block_until_ready(fn(x, params, dilation=dil))
        ref = jax.block_until_ready(resnet_block_ref(x, params, dilation=dil))
        assert out.shape == (N, H, W, Cout)
        # bf16 MXU operands / bf16 intermediates (f32 accumulation & BN math) vs pure-f32 reference.
        diff = out - ref
        rel = float(jnp.sqrt(jnp.sum(diff * diff) / jnp.sum(ref * ref)))
        mx = float(jnp.max(jnp.abs(diff)))
        assert rel < 5e-2 and mx < 2.5e-1, \
            f"mismatch (dilation={dil}): rel_rms={rel:.4f} max_abs={mx:.4f}"

    print("KERNEL_OK")
</pallas_src>

<mosaic_0001>
module attributes {stable_mosaic.version = 11 : i64} {
  func.func @_pass1_kernel(%arg0: i32, %arg1: memref<1x16x16x4xbf16, #tpu.memory_space<vmem>>, %arg2: memref<4x256xbf16, #tpu.memory_space<vmem>>, %arg3: memref<1x256xf32, #tpu.memory_space<vmem>>, %arg4: memref<9x128x128xbf16, #tpu.memory_space<vmem>>, %arg5: memref<1x128xf32, #tpu.memory_space<vmem>>, %arg6: memref<1x16x16x128xbf16, #tpu.memory_space<vmem>>, %arg7: memref<1x16x16x128xbf16, #tpu.memory_space<vmem>>, %arg8: memref<1x4x128xf32, #tpu.memory_space<vmem>>, %arg9: memref<1x18x32x128xbf16, #tpu.memory_space<vmem>>) attributes {dimension_semantics = [#tpu.dimension_semantics<parallel>], iteration_bounds = array<i64: 2>, scalar_prefetch = 0 : i64, scratch_operands = 1 : i64, tpu.core_type = #tpu.core_type<tc>, window_params = [{transform_indices = @transform_0, window_bounds = array<i64: 1, 16, 16, 4>}, {pipeline_mode = #tpu.pipeline_mode<synchronous>, transform_indices = @transform_1, window_bounds = array<i64: 4, 256>}, {pipeline_mode = #tpu.pipeline_mode<synchronous>, transform_indices = @transform_2, window_bounds = array<i64: 1, 256>}, {pipeline_mode = #tpu.pipeline_mode<synchronous>, transform_indices = @transform_3, window_bounds = array<i64: 9, 128, 128>}, {pipeline_mode = #tpu.pipeline_mode<synchronous>, transform_indices = @transform_4, window_bounds = array<i64: 1, 128>}, {transform_indices = @transform_5, window_bounds = array<i64: 1, 16, 16, 128>}, {transform_indices = @transform_6, window_bounds = array<i64: 1, 16, 16, 128>}, {transform_indices = @transform_7, window_bounds = array<i64: 1, 4, 128>}]} {
    %cst = arith.constant 0.000000e+00 : bf16
    %0 = vector.broadcast %cst : bf16 to vector<1x1x32x128xbf16>
    %c0 = arith.constant 0 : index
    %c0_0 = arith.constant 0 : index
    %c0_1 = arith.constant 0 : index
    %c0_2 = arith.constant 0 : index
    %1 = vector.load %arg9[%c0, %c0_0, %c0_1, %c0_2] : memref<1x18x32x128xbf16, #tpu.memory_space<vmem>>, vector<1x1x32x128xbf16>
    tpu.vector_store %arg9[%c0, %c0_0, %c0_1, %c0_2], %0 {strides = array<i32>} : memref<1x18x32x128xbf16, #tpu.memory_space<vmem>>, vector<1x1x32x128xbf16>,
    %cst_3 = arith.constant 0.000000e+00 : bf16
    %2 = vector.broadcast %cst_3 : bf16 to vector<1x1x32x128xbf16>
    %c0_4 = arith.constant 0 : index
    %c17 = arith.constant 17 : index
    %c0_5 = arith.constant 0 : index
    %c0_6 = arith.constant 0 : index
    %3 = vector.load %arg9[%c0_4, %c17, %c0_5, %c0_6] : memref<1x18x32x128xbf16, #tpu.memory_space<vmem>>, vector<1x1x32x128xbf16>
    tpu.vector_store %arg9[%c0_4, %c17, %c0_5, %c0_6], %2 {strides = array<i32>} : memref<1x18x32x128xbf16, #tpu.memory_space<vmem>>, vector<1x1x32x128xbf16>,
    %cst_7 = arith.constant 0.000000e+00 : bf16
    %4 = vector.broadcast %cst_7 : bf16 to vector<1x16x8x128xbf16>
    %c0_8 = arith.constant 0 : index
    %c1 = arith.constant 1 : index
    %c0_9 = arith.constant 0 : index
    %c0_10 = arith.constant 0 : index
    %5 = vector.load %arg9[%c0_8, %c1, %c0_9, %c0_10] : memref<1x18x32x128xbf16, #tpu.memory_space<vmem>>, vector<1x16x8x128xbf16>
    tpu.vector_store %arg9[%c0_8, %c1, %c0_9, %c0_10], %4 {strides = array<i32>} : memref<1x18x32x128xbf16, #tpu.memory_space<vmem>>, vector<1x16x8x128xbf16>,
    %cst_11 = arith.constant 0.000000e+00 : bf16
    %6 = vector.broadcast %cst_11 : bf16 to vector<1x16x8x128xbf16>
    %c0_12 = arith.constant 0 : index
    %c1_13 = arith.constant 1 : index
    %c24 = arith.constant 24 : index
    %c0_14 = arith.constant 0 : index
    %7 = vector.load %arg9[%c0_12, %c1_13, %c24, %c0_14] : memref<1x18x32x128xbf16, #tpu.memory_space<vmem>>, vector<1x16x8x128xbf16>
    tpu.vector_store %arg9[%c0_12, %c1_13, %c24, %c0_14], %6 {strides = array<i32>} : memref<1x18x32x128xbf16, #tpu.memory_space<vmem>>, vector<1x16x8x128xbf16>,
    %c0_15 = arith.constant 0 : index
    %c0_16 = arith.constant 0 : index
    %c0_17 = arith.constant 0 : index
    %c0_18 = arith.constant 0 : index
    %8 = vector.load %arg1[%c0_15, %c0_16, %c0_17, %c0_18] : memref<1x16x16x4xbf16, #tpu.memory_space<vmem>>, vector<1x16x16x4xbf16>
    %9 = vector.shape_cast %8 : vector<1x16x16x4xbf16> to vector<256x4xbf16>
    %c0_19 = arith.constant 0 : index
    %c0_20 = arith.constant 0 : index
    %10 = vector.load %arg2[%c0_19, %c0_20] : memref<4x256xbf16, #tpu.memory_space<vmem>>, vector<4x256xbf16>
    %cst_21 = arith.constant dense<0.000000e+00> : vector<256x256xf32>
    %11 = tpu.matmul %9, %10, %cst_21 {dimension_numbers = #tpu.dot_dimension_numbers<[1], [0], [0], [1], [0, 0, 1, 1], [], []>} : vector<256x4xbf16>, vector<4x256xbf16>, vector<256x256xf32> -> vector<256x256xf32>
    %c0_22 = arith.constant 0 : index
    %c0_23 = arith.constant 0 : index
    %12 = vector.load %arg3[%c0_22, %c0_23] : memref<1x256xf32, #tpu.memory_space<vmem>>, vector<1x256xf32>
    %13 = vector.broadcast %12 : vector<1x256xf32> to vector<256x256xf32>
    %14 = arith.addf %11, %13 : vector<256x256xf32>
    %cst_24 = arith.constant 0.000000e+00 : f32
    %15 = vector.broadcast %cst_24 : f32 to vector<256x256xf32>
    %16 = arith.maximumf %14, %15 : vector<256x256xf32>
    %17 = vector.extract_strided_slice %16 {offsets = [0, 0], sizes = [256, 128], strides = [1, 1]} : vector<256x256xf32> to vector<256x128xf32>
    %18 = vector.extract_strided_slice %16 {offsets = [0, 128], sizes = [256, 128], strides = [1, 1]} : vector<256x256xf32> to vector<256x128xf32>
    %19 = vector.shape_cast %17 : vector<256x128xf32> to vector<1x16x16x128xf32>
    %20 = arith.truncf %19 : vector<1x16x16x128xf32> to vector<1x16x16x128xbf16>
    %c0_25 = arith.constant 0 : index
    %c1_26 = arith.constant 1 : index
    %c8 = arith.constant 8 : index
    %c0_27 = arith.constant 0 : index
    %21 = vector.load %arg9[%c0_25, %c1_26, %c8, %c0_27] : memref<1x18x32x128xbf16, #tpu.memory_space<vmem>>, vector<1x16x16x128xbf16>
    tpu.vector_store %arg9[%c0_25, %c1_26, %c8, %c0_27], %20 {strides = array<i32>} : memref<1x18x32x128xbf16, #tpu.memory_space<vmem>>, vector<1x16x16x128xbf16>,
    %c0_28 = arith.constant 0 : index
    %c0_29 = arith.constant 0 : index
    %22 = vector.load %arg5[%c0_28, %c0_29] : memref<1x128xf32, #tpu.memory_space<vmem>>, vector<1x128xf32>
    %cst_30 = arith.constant 0.000000e+00 : f32
    %23 = vector.broadcast %cst_30 : f32 to vector<256x128xf32>
    %c0_31 = arith.constant 0 : index
    %c0_32 = arith.constant 0 : index
    %c7 = arith.constant 7 : index
    %c0_33 = arith.constant 0 : index
    %24 = vector.load %arg9[%c0_31, %c0_32, %c7, %c0_33] : memref<1x18x32x128xbf16, #tpu.memory_space<vmem>>, vector<1x16x16x128xbf16>
    %25 = vector.shape_cast %24 : vector<1x16x16x128xbf16> to vector<16x16x128xbf16>
    %26 = vector.shape_cast %25 : vector<16x16x128xbf16> to vector<256x128xbf16>
    %c0_34 = arith.constant 0 : index
    %c0_35 = arith.constant 0 : index
    %c0_36 = arith.constant 0 : index
    %27 = vector.load %arg4[%c0_34, %c0_35, %c0_36] : memref<9x128x128xbf16, #tpu.memory_space<vmem>>, vector<1x128x128xbf16>
    %28 = vector.shape_cast %27 : vector<1x128x128xbf16> to vector<128x128xbf16>
    %cst_37 = arith.constant dense<0.000000e+00> : vector<256x128xf32>
    %29 = tpu.matmul %26, %28, %cst_37 {dimension_numbers = #tpu.dot_dimension_numbers<[1], [0], [0], [1], [0, 0, 1, 1], [], []>} : vector<256x128xbf16>, vector<128x128xbf16>, vector<256x128xf32> -> vector<256x128xf32>
    %30 = arith.addf %23, %29 : vector<256x128xf32>
    %c0_38 = arith.constant 0 : index
    %c0_39 = arith.constant 0 : index
    %c8_40 = arith.constant 8 : index
    %c0_41 = arith.constant 0 : index
    %31 = vector.load %arg9[%c0_38, %c0_39, %c8_40, %c0_41] : memref<1x18x32x128xbf16, #tpu.memory_space<vmem>>, vector<1x16x16x128xbf16>
    %32 = vector.shape_cast %31 : vector<1x16x16x128xbf16> to vector<16x16x128xbf16>
    %33 = vector.shape_cast %32 : vector<16x16x128xbf16> to vector<256x128xbf16>
    %c1_42 = arith.constant 1 : index
    %c0_43 = arith.constant 0 : index
    %c0_44 = arith.constant 0 : index
    %34 = vector.load %arg4[%c1_42, %c0_43, %c0_44] : memref<9x128x128xbf16, #tpu.memory_space<vmem>>, vector<1x128x128xbf16>
    %35 = vector.shape_cast %34 : vector<1x128x128xbf16> to vector<128x128xbf16>
    %cst_45 = arith.constant dense<0.000000e+00> : vector<256x128xf32>
    %36 = tpu.matmul %33, %35, %cst_45 {dimension_numbers = #tpu.dot_dimension_numbers<[1], [0], [0], [1], [0, 0, 1, 1], [], []>} : vector<256x128xbf16>, vector<128x128xbf16>, vector<256x128xf32> -> vector<256x128xf32>
    %37 = arith.addf %30, %36 : vector<256x128xf32>
    %c0_46 = arith.constant 0 : index
    %c0_47 = arith.constant 0 : index
    %c9 = arith.constant 9 : index
    %c0_48 = arith.constant 0 : index
    %38 = vector.load %arg9[%c0_46, %c0_47, %c9, %c0_48] : memref<1x18x32x128xbf16, #tpu.memory_space<vmem>>, vector<1x16x16x128xbf16>
    %39 = vector.shape_cast %38 : vector<1x16x16x128xbf16> to vector<16x16x128xbf16>
    %40 = vector.shape_cast %39 : vector<16x16x128xbf16> to vector<256x128xbf16>
    %c2 = arith.constant 2 : index
    %c0_49 = arith.constant 0 : index
    %c0_50 = arith.constant 0 : index
    %41 = vector.load %arg4[%c2, %c0_49, %c0_50] : memref<9x128x128xbf16, #tpu.memory_space<vmem>>, vector<1x128x128xbf16>
    %42 = vector.shape_cast %41 : vector<1x128x128xbf16> to vector<128x128xbf16>
    %cst_51 = arith.constant dense<0.000000e+00> : vector<256x128xf32>
    %43 = tpu.matmul %40, %42, %cst_51 {dimension_numbers = #tpu.dot_dimension_numbers<[1], [0], [0], [1], [0, 0, 1, 1], [], []>} : vector<256x128xbf16>, vector<128x128xbf16>, vector<256x128xf32> -> vector<256x128xf32>
    %44 = arith.addf %37, %43 : vector<256x128xf32>
    %c0_52 = arith.constant 0 : index
    %c1_53 = arith.constant 1 : index
    %c7_54 = arith.constant 7 : index
    %c0_55 = arith.constant 0 : index
    %45 = vector.load %arg9[%c0_52, %c1_53, %c7_54, %c0_55] : memref<1x18x32x128xbf16, #tpu.memory_space<vmem>>, vector<1x16x16x128xbf16>
    %46 = vector.shape_cast %45 : vector<1x16x16x128xbf16> to vector<16x16x128xbf16>
    %47 = vector.shape_cast %46 : vector<16x16x128xbf16> to vector<256x128xbf16>
    %c3 = arith.constant 3 : index
    %c0_56 = arith.constant 0 : index
    %c0_57 = arith.constant 0 : index
    %48 = vector.load %arg4[%c3, %c0_56, %c0_57] : memref<9x128x128xbf16, #tpu.memory_space<vmem>>, vector<1x128x128xbf16>
    %49 = vector.shape_cast %48 : vector<1x128x128xbf16> to vector<128x128xbf16>
    %cst_58 = arith.constant dense<0.000000e+00> : vector<256x128xf32>
    %50 = tpu.matmul %47, %49, %cst_58 {dimension_numbers = #tpu.dot_dimension_numbers<[1], [0], [0], [1], [0, 0, 1, 1], [], []>} : vector<256x128xbf16>, vector<128x128xbf16>, vector<256x128xf32> -> vector<256x128xf32>
    %51 = arith.addf %44, %50 : vector<256x128xf32>
    %c0_59 = arith.constant 0 : index
    %c1_60 = arith.constant 1 : index
    %c8_61 = arith.constant 8 : index
    %c0_62 = arith.constant 0 : index
    %52 = vector.load %arg9[%c0_59, %c1_60, %c8_61, %c0_62] : memref<1x18x32x128xbf16, #tpu.memory_space<vmem>>, vector<1x16x16x128xbf16>
    %53 = vector.shape_cast %52 : vector<1x16x16x128xbf16> to vector<16x16x128xbf16>
    %54 = vector.shape_cast %53 : vector<16x16x128xbf16> to vector<256x128xbf16>
    %c4 = arith.constant 4 : index
    %c0_63 = arith.constant 0 : index
    %c0_64 = arith.constant 0 : index
    %55 = vector.load %arg4[%c4, %c0_63, %c0_64] : memref<9x128x128xbf16, #tpu.memory_space<vmem>>, vector<1x128x128xbf16>
    %56 = vector.shape_cast %55 : vector<1x128x128xbf16> to vector<128x128xbf16>
    %cst_65 = arith.constant dense<0.000000e+00> : vector<256x128xf32>
    %57 = tpu.matmul %54, %56, %cst_65 {dimension_numbers = #tpu.dot_dimension_numbers<[1], [0], [0], [1], [0, 0, 1, 1], [], []>} : vector<256x128xbf16>, vector<128x128xbf16>, vector<256x128xf32> -> vector<256x128xf32>
    %58 = arith.addf %51, %57 : vector<256x128xf32>
    %c0_66 = arith.constant 0 : index
    %c1_67 = arith.constant 1 : index
    %c9_68 = arith.constant 9 : index
    %c0_69 = arith.constant 0 : index
    %59 = vector.load %arg9[%c0_66, %c1_67, %c9_68, %c0_69] : memref<1x18x32x128xbf16, #tpu.memory_space<vmem>>, vector<1x16x16x128xbf16>
    %60 = vector.shape_cast %59 : vector<1x16x16x128xbf16> to vector<16x16x128xbf16>
    %61 = vector.shape_cast %60 : vector<16x16x128xbf16> to vector<256x128xbf16>
    %c5 = arith.constant 5 : index
    %c0_70 = arith.constant 0 : index
    %c0_71 = arith.constant 0 : index
    %62 = vector.load %arg4[%c5, %c0_70, %c0_71] : memref<9x128x128xbf16, #tpu.memory_space<vmem>>, vector<1x128x128xbf16>
    %63 = vector.shape_cast %62 : vector<1x128x128xbf16> to vector<128x128xbf16>
    %cst_72 = arith.constant dense<0.000000e+00> : vector<256x128xf32>
    %64 = tpu.matmul %61, %63, %cst_72 {dimension_numbers = #tpu.dot_dimension_numbers<[1], [0], [0], [1], [0, 0, 1, 1], [], []>} : vector<256x128xbf16>, vector<128x128xbf16>, vector<256x128xf32> -> vector<256x128xf32>
    %65 = arith.addf %58, %64 : vector<256x128xf32>
    %c0_73 = arith.constant 0 : index
    %c2_74 = arith.constant 2 : index
    %c7_75 = arith.constant 7 : index
    %c0_76 = arith.constant 0 : index
    %66 = vector.load %arg9[%c0_73, %c2_74, %c7_75, %c0_76] : memref<1x18x32x128xbf16, #tpu.memory_space<vmem>>, vector<1x16x16x128xbf16>
    %67 = vector.shape_cast %66 : vector<1x16x16x128xbf16> to vector<16x16x128xbf16>
    %68 = vector.shape_cast %67 : vector<16x16x128xbf16> to vector<256x128xbf16>
    %c6 = arith.constant 6 : index
    %c0_77 = arith.constant 0 : index
    %c0_78 = arith.constant 0 : index
    %69 = vector.load %arg4[%c6, %c0_77, %c0_78] : memref<9x128x128xbf16, #tpu.memory_space<vmem>>, vector<1x128x128xbf16>
    %70 = vector.shape_cast %69 : vector<1x128x128xbf16> to vector<128x128xbf16>
    %cst_79 = arith.constant dense<0.000000e+00> : vector<256x128xf32>
    %71 = tpu.matmul %68, %70, %cst_79 {dimension_numbers = #tpu.dot_dimension_numbers<[1], [0], [0], [1], [0, 0, 1, 1], [], []>} : vector<256x128xbf16>, vector<128x128xbf16>, vector<256x128xf32> -> vector<256x128xf32>
    %72 = arith.addf %65, %71 : vector<256x128xf32>
    %c0_80 = arith.constant 0 : index
    %c2_81 = arith.constant 2 : index
    %c8_82 = arith.constant 8 : index
    %c0_83 = arith.constant 0 : index
    %73 = vector.load %arg9[%c0_80, %c2_81, %c8_82, %c0_83] : memref<1x18x32x128xbf16, #tpu.memory_space<vmem>>, vector<1x16x16x128xbf16>
    %74 = vector.shape_cast %73 : vector<1x16x16x128xbf16> to vector<16x16x128xbf16>
    %75 = vector.shape_cast %74 : vector<16x16x128xbf16> to vector<256x128xbf16>
    %c7_84 = arith.constant 7 : index
    %c0_85 = arith.constant 0 : index
    %c0_86 = arith.constant 0 : index
    %76 = vector.load %arg4[%c7_84, %c0_85, %c0_86] : memref<9x128x128xbf16, #tpu.memory_space<vmem>>, vector<1x128x128xbf16>
    %77 = vector.shape_cast %76 : vector<1x128x128xbf16> to vector<128x128xbf16>
    %cst_87 = arith.constant dense<0.000000e+00> : vector<256x128xf32>
    %78 = tpu.matmul %75, %77, %cst_87 {dimension_numbers = #tpu.dot_dimension_numbers<[1], [0], [0], [1], [0, 0, 1, 1], [], []>} : vector<256x128xbf16>, vector<128x128xbf16>, vector<256x128xf32> -> vector<256x128xf32>
    %79 = arith.addf %72, %78 : vector<256x128xf32>
    %c0_88 = arith.constant 0 : index
    %c2_89 = arith.constant 2 : index
    %c9_90 = arith.constant 9 : index
    %c0_91 = arith.constant 0 : index
    %80 = vector.load %arg9[%c0_88, %c2_89, %c9_90, %c0_91] : memref<1x18x32x128xbf16, #tpu.memory_space<vmem>>, vector<1x16x16x128xbf16>
    %81 = vector.shape_cast %80 : vector<1x16x16x128xbf16> to vector<16x16x128xbf16>
    %82 = vector.shape_cast %81 : vector<16x16x128xbf16> to vector<256x128xbf16>
    %c8_92 = arith.constant 8 : index
    %c0_93 = arith.constant 0 : index
    %c0_94 = arith.constant 0 : index
    %83 = vector.load %arg4[%c8_92, %c0_93, %c0_94] : memref<9x128x128xbf16, #tpu.memory_space<vmem>>, vector<1x128x128xbf16>
    %84 = vector.shape_cast %83 : vector<1x128x128xbf16> to vector<128x128xbf16>
    %cst_95 = arith.constant dense<0.000000e+00> : vector<256x128xf32>
    %85 = tpu.matmul %82, %84, %cst_95 {dimension_numbers = #tpu.dot_dimension_numbers<[1], [0], [0], [1], [0, 0, 1, 1], [], []>} : vector<256x128xbf16>, vector<128x128xbf16>, vector<256x128xf32> -> vector<256x128xf32>
    %86 = arith.addf %79, %85 : vector<256x128xf32>
    %87 = vector.broadcast %22 : vector<1x128xf32> to vector<256x128xf32>
    %88 = arith.addf %86, %87 : vector<256x128xf32>
    %cst_96 = arith.constant 0.000000e+00 : f32
    %89 = vector.broadcast %cst_96 : f32 to vector<256x128xf32>
    %90 = arith.maximumf %88, %89 : vector<256x128xf32>
    %91 = arith.truncf %90 : vector<256x128xf32> to vector<256x128xbf16>
    %92 = arith.truncf %18 : vector<256x128xf32> to vector<256x128xbf16>
    %93 = vector.shape_cast %91 : vector<256x128xbf16> to vector<1x16x16x128xbf16>
    %c0_97 = arith.constant 0 : index
    %c0_98 = arith.constant 0 : index
    %c0_99 = arith.constant 0 : index
    %c0_100 = arith.constant 0 : index
    %94 = vector.load %arg6[%c0_97, %c0_98, %c0_99, %c0_100] : memref<1x16x16x128xbf16, #tpu.memory_space<vmem>>, vector<1x16x16x128xbf16>
    tpu.vector_store %arg6[%c0_97, %c0_98, %c0_99, %c0_100], %93 {strides = array<i32>} : memref<1x16x16x128xbf16, #tpu.memory_space<vmem>>, vector<1x16x16x128xbf16>,
    %95 = vector.shape_cast %92 : vector<256x128xbf16> to vector<1x16x16x128xbf16>
    %c0_101 = arith.constant 0 : index
    %c0_102 = arith.constant 0 : index
    %c0_103 = arith.constant 0 : index
    %c0_104 = arith.constant 0 : index
    %96 = vector.load %arg7[%c0_101, %c0_102, %c0_103, %c0_104] : memref<1x16x16x128xbf16, #tpu.memory_space<vmem>>, vector<1x16x16x128xbf16>
    tpu.vector_store %arg7[%c0_101, %c0_102, %c0_103, %c0_104], %95 {strides = array<i32>} : memref<1x16x16x128xbf16, #tpu.memory_space<vmem>>, vector<1x16x16x128xbf16>,
    %97 = arith.extf %91 : vector<256x128xbf16> to vector<256x128xf32>
    %98 = arith.extf %92 : vector<256x128xbf16> to vector<256x128xf32>
    %cst_105 = arith.constant dense<0.000000e+00> : vector<128xf32>
    %99 = vector.multi_reduction <add>, %97, %cst_105 [0] : vector<256x128xf32> to vector<128xf32>
    %100 = vector.shape_cast %99 : vector<128xf32> to vector<1x128xf32>
    %101 = arith.mulf %97, %97 : vector<256x128xf32>
    %cst_106 = arith.constant dense<0.000000e+00> : vector<128xf32>
    %102 = vector.multi_reduction <add>, %101, %cst_106 [0] : vector<256x128xf32> to vector<128xf32>
    %103 = vector.shape_cast %102 : vector<128xf32> to vector<1x128xf32>
    %cst_107 = arith.constant dense<0.000000e+00> : vector<128xf32>
    %104 = vector.multi_reduction <add>, %98, %cst_107 [0] : vector<256x128xf32> to vector<128xf32>
    %105 = vector.shape_cast %104 : vector<128xf32> to vector<1x128xf32>
    %106 = arith.mulf %98, %98 : vector<256x128xf32>
    %cst_108 = arith.constant dense<0.000000e+00> : vector<128xf32>
    %107 = vector.multi_reduction <add>, %106, %cst_108 [0] : vector<256x128xf32> to vector<128xf32>
    %108 = vector.shape_cast %107 : vector<128xf32> to vector<1x128xf32>
    %109 = tpu.concatenate %100, %103, %105, %108 in 0 : vector<1x128xf32>, vector<1x128xf32>, vector<1x128xf32>, vector<1x128xf32> -> vector<4x128xf32>
    %110 = vector.shape_cast %109 : vector<4x128xf32> to vector<1x4x128xf32>
    %c0_109 = arith.constant 0 : index
    %c0_110 = arith.constant 0 : index
    %c0_111 = arith.constant 0 : index
    %111 = vector.load %arg8[%c0_109, %c0_110, %c0_111] : memref<1x4x128xf32, #tpu.memory_space<vmem>>, vector<1x4x128xf32>
    tpu.vector_store %arg8[%c0_109, %c0_110, %c0_111], %110 {strides = array<i32>} : memref<1x4x128xf32, #tpu.memory_space<vmem>>, vector<1x4x128xf32>,
    return
  }
  func.func @transform_0(%arg0: i32) -> (i32, i32, i32, i32) {
    %c0_i32 = arith.constant 0 : i32
    %c0_i32_0 = arith.constant 0 : i32
    %c0_i32_1 = arith.constant 0 : i32
    %c0_i32_2 = arith.constant 0 : i32
    return %arg0, %c0_i32, %c0_i32_0, %c0_i32_1 : i32, i32, i32, i32
  }
  func.func @transform_1(%arg0: i32) -> (i32, i32) {
    %c0_i32 = arith.constant 0 : i32
    %c0_i32_0 = arith.constant 0 : i32
    %c0_i32_1 = arith.constant 0 : i32
    return %c0_i32, %c0_i32_0 : i32, i32
  }
  func.func @transform_2(%arg0: i32) -> (i32, i32) {
    %c0_i32 = arith.constant 0 : i32
    %c0_i32_0 = arith.constant 0 : i32
    %c0_i32_1 = arith.constant 0 : i32
    return %c0_i32, %c0_i32_0 : i32, i32
  }
  func.func @transform_3(%arg0: i32) -> (i32, i32, i32) {
    %c0_i32 = arith.constant 0 : i32
    %c0_i32_0 = arith.constant 0 : i32
    %c0_i32_1 = arith.constant 0 : i32
    %c0_i32_2 = arith.constant 0 : i32
    return %c0_i32, %c0_i32_0, %c0_i32_1 : i32, i32, i32
  }
  func.func @transform_4(%arg0: i32) -> (i32, i32) {
    %c0_i32 = arith.constant 0 : i32
    %c0_i32_0 = arith.constant 0 : i32
    %c0_i32_1 = arith.constant 0 : i32
    return %c0_i32, %c0_i32_0 : i32, i32
  }
  func.func @transform_5(%arg0: i32) -> (i32, i32, i32, i32) {
    %c0_i32 = arith.constant 0 : i32
    %c0_i32_0 = arith.constant 0 : i32
    %c0_i32_1 = arith.constant 0 : i32
    %c0_i32_2 = arith.constant 0 : i32
    return %arg0, %c0_i32, %c0_i32_0, %c0_i32_1 : i32, i32, i32, i32
  }
  func.func @transform_6(%arg0: i32) -> (i32, i32, i32, i32) {
    %c0_i32 = arith.constant 0 : i32
    %c0_i32_0 = arith.constant 0 : i32
    %c0_i32_1 = arith.constant 0 : i32
    %c0_i32_2 = arith.constant 0 : i32
    return %arg0, %c0_i32, %c0_i32_0, %c0_i32_1 : i32, i32, i32, i32
  }
  func.func @transform_7(%arg0: i32) -> (i32, i32, i32) {
    %c0_i32 = arith.constant 0 : i32
    %c0_i32_0 = arith.constant 0 : i32
    %c0_i32_1 = arith.constant 0 : i32
    return %arg0, %c0_i32, %c0_i32_0 : i32, i32, i32
  }
}

module attributes {stable_mosaic.version = 11 : i64} {
  func.func @_pass2_kernel(%arg0: i32, %arg1: memref<1x16x16x128xbf16, #tpu.memory_space<vmem>>, %arg2: memref<1x128xf32, #tpu.memory_space<vmem>>, %arg3: memref<1x128xf32, #tpu.memory_space<vmem>>, %arg4: memref<9x128x128xbf16, #tpu.memory_space<vmem>>, %arg5: memref<1x128xf32, #tpu.memory_space<vmem>>, %arg6: memref<1x16x16x128xbf16, #tpu.memory_space<vmem>>, %arg7: memref<1x2x128xf32, #tpu.memory_space<vmem>>, %arg8: memref<1x18x32x128xbf16, #tpu.memory_space<vmem>>) attributes {dimension_semantics = [#tpu.dimension_semantics<parallel>], iteration_bounds = array<i64: 2>, scalar_prefetch = 0 : i64, scratch_operands = 1 : i64, tpu.core_type = #tpu.core_type<tc>, window_params = [{transform_indices = @transform_0, window_bounds = array<i64: 1, 16, 16, 128>}, {pipeline_mode = #tpu.pipeline_mode<synchronous>, transform_indices = @transform_1, window_bounds = array<i64: 1, 128>}, {pipeline_mode = #tpu.pipeline_mode<synchronous>, transform_indices = @transform_2, window_bounds = array<i64: 1, 128>}, {pipeline_mode = #tpu.pipeline_mode<synchronous>, transform_indices = @transform_3, window_bounds = array<i64: 9, 128, 128>}, {pipeline_mode = #tpu.pipeline_mode<synchronous>, transform_indices = @transform_4, window_bounds = array<i64: 1, 128>}, {transform_indices = @transform_5, window_bounds = array<i64: 1, 16, 16, 128>}, {transform_indices = @transform_6, window_bounds = array<i64: 1, 2, 128>}]} {
    %cst = arith.constant 0.000000e+00 : bf16
    %0 = vector.broadcast %cst : bf16 to vector<1x1x32x128xbf16>
    %c0 = arith.constant 0 : index
    %c0_0 = arith.constant 0 : index
    %c0_1 = arith.constant 0 : index
    %c0_2 = arith.constant 0 : index
    %1 = vector.load %arg8[%c0, %c0_0, %c0_1, %c0_2] : memref<1x18x32x128xbf16, #tpu.memory_space<vmem>>, vector<1x1x32x128xbf16>
    tpu.vector_store %arg8[%c0, %c0_0, %c0_1, %c0_2], %0 {strides = array<i32>} : memref<1x18x32x128xbf16, #tpu.memory_space<vmem>>, vector<1x1x32x128xbf16>,
    %cst_3 = arith.constant 0.000000e+00 : bf16
    %2 = vector.broadcast %cst_3 : bf16 to vector<1x1x32x128xbf16>
    %c0_4 = arith.constant 0 : index
    %c17 = arith.constant 17 : index
    %c0_5 = arith.constant 0 : index
    %c0_6 = arith.constant 0 : index
    %3 = vector.load %arg8[%c0_4, %c17, %c0_5, %c0_6] : memref<1x18x32x128xbf16, #tpu.memory_space<vmem>>, vector<1x1x32x128xbf16>
    tpu.vector_store %arg8[%c0_4, %c17, %c0_5, %c0_6], %2 {strides = array<i32>} : memref<1x18x32x128xbf16, #tpu.memory_space<vmem>>, vector<1x1x32x128xbf16>,
    %cst_7 = arith.constant 0.000000e+00 : bf16
    %4 = vector.broadcast %cst_7 : bf16 to vector<1x16x8x128xbf16>
    %c0_8 = arith.constant 0 : index
    %c1 = arith.constant 1 : index
    %c0_9 = arith.constant 0 : index
    %c0_10 = arith.constant 0 : index
    %5 = vector.load %arg8[%c0_8, %c1, %c0_9, %c0_10] : memref<1x18x32x128xbf16, #tpu.memory_space<vmem>>, vector<1x16x8x128xbf16>
    tpu.vector_store %arg8[%c0_8, %c1, %c0_9, %c0_10], %4 {strides = array<i32>} : memref<1x18x32x128xbf16, #tpu.memory_space<vmem>>, vector<1x16x8x128xbf16>,
    %cst_11 = arith.constant 0.000000e+00 : bf16
    %6 = vector.broadcast %cst_11 : bf16 to vector<1x16x8x128xbf16>
    %c0_12 = arith.constant 0 : index
    %c1_13 = arith.constant 1 : index
    %c24 = arith.constant 24 : index
    %c0_14 = arith.constant 0 : index
    %7 = vector.load %arg8[%c0_12, %c1_13, %c24, %c0_14] : memref<1x18x32x128xbf16, #tpu.memory_space<vmem>>, vector<1x16x8x128xbf16>
    tpu.vector_store %arg8[%c0_12, %c1_13, %c24, %c0_14], %6 {strides = array<i32>} : memref<1x18x32x128xbf16, #tpu.memory_space<vmem>>, vector<1x16x8x128xbf16>,
    %c0_15 = arith.constant 0 : index
    %c0_16 = arith.constant 0 : index
    %c0_17 = arith.constant 0 : index
    %c0_18 = arith.constant 0 : index
    %8 = vector.load %arg1[%c0_15, %c0_16, %c0_17, %c0_18] : memref<1x16x16x128xbf16, #tpu.memory_space<vmem>>, vector<1x16x16x128xbf16>
    %9 = vector.shape_cast %8 : vector<1x16x16x128xbf16> to vector<256x128xbf16>
    %10 = arith.extf %9 : vector<256x128xbf16> to vector<256x128xf32>
    %c0_19 = arith.constant 0 : index
    %c0_20 = arith.constant 0 : index
    %11 = vector.load %arg2[%c0_19, %c0_20] : memref<1x128xf32, #tpu.memory_space<vmem>>, vector<1x128xf32>
    %12 = vector.broadcast %11 : vector<1x128xf32> to vector<256x128xf32>
    %13 = arith.mulf %10, %12 : vector<256x128xf32>
    %c0_21 = arith.constant 0 : index
    %c0_22 = arith.constant 0 : index
    %14 = vector.load %arg3[%c0_21, %c0_22] : memref<1x128xf32, #tpu.memory_space<vmem>>, vector<1x128xf32>
    %15 = vector.broadcast %14 : vector<1x128xf32> to vector<256x128xf32>
    %16 = arith.addf %13, %15 : vector<256x128xf32>
    %17 = vector.shape_cast %16 : vector<256x128xf32> to vector<1x16x16x128xf32>
    %18 = arith.truncf %17 : vector<1x16x16x128xf32> to vector<1x16x16x128xbf16>
    %c0_23 = arith.constant 0 : index
    %c1_24 = arith.constant 1 : index
    %c8 = arith.constant 8 : index
    %c0_25 = arith.constant 0 : index
    %19 = vector.load %arg8[%c0_23, %c1_24, %c8, %c0_25] : memref<1x18x32x128xbf16, #tpu.memory_space<vmem>>, vector<1x16x16x128xbf16>
    tpu.vector_store %arg8[%c0_23, %c1_24, %c8, %c0_25], %18 {strides = array<i32>} : memref<1x18x32x128xbf16, #tpu.memory_space<vmem>>, vector<1x16x16x128xbf16>,
    %c0_26 = arith.constant 0 : index
    %c0_27 = arith.constant 0 : index
    %20 = vector.load %arg5[%c0_26, %c0_27] : memref<1x128xf32, #tpu.memory_space<vmem>>, vector<1x128xf32>
    %cst_28 = arith.constant 0.000000e+00 : f32
    %21 = vector.broadcast %cst_28 : f32 to vector<256x128xf32>
    %c0_29 = arith.constant 0 : index
    %c0_30 = arith.constant 0 : index
    %c7 = arith.constant 7 : index
    %c0_31 = arith.constant 0 : index
    %22 = vector.load %arg8[%c0_29, %c0_30, %c7, %c0_31] : memref<1x18x32x128xbf16, #tpu.memory_space<vmem>>, vector<1x16x16x128xbf16>
    %23 = vector.shape_cast %22 : vector<1x16x16x128xbf16> to vector<16x16x128xbf16>
    %24 = vector.shape_cast %23 : vector<16x16x128xbf16> to vector<256x128xbf16>
    %c0_32 = arith.constant 0 : index
    %c0_33 = arith.constant 0 : index
    %c0_34 = arith.constant 0 : index
    %25 = vector.load %arg4[%c0_32, %c0_33, %c0_34] : memref<9x128x128xbf16, #tpu.memory_space<vmem>>, vector<1x128x128xbf16>
    %26 = vector.shape_cast %25 : vector<1x128x128xbf16> to vector<128x128xbf16>
    %cst_35 = arith.constant dense<0.000000e+00> : vector<256x128xf32>
    %27 = tpu.matmul %24, %26, %cst_35 {dimension_numbers = #tpu.dot_dimension_numbers<[1], [0], [0], [1], [0, 0, 1, 1], [], []>} : vector<256x128xbf16>, vector<128x128xbf16>, vector<256x128xf32> -> vector<256x128xf32>
    %28 = arith.addf %21, %27 : vector<256x128xf32>
    %c0_36 = arith.constant 0 : index
    %c0_37 = arith.constant 0 : index
    %c8_38 = arith.constant 8 : index
    %c0_39 = arith.constant 0 : index
    %29 = vector.load %arg8[%c0_36, %c0_37, %c8_38, %c0_39] : memref<1x18x32x128xbf16, #tpu.memory_space<vmem>>, vector<1x16x16x128xbf16>
    %30 = vector.shape_cast %29 : vector<1x16x16x128xbf16> to vector<16x16x128xbf16>
    %31 = vector.shape_cast %30 : vector<16x16x128xbf16> to vector<256x128xbf16>
    %c1_40 = arith.constant 1 : index
    %c0_41 = arith.constant 0 : index
    %c0_42 = arith.constant 0 : index
    %32 = vector.load %arg4[%c1_40, %c0_41, %c0_42] : memref<9x128x128xbf16, #tpu.memory_space<vmem>>, vector<1x128x128xbf16>
    %33 = vector.shape_cast %32 : vector<1x128x128xbf16> to vector<128x128xbf16>
    %cst_43 = arith.constant dense<0.000000e+00> : vector<256x128xf32>
    %34 = tpu.matmul %31, %33, %cst_43 {dimension_numbers = #tpu.dot_dimension_numbers<[1], [0], [0], [1], [0, 0, 1, 1], [], []>} : vector<256x128xbf16>, vector<128x128xbf16>, vector<256x128xf32> -> vector<256x128xf32>
    %35 = arith.addf %28, %34 : vector<256x128xf32>
    %c0_44 = arith.constant 0 : index
    %c0_45 = arith.constant 0 : index
    %c9 = arith.constant 9 : index
    %c0_46 = arith.constant 0 : index
    %36 = vector.load %arg8[%c0_44, %c0_45, %c9, %c0_46] : memref<1x18x32x128xbf16, #tpu.memory_space<vmem>>, vector<1x16x16x128xbf16>
    %37 = vector.shape_cast %36 : vector<1x16x16x128xbf16> to vector<16x16x128xbf16>
    %38 = vector.shape_cast %37 : vector<16x16x128xbf16> to vector<256x128xbf16>
    %c2 = arith.constant 2 : index
    %c0_47 = arith.constant 0 : index
    %c0_48 = arith.constant 0 : index
    %39 = vector.load %arg4[%c2, %c0_47, %c0_48] : memref<9x128x128xbf16, #tpu.memory_space<vmem>>, vector<1x128x128xbf16>
    %40 = vector.shape_cast %39 : vector<1x128x128xbf16> to vector<128x128xbf16>
    %cst_49 = arith.constant dense<0.000000e+00> : vector<256x128xf32>
    %41 = tpu.matmul %38, %40, %cst_49 {dimension_numbers = #tpu.dot_dimension_numbers<[1], [0], [0], [1], [0, 0, 1, 1], [], []>} : vector<256x128xbf16>, vector<128x128xbf16>, vector<256x128xf32> -> vector<256x128xf32>
    %42 = arith.addf %35, %41 : vector<256x128xf32>
    %c0_50 = arith.constant 0 : index
    %c1_51 = arith.constant 1 : index
    %c7_52 = arith.constant 7 : index
    %c0_53 = arith.constant 0 : index
    %43 = vector.load %arg8[%c0_50, %c1_51, %c7_52, %c0_53] : memref<1x18x32x128xbf16, #tpu.memory_space<vmem>>, vector<1x16x16x128xbf16>
    %44 = vector.shape_cast %43 : vector<1x16x16x128xbf16> to vector<16x16x128xbf16>
    %45 = vector.shape_cast %44 : vector<16x16x128xbf16> to vector<256x128xbf16>
    %c3 = arith.constant 3 : index
    %c0_54 = arith.constant 0 : index
    %c0_55 = arith.constant 0 : index
    %46 = vector.load %arg4[%c3, %c0_54, %c0_55] : memref<9x128x128xbf16, #tpu.memory_space<vmem>>, vector<1x128x128xbf16>
    %47 = vector.shape_cast %46 : vector<1x128x128xbf16> to vector<128x128xbf16>
    %cst_56 = arith.constant dense<0.000000e+00> : vector<256x128xf32>
    %48 = tpu.matmul %45, %47, %cst_56 {dimension_numbers = #tpu.dot_dimension_numbers<[1], [0], [0], [1], [0, 0, 1, 1], [], []>} : vector<256x128xbf16>, vector<128x128xbf16>, vector<256x128xf32> -> vector<256x128xf32>
    %49 = arith.addf %42, %48 : vector<256x128xf32>
    %c0_57 = arith.constant 0 : index
    %c1_58 = arith.constant 1 : index
    %c8_59 = arith.constant 8 : index
    %c0_60 = arith.constant 0 : index
    %50 = vector.load %arg8[%c0_57, %c1_58, %c8_59, %c0_60] : memref<1x18x32x128xbf16, #tpu.memory_space<vmem>>, vector<1x16x16x128xbf16>
    %51 = vector.shape_cast %50 : vector<1x16x16x128xbf16> to vector<16x16x128xbf16>
    %52 = vector.shape_cast %51 : vector<16x16x128xbf16> to vector<256x128xbf16>
    %c4 = arith.constant 4 : index
    %c0_61 = arith.constant 0 : index
    %c0_62 = arith.constant 0 : index
    %53 = vector.load %arg4[%c4, %c0_61, %c0_62] : memref<9x128x128xbf16, #tpu.memory_space<vmem>>, vector<1x128x128xbf16>
    %54 = vector.shape_cast %53 : vector<1x128x128xbf16> to vector<128x128xbf16>
    %cst_63 = arith.constant dense<0.000000e+00> : vector<256x128xf32>
    %55 = tpu.matmul %52, %54, %cst_63 {dimension_numbers = #tpu.dot_dimension_numbers<[1], [0], [0], [1], [0, 0, 1, 1], [], []>} : vector<256x128xbf16>, vector<128x128xbf16>, vector<256x128xf32> -> vector<256x128xf32>
    %56 = arith.addf %49, %55 : vector<256x128xf32>
    %c0_64 = arith.constant 0 : index
    %c1_65 = arith.constant 1 : index
    %c9_66 = arith.constant 9 : index
    %c0_67 = arith.constant 0 : index
    %57 = vector.load %arg8[%c0_64, %c1_65, %c9_66, %c0_67] : memref<1x18x32x128xbf16, #tpu.memory_space<vmem>>, vector<1x16x16x128xbf16>
    %58 = vector.shape_cast %57 : vector<1x16x16x128xbf16> to vector<16x16x128xbf16>
    %59 = vector.shape_cast %58 : vector<16x16x128xbf16> to vector<256x128xbf16>
    %c5 = arith.constant 5 : index
    %c0_68 = arith.constant 0 : index
    %c0_69 = arith.constant 0 : index
    %60 = vector.load %arg4[%c5, %c0_68, %c0_69] : memref<9x128x128xbf16, #tpu.memory_space<vmem>>, vector<1x128x128xbf16>
    %61 = vector.shape_cast %60 : vector<1x128x128xbf16> to vector<128x128xbf16>
    %cst_70 = arith.constant dense<0.000000e+00> : vector<256x128xf32>
    %62 = tpu.matmul %59, %61, %cst_70 {dimension_numbers = #tpu.dot_dimension_numbers<[1], [0], [0], [1], [0, 0, 1, 1], [], []>} : vector<256x128xbf16>, vector<128x128xbf16>, vector<256x128xf32> -> vector<256x128xf32>
    %63 = arith.addf %56, %62 : vector<256x128xf32>
    %c0_71 = arith.constant 0 : index
    %c2_72 = arith.constant 2 : index
    %c7_73 = arith.constant 7 : index
    %c0_74 = arith.constant 0 : index
    %64 = vector.load %arg8[%c0_71, %c2_72, %c7_73, %c0_74] : memref<1x18x32x128xbf16, #tpu.memory_space<vmem>>, vector<1x16x16x128xbf16>
    %65 = vector.shape_cast %64 : vector<1x16x16x128xbf16> to vector<16x16x128xbf16>
    %66 = vector.shape_cast %65 : vector<16x16x128xbf16> to vector<256x128xbf16>
    %c6 = arith.constant 6 : index
    %c0_75 = arith.constant 0 : index
    %c0_76 = arith.constant 0 : index
    %67 = vector.load %arg4[%c6, %c0_75, %c0_76] : memref<9x128x128xbf16, #tpu.memory_space<vmem>>, vector<1x128x128xbf16>
    %68 = vector.shape_cast %67 : vector<1x128x128xbf16> to vector<128x128xbf16>
    %cst_77 = arith.constant dense<0.000000e+00> : vector<256x128xf32>
    %69 = tpu.matmul %66, %68, %cst_77 {dimension_numbers = #tpu.dot_dimension_numbers<[1], [0], [0], [1], [0, 0, 1, 1], [], []>} : vector<256x128xbf16>, vector<128x128xbf16>, vector<256x128xf32> -> vector<256x128xf32>
    %70 = arith.addf %63, %69 : vector<256x128xf32>
    %c0_78 = arith.constant 0 : index
    %c2_79 = arith.constant 2 : index
    %c8_80 = arith.constant 8 : index
    %c0_81 = arith.constant 0 : index
    %71 = vector.load %arg8[%c0_78, %c2_79, %c8_80, %c0_81] : memref<1x18x32x128xbf16, #tpu.memory_space<vmem>>, vector<1x16x16x128xbf16>
    %72 = vector.shape_cast %71 : vector<1x16x16x128xbf16> to vector<16x16x128xbf16>
    %73 = vector.shape_cast %72 : vector<16x16x128xbf16> to vector<256x128xbf16>
    %c7_82 = arith.constant 7 : index
    %c0_83 = arith.constant 0 : index
    %c0_84 = arith.constant 0 : index
    %74 = vector.load %arg4[%c7_82, %c0_83, %c0_84] : memref<9x128x128xbf16, #tpu.memory_space<vmem>>, vector<1x128x128xbf16>
    %75 = vector.shape_cast %74 : vector<1x128x128xbf16> to vector<128x128xbf16>
    %cst_85 = arith.constant dense<0.000000e+00> : vector<256x128xf32>
    %76 = tpu.matmul %73, %75, %cst_85 {dimension_numbers = #tpu.dot_dimension_numbers<[1], [0], [0], [1], [0, 0, 1, 1], [], []>} : vector<256x128xbf16>, vector<128x128xbf16>, vector<256x128xf32> -> vector<256x128xf32>
    %77 = arith.addf %70, %76 : vector<256x128xf32>
    %c0_86 = arith.constant 0 : index
    %c2_87 = arith.constant 2 : index
    %c9_88 = arith.constant 9 : index
    %c0_89 = arith.constant 0 : index
    %78 = vector.load %arg8[%c0_86, %c2_87, %c9_88, %c0_89] : memref<1x18x32x128xbf16, #tpu.memory_space<vmem>>, vector<1x16x16x128xbf16>
    %79 = vector.shape_cast %78 : vector<1x16x16x128xbf16> to vector<16x16x128xbf16>
    %80 = vector.shape_cast %79 : vector<16x16x128xbf16> to vector<256x128xbf16>
    %c8_90 = arith.constant 8 : index
    %c0_91 = arith.constant 0 : index
    %c0_92 = arith.constant 0 : index
    %81 = vector.load %arg4[%c8_90, %c0_91, %c0_92] : memref<9x128x128xbf16, #tpu.memory_space<vmem>>, vector<1x128x128xbf16>
    %82 = vector.shape_cast %81 : vector<1x128x128xbf16> to vector<128x128xbf16>
    %cst_93 = arith.constant dense<0.000000e+00> : vector<256x128xf32>
    %83 = tpu.matmul %80, %82, %cst_93 {dimension_numbers = #tpu.dot_dimension_numbers<[1], [0], [0], [1], [0, 0, 1, 1], [], []>} : vector<256x128xbf16>, vector<128x128xbf16>, vector<256x128xf32> -> vector<256x128xf32>
    %84 = arith.addf %77, %83 : vector<256x128xf32>
    %85 = vector.broadcast %20 : vector<1x128xf32> to vector<256x128xf32>
    %86 = arith.addf %84, %85 : vector<256x128xf32>
    %cst_94 = arith.constant 0.000000e+00 : f32
    %87 = vector.broadcast %cst_94 : f32 to vector<256x128xf32>
    %88 = arith.maximumf %86, %87 : vector<256x128xf32>
    %89 = arith.truncf %88 : vector<256x128xf32> to vector<256x128xbf16>
    %90 = vector.shape_cast %89 : vector<256x128xbf16> to vector<1x16x16x128xbf16>
    %c0_95 = arith.constant 0 : index
    %c0_96 = arith.constant 0 : index
    %c0_97 = arith.constant 0 : index
    %c0_98 = arith.constant 0 : index
    %91 = vector.load %arg6[%c0_95, %c0_96, %c0_97, %c0_98] : memref<1x16x16x128xbf16, #tpu.memory_space<vmem>>, vector<1x16x16x128xbf16>
    tpu.vector_store %arg6[%c0_95, %c0_96, %c0_97, %c0_98], %90 {strides = array<i32>} : memref<1x16x16x128xbf16, #tpu.memory_space<vmem>>, vector<1x16x16x128xbf16>,
    %92 = arith.extf %89 : vector<256x128xbf16> to vector<256x128xf32>
    %cst_99 = arith.constant dense<0.000000e+00> : vector<128xf32>
    %93 = vector.multi_reduction <add>, %92, %cst_99 [0] : vector<256x128xf32> to vector<128xf32>
    %94 = vector.shape_cast %93 : vector<128xf32> to vector<1x128xf32>
    %95 = arith.mulf %92, %92 : vector<256x128xf32>
    %cst_100 = arith.constant dense<0.000000e+00> : vector<128xf32>
    %96 = vector.multi_reduction <add>, %95, %cst_100 [0] : vector<256x128xf32> to vector<128xf32>
    %97 = vector.shape_cast %96 : vector<128xf32> to vector<1x128xf32>
    %98 = tpu.concatenate %94, %97 in 0 : vector<1x128xf32>, vector<1x128xf32> -> vector<2x128xf32>
    %99 = vector.shape_cast %98 : vector<2x128xf32> to vector<1x2x128xf32>
    %c0_101 = arith.constant 0 : index
    %c0_102 = arith.constant 0 : index
    %c0_103 = arith.constant 0 : index
    %100 = vector.load %arg7[%c0_101, %c0_102, %c0_103] : memref<1x2x128xf32, #tpu.memory_space<vmem>>, vector<1x2x128xf32>
    tpu.vector_store %arg7[%c0_101, %c0_102, %c0_103], %99 {strides = array<i32>} : memref<1x2x128xf32, #tpu.memory_space<vmem>>, vector<1x2x128xf32>,
    return
  }
  func.func @transform_0(%arg0: i32) -> (i32, i32, i32, i32) {
    %c0_i32 = arith.constant 0 : i32
    %c0_i32_0 = arith.constant 0 : i32
    %c0_i32_1 = arith.constant 0 : i32
    %c0_i32_2 = arith.constant 0 : i32
    return %arg0, %c0_i32, %c0_i32_0, %c0_i32_1 : i32, i32, i32, i32
  }
  func.func @transform_1(%arg0: i32) -> (i32, i32) {
    %c0_i32 = arith.constant 0 : i32
    %c0_i32_0 = arith.constant 0 : i32
    %c0_i32_1 = arith.constant 0 : i32
    return %c0_i32, %c0_i32_0 : i32, i32
  }
  func.func @transform_2(%arg0: i32) -> (i32, i32) {
    %c0_i32 = arith.constant 0 : i32
    %c0_i32_0 = arith.constant 0 : i32
    %c0_i32_1 = arith.constant 0 : i32
    return %c0_i32, %c0_i32_0 : i32, i32
  }
  func.func @transform_3(%arg0: i32) -> (i32, i32, i32) {
    %c0_i32 = arith.constant 0 : i32
    %c0_i32_0 = arith.constant 0 : i32
    %c0_i32_1 = arith.constant 0 : i32
    %c0_i32_2 = arith.constant 0 : i32
    return %c0_i32, %c0_i32_0, %c0_i32_1 : i32, i32, i32
  }
  func.func @transform_4(%arg0: i32) -> (i32, i32) {
    %c0_i32 = arith.constant 0 : i32
    %c0_i32_0 = arith.constant 0 : i32
    %c0_i32_1 = arith.constant 0 : i32
    return %c0_i32, %c0_i32_0 : i32, i32
  }
  func.func @transform_5(%arg0: i32) -> (i32, i32, i32, i32) {
    %c0_i32 = arith.constant 0 : i32
    %c0_i32_0 = arith.constant 0 : i32
    %c0_i32_1 = arith.constant 0 : i32
    %c0_i32_2 = arith.constant 0 : i32
    return %arg0, %c0_i32, %c0_i32_0, %c0_i32_1 : i32, i32, i32, i32
  }
  func.func @transform_6(%arg0: i32) -> (i32, i32, i32) {
    %c0_i32 = arith.constant 0 : i32
    %c0_i32_0 = arith.constant 0 : i32
    %c0_i32_1 = arith.constant 0 : i32
    return %arg0, %c0_i32, %c0_i32_0 : i32, i32, i32
  }
}

module attributes {stable_mosaic.version = 11 : i64} {
  func.func @_pass3_kernel(%arg0: i32, %arg1: memref<1x16x16x128xbf16, #tpu.memory_space<vmem>>, %arg2: memref<1x16x16x128xbf16, #tpu.memory_space<vmem>>, %arg3: memref<1x128xf32, #tpu.memory_space<vmem>>, %arg4: memref<1x128xf32, #tpu.memory_space<vmem>>, %arg5: memref<1x128xf32, #tpu.memory_space<vmem>>, %arg6: memref<1x16x16x128xbf16, #tpu.memory_space<vmem>>) attributes {dimension_semantics = [#tpu.dimension_semantics<parallel>], iteration_bounds = array<i64: 2>, scalar_prefetch = 0 : i64, scratch_operands = 0 : i64, tpu.core_type = #tpu.core_type<tc>, window_params = [{transform_indices = @transform_0, window_bounds = array<i64: 1, 16, 16, 128>}, {transform_indices = @transform_1, window_bounds = array<i64: 1, 16, 16, 128>}, {pipeline_mode = #tpu.pipeline_mode<synchronous>, transform_indices = @transform_2, window_bounds = array<i64: 1, 128>}, {pipeline_mode = #tpu.pipeline_mode<synchronous>, transform_indices = @transform_3, window_bounds = array<i64: 1, 128>}, {pipeline_mode = #tpu.pipeline_mode<synchronous>, transform_indices = @transform_4, window_bounds = array<i64: 1, 128>}, {transform_indices = @transform_5, window_bounds = array<i64: 1, 16, 16, 128>}]} {
    %c0 = arith.constant 0 : index
    %c0_0 = arith.constant 0 : index
    %c0_1 = arith.constant 0 : index
    %c0_2 = arith.constant 0 : index
    %0 = vector.load %arg1[%c0, %c0_0, %c0_1, %c0_2] : memref<1x16x16x128xbf16, #tpu.memory_space<vmem>>, vector<1x16x16x128xbf16>
    %1 = vector.shape_cast %0 : vector<1x16x16x128xbf16> to vector<256x128xbf16>
    %2 = arith.extf %1 : vector<256x128xbf16> to vector<256x128xf32>
    %c0_3 = arith.constant 0 : index
    %c0_4 = arith.constant 0 : index
    %c0_5 = arith.constant 0 : index
    %c0_6 = arith.constant 0 : index
    %3 = vector.load %arg2[%c0_3, %c0_4, %c0_5, %c0_6] : memref<1x16x16x128xbf16, #tpu.memory_space<vmem>>, vector<1x16x16x128xbf16>
    %4 = vector.shape_cast %3 : vector<1x16x16x128xbf16> to vector<256x128xbf16>
    %5 = arith.extf %4 : vector<256x128xbf16> to vector<256x128xf32>
    %c0_7 = arith.constant 0 : index
    %c0_8 = arith.constant 0 : index
    %6 = vector.load %arg3[%c0_7, %c0_8] : memref<1x128xf32, #tpu.memory_space<vmem>>, vector<1x128xf32>
    %7 = vector.broadcast %6 : vector<1x128xf32> to vector<256x128xf32>
    %8 = arith.mulf %2, %7 : vector<256x128xf32>
    %c0_9 = arith.constant 0 : index
    %c0_10 = arith.constant 0 : index
    %9 = vector.load %arg4[%c0_9, %c0_10] : memref<1x128xf32, #tpu.memory_space<vmem>>, vector<1x128xf32>
    %10 = vector.broadcast %9 : vector<1x128xf32> to vector<256x128xf32>
    %11 = arith.mulf %5, %10 : vector<256x128xf32>
    %12 = arith.addf %8, %11 : vector<256x128xf32>
    %c0_11 = arith.constant 0 : index
    %c0_12 = arith.constant 0 : index
    %13 = vector.load %arg5[%c0_11, %c0_12] : memref<1x128xf32, #tpu.memory_space<vmem>>, vector<1x128xf32>
    %14 = vector.broadcast %13 : vector<1x128xf32> to vector<256x128xf32>
    %15 = arith.addf %12, %14 : vector<256x128xf32>
    %16 = vector.shape_cast %15 : vector<256x128xf32> to vector<1x16x16x128xf32>
    %17 = arith.truncf %16 : vector<1x16x16x128xf32> to vector<1x16x16x128xbf16>
    %c0_13 = arith.constant 0 : index
    %c0_14 = arith.constant 0 : index
    %c0_15 = arith.constant 0 : index
    %c0_16 = arith.constant 0 : index
    %18 = vector.load %arg6[%c0_13, %c0_14, %c0_15, %c0_16] : memref<1x16x16x128xbf16, #tpu.memory_space<vmem>>, vector<1x16x16x128xbf16>
    tpu.vector_store %arg6[%c0_13, %c0_14, %c0_15, %c0_16], %17 {strides = array<i32>} : memref<1x16x16x128xbf16, #tpu.memory_space<vmem>>, vector<1x16x16x128xbf16>,
    return
  }
  func.func @transform_0(%arg0: i32) -> (i32, i32, i32, i32) {
    %c0_i32 = arith.constant 0 : i32
    %c0_i32_0 = arith.constant 0 : i32
    %c0_i32_1 = arith.constant 0 : i32
    %c0_i32_2 = arith.constant 0 : i32
    return %arg0, %c0_i32, %c0_i32_0, %c0_i32_1 : i32, i32, i32, i32
  }
  func.func @transform_1(%arg0: i32) -> (i32, i32, i32, i32) {
    %c0_i32 = arith.constant 0 : i32
    %c0_i32_0 = arith.constant 0 : i32
    %c0_i32_1 = arith.constant 0 : i32
    %c0_i32_2 = arith.constant 0 : i32
    return %arg0, %c0_i32, %c0_i32_0, %c0_i32_1 : i32, i32, i32, i32
  }
  func.func @transform_2(%arg0: i32) -> (i32, i32) {
    %c0_i32 = arith.constant 0 : i32
    %c0_i32_0 = arith.constant 0 : i32
    %c0_i32_1 = arith.constant 0 : i32
    return %c0_i32, %c0_i32_0 : i32, i32
  }
  func.func @transform_3(%arg0: i32) -> (i32, i32) {
    %c0_i32 = arith.constant 0 : i32
    %c0_i32_0 = arith.constant 0 : i32
    %c0_i32_1 = arith.constant 0 : i32
    return %c0_i32, %c0_i32_0 : i32, i32
  }
  func.func @transform_4(%arg0: i32) -> (i32, i32) {
    %c0_i32 = arith.constant 0 : i32
    %c0_i32_0 = arith.constant 0 : i32
    %c0_i32_1 = arith.constant 0 : i32
    return %c0_i32, %c0_i32_0 : i32, i32
  }
  func.func @transform_5(%arg0: i32) -> (i32, i32, i32, i32) {
    %c0_i32 = arith.constant 0 : i32
    %c0_i32_0 = arith.constant 0 : i32
    %c0_i32_1 = arith.constant 0 : i32
    %c0_i32_2 = arith.constant 0 : i32
    return %arg0, %c0_i32, %c0_i32_0, %c0_i32_1 : i32, i32, i32, i32
  }
}

</mosaic_0001>

<bundles_post_ra>
// kernel: resnet_block.5
= control target key start
LH: loop header
LB: loop body
LE: loop exit
PB: predicated region body
PF: predicated region fallthrough
CT: control target
= control target key end

     0   :  { %s1131_s18 = smov 0   ;;  %s1321_s0 = inlined_call_operand.vmem [shape: bf16[2,16,16,128], index: 0, kind: input, shape index: {}]   ;;  %s1322_s1 = inlined_call_operand.vmem [shape: bf16[2,16,16,128], index: 1, kind: input, shape index: {}]   ;;  %s1323_s2 = inlined_call_operand.vmem [shape: f32[1,128], index: 2, kind: input, shape index: {}]   ;;  %s1324_s3 = inlined_call_operand.vmem [shape: f32[1,128], index: 3, kind: input, shape index: {}]   ;;  %s1325_s4 = inlined_call_operand.vmem [shape: f32[1,128], index: 4, kind: input, shape index: {}]   ;;  %s1326_s5 = inlined_call_operand.vmem [shape: bf16[2,16,16,128], index: 5, kind: output, shape index: {}]  }
   0x1 LB: > { %s749_s19 = sadd.s32 4294967295, %s1099_s18   ;;  %p753_p0 = scmp.ge.s32.totalorder %s1099_s18, 1  ;;  %s1099_s18 = sphi %s1131_s18, %s15_s18  }
   0x2   : > { %p197_p1 = scmp.lt.s32.totalorder %s1099_s18, 3 }
   0x4   : > { %p198_p2 = pnand %p753_p0, %p197_p1 }
   0x5   : > { %p230_p3 = scmp.lt.s32.totalorder (!%p198_p2), %s749_s19, 1  ;;  %v1156_v0 = vld [vmem:[%s1323_s2] ss:$0 sm:$0xff] (!%p198_p2) }
   0x6   : > { %201 = sbr.rel (%p198_p2) target bundleno = 76 (0x4c), region = 40  ;;  %v1161_v1 = vld [vmem:[%s1324_s3] ss:$0 sm:$0xff] (!%p198_p2) }
   0x7   : > { %v1176_v20 = vld [vmem:[%s1325_s4] ss:$0 sm:$0xff] (!%p198_p2) }
   0xd   : > { %s1328_s19 = smov (!%p230_p3, %s749_s19), 1 }
   0xe   : > { %s1139_s20 = sshll.u32 %s1328_s19, 7 }
   0xf   : > { %s1145_s23 = scalar_lea.vmem %s1321_s0, %s1139_s20  ;;  %s1151_s26 = scalar_lea.vmem %s1322_s1, %s1139_s20 }
  0x10   : > { %v833_v2 = vld [vmem:[%s1145_s23] sm:$0xff]   ;;  %v1040_v4 = vld [vmem:[%s1145_s23 + $0x8] sm:$0xff]   ;;  %v1041_v14 = vld [vmem:[%s1145_s23 + $0x10] sm:$0xff]   ;;  %s1192_s10 = scalar_lea.vmem %s1326_s5, %s1139_s20 }
  0x11   : > { %v897_v3 = vld [vmem:[%s1151_s26] sm:$0xff]   ;;  %v834_v5 = vunpack.c.l.bf16 %v833_v2  ;;  %v835_v6 = vunpack.c.h.bf16 %v833_v2  ;;  %v1055_v9 = vld [vmem:[%s1151_s26 + $0x8] sm:$0xff]   ;;  %v838_v10 = vunpack.c.l.bf16 %v1040_v4  ;;  %v839_v11 = vunpack.c.h.bf16 %v1040_v4  ;;  %v1056_v19 = vld [vmem:[%s1151_s26 + $0x10] sm:$0xff]  }
  0x12   : > { %v898_v7 = vunpack.c.l.bf16 %v897_v3  ;;  %v899_v8 = vunpack.c.h.bf16 %v897_v3  ;;  %v902_v12 = vunpack.c.l.bf16 %v1055_v9  ;;  %v903_v13 = vunpack.c.h.bf16 %v1055_v9  ;;  %v1042_v33 = vld [vmem:[%s1145_s23 + $0x18] sm:$0xff]   ;;  %v1043_v43 = vld [vmem:[%s1145_s23 + $0x20] sm:$0xff]   ;;  %v1044_v57 = vld [vmem:[%s1145_s23 + $0x28] sm:$0xff]  }
  0x13   : > { %v380_v15 = vmul.f32 %v834_v5, %v1156_v0  ;;  %v381_v16 = vmul.f32 %v835_v6, %v1156_v0  ;;  %v382_v21 = vmul.f32 %v838_v10, %v1156_v0  ;;  %v383_v22 = vmul.f32 %v839_v11, %v1156_v0  ;;  %v1057_v34 = vld [vmem:[%s1151_s26 + $0x18] sm:$0xff]   ;;  %v1058_v52 = vld [vmem:[%s1151_s26 + $0x20] sm:$0xff]   ;;  %v1059_v4 = vld [vmem:[%s1151_s26 + $0x28] sm:$0xff]  }
  0x14   : > { %v419_v17 = vmul.f32 %v898_v7, %v1161_v1  ;;  %v420_v18 = vmul.f32 %v899_v8, %v1161_v1  ;;  %v421_v23 = vmul.f32 %v902_v12, %v1161_v1  ;;  %v422_v24 = vmul.f32 %v903_v13, %v1161_v1  ;;  %v1045_v9 = vld [vmem:[%s1145_s23 + $0x30] sm:$0xff]  }
  0x15   : > { %v842_v27 = vunpack.c.l.bf16 %v1041_v14  ;;  %v843_v28 = vunpack.c.h.bf16 %v1041_v14  ;;  %v906_v31 = vunpack.c.l.bf16 %v1056_v19  ;;  %v907_v32 = vunpack.c.h.bf16 %v1056_v19 }
  0x16   : > { %v451_v25 = vadd.f32 %v419_v17, %v380_v15  ;;  %v452_v26 = vadd.f32 %v420_v18, %v381_v16  ;;  %v453_v29 = vadd.f32 %v421_v23, %v382_v21  ;;  %v454_v30 = vadd.f32 %v422_v24, %v383_v22  ;;  %v1060_v18 = vld [vmem:[%s1151_s26 + $0x30] sm:$0xff]  }
  0x17   : > { %v384_v37 = vmul.f32 %v842_v27, %v1156_v0  ;;  %v385_v38 = vmul.f32 %v843_v28, %v1156_v0  ;;  %v423_v41 = vmul.f32 %v906_v31, %v1161_v1  ;;  %v424_v42 = vmul.f32 %v907_v32, %v1161_v1  ;;  %v1046_v28 = vld [vmem:[%s1145_s23 + $0x38] sm:$0xff]  }
  0x18   : > { %v490_v35 = vadd.f32 %v1176_v20, %v451_v25  ;;  %v491_v36 = vadd.f32 %v1176_v20, %v452_v26  ;;  %v492_v39 = vadd.f32 %v1176_v20, %v453_v29  ;;  %v493_v40 = vadd.f32 %v1176_v20, %v454_v30 }
  0x19   : > { %v846_v45 = vunpack.c.l.bf16 %v1042_v33  ;;  %v847_v46 = vunpack.c.h.bf16 %v1042_v33  ;;  %v910_v47 = vunpack.c.l.bf16 %v1057_v34  ;;  %v455_v49 = vadd.f32 %v423_v41, %v384_v37  ;;  %v1061_v33 = vld [vmem:[%s1151_s26 + $0x38] sm:$0xff]  }
  0x1a   : > { %v963_v44 = vpack.c.bf16 %v491_v36, %v490_v35  ;;  %v968_v48 = vpack.c.bf16 %v493_v40, %v492_v39  ;;  %v456_v50 = vadd.f32 %v424_v42, %v385_v38  ;;  %v911_v51 = vunpack.c.h.bf16 %v1057_v34  ;;  %v1047_v42 = vld [vmem:[%s1145_s23 + $0x40] sm:$0xff]  }
  0x1b   : > { %v386_v53 = vmul.f32 %v846_v45, %v1156_v0  ;;  %v387_v54 = vmul.f32 %v847_v46, %v1156_v0  ;;  %v425_v55 = vmul.f32 %v910_v47, %v1161_v1  ;;  %v850_v56 = vunpack.c.l.bf16 %v1043_v43 }
  0x1c   : > { %964 = vst [vmem:[%s1192_s10] sm:$0xff] %v963_v44   ;;  %1070 = vst [vmem:[%s1192_s10 + $0x8] sm:$0xff] %v968_v48   ;;  %v494_v58 = vadd.f32 %v1176_v20, %v455_v49  ;;  %v495_v59 = vadd.f32 %v1176_v20, %v456_v50  ;;  %v426_v60 = vmul.f32 %v911_v51, %v1161_v1  ;;  %v851_v61 = vunpack.c.h.bf16 %v1043_v43  ;;  %v1062_v51 = vld [vmem:[%s1151_s26 + $0x40] sm:$0xff]  }
  0x1d   : > { %v457_v62 = vadd.f32 %v425_v55, %v386_v53  ;;  %v914_v63 = vunpack.c.l.bf16 %v1058_v52  ;;  %v915_v2 = vunpack.c.h.bf16 %v1058_v52  ;;  %v388_v3 = vmul.f32 %v850_v56, %v1156_v0  ;;  %v1048_v56 = vld [vmem:[%s1145_s23 + $0x48] sm:$0xff]  }
  0x1e   : > { %v973_v5 = vpack.c.bf16 %v495_v59, %v494_v58  ;;  %v458_v6 = vadd.f32 %v426_v60, %v387_v54  ;;  %v389_v7 = vmul.f32 %v851_v61, %v1156_v0  ;;  %v854_v8 = vunpack.c.l.bf16 %v1044_v57 }
  0x1f   : > { %v496_v10 = vadd.f32 %v1176_v20, %v457_v62  ;;  %v427_v11 = vmul.f32 %v914_v63, %v1161_v1  ;;  %v428_v12 = vmul.f32 %v915_v2, %v1161_v1  ;;  %v855_v13 = vunpack.c.h.bf16 %v1044_v57 }
  0x20   : > { %1071 = vst [vmem:[%s1192_s10 + $0x10] sm:$0xff] %v973_v5   ;;  %v497_v14 = vadd.f32 %v1176_v20, %v458_v6  ;;  %v918_v15 = vunpack.c.l.bf16 %v1059_v4  ;;  %v919_v16 = vunpack.c.h.bf16 %v1059_v4  ;;  %v390_v17 = vmul.f32 %v854_v8, %v1156_v0  ;;  %v1049_v8 = vld [vmem:[%s1145_s23 + $0x50] sm:$0xff]  }
  0x21   : > { %v459_v19 = vadd.f32 %v427_v11, %v388_v3  ;;  %v460_v21 = vadd.f32 %v428_v12, %v389_v7  ;;  %v391_v22 = vmul.f32 %v855_v13, %v1156_v0  ;;  %v858_v23 = vunpack.c.l.bf16 %v1045_v9  ;;  %v1063_v3 = vld [vmem:[%s1151_s26 + $0x48] sm:$0xff]  }
  0x22   : > { %v978_v24 = vpack.c.bf16 %v497_v14, %v496_v10  ;;  %v429_v25 = vmul.f32 %v918_v15, %v1161_v1  ;;  %v430_v26 = vmul.f32 %v919_v16, %v1161_v1  ;;  %v859_v27 = vunpack.c.h.bf16 %v1045_v9 }
  0x23   : > { %v498_v29 = vadd.f32 %v1176_v20, %v459_v19  ;;  %v499_v30 = vadd.f32 %v1176_v20, %v460_v21  ;;  %v922_v31 = vunpack.c.l.bf16 %v1060_v18  ;;  %v923_v32 = vunpack.c.h.bf16 %v1060_v18 }
  0x24   : > { %1072 = vst [vmem:[%s1192_s10 + $0x18] sm:$0xff] %v978_v24   ;;  %v461_v34 = vadd.f32 %v429_v25, %v390_v17  ;;  %v462_v35 = vadd.f32 %v430_v26, %v391_v22  ;;  %v392_v36 = vmul.f32 %v858_v23, %v1156_v0  ;;  %v393_v37 = vmul.f32 %v859_v27, %v1156_v0  ;;  %v1064_v17 = vld [vmem:[%s1151_s26 + $0x50] sm:$0xff]   ;;  %v1050_v27 = vld [vmem:[%s1145_s23 + $0x58] sm:$0xff]  }
  0x25   : > { %v983_v38 = vpack.c.bf16 %v499_v30, %v498_v29  ;;  %v431_v39 = vmul.f32 %v922_v31, %v1161_v1  ;;  %v432_v40 = vmul.f32 %v923_v32, %v1161_v1  ;;  %v862_v41 = vunpack.c.l.bf16 %v1046_v28  ;;  %v1065_v32 = vld [vmem:[%s1151_s26 + $0x58] sm:$0xff]  }
  0x26   : > { %v500_v43 = vadd.f32 %v1176_v20, %v461_v34  ;;  %v501_v44 = vadd.f32 %v1176_v20, %v462_v35  ;;  %v863_v45 = vunpack.c.h.bf16 %v1046_v28  ;;  %v926_v46 = vunpack.c.l.bf16 %v1061_v33 }
  0x27   : > { %1073 = vst [vmem:[%s1192_s10 + $0x20] sm:$0xff] %v983_v38   ;;  %v463_v47 = vadd.f32 %v431_v39, %v392_v36  ;;  %v464_v48 = vadd.f32 %v432_v40, %v393_v37  ;;  %v927_v49 = vunpack.c.h.bf16 %v1061_v33  ;;  %v394_v50 = vmul.f32 %v862_v41, %v1156_v0  ;;  %v1051_v41 = vld [vmem:[%s1145_s23 + $0x60] sm:$0xff]  }
  0x28   : > { %v988_v52 = vpack.c.bf16 %v501_v44, %v500_v43  ;;  %v395_v53 = vmul.f32 %v863_v45, %v1156_v0  ;;  %v433_v54 = vmul.f32 %v926_v46, %v1161_v1  ;;  %v866_v55 = vunpack.c.l.bf16 %v1047_v42 }
  0x29   : > { %v502_v57 = vadd.f32 %v1176_v20, %v463_v47  ;;  %v503_v58 = vadd.f32 %v1176_v20, %v464_v48  ;;  %v434_v59 = vmul.f32 %v927_v49, %v1161_v1  ;;  %v867_v60 = vunpack.c.h.bf16 %v1047_v42 }
  0x2a   : > { %1074 = vst [vmem:[%s1192_s10 + $0x28] sm:$0xff] %v988_v52   ;;  %v465_v61 = vadd.f32 %v433_v54, %v394_v50  ;;  %v930_v62 = vunpack.c.l.bf16 %v1062_v51  ;;  %v931_v63 = vunpack.c.h.bf16 %v1062_v51  ;;  %v396_v2 = vmul.f32 %v866_v55, %v1156_v0  ;;  %v1066_v50 = vld [vmem:[%s1151_s26 + $0x60] sm:$0xff]   ;;  %v1052_v55 = vld [vmem:[%s1145_s23 + $0x68] sm:$0xff]  }
  0x2b   : > { %v993_v4 = vpack.c.bf16 %v503_v58, %v502_v57  ;;  %v466_v5 = vadd.f32 %v434_v59, %v395_v53  ;;  %v397_v6 = vmul.f32 %v867_v60, %v1156_v0  ;;  %v870_v7 = vunpack.c.l.bf16 %v1048_v56 }
  0x2c   : > { %v504_v9 = vadd.f32 %v1176_v20, %v465_v61  ;;  %v435_v10 = vmul.f32 %v930_v62, %v1161_v1  ;;  %v436_v11 = vmul.f32 %v931_v63, %v1161_v1  ;;  %v871_v12 = vunpack.c.h.bf16 %v1048_v56 }
  0x2d   : > { %1075 = vst [vmem:[%s1192_s10 + $0x30] sm:$0xff] %v993_v4   ;;  %v505_v13 = vadd.f32 %v1176_v20, %v466_v5  ;;  %v934_v14 = vunpack.c.l.bf16 %v1063_v3  ;;  %v935_v15 = vunpack.c.h.bf16 %v1063_v3  ;;  %v398_v16 = vmul.f32 %v870_v7, %v1156_v0  ;;  %v1053_v7 = vld [vmem:[%s1145_s23 + $0x70] sm:$0xff]  }
  0x2e   : > { %v467_v18 = vadd.f32 %v435_v10, %v396_v2  ;;  %v468_v19 = vadd.f32 %v436_v11, %v397_v6  ;;  %v399_v21 = vmul.f32 %v871_v12, %v1156_v0  ;;  %v874_v22 = vunpack.c.l.bf16 %v1049_v8  ;;  %v1067_v2 = vld [vmem:[%s1151_s26 + $0x68] sm:$0xff]  }
  0x2f   : > { %v998_v23 = vpack.c.bf16 %v505_v13, %v504_v9  ;;  %v437_v24 = vmul.f32 %v934_v14, %v1161_v1  ;;  %v438_v25 = vmul.f32 %v935_v15, %v1161_v1  ;;  %v875_v26 = vunpack.c.h.bf16 %v1049_v8 }
  0x30   : > { %v506_v28 = vadd.f32 %v1176_v20, %v467_v18  ;;  %v507_v29 = vadd.f32 %v1176_v20, %v468_v19  ;;  %v938_v30 = vunpack.c.l.bf16 %v1064_v17  ;;  %v939_v31 = vunpack.c.h.bf16 %v1064_v17 }
  0x31   : > { %1076 = vst [vmem:[%s1192_s10 + $0x38] sm:$0xff] %v998_v23   ;;  %v469_v33 = vadd.f32 %v437_v24, %v398_v16  ;;  %v470_v34 = vadd.f32 %v438_v25, %v399_v21  ;;  %v400_v35 = vmul.f32 %v874_v22, %v1156_v0  ;;  %v401_v36 = vmul.f32 %v875_v26, %v1156_v0  ;;  %v1068_v16 = vld [vmem:[%s1151_s26 + $0x70] sm:$0xff]   ;;  %v1054_v26 = vld [vmem:[%s1145_s23 + $0x78] sm:$0xff]  }
  0x32   : > { %v1003_v37 = vpack.c.bf16 %v507_v29, %v506_v28  ;;  %v439_v38 = vmul.f32 %v938_v30, %v1161_v1  ;;  %v440_v39 = vmul.f32 %v939_v31, %v1161_v1  ;;  %v878_v40 = vunpack.c.l.bf16 %v1050_v27  ;;  %v1069_v31 = vld [vmem:[%s1151_s26 + $0x78] sm:$0xff]  }
  0x33   : > { %v508_v42 = vadd.f32 %v1176_v20, %v469_v33  ;;  %v509_v43 = vadd.f32 %v1176_v20, %v470_v34  ;;  %v879_v44 = vunpack.c.h.bf16 %v1050_v27  ;;  %v942_v45 = vunpack.c.l.bf16 %v1065_v32 }
  0x34   : > { %1077 = vst [vmem:[%s1192_s10 + $0x40] sm:$0xff] %v1003_v37   ;;  %v471_v46 = vadd.f32 %v439_v38, %v400_v35  ;;  %v472_v47 = vadd.f32 %v440_v39, %v401_v36  ;;  %v943_v48 = vunpack.c.h.bf16 %v1065_v32  ;;  %v402_v49 = vmul.f32 %v878_v40, %v1156_v0 }
  0x35   : > { %v1008_v51 = vpack.c.bf16 %v509_v43, %v508_v42  ;;  %v403_v52 = vmul.f32 %v879_v44, %v1156_v0  ;;  %v441_v53 = vmul.f32 %v942_v45, %v1161_v1  ;;  %v882_v54 = vunpack.c.l.bf16 %v1051_v41 }
  0x36   : > { %v510_v56 = vadd.f32 %v1176_v20, %v471_v46  ;;  %v511_v57 = vadd.f32 %v1176_v20, %v472_v47  ;;  %v442_v58 = vmul.f32 %v943_v48, %v1161_v1  ;;  %v883_v59 = vunpack.c.h.bf16 %v1051_v41 }
  0x37   : > { %1078 = vst [vmem:[%s1192_s10 + $0x48] sm:$0xff] %v1008_v51   ;;  %v473_v60 = vadd.f32 %v441_v53, %v402_v49  ;;  %v946_v61 = vunpack.c.l.bf16 %v1066_v50  ;;  %v947_v62 = vunpack.c.h.bf16 %v1066_v50  ;;  %v404_v63 = vmul.f32 %v882_v54, %v1156_v0 }
  0x38   : > { %v1013_v3 = vpack.c.bf16 %v511_v57, %v510_v56  ;;  %v474_v4 = vadd.f32 %v442_v58, %v403_v52  ;;  %v405_v5 = vmul.f32 %v883_v59, %v1156_v0  ;;  %v886_v6 = vunpack.c.l.bf16 %v1052_v55 }
  0x39   : > { %v512_v8 = vadd.f32 %v1176_v20, %v473_v60  ;;  %v443_v9 = vmul.f32 %v946_v61, %v1161_v1  ;;  %v444_v10 = vmul.f32 %v947_v62, %v1161_v1  ;;  %v887_v11 = vunpack.c.h.bf16 %v1052_v55 }
  0x3a   : > { %1079 = vst [vmem:[%s1192_s10 + $0x50] sm:$0xff] %v1013_v3   ;;  %v513_v12 = vadd.f32 %v1176_v20, %v474_v4  ;;  %v950_v13 = vunpack.c.l.bf16 %v1067_v2  ;;  %v951_v14 = vunpack.c.h.bf16 %v1067_v2  ;;  %v406_v15 = vmul.f32 %v886_v6, %v1156_v0 }
  0x3b   : > { %v475_v17 = vadd.f32 %v443_v9, %v404_v63  ;;  %v476_v18 = vadd.f32 %v444_v10, %v405_v5  ;;  %v407_v19 = vmul.f32 %v887_v11, %v1156_v0  ;;  %v890_v21 = vunpack.c.l.bf16 %v1053_v7 }
  0x3c   : > { %v1018_v22 = vpack.c.bf16 %v513_v12, %v512_v8  ;;  %v445_v23 = vmul.f32 %v950_v13, %v1161_v1  ;;  %v446_v24 = vmul.f32 %v951_v14, %v1161_v1  ;;  %v891_v25 = vunpack.c.h.bf16 %v1053_v7 }
  0x3d   : > { %v514_v27 = vadd.f32 %v1176_v20, %v475_v17  ;;  %v515_v28 = vadd.f32 %v1176_v20, %v476_v18  ;;  %v954_v29 = vunpack.c.l.bf16 %v1068_v16  ;;  %v955_v30 = vunpack.c.h.bf16 %v1068_v16 }
  0x3e   : > { %1080 = vst [vmem:[%s1192_s10 + $0x58] sm:$0xff] %v1018_v22   ;;  %v477_v32 = vadd.f32 %v445_v23, %v406_v15  ;;  %v478_v33 = vadd.f32 %v446_v24, %v407_v19  ;;  %v408_v34 = vmul.f32 %v890_v21, %v1156_v0  ;;  %v409_v35 = vmul.f32 %v891_v25, %v1156_v0 }
  0x3f   : > { %v1023_v36 = vpack.c.bf16 %v515_v28, %v514_v27  ;;  %v447_v37 = vmul.f32 %v954_v29, %v1161_v1  ;;  %v448_v38 = vmul.f32 %v955_v30, %v1161_v1  ;;  %v894_v39 = vunpack.c.l.bf16 %v1054_v26 }
  0x40   : > { %v516_v40 = vadd.f32 %v1176_v20, %v477_v32  ;;  %v517_v41 = vadd.f32 %v1176_v20, %v478_v33  ;;  %v895_v42 = vunpack.c.h.bf16 %v1054_v26  ;;  %v958_v43 = vunpack.c.l.bf16 %v1069_v31 }
  0x41   : > { %1081 = vst [vmem:[%s1192_s10 + $0x60] sm:$0xff] %v1023_v36   ;;  %v479_v44 = vadd.f32 %v447_v37, %v408_v34  ;;  %v480_v45 = vadd.f32 %v448_v38, %v409_v35  ;;  %v959_v46 = vunpack.c.h.bf16 %v1069_v31  ;;  %v410_v47 = vmul.f32 %v894_v39, %v1156_v0 }
  0x42   : > { %v1028_v48 = vpack.c.bf16 %v517_v41, %v516_v40  ;;  %v411_v49 = vmul.f32 %v895_v42, %v1156_v0  ;;  %v449_v50 = vmul.f32 %v958_v43, %v1161_v1 }
  0x43   : > { %v518_v51 = vadd.f32 %v1176_v20, %v479_v44  ;;  %v519_v52 = vadd.f32 %v1176_v20, %v480_v45  ;;  %v450_v53 = vmul.f32 %v959_v46, %v1161_v1 }
  0x44   : > { %1082 = vst [vmem:[%s1192_s10 + $0x68] sm:$0xff] %v1028_v48   ;;  %v481_v54 = vadd.f32 %v449_v50, %v410_v47 }
  0x45   : > { %v1033_v55 = vpack.c.bf16 %v519_v52, %v518_v51  ;;  %v482_v56 = vadd.f32 %v450_v53, %v411_v49 }
  0x46   : > { %v520_v57 = vadd.f32 %v1176_v20, %v481_v54 }
  0x47   : > { %1083 = vst [vmem:[%s1192_s10 + $0x70] sm:$0xff] %v1033_v55   ;;  %v521_v58 = vadd.f32 %v1176_v20, %v482_v56 }
  0x49   : > { %v1038_v59 = vpack.c.bf16 %v521_v58, %v520_v57 }
  0x4b   : > { %1084 = vst [vmem:[%s1192_s10 + $0x78] sm:$0xff] %v1038_v59  }
  0x4c PF: > { %s15_s18 = sadd.s32 1, %s1099_s18  }
  0x4d   : > { %p12_p4 = scmp.ge.s32.totalorder %s15_s18, 4  }
  0x4f   :  { %14 = sbr.rel (!%p12_p4) target bundleno = 1 (0x1), region = 73 }

// kernel: resnet_block.4
= control target key start
LH: loop header
LB: loop body
LE: loop exit
PB: predicated region body
PF: predicated region fallthrough
CT: control target
= control target key end

     0   :  { %s7009_s21 = smov 0   ;;  %s8029_s0 = inlined_call_operand.vmem [shape: bf16[2,16,16,128], index: 0, kind: input, shape index: {}]   ;;  %s8030_s1 = inlined_call_operand.vmem [shape: f32[1,128], index: 1, kind: input, shape index: {}]   ;;  %s8031_s2 = inlined_call_operand.vmem [shape: f32[1,128], index: 2, kind: input, shape index: {}]   ;;  %s8032_s3 = inlined_call_operand.vmem [shape: bf16[9,128,128], index: 3, kind: input, shape index: {}]   ;;  %s8033_s4 = inlined_call_operand.vmem [shape: f32[1,128], index: 4, kind: input, shape index: {}]   ;;  %s8034_s5 = inlined_call_operand.vmem [shape: bf16[2,16,16,128], index: 5, kind: output, shape index: {0}]   ;;  %s8035_s6 = inlined_call_operand.vmem [shape: f32[2,2,128], index: 6, kind: output, shape index: {1}]  }
   0x1 LB: > { %s5467_s22 = sadd.s32 4294967295, %s6971_s21   ;;  %p5471_p0 = scmp.ge.s32.totalorder %s6971_s21, 1  ;;  %s6971_s21 = sphi %s7009_s21, %s17_s21  }
   0x2   : > { %p215_p1 = scmp.lt.s32.totalorder %s6971_s21, 3 }
   0x4   : > { %p216_p2 = pnand %p5471_p0, %p215_p1 }
   0x5   : > { %v6851_v0 = vld [vmem:[%s8032_s3 + $0x40] sm:$0xff] (!%p216_p2)   ;;  %v6973_v2 = vmov (!%p216_p2), 0   ;;  %v6853_v3 = vld [vmem:[%s8032_s3 + $0x48] sm:$0xff] (!%p216_p2)   ;;  %p249_p3 = scmp.lt.s32.totalorder (!%p216_p2), %s5467_s22, 1  ;;  %v6855_v5 = vld [vmem:[%s8032_s3 + $0x50] sm:$0xff] (!%p216_p2)   ;;  %vm926_vm0 = vcmask (!%p216_p2), 1043456  }
   0x6   : > { %219 = sbr.rel (%p216_p2) target bundleno = 612 (0x264), region = 40  ;;  %v6852_v1 = vld [vmem:[%s8032_s3 + $0x100] sm:$0xff] (!%p216_p2)   ;;  %264 = vst [vmem:[#allocation2] sm:$0xff] (!%p216_p2), %v6973_v2  ;;  %265 = vst [vmem:[#allocation2 + $0x8] sm:$0xff] (!%p216_p2), %v6973_v2  ;;  %6138 = vmatprep.subr.bf16.mxu1 (!%p216_p2), %v6851_v0  ;;  %v6854_v4 = vld [vmem:[%s8032_s3 + $0x108] sm:$0xff] (!%p216_p2)   ;;  %vm5378_vm3 = vcmask (!%p216_p2), 1040384  }
   0x7   : > { %267 = vst [vmem:[#allocation2 + $0x110] sm:$0xff] (!%p216_p2), %v6973_v2  ;;  %268 = vst [vmem:[#allocation2 + $0x118] sm:$0xff] (!%p216_p2), %v6973_v2  ;;  %6330 = vmatprep.subr.bf16.mxu0 (!%p216_p2), %v6852_v1  ;;  %6139 = vmatpush3.bf16.msra.mxu1 (!%p216_p2), %v6851_v0  ;;  %v6856_v6 = vld [vmem:[%s8032_s3 + $0x110] sm:$0xff] (!%p216_p2)   ;;  %v6857_v7 = vld [vmem:[%s8032_s3 + $0x58] sm:$0xff] (!%p216_p2)   ;;  %vm1442_vm1 = vsmask.f32 (!%p216_p2), 3328 }
   0x8   : > { %270 = vst [vmem:[#allocation2 + $0x10] sm:$0xf] (!%p216_p2), %v6973_v2  ;;  %271 = vst [vmem:[#allocation2 + $0x20] sm:$0xf] (!%p216_p2), %v6973_v2  ;;  %6331 = vmatpush3.bf16.msra.mxu0 (!%p216_p2), %v6852_v1  ;;  %6140 = vmatprep.subr.bf16.mxu1 (!%p216_p2), %v6853_v3  ;;  %v6858_v8 = vld [vmem:[%s8032_s3 + $0x118] sm:$0xff] (!%p216_p2)   ;;  %v6859_v9 = vld [vmem:[%s8032_s3 + $0x60] sm:$0xff] (!%p216_p2)  }
   0x9   : > { %272 = vst [vmem:[#allocation2 + $0x30] sm:$0xf] (!%p216_p2), %v6973_v2  ;;  %273 = vst [vmem:[#allocation2 + $0x40] sm:$0xf] (!%p216_p2), %v6973_v2  ;;  %6332 = vmatprep.subr.bf16.mxu0 (!%p216_p2), %v6854_v4  ;;  %v6860_v10 = vld [vmem:[%s8032_s3 + $0x120] sm:$0xff] (!%p216_p2)   ;;  %v6861_v11 = vld [vmem:[%s8032_s3 + $0x68] sm:$0xff] (!%p216_p2)  }
   0xa   : > { %274 = vst [vmem:[#allocation2 + $0x50] sm:$0xf] (!%p216_p2), %v6973_v2  ;;  %275 = vst [vmem:[#allocation2 + $0x60] sm:$0xf] (!%p216_p2), %v6973_v2  ;;  %v6862_v15 = vld [vmem:[%s8032_s3 + $0x128] sm:$0xff] (!%p216_p2)   ;;  %v6863_v27 = vld [vmem:[%s8032_s3 + $0x70] sm:$0xff] (!%p216_p2)  }
   0xb   : > { %276 = vst [vmem:[#allocation2 + $0x70] sm:$0xf] (!%p216_p2), %v6973_v2  ;;  %277 = vst [vmem:[#allocation2 + $0x80] sm:$0xf] (!%p216_p2), %v6973_v2  ;;  %6141 = vmatpush3.bf16.msra.mxu1 (!%p216_p2), %v6853_v3  ;;  %v7071_v20 = vld [vmem:[%s8030_s1] ss:$0 sm:$0xff] (!%p216_p2) }
   0xc   : > { %278 = vst [vmem:[#allocation2 + $0x90] sm:$0xf] (!%p216_p2), %v6973_v2  ;;  %279 = vst [vmem:[#allocation2 + $0xa0] sm:$0xf] (!%p216_p2), %v6973_v2  ;;  %6333 = vmatpush3.bf16.msra.mxu0 (!%p216_p2), %v6854_v4  ;;  %6142 = vmatprep.subr.bf16.mxu1 (!%p216_p2), %v6855_v5  ;;  %v7076_v21 = vld [vmem:[%s8031_s2] ss:$0 sm:$0xff] (!%p216_p2) }
   0xd   : > { %280 = vst [vmem:[#allocation2 + $0xb0] sm:$0xf] %v6973_v2  ;;  %281 = vst [vmem:[#allocation2 + $0xc0] sm:$0xf] %v6973_v2  ;;  %s8037_s22 = smov (!%p249_p3, %s5467_s22), 1  ;;  %6334 = vmatprep.subr.bf16.mxu0 %v6856_v6  ;;  %v6864_v31 = vld [vmem:[%s8032_s3 + $0x130] sm:$0xff]  }
   0xe   : > { %282 = vst [vmem:[#allocation2 + $0xd0] sm:$0xf] %v6973_v2  ;;  %283 = vst [vmem:[#allocation2 + $0xe0] sm:$0xf] %v6973_v2  ;;  %s5714_s15 = sshll.u32 %s8037_s22, 7  ;;  %v6865_v40 = vld [vmem:[%s8032_s3 + $0x78] sm:$0xff]  }
   0xf   : > { %284 = vst [vmem:[#allocation2 + $0xf0] sm:$0xf] %v6973_v2  ;;  %285 = vst [vmem:[#allocation2 + $0x100] sm:$0xf] %v6973_v2  ;;  %6143 = vmatpush3.bf16.msra.mxu1 %v6855_v5  ;;  %s7059_s24 = scalar_lea.vmem %s8029_s0, %s5714_s15  ;;  %v542_v12 = vld [vmem:[#allocation2 + $0x8] sm:$0xf]  ;;  %s7970_s8 = scalar_lea.vmem %s8034_s5, %s5714_s15 }
  0x10   : > { %286 = vst [vmem:[#allocation2 + $0x18] sm:$0xf0] %v6973_v2  ;;  %287 = vst [vmem:[#allocation2 + $0x28] sm:$0xf0] %v6973_v2  ;;  %6335 = vmatpush3.bf16.msra.mxu0 %v6856_v6  ;;  %6144 = vmatprep.subr.bf16.mxu1 %v6857_v7  ;;  %v878_v13 = vld [vmem:[#allocation2] sm:$0xf0] }
  0x11   : > { %288 = vst [vmem:[#allocation2 + $0x38] sm:$0xf0] %v6973_v2  ;;  %289 = vst [vmem:[#allocation2 + $0x48] sm:$0xf0] %v6973_v2  ;;  %6336 = vmatprep.subr.bf16.mxu0 %v6858_v8  ;;  %v5749_v14 = vld [vmem:[%s7059_s24] sm:$0xff]   ;;  %v927_v16 = vrot.slane %v878_v13, 4 }
  0x12   : > { %290 = vst [vmem:[#allocation2 + $0x58] sm:$0xf0] %v6973_v2  ;;  %291 = vst [vmem:[#allocation2 + $0x68] sm:$0xf0] %v6973_v2  ;;  %v928_v17 = vrot.slane %v542_v12, 4  ;;  %v5750_v18 = vunpack.c.l.bf16 %v5749_v14  ;;  %v5751_v19 = vunpack.c.h.bf16 %v5749_v14  ;;  %v5892_v25 = vld [vmem:[%s7059_s24 + $0x8] sm:$0xff]  }
  0x13   : > { %292 = vst [vmem:[#allocation2 + $0x78] sm:$0xf0] %v6973_v2  ;;  %293 = vst [vmem:[#allocation2 + $0x88] sm:$0xf0] %v6973_v2  ;;  %6145 = vmatpush3.bf16.msra.mxu1 %v6857_v7  ;;  %v583_v26 = vshrl.u32 %v542_v12, 16  ;;  %v5754_v28 = vunpack.c.l.bf16 %v5892_v25  ;;  %v5755_v29 = vunpack.c.h.bf16 %v5892_v25  ;;  %v586_v30 = vshll.u32 %v542_v12, 16 }
  0x14   : > { %294 = vst [vmem:[#allocation2 + $0x98] sm:$0xf0] %v6973_v2  ;;  %295 = vst [vmem:[#allocation2 + $0xa8] sm:$0xf0] %v6973_v2  ;;  %6337 = vmatpush3.bf16.msra.mxu0 %v6858_v8  ;;  %6146 = vmatprep.subr.bf16.mxu1 %v6859_v9  ;;  %v929_v22 = vsel %vm926_vm0, %v927_v16, %v928_v17  ;;  %v373_v23 = vmul.f32 %v5750_v18, %v7071_v20  ;;  %v5893_v34 = vld [vmem:[%s7059_s24 + $0x10] sm:$0xff]   ;;  %v5894_v39 = vld [vmem:[%s7059_s24 + $0x18] sm:$0xff]  }
  0x15   : > { %296 = vst [vmem:[#allocation2 + $0xb8] sm:$0xf0] %v6973_v2  ;;  %297 = vst [vmem:[#allocation2 + $0xc8] sm:$0xf0] %v6973_v2  ;;  %6338 = vmatprep.subr.bf16.mxu0 %v6860_v10  ;;  %v374_v24 = vmul.f32 %v5751_v19, %v7071_v20  ;;  %6154 = vmatprep.mubr.bf16.mxu1 %v929_v22  ;;  %v375_v35 = vmul.f32 %v5754_v28, %v7071_v20  ;;  %v5758_v37 = vunpack.c.l.bf16 %v5893_v34  ;;  %v6866_v45 = vld [vmem:[%s8032_s3 + $0x138] sm:$0xff]   ;;  %v5895_v54 = vld [vmem:[%s7059_s24 + $0x20] sm:$0xff]  }
  0x16   : > { %298 = vst [vmem:[#allocation2 + $0xd8] sm:$0xf0] %v6973_v2  ;;  %299 = vst [vmem:[#allocation2 + $0xe8] sm:$0xf0] %v6973_v2  ;;  %v412_v32 = vadd.f32 %v7076_v21, %v373_v23  ;;  %v376_v36 = vmul.f32 %v5755_v29, %v7071_v20  ;;  %v5759_v38 = vunpack.c.h.bf16 %v5893_v34  ;;  %v5762_v42 = vunpack.c.l.bf16 %v5894_v39  ;;  %v5896_v59 = vld [vmem:[%s7059_s24 + $0x28] sm:$0xff]   ;;  %v7119_v0 = vld [vmem:[%s8032_s3] sm:$0xff]  }
  0x17   : > { %300 = vst [vmem:[#allocation2 + $0xf8] sm:$0xf0] %v6973_v2  ;;  %301 = vst [vmem:[#allocation2 + $0x108] sm:$0xf0] %v6973_v2  ;;  %6147 = vmatpush3.bf16.msra.mxu1 %v6859_v9  ;;  %v413_v33 = vadd.f32 %v7076_v21, %v374_v24  ;;  %v5763_v43 = vunpack.c.h.bf16 %v5894_v39  ;;  %v7097_v44 = vrot.slane %v583_v26, 3  ;;  %v414_v46 = vadd.f32 %v7076_v21, %v375_v35  ;;  %v5897_v5 = vld [vmem:[%s7059_s24 + $0x30] sm:$0xff]  }
  0x18   : > { %6339 = vmatpush3.bf16.msra.mxu0 %v6860_v10  ;;  %6148 = vmatprep.subr.bf16.mxu1 %v6861_v11  ;;  %v415_v47 = vadd.f32 %v7076_v21, %v376_v36  ;;  %v377_v48 = vmul.f32 %v5758_v37, %v7071_v20  ;;  %v7105_v49 = vrot.slane %v586_v30, 4  ;;  %v378_v51 = vmul.f32 %v5759_v38, %v7071_v20  ;;  %v7127_v6 = vld [vmem:[%s8032_s3 + $0x140] sm:$0xff]   ;;  %s5476_s15 = sshll.u32 %s8037_s22, 1 }
  0x19   : > { %6340 = vmatprep.subr.bf16.mxu0 %v6862_v15  ;;  %v444_v41 = vpack.c.bf16 %v413_v33, %v412_v32  ;;  %v379_v52 = vmul.f32 %v5762_v42, %v7071_v20  ;;  %v380_v53 = vmul.f32 %v5763_v43, %v7071_v20  ;;  %v5766_v57 = vunpack.c.l.bf16 %v5895_v54  ;;  %v7153_v26 = vld [vmem:[%s7059_s24 + $0x40] sm:$0xff]   ;;  %s262_s11 = scalar_lea.vmem %s8035_s6, %s5476_s15 }
  0x1a   : > { %v445_v55 = vpack.c.bf16 %v415_v47, %v414_v46  ;;  %v416_v56 = vadd.f32 %v7076_v21, %v377_v48  ;;  %v5767_v58 = vunpack.c.h.bf16 %v5895_v54  ;;  %v417_v60 = vadd.f32 %v7076_v21, %v378_v51  ;;  %v6870_v48 = vld [vmem:[%s8032_s3 + $0x8] sm:$0xff]  }
  0x1b   : > { %6149 = vmatpush3.bf16.msra.mxu1 %v6861_v11  ;;  %v476_v50 = vrot.slane %v444_v41, 4  ;;  %v418_v61 = vadd.f32 %v7076_v21, %v379_v52  ;;  %v419_v62 = vadd.f32 %v7076_v21, %v380_v53  ;;  %v5770_v63 = vunpack.c.l.bf16 %v5896_v59 }
  0x1c   : > { %6341 = vmatpush3.bf16.msra.mxu0 %v6862_v15  ;;  %6150 = vmatprep.subr.bf16.mxu1 %v6863_v27  ;;  %v477_v1 = vrot.slane %v445_v55, 4  ;;  %v381_v2 = vmul.f32 %v5766_v57, %v7071_v20  ;;  %v382_v3 = vmul.f32 %v5767_v58, %v7071_v20  ;;  %v5771_v4 = vunpack.c.h.bf16 %v5896_v59  ;;  %v7138_v15 = vld [vmem:[%s7059_s24 + $0x38] sm:$0xff]  }
  0x1d   : > { %6342 = vmatprep.subr.bf16.mxu0 %v6864_v31  ;;  %508 = vst [vmem:[#allocation2 + $0x18] ss:$-4 sps:$4 sm:$0xff] %v476_v50   ;;  %v446_v7 = vpack.c.bf16 %v417_v60, %v416_v56  ;;  %v447_v8 = vpack.c.bf16 %v419_v62, %v418_v61  ;;  %v383_v9 = vmul.f32 %v5770_v63, %v7071_v20  ;;  %v5774_v10 = vunpack.c.l.bf16 %v5897_v5  ;;  %v6869_v60 = vld [vmem:[%s8032_s3 + $0x148] sm:$0xff]  }
  0x1e   : > { %510 = vst [vmem:[#allocation2 + $0x28] ss:$-4 sps:$4 sm:$0xff] %v477_v1   ;;  %v7131_v11 = vadd.f32 %v7076_v21, %v381_v2  ;;  %v7134_v12 = vadd.f32 %v7076_v21, %v382_v3  ;;  %v384_v13 = vmul.f32 %v5771_v4, %v7071_v20  ;;  %v5775_v14 = vunpack.c.h.bf16 %v5897_v5 }
  0x1f   : > { %6151 = vmatpush3.bf16.msra.mxu1 %v6863_v27  ;;  %v478_v16 = vrot.slane %v446_v7, 4  ;;  %v479_v17 = vrot.slane %v447_v8, 4  ;;  %v7141_v18 = vadd.f32 %v7076_v21, %v383_v9  ;;  %v385_v19 = vmul.f32 %v5774_v10, %v7071_v20 }
  0x20   : > { %6343 = vmatpush3.bf16.msra.mxu0 %v6864_v31  ;;  %6152 = vmatprep.subr.bf16.mxu1 %v6865_v40  ;;  %v448_v22 = vpack.c.bf16 %v7134_v12, %v7131_v11  ;;  %v7148_v23 = vadd.f32 %v7076_v21, %v384_v13  ;;  %v386_v24 = vmul.f32 %v5775_v14, %v7071_v20  ;;  %v5778_v25 = vunpack.c.l.bf16 %v7138_v15 }
  0x21   : > { %6344 = vmatprep.subr.bf16.mxu0 %v6866_v45  ;;  %512 = vst [vmem:[#allocation2 + $0x38] ss:$-4 sps:$4 sm:$0xff] %v478_v16   ;;  %514 = vst [vmem:[#allocation2 + $0x48] ss:$-4 sps:$4 sm:$0xff] %v479_v17   ;;  %v7157_v27 = vadd.f32 %v7076_v21, %v385_v19  ;;  %v5779_v28 = vunpack.c.h.bf16 %v7138_v15  ;;  %v5782_v29 = vunpack.c.l.bf16 %v7153_v26  ;;  %v5783_v30 = vunpack.c.h.bf16 %v7153_v26  ;;  %v6873_v17 = vld [vmem:[%s8032_s3 + $0x10] sm:$0xff]   ;;  %v6879_v26 = vld [vmem:[%s8032_s3 + $0x20] sm:$0xff]  }
  0x22   : > { %v449_v34 = vpack.c.bf16 %v7148_v23, %v7141_v18  ;;  %v7167_v35 = vadd.f32 %v7076_v21, %v386_v24  ;;  %v387_v36 = vmul.f32 %v5778_v25, %v7071_v20  ;;  %v589_v37 = vor.u32 %v7105_v49, %v7097_v44  ;;  %v6872_v18 = vld [vmem:[%s8032_s3 + $0x158] sm:$0xff]  }
  0x23   : > { %6153 = vmatpush3.bf16.msra.mxu1 %v6865_v40  ;;  %vm573_vm2 = vsmask.f32 4352 }
  0x24   : > { %6345 = vmatpush3.bf16.msra.mxu0 %v6866_v45  ;;  %6186 = vmatprep.subr.bf16.mxu1 %v7119_v0  ;;  %v1990_v31 = vld [vmem:[#allocation2 + $0x18] sm:$0xf]  ;;  %v7162_v32 = vld [vmem:[#allocation2 + $0x10] sm:$0xf0]  ;;  %v450_v55 = vpack.c.bf16 %v7167_v35, %v7157_v27 }
  0x25   : > { %6378 = vmatprep.subr.bf16.mxu0 %v7127_v6  ;;  %v544_v33 = vld [vmem:[#allocation2 + $0x18] sm:$0xf]  ;;  %v2615_v38 = vrot.slane %v7162_v32, 4  ;;  %v2616_v39 = vrot.slane %v1990_v31, 4  ;;  %v879_v42 = vld [vmem:[#allocation2 + $0x10] sm:$0xf0] }
  0x26   : > { %v600_v40 = vshrl.u32 %v544_v33, 16  ;;  %v603_v41 = vshll.u32 %v544_v33, 16  ;;  %v930_v43 = vrot.slane %v879_v42, 4  ;;  %v931_v45 = vrot.slane %v544_v33, 4  ;;  %v1992_v53 = vld [vmem:[#allocation2 + $0x28] sm:$0xf] }
  0x27   : > { %v1461_v46 = vshrl.u32 %v879_v42, 16  ;;  %v1464_v47 = vshll.u32 %v879_v42, 16  ;;  %v2617_v50 = vsel %vm926_vm0, %v2615_v38, %v2616_v39  ;;  %v2568_v54 = vld [vmem:[#allocation2 + $0x20] sm:$0xf0]  ;;  %v2047_v59 = vshrl.u32 %v1992_v53, 16  ;;  %v6871_v31 = vld [vmem:[%s8032_s3 + $0x150] sm:$0xff]  }
  0x28   : > { %v7177_v51 = vrot.slane %v600_v40, 3  ;;  %v7179_v52 = vrot.slane %v603_v41, 4  ;;  %6346 = vmatprep.mubr.bf16.mxu0 %v2617_v50  ;;  %v932_v56 = vsel %vm926_vm0, %v930_v43, %v931_v45  ;;  %v7191_v61 = vld [vmem:[#allocation2 + $0x28] sm:$0xf]  ;;  %v2050_v62 = vshll.u32 %v1992_v53, 16 }
  0x29   : > { %v7184_v57 = vrot.slane %v1461_v46, 4  ;;  %v7186_v58 = vrot.slane %v1464_v47, 5  ;;  %6155 = vmatmul.mubr.bf16.vlgmr.msra.gmra.mrb[0].mxu1 %v932_v56  ;;  %v2618_v63 = vrot.slane %v2568_v54, 4  ;;  %v2619_v1 = vrot.slane %v1992_v53, 4  ;;  %v880_v3 = vld [vmem:[#allocation2 + $0x20] sm:$0xf0] }
  0x2a   : > { %v2971_v2 = vshrl.u32 %v2568_v54, 16  ;;  %v7193_v4 = vrot.slane %v2047_v59, 3  ;;  %v2974_v5 = vshll.u32 %v2568_v54, 16  ;;  %6187 = vmatpush3.bf16.msra.mxu1 %v7119_v0  ;;  %v933_v7 = vrot.slane %v880_v3, 4  ;;  %v1994_v9 = vld [vmem:[#allocation2 + $0x38] sm:$0xf] }
  0x2b   : > { %v934_v8 = vrot.slane %v7191_v61, 4  ;;  %v7197_v10 = vrot.slane %v2050_v62, 4  ;;  %v2620_v13 = vsel %vm926_vm0, %v2618_v63, %v2619_v1  ;;  %v7202_v15 = vld [vmem:[#allocation2 + $0x30] sm:$0xf0]  ;;  %v2622_v16 = vrot.slane %v1994_v9, 4  ;;  %6188 = vmatprep.subr.bf16.mxu1 %v6870_v48  ;;  %v5900_v3 = vld [vmem:[%s7059_s24 + $0x48] sm:$0xff]  }
  0x2c   : > { %v7200_v14 = vrot.slane %v2971_v2, 4  ;;  %6347 = vmatmul.mubr.bf16.vlgmr.msra.gmra.mrb[0].mxu0 %v2620_v13  ;;  %v7207_v0 = vrot.slane %v2974_v5, 5  ;;  %v2621_v24 = vrot.slane %v7202_v15, 4  ;;  %v7211_v25 = vld [vmem:[#allocation2 + $0x38] sm:$0xf]  ;;  %v388_v33 = vmul.f32 %v5779_v28, %v7071_v20 }
  0x2d   : > { %v935_v19 = vsel %vm926_vm0, %v933_v7, %v934_v8  ;;  %v881_v27 = vld [vmem:[#allocation2 + $0x30] sm:$0xf0]  ;;  %v2937_v35 = vld [vmem:[#allocation2 + $0x18] sm:$0x1f]  ;;  %6379 = vmatpush3.bf16.msra.mxu0 %v7127_v6  ;;  %v937_v39 = vrot.slane %v7211_v25, 4  ;;  %v426_v42 = vadd.f32 %v7076_v21, %v387_v36  ;;  %v389_v43 = vmul.f32 %v5782_v29, %v7071_v20 }
  0x2e   : > { %6158 = vmatprep.mubr.bf16.mxu1 %v935_v19  ;;  %v936_v38 = vrot.slane %v881_v27, 4  ;;  %v1996_v40 = vld [vmem:[#allocation2 + $0x48] sm:$0xf]  ;;  %v7219_v41 = vld [vmem:[#allocation2 + $0x40] sm:$0xf0]  ;;  %6380 = vmatprep.subr.bf16.mxu0 %v6869_v60  ;;  %v2623_v28 = vsel %vm926_vm0, %v2621_v24, %v2622_v16  ;;  %v427_v50 = vadd.f32 %v7076_v21, %v388_v33  ;;  %v480_v29 = vrot.slane %v448_v22, 4 }
  0x2f   : > { %v2624_v45 = vrot.slane %v7219_v41, 4  ;;  %v2625_v6 = vrot.slane %v1996_v40, 4  ;;  %6189 = vmatpush3.bf16.msra.mxu1 %v6870_v48  ;;  %v7227_v46 = vld [vmem:[#allocation2 + $0x48] sm:$0xf]  ;;  %v882_v47 = vld [vmem:[#allocation2 + $0x40] sm:$0xf0]  ;;  %6350 = vmatprep.mubr.bf16.mxu0 %v2623_v28  ;;  %v2977_v8 = vor.u32 %v7207_v0, %v7200_v14  ;;  %v5786_v19 = vunpack.c.l.bf16 %v5900_v3 }
  0x30   : > { %v938_v36 = vsel %vm926_vm0, %v936_v38, %v937_v39  ;;  %v939_v53 = vrot.slane %v882_v47, 4  ;;  %v940_v54 = vrot.slane %v7227_v46, 4  ;;  %6190 = vmatprep.subr.bf16.mxu1 %v6873_v17  ;;  %v6876_v48 = vld [vmem:[%s8032_s3 + $0x18] sm:$0xff]   ;;  %v481_v59 = vrot.slane %v449_v34, 4  ;;  %v2938_v1 = vld [vmem:[#allocation2 + $0x28] sm:$0x1f] }
  0x31   : > { %v2626_v56 = vsel %vm926_vm0, %v2624_v45, %v2625_v6  ;;  %v482_v62 = vrot.slane %v450_v55, 4  ;;  %v451_v63 = vpack.c.bf16 %v427_v50, %v426_v42  ;;  %6381 = vmatpush3.bf16.msra.mxu0 %v6869_v60  ;;  %6159 = vmatmul.mubr.bf16.gmra.mrb[4].mxu1 %v938_v36  ;;  %516 = vst [vmem:[#allocation2 + $0x58] ss:$-4 sps:$4 sm:$0xff] %v480_v29   ;;  %v2954_v12 = vshrl.u32 %v7162_v32, 16  ;;  %v5901_v33 = vld [vmem:[%s7059_s24 + $0x50] sm:$0xff]   ;;  %v6874_v14 = vld [vmem:[%s8032_s3 + $0x160] sm:$0xff]  }
  0x32   : > { %v941_v11 = vsel %vm926_vm0, %v939_v53, %v940_v54  ;;  %v2957_v22 = vshll.u32 %v7162_v32, 16  ;;  %v2962_v2 = vshrl.u32 %v2937_v35, 16  ;;  %6382 = vmatprep.subr.bf16.mxu0 %v6871_v31  ;;  %518 = vst [vmem:[#allocation2 + $0x68] ss:$-4 sps:$4 sm:$0xff] %v481_v59   ;;  %v2965_v34 = vshll.u32 %v2937_v35, 16  ;;  %v7272_v28 = vld [vmem:[%s8032_s3 + $0x28] sm:$0xff]  }
  0x33   : > { %6162 = vmatprep.mubr.bf16.mxu1 %v941_v11  ;;  %520 = vst [vmem:[#allocation2 + $0x78] ss:$-4 sps:$4 sm:$0xff] %v482_v62   ;;  %v483_v23 = vrot.slane %v451_v63, 4  ;;  %v390_v55 = vmul.f32 %v5783_v30, %v7071_v20  ;;  %v428_v60 = vadd.f32 %v7076_v21, %v389_v43  ;;  %6191 = vmatpush3.bf16.msra.mxu1 %v6873_v17  ;;  %v2956_v32 = vrot.slane %v2954_v12, 4  ;;  %v7281_v50 = vld [vmem:[%s8032_s3 + $0x168] sm:$0xff]  }
  0x34   : > { %v2959_v5 = vrot.slane %v2957_v22, 5  ;;  %v2964_v7 = vrot.slane %v2962_v2, 4  ;;  %6351 = vmatmul.mubr.bf16.gmra.mrb[4].mxu0 %v2626_v56  ;;  %6192 = vmatprep.subr.bf16.mxu1 %v6876_v48  ;;  %v2967_v9 = vrot.slane %v2965_v34, 5  ;;  %v2979_v30 = vshrl.u32 %v2938_v1, 16 }
  0x35   : > { %522 = vst [vmem:[#allocation2 + $0x88] ss:$-4 sps:$4 sm:$0xff] %v483_v23   ;;  %v429_v13 = vadd.f32 %v7076_v21, %v390_v55  ;;  %v2982_v16 = vshll.u32 %v2938_v1, 16  ;;  %6383 = vmatpush3.bf16.msra.mxu0 %v6871_v31  ;;  %v5787_v24 = vunpack.c.h.bf16 %v5900_v3  ;;  %v2988_v27 = vshrl.u32 %v7202_v15, 16 }
  0x36   : > { %v2960_v17 = vor.u32 %v2959_v5, %v2956_v32  ;;  %6384 = vmatprep.subr.bf16.mxu0 %v6872_v18  ;;  %v2968_v0 = vor.u32 %v2967_v9, %v2964_v7  ;;  %v2981_v38 = vrot.slane %v2979_v30, 4  ;;  %v391_v40 = vmul.f32 %v5786_v19, %v7071_v20  ;;  %v2939_v19 = vld [vmem:[#allocation2 + $0x38] sm:$0x1f] }
  0x37   : > { %v452_v35 = vpack.c.bf16 %v429_v13, %v428_v60  ;;  %v2984_v39 = vrot.slane %v2982_v16, 5  ;;  %6193 = vmatpush3.bf16.msra.mxu1 %v6876_v48  ;;  %v392_v31 = vmul.f32 %v5787_v24, %v7071_v20  ;;  %v7266_v42 = vrot.slane %v2988_v27, 4  ;;  %v6877_v16 = vld [vmem:[%s8032_s3 + $0x170] sm:$0xff]  }
  0x38   : > { %v2991_v43 = vshll.u32 %v7202_v15, 16  ;;  %v1998_v45 = vld [vmem:[#allocation2 + $0x58] sm:$0xf]  ;;  %v7274_v6 = vld [vmem:[#allocation2 + $0x50] sm:$0xf0]  ;;  %v7284_v36 = vsel %vm1442_vm1, %v2960_v17, %v2968_v0  ;;  %6194 = vmatprep.subr.bf16.mxu1 %v6879_v26  ;;  %v5790_v54 = vunpack.c.l.bf16 %v5901_v33  ;;  %v5791_v29 = vunpack.c.h.bf16 %v5901_v33 }
  0x39   : > { %v7276_v47 = vld [vmem:[#allocation2 + $0x58] sm:$0xf]  ;;  %v2985_v53 = vor.u32 %v2984_v39, %v2981_v38  ;;  %6385 = vmatpush3.bf16.msra.mxu0 %v6872_v18  ;;  %v2627_v48 = vrot.slane %v7274_v6, 4  ;;  %v2628_v56 = vrot.slane %v1998_v45, 4  ;;  %v883_v59 = vld [vmem:[#allocation2 + $0x50] sm:$0xf0]  ;;  %v430_v2 = vadd.f32 %v7076_v21, %v391_v40 }
  0x3a   : > { %v943_v62 = vrot.slane %v7276_v47, 4  ;;  %v484_v63 = vrot.slane %v452_v35, 4  ;;  %v942_v1 = vrot.slane %v883_v59, 4  ;;  %v2000_v11 = vld [vmem:[#allocation2 + $0x68] sm:$0xf]  ;;  %6386 = vmatprep.subr.bf16.mxu0 %v6874_v14  ;;  %v431_v23 = vadd.f32 %v7076_v21, %v392_v31  ;;  %v7298_v18 = vld [vmem:[%s8032_s3 + $0x30] sm:$0xff]  }
  0x3b   : > { %v7288_v12 = vld [vmem:[#allocation2 + $0x60] sm:$0xf0]  ;;  %v7291_v22 = vsel %vm1442_vm1, %v2977_v8, %v2985_v53  ;;  %v2629_v34 = vsel %vm926_vm0, %v2627_v48, %v2628_v56  ;;  %v2631_v60 = vrot.slane %v2000_v11, 4  ;;  %v7302_v3 = vld [vmem:[#allocation2 + $0x68] sm:$0xf]  ;;  %6195 = vmatpush3.bf16.msra.mxu1 %v6879_v26  ;;  %v393_v5 = vmul.f32 %v5790_v54, %v7071_v20 }
  0x3c   : > { %v2630_v55 = vrot.slane %v7288_v12, 4  ;;  %v884_v32 = vld [vmem:[#allocation2 + $0x60] sm:$0xf0]  ;;  %524 = vst [vmem:[#allocation2 + $0x98] ss:$-4 sps:$4 sm:$0xff] %v484_v63   ;;  %6354 = vmatprep.mubr.bf16.mxu0 %v2629_v34  ;;  %v944_v7 = vsel %vm926_vm0, %v942_v1, %v943_v62  ;;  %v946_v9 = vrot.slane %v7302_v3, 4  ;;  %v453_v17 = vpack.c.bf16 %v431_v23, %v430_v2  ;;  %6196 = vmatprep.subr.bf16.mxu1 %v7272_v28 }
  0x3d   : > { %v945_v8 = vrot.slane %v884_v32, 4  ;;  %v2002_v13 = vld [vmem:[#allocation2 + $0x78] sm:$0xf]  ;;  %v7307_v30 = vld [vmem:[#allocation2 + $0x70] sm:$0xf0]  ;;  %6163 = vmatmul.mubr.bf16.gmra.mrb[8].mxu1 %v944_v7  ;;  %6387 = vmatpush3.bf16.msra.mxu0 %v6874_v14  ;;  %v394_v35 = vmul.f32 %v5791_v29, %v7071_v20  ;;  %v432_v14 = vadd.f32 %v7076_v21, %v393_v5  ;;  %v2993_v34 = vrot.slane %v2991_v43, 5 }
  0x3e   : > { %v2632_v26 = vsel %vm926_vm0, %v2630_v55, %v2631_v60  ;;  %v2633_v24 = vrot.slane %v7307_v30, 4  ;;  %v2634_v27 = vrot.slane %v2002_v13, 4  ;;  %v7315_v33 = vld [vmem:[#allocation2 + $0x78] sm:$0xf]  ;;  %v885_v0 = vld [vmem:[#allocation2 + $0x70] sm:$0xf0]  ;;  %6388 = vmatprep.subr.bf16.mxu0 %v7281_v50 }
  0x3f   : > { %6355 = vmatmul.mubr.bf16.gmra.mrb[8].mxu0 %v2632_v26  ;;  %v947_v38 = vsel %vm926_vm0, %v945_v8, %v946_v9  ;;  %v948_v39 = vrot.slane %v885_v0, 4  ;;  %v949_v40 = vrot.slane %v7315_v33, 4  ;;  %v2004_v31 = vld [vmem:[#allocation2 + $0x88] sm:$0xf]  ;;  %v7321_v45 = vld [vmem:[#allocation2 + $0x80] sm:$0xf0]  ;;  %v433_v59 = vadd.f32 %v7076_v21, %v394_v35  ;;  %6197 = vmatpush3.bf16.msra.mxu1 %v7272_v28 }
  0x40   : > { %6166 = vmatprep.mubr.bf16.mxu1 %v947_v38  ;;  %v2635_v53 = vsel %vm926_vm0, %v2633_v24, %v2634_v27  ;;  %v2636_v54 = vrot.slane %v7321_v45, 4  ;;  %v2637_v48 = vrot.slane %v2004_v31, 4  ;;  %v7326_v29 = vld [vmem:[#allocation2 + $0x88] sm:$0xf]  ;;  %v886_v56 = vld [vmem:[#allocation2 + $0x80] sm:$0xf0]  ;;  %6198 = vmatprep.subr.bf16.mxu1 %v7298_v18  ;;  %v2994_v43 = vor.u32 %v2993_v34, %v7266_v42 }
  0x41   : > { %6358 = vmatprep.mubr.bf16.mxu0 %v2635_v53  ;;  %v950_v62 = vsel %vm926_vm0, %v948_v39, %v949_v40  ;;  %v6878_v63 = vld [vmem:[%s8032_s3 + $0x178] sm:$0xff]   ;;  %v951_v1 = vrot.slane %v886_v56, 4  ;;  %v952_v11 = vrot.slane %v7326_v29, 4  ;;  %v485_v2 = vrot.slane %v453_v17, 4  ;;  %6389 = vmatpush3.bf16.msra.mxu0 %v7281_v50  ;;  %v2940_v32 = vld [vmem:[#allocation2 + $0x48] sm:$0x1f] }
  0x42   : > { %v6885_v23 = vld [vmem:[%s8032_s3 + $0x38] sm:$0xff]   ;;  %v2638_v28 = vsel %vm926_vm0, %v2636_v54, %v2637_v48  ;;  %v2996_v55 = vshrl.u32 %v2939_v19, 16  ;;  %v2999_v60 = vshll.u32 %v2939_v19, 16  ;;  %6390 = vmatprep.subr.bf16.mxu0 %v6877_v16  ;;  %v454_v13 = vpack.c.bf16 %v433_v59, %v432_v14  ;;  %v7356_v42 = vld [vmem:[%s8032_s3 + $0x80] sm:$0xff]  }
  0x43   : > { %v5902_v5 = vld [vmem:[%s7059_s24 + $0x58] sm:$0xff]   ;;  %v953_v7 = vsel %vm926_vm0, %v951_v1, %v952_v11  ;;  %v887_v9 = vld [vmem:[#allocation2 + $0x90] sm:$0xf0]  ;;  %526 = vst [vmem:[#allocation2 + $0xa8] ss:$-4 sps:$4 sm:$0xff] %v485_v2   ;;  %v3005_v17 = vshrl.u32 %v7219_v41, 16  ;;  %6199 = vmatpush3.bf16.msra.mxu1 %v7298_v18 }
  0x44   : > { %v7345_v8 = vld [vmem:[#allocation2 + $0x98] sm:$0xf]  ;;  %v3008_v50 = vshll.u32 %v7219_v41, 16  ;;  %v954_v26 = vrot.slane %v887_v9, 4  ;;  %v2998_v19 = vrot.slane %v2996_v55, 4  ;;  %v3001_v27 = vrot.slane %v2999_v60, 5  ;;  %6200 = vmatprep.subr.bf16.mxu1 %v6885_v23 }
  0x45   : > { %v955_v15 = vrot.slane %v7345_v8, 4  ;;  %v2941_v24 = vld [vmem:[#allocation2 + $0x58] sm:$0x1f]  ;;  %v486_v0 = vrot.slane %v454_v13, 4  ;;  %v3007_v35 = vrot.slane %v3005_v17, 4  ;;  %6167 = vmatmul.mubr.bf16.gmra.mrb[12].mxu1 %v950_v62  ;;  %6391 = vmatpush3.bf16.msra.mxu0 %v6877_v16  ;;  %v3013_v40 = vshrl.u32 %v2940_v32, 16 }
  0x46   : > { %v3010_v38 = vrot.slane %v3008_v50, 5  ;;  %v3016_v41 = vshll.u32 %v2940_v32, 16  ;;  %v5794_v31 = vunpack.c.l.bf16 %v5902_v5  ;;  %6392 = vmatprep.subr.bf16.mxu0 %v6878_v63  ;;  %v6880_v18 = vld [vmem:[%s8032_s3 + $0x180] sm:$0xff]   ;;  %v3002_v14 = vor.u32 %v3001_v27, %v2998_v19  ;;  %6170 = vmatprep.mubr.bf16.mxu1 %v953_v7  ;;  %v2942_v50 = vld [vmem:[#allocation2 + $0x68] sm:$0x1f] }
  0x47   : > { %v956_v39 = vsel %vm926_vm0, %v954_v26, %v955_v15  ;;  %6359 = vmatmul.mubr.bf16.gmra.mrb[12].mxu0 %v2638_v28  ;;  %528 = vst [vmem:[#allocation2 + $0xb8] ss:$-4 sps:$4 sm:$0xff] %v486_v0   ;;  %v5795_v53 = vunpack.c.h.bf16 %v5902_v5  ;;  %v3022_v54 = vshrl.u32 %v7274_v6, 16  ;;  %v3015_v48 = vrot.slane %v3013_v40, 4  ;;  %v5903_v34 = vld [vmem:[%s7059_s24 + $0x60] sm:$0xff]   ;;  %6201 = vmatpush3.bf16.msra.mxu1 %v6885_v23  ;;  %v6882_v19 = vld [vmem:[%s8032_s3 + $0x188] sm:$0xff]  }
  0x48   : > { %v3011_v16 = vor.u32 %v3010_v38, %v3007_v35  ;;  %6394 = vmatprep.mubr.bf16.mxu0 %v7284_v36  ;;  %v3018_v56 = vrot.slane %v3016_v41, 5  ;;  %v395_v59 = vmul.f32 %v5794_v31, %v7071_v20  ;;  %v3025_v62 = vshll.u32 %v7274_v6, 16  ;;  %6234 = vmatprep.subr.bf16.mxu1 %v7356_v42 }
  0x49   : > { %v3003_v1 = vsel %vm1442_vm1, %v2994_v43, %v3002_v14  ;;  %v396_v11 = vmul.f32 %v5795_v53, %v7071_v20  ;;  %v3024_v2 = vrot.slane %v3022_v54, 4  ;;  %v3030_v28 = vshrl.u32 %v2941_v24, 16  ;;  %6393 = vmatpush3.bf16.msra.mxu0 %v6878_v63 }
  0x4a   : > { %v7368_v55 = vld [vmem:[#allocation2 + $0xa8] sm:$0xf]  ;;  %v888_v60 = vld [vmem:[#allocation2 + $0xa0] sm:$0xf0]  ;;  %v3019_v32 = vor.u32 %v3018_v56, %v3015_v48  ;;  %v434_v36 = vadd.f32 %v7076_v21, %v395_v59  ;;  %v3027_v5 = vrot.slane %v3025_v62, 5  ;;  %v3033_v7 = vshll.u32 %v2941_v24, 16  ;;  %6426 = vmatprep.subr.bf16.mxu0 %v6880_v18 }
  0x4b   : > { %v957_v6 = vrot.slane %v888_v60, 4  ;;  %v958_v9 = vrot.slane %v7368_v55, 4  ;;  %v435_v13 = vadd.f32 %v7076_v21, %v396_v11  ;;  %v3032_v17 = vrot.slane %v3030_v28, 4  ;;  %v5904_v56 = vld [vmem:[%s7059_s24 + $0x68] sm:$0xff]  }
  0x4c   : > { %v3020_v63 = vsel %vm1442_vm1, %v3011_v16, %v3019_v32  ;;  %v3028_v23 = vor.u32 %v3027_v5, %v3024_v2  ;;  %v3035_v26 = vrot.slane %v3033_v7, 5  ;;  %v5798_v15 = vunpack.c.l.bf16 %v5903_v34 }
  0x4d   : > { %v959_v43 = vsel %vm926_vm0, %v957_v6, %v958_v9  ;;  %v455_v24 = vpack.c.bf16 %v435_v13, %v434_v36  ;;  %v5799_v27 = vunpack.c.h.bf16 %v5903_v34  ;;  %v3039_v0 = vshrl.u32 %v7288_v12, 16  ;;  %6171 = vmatmul.mubr.bf16.gmra.mrb[16].mxu1 %v956_v39  ;;  %v5905_v13 = vld [vmem:[%s7059_s24 + $0x70] sm:$0xff]  }
  0x4e   : > { %v7380_v35 = vld [vmem:[#allocation2 + $0xb8] sm:$0xf]  ;;  %v889_v38 = vld [vmem:[#allocation2 + $0xb0] sm:$0xf0]  ;;  %v3036_v40 = vor.u32 %v3035_v26, %v3032_v17  ;;  %v397_v41 = vmul.f32 %v5798_v15, %v7071_v20  ;;  %v3042_v31 = vshll.u32 %v7288_v12, 16  ;;  %v3047_v14 = vshrl.u32 %v2942_v50, 16  ;;  %6174 = vmatprep.mubr.bf16.mxu1 %v959_v43 }
  0x4f   : > { %6395 = vmatmul.mubr.bf16.vlgmr.msra.gmra.mrb[0].mxu0 %v7291_v22  ;;  %v960_v16 = vrot.slane %v889_v38, 4  ;;  %v961_v53 = vrot.slane %v7380_v35, 4  ;;  %v487_v54 = vrot.slane %v455_v24, 4  ;;  %v398_v48 = vmul.f32 %v5799_v27, %v7071_v20  ;;  %v2943_v12 = vld [vmem:[#allocation2 + $0x78] sm:$0x1f] }
  0x50   : > { %6427 = vmatpush3.bf16.msra.mxu0 %v6880_v18  ;;  %6398 = vmatprep.mubr.bf16.mxu0 %v3003_v1  ;;  %v3037_v39 = vsel %vm1442_vm1, %v3028_v23, %v3036_v40  ;;  %v436_v59 = vadd.f32 %v7076_v21, %v397_v41  ;;  %v3041_v62 = vrot.slane %v3039_v0, 4  ;;  %v3044_v11 = vrot.slane %v3042_v31, 5  ;;  %v6884_v18 = vld [vmem:[%s8032_s3 + $0x190] sm:$0xff]   ;;  %v6886_v0 = vld [vmem:[%s8032_s3 + $0x198] sm:$0xff]   ;;  %v2944_v41 = vld [vmem:[#allocation2 + $0x88] sm:$0x1f] }
  0x51   : > { %v962_v22 = vsel %vm926_vm0, %v960_v16, %v961_v53  ;;  %6428 = vmatprep.subr.bf16.mxu0 %v6882_v19  ;;  %530 = vst [vmem:[#allocation2 + $0xc8] ss:$-4 sps:$4 sm:$0xff] %v487_v54   ;;  %v437_v2 = vadd.f32 %v7076_v21, %v398_v48  ;;  %v3049_v28 = vrot.slane %v3047_v14, 4  ;;  %v3050_v34 = vshll.u32 %v2942_v50, 16 }
  0x52   : > { %v3045_v1 = vor.u32 %v3044_v11, %v3041_v62  ;;  %v5802_v60 = vunpack.c.l.bf16 %v5904_v56  ;;  %v5803_v32 = vunpack.c.h.bf16 %v5904_v56  ;;  %v3056_v36 = vshrl.u32 %v7307_v30, 16 }
  0x53   : > { %v456_v5 = vpack.c.bf16 %v437_v2, %v436_v59  ;;  %v3052_v7 = vrot.slane %v3050_v34, 5  ;;  %v3059_v6 = vshll.u32 %v7307_v30, 16  ;;  %v3064_v9 = vshrl.u32 %v2943_v12, 16 }
  0x54   : > { %6429 = vmatpush3.bf16.msra.mxu0 %v6882_v19  ;;  %v399_v17 = vmul.f32 %v5802_v60, %v7071_v20  ;;  %v400_v50 = vmul.f32 %v5803_v32, %v7071_v20  ;;  %v3058_v23 = vrot.slane %v3056_v36, 4  ;;  %v3067_v26 = vshll.u32 %v2943_v12, 16 }
  0x55   : > { %v488_v15 = vrot.slane %v456_v5, 4  ;;  %v3053_v43 = vor.u32 %v3052_v7, %v3049_v28  ;;  %6430 = vmatprep.subr.bf16.mxu0 %v6884_v18  ;;  %v3061_v24 = vrot.slane %v3059_v6, 5  ;;  %v3066_v27 = vrot.slane %v3064_v9, 4  ;;  %6175 = vmatmul.mubr.bf16.gmra.mrb[20].mxu1 %v962_v22  ;;  %v541_v28 = vld [vmem:[#allocation2] sm:$0xf8]  ;;  %v7421_v6 = vld [vmem:[%s7059_s24 + $0x78] sm:$0xff]  }
  0x56   : > { %v438_v30 = vadd.f32 %v7076_v21, %v399_v17  ;;  %v439_v19 = vadd.f32 %v7076_v21, %v400_v50  ;;  %v3069_v38 = vrot.slane %v3067_v26, 5  ;;  %v5806_v40 = vunpack.c.l.bf16 %v5905_v13  ;;  %v2945_v7 = vld [vmem:[#allocation2 + $0x98] sm:$0x1f]  ;;  %v543_v50 = vld [vmem:[#allocation2 + $0x10] sm:$0xf8] }
  0x57   : > { %6399 = vmatmul.mubr.bf16.gmra.mrb[4].mxu0 %v3020_v63  ;;  %532 = vst [vmem:[#allocation2 + $0xd8] ss:$-4 sps:$4 sm:$0xff] %v488_v15   ;;  %v3054_v31 = vsel %vm1442_vm1, %v3045_v1, %v3053_v43  ;;  %v3062_v14 = vor.u32 %v3061_v24, %v3058_v23  ;;  %v5807_v16 = vunpack.c.h.bf16 %v5905_v13  ;;  %v3073_v53 = vshrl.u32 %v7321_v45, 16 }
  0x58   : > { %v7407_v54 = vld [vmem:[#allocation2 + $0xc8] sm:$0xf]  ;;  %v890_v48 = vld [vmem:[#allocation2 + $0xc0] sm:$0xf0]  ;;  %6402 = vmatprep.mubr.bf16.mxu0 %v3037_v39  ;;  %6431 = vmatpush3.bf16.msra.mxu0 %v6884_v18  ;;  %v457_v56 = vpack.c.bf16 %v439_v19, %v438_v30  ;;  %v3070_v59 = vor.u32 %v3069_v38, %v3066_v27  ;;  %v401_v62 = vmul.f32 %v5806_v40, %v7071_v20  ;;  %v3076_v11 = vshll.u32 %v7321_v45, 16 }
  0x59   : > { %v963_v12 = vrot.slane %v890_v48, 4  ;;  %v964_v63 = vrot.slane %v7407_v54, 4  ;;  %v402_v22 = vmul.f32 %v5807_v16, %v7071_v20  ;;  %v3075_v2 = vrot.slane %v3073_v53, 4  ;;  %6432 = vmatprep.subr.bf16.mxu0 %v6886_v0  ;;  %v6888_v39 = vld [vmem:[%s8032_s3 + $0x1a0] sm:$0xff]   ;;  %v2575_v45 = vld [vmem:[#allocation2 + $0x90] sm:$0xf0] }
  0x5a   : > { %v489_v34 = vrot.slane %v457_v56, 4  ;;  %v3071_v18 = vsel %vm1442_vm1, %v3062_v14, %v3070_v59  ;;  %v440_v1 = vadd.f32 %v7076_v21, %v401_v62  ;;  %v3078_v60 = vrot.slane %v3076_v11, 5  ;;  %v2576_v62 = vld [vmem:[#allocation2 + $0xa0] sm:$0xf0]  ;;  %v2946_v11 = vld [vmem:[#allocation2 + $0xa8] sm:$0x1f] }
  0x5b   : > { %v965_v32 = vsel %vm926_vm0, %v963_v12, %v964_v63  ;;  %v441_v36 = vadd.f32 %v7076_v21, %v402_v22  ;;  %v3081_v5 = vshrl.u32 %v2944_v41, 16  ;;  %v3084_v20 = vshll.u32 %v2944_v41, 16  ;;  %v6890_v21 = vld [vmem:[%s8032_s3 + $0x1a8] sm:$0xff]  }
  0x5c   : > { %6178 = vmatprep.mubr.bf16.mxu1 %v965_v32  ;;  %534 = vst [vmem:[#allocation2 + $0xe8] ss:$-4 sps:$4 sm:$0xff] %v489_v34   ;;  %v3079_v9 = vor.u32 %v3078_v60, %v3075_v2  ;;  %6433 = vmatpush3.bf16.msra.mxu0 %v6886_v0  ;;  %v575_v13 = vshrl.u32 %v541_v28, 16  ;;  %v578_v17 = vshll.u32 %v541_v28, 16  ;;  %v3090_v43 = vshrl.u32 %v2575_v45, 16 }
  0x5d   : > { %v458_v23 = vpack.c.bf16 %v441_v36, %v440_v1  ;;  %v3083_v26 = vrot.slane %v3081_v5, 4  ;;  %v3086_v15 = vrot.slane %v3084_v20, 5  ;;  %6434 = vmatprep.subr.bf16.mxu0 %v6888_v39  ;;  %v606_v0 = vor.u32 %v7179_v52, %v7177_v51  ;;  %v6892_v51 = vld [vmem:[%s8032_s3 + $0x1b0] sm:$0xff]   ;;  %v545_v34 = vld [vmem:[#allocation2 + $0x20] sm:$0xf8] }
  0x5e   : > { %v7426_v24 = vld [vmem:[#allocation2 + $0xd8] sm:$0xf]  ;;  %v891_v27 = vld [vmem:[#allocation2 + $0xd0] sm:$0xf0]  ;;  %v577_v30 = vrot.slane %v575_v13, 3  ;;  %v580_v19 = vrot.slane %v578_v17, 4  ;;  %v5810_v38 = vunpack.c.l.bf16 %v7421_v6  ;;  %v5811_v32 = vunpack.c.h.bf16 %v7421_v6 }
  0x5f   : > { %v966_v40 = vrot.slane %v891_v27, 4  ;;  %v967_v41 = vrot.slane %v7426_v24, 4  ;;  %6403 = vmatmul.mubr.bf16.gmra.mrb[8].mxu0 %v3054_v31  ;;  %v490_v14 = vrot.slane %v458_v23, 4  ;;  %v3087_v16 = vor.u32 %v3086_v15, %v3083_v26  ;;  %v6923_v36 = vld [vmem:[%s8030_s1] ss:$0 sm:$0xff]  ;;  %v6894_v6 = vld [vmem:[%s8032_s3 + $0x1b8] sm:$0xff]  }
  0x60   : > { %6406 = vmatprep.mubr.bf16.mxu0 %v3071_v18  ;;  %v581_v53 = vor.u32 %v580_v19, %v577_v30  ;;  %v3092_v48 = vrot.slane %v3090_v43, 4  ;;  %v3093_v56 = vshll.u32 %v2575_v45, 16  ;;  %v3098_v59 = vshrl.u32 %v2945_v7, 16  ;;  %6435 = vmatpush3.bf16.msra.mxu0 %v6888_v39  ;;  %v2577_v43 = vld [vmem:[#allocation2 + $0xb0] sm:$0xf0] }
  0x61   : > { %v968_v52 = vsel %vm926_vm0, %v966_v40, %v967_v41  ;;  %536 = vst [vmem:[#allocation2 + $0xf8] ss:$-4 sps:$4 sm:$0xff] %v490_v14   ;;  %v3088_v12 = vsel %vm1442_vm1, %v3079_v9, %v3087_v16  ;;  %v3101_v31 = vshll.u32 %v2945_v7, 16  ;;  %v592_v63 = vshrl.u32 %v543_v50, 16  ;;  %6436 = vmatprep.subr.bf16.mxu0 %v6890_v21 }
  0x62   : > { %6179 = vmatmul.mubr.bf16.gmra.mrb[24].mxu1 %v968_v52  ;;  %v7441_v22 = vsel %vm573_vm2, %v581_v53, %v589_v37  ;;  %v3095_v2 = vrot.slane %v3093_v56, 5  ;;  %v3100_v28 = vrot.slane %v3098_v59, 4  ;;  %v595_v39 = vshll.u32 %v543_v50, 16  ;;  %v547_v52 = vld [vmem:[#allocation2 + $0x30] sm:$0xf8] }
  0x63   : > { %v7443_v18 = vld [vmem:[#allocation2 + $0xe8] sm:$0xf]  ;;  %v892_v1 = vld [vmem:[#allocation2 + $0xe0] sm:$0xf0]  ;;  %v3103_v60 = vrot.slane %v3101_v31, 5  ;;  %v594_v45 = vrot.slane %v592_v63, 3  ;;  %v7449_v5 = vmul.f32 %v6923_v36, %v5810_v38 }
  0x64   : > { %v969_v44 = vrot.slane %v892_v1, 4  ;;  %v970_v49 = vrot.slane %v7443_v18, 4  ;;  %v3096_v37 = vor.u32 %v3095_v2, %v3092_v48  ;;  %v597_v20 = vrot.slane %v595_v39, 4  ;;  %6437 = vmatpush3.bf16.msra.mxu0 %v6890_v21  ;;  %v2947_v38 = vld [vmem:[#allocation2 + $0xb8] sm:$0x1f] }
  0x65   : > { %v3104_v7 = vor.u32 %v3103_v60, %v3100_v28  ;;  %v3107_v9 = vshrl.u32 %v2576_v62, 16  ;;  %v3110_v13 = vshll.u32 %v2576_v62, 16  ;;  %v3115_v17 = vshrl.u32 %v2946_v11, 16  ;;  %6438 = vmatprep.subr.bf16.mxu0 %v6892_v51  ;;  %v2578_v2 = vld [vmem:[#allocation2 + $0xc0] sm:$0xf0] }
  0x66   : > { %v971_v50 = vsel %vm926_vm0, %v969_v44, %v970_v49  ;;  %v598_v23 = vor.u32 %v597_v20, %v594_v45  ;;  %v3118_v26 = vshll.u32 %v2946_v11, 16  ;;  %v609_v15 = vshrl.u32 %v545_v34, 16  ;;  %v549_v20 = vld [vmem:[#allocation2 + $0x40] sm:$0xf8] }
  0x67   : > { %6182 = vmatprep.mubr.bf16.mxu1 %v971_v50  ;;  %6407 = vmatmul.mubr.bf16.gmra.mrb[12].mxu0 %v3088_v12  ;;  %v3105_v27 = vsel %vm1442_vm1, %v3096_v37, %v3104_v7  ;;  %v3109_v21 = vrot.slane %v3107_v9, 4  ;;  %v3112_v30 = vrot.slane %v3110_v13, 5  ;;  %v3117_v19 = vrot.slane %v3115_v17, 4  ;;  %v7466_v12 = vld [vmem:[%s8032_s3 + $0x1c0] sm:$0xff]   ;;  %v2948_v50 = vld [vmem:[#allocation2 + $0xc8] sm:$0x1f] }
  0x68   : > { %v7457_v40 = vld [vmem:[#allocation2 + $0xf8] sm:$0xf]  ;;  %v893_v41 = vld [vmem:[#allocation2 + $0xf0] sm:$0xf0]  ;;  %6410 = vmatprep.mubr.bf16.mxu0 %v3105_v27  ;;  %v607_v14 = vsel %vm573_vm2, %v598_v23, %v606_v0  ;;  %v3120_v16 = vrot.slane %v3118_v26, 5  ;;  %v611_v53 = vrot.slane %v609_v15, 3  ;;  %6439 = vmatpush3.bf16.msra.mxu0 %v6892_v51  ;;  %v7460_v48 = vmul.f32 %v6923_v36, %v5811_v32 }
  0x69   : > { %v972_v56 = vrot.slane %v893_v41, 4  ;;  %v973_v59 = vrot.slane %v7457_v40, 4  ;;  %v3113_v62 = vor.u32 %v3112_v30, %v3109_v21  ;;  %v612_v11 = vshll.u32 %v545_v34, 16  ;;  %6440 = vmatprep.subr.bf16.mxu0 %v6894_v6 }
  0x6a   : > { %v3121_v31 = vor.u32 %v3120_v16, %v3117_v19  ;;  %v617_v0 = vshrl.u32 %v7191_v61, 16  ;;  %v620_v63 = vshll.u32 %v7191_v61, 16  ;;  %v3124_v51 = vshrl.u32 %v2577_v43, 16 }
  0x6b   : > { %v974_v28 = vsel %vm926_vm0, %v972_v56, %v973_v59  ;;  %v614_v39 = vrot.slane %v612_v11, 4  ;;  %v3127_v1 = vshll.u32 %v2577_v43, 16  ;;  %v3132_v60 = vshrl.u32 %v2947_v38, 16 }
  0x6c   : > { %6183 = vmatmul.mubr.bf16.gmra.mrb[28].mxu1 %v974_v28  ;;  %v3122_v34 = vsel %vm1442_vm1, %v3113_v62, %v3121_v31  ;;  %v619_v45 = vrot.slane %v617_v0, 3  ;;  %v622_v32 = vrot.slane %v620_v63, 4  ;;  %v3126_v36 = vrot.slane %v3124_v51, 4  ;;  %6441 = vmatpush3.bf16.msra.mxu0 %v6894_v6  ;;  %v2579_v0 = vld [vmem:[#allocation2 + $0xd0] sm:$0xf0] }
  0x6d   : > { %6202 = vmatprep.mubr.bf16.mxu1 %v7441_v22  ;;  %v615_v44 = vor.u32 %v614_v39, %v611_v53  ;;  %v3129_v49 = vrot.slane %v3127_v1, 5  ;;  %v3134_v37 = vrot.slane %v3132_v60, 4  ;;  %v3135_v61 = vshll.u32 %v2947_v38, 16  ;;  %6474 = vmatprep.subr.bf16.mxu0 %v7466_v12  ;;  %v6889_v53 = vld [vmem:[%s8032_s3 + $0x88] sm:$0xff]   ;;  %v2949_v63 = vld [vmem:[#allocation2 + $0xd8] sm:$0x1f] }
  0x6e   : > { %v623_v7 = vor.u32 %v622_v32, %v619_v45  ;;  %v626_v9 = vshrl.u32 %v547_v52, 16  ;;  %v629_v13 = vshll.u32 %v547_v52, 16  ;;  %v634_v17 = vshrl.u32 %v7211_v25, 16  ;;  %v551_v32 = vld [vmem:[#allocation2 + $0x50] sm:$0xf8] }
  0x6f   : > { %6411 = vmatmul.mubr.bf16.gmra.mrb[16].mxu0 %v3122_v34  ;;  %v3130_v23 = vor.u32 %v3129_v49, %v3126_v36  ;;  %v3137_v26 = vrot.slane %v3135_v61, 5  ;;  %v637_v6 = vshll.u32 %v7211_v25, 16  ;;  %v3141_v15 = vshrl.u32 %v2578_v2, 16  ;;  %v2580_v61 = vld [vmem:[#allocation2 + $0xe0] sm:$0xf0] }
  0x70   : > { %v624_v22 = vsel %vm573_vm2, %v615_v44, %v623_v7  ;;  %v628_v43 = vrot.slane %v626_v9, 3  ;;  %v631_v27 = vrot.slane %v629_v13, 4  ;;  %v636_v21 = vrot.slane %v634_v17, 3 }
  0x71   : > { %v3138_v30 = vor.u32 %v3137_v26, %v3134_v37  ;;  %v639_v19 = vrot.slane %v637_v6, 4  ;;  %v3143_v38 = vrot.slane %v3141_v15, 4  ;;  %v3144_v41 = vshll.u32 %v2578_v2, 16  ;;  %v6891_v37 = vld [vmem:[%s8032_s3 + $0x90] sm:$0xff]  }
  0x72   : > { %v632_v16 = vor.u32 %v631_v27, %v628_v43  ;;  %v3149_v56 = vshrl.u32 %v2948_v50, 16  ;;  %v3152_v59 = vshll.u32 %v2948_v50, 16  ;;  %v643_v62 = vshrl.u32 %v549_v20, 16 }
  0x73   : > { %v3139_v25 = vsel %vm1442_vm1, %v3130_v23, %v3138_v30  ;;  %v640_v11 = vor.u32 %v639_v19, %v636_v21  ;;  %v3146_v52 = vrot.slane %v3144_v41, 5  ;;  %v646_v31 = vshll.u32 %v549_v20, 16  ;;  %v6893_v19 = vld [vmem:[%s8032_s3 + $0x98] sm:$0xff]  }
  0x74   : > { %6203 = vmatmul.mubr.bf16.vlgmr.msra.gmra.mrb[0].mxu1 %v607_v14  ;;  %6414 = vmatprep.mubr.bf16.mxu0 %v3139_v25  ;;  %v3151_v51 = vrot.slane %v3149_v56, 4  ;;  %v3154_v28 = vrot.slane %v3152_v59, 5  ;;  %v645_v2 = vrot.slane %v643_v62, 3  ;;  %v651_v39 = vshrl.u32 %v7227_v46, 16  ;;  %v553_v56 = vld [vmem:[#allocation2 + $0x60] sm:$0xf8] }
  0x75   : > { %6235 = vmatpush3.bf16.msra.mxu1 %v7356_v42  ;;  %6206 = vmatprep.mubr.bf16.mxu1 %v624_v22  ;;  %v641_v1 = vsel %vm573_vm2, %v632_v16, %v640_v11  ;;  %v3147_v60 = vor.u32 %v3146_v52, %v3143_v38  ;;  %v648_v34 = vrot.slane %v646_v31, 4  ;;  %v654_v45 = vshll.u32 %v7227_v46, 16  ;;  %v2950_v22 = vld [vmem:[#allocation2 + $0xe8] sm:$0x1f] }
  0x76   : > { %6236 = vmatprep.subr.bf16.mxu1 %v6889_v53  ;;  %v3155_v36 = vor.u32 %v3154_v28, %v3151_v51  ;;  %v653_v44 = vrot.slane %v651_v39, 3  ;;  %v3158_v14 = vshrl.u32 %v2579_v0, 16  ;;  %v3161_v49 = vshll.u32 %v2579_v0, 16 }
  0x77   : > { %v649_v20 = vor.u32 %v648_v34, %v645_v2  ;;  %v656_v42 = vrot.slane %v654_v45, 4  ;;  %v3166_v7 = vshrl.u32 %v2949_v63, 16  ;;  %v3169_v9 = vshll.u32 %v2949_v63, 16  ;;  %v2581_v63 = vld [vmem:[#allocation2 + $0xf0] sm:$0xf0] }
  0x78   : > { %v3156_v13 = vsel %vm1442_vm1, %v3147_v60, %v3155_v36  ;;  %v3160_v17 = vrot.slane %v3158_v14, 4  ;;  %v3163_v50 = vrot.slane %v3161_v49, 5  ;;  %v660_v46 = vshrl.u32 %v551_v32, 16  ;;  %v2951_v60 = vld [vmem:[#allocation2 + $0xf8] sm:$0x1f] }
  0x79   : > { %6415 = vmatmul.mubr.bf16.gmra.mrb[20].mxu0 %v3156_v13  ;;  %6237 = vmatpush3.bf16.msra.mxu1 %v6889_v53  ;;  %v657_v23 = vor.u32 %v656_v42, %v653_v44  ;;  %v3168_v26 = vrot.slane %v3166_v7, 4  ;;  %v3171_v6 = vrot.slane %v3169_v9, 5  ;;  %v663_v15 = vshll.u32 %v551_v32, 16 }
  0x7a   : > { %v3164_v43 = vor.u32 %v3163_v50, %v3160_v17  ;;  %v662_v27 = vrot.slane %v660_v46, 3  ;;  %v668_v21 = vshrl.u32 %v7276_v47, 16  ;;  %v671_v30 = vshll.u32 %v7276_v47, 16  ;;  %6238 = vmatprep.subr.bf16.mxu1 %v6891_v37 }
  0x7b   : > { %v658_v38 = vsel %vm573_vm2, %v649_v20, %v657_v23  ;;  %v3172_v41 = vor.u32 %v3171_v6, %v3168_v26  ;;  %v665_v16 = vrot.slane %v663_v15, 4  ;;  %v3175_v53 = vshrl.u32 %v2580_v61, 16 }
  0x7c   : > { %6207 = vmatmul.mubr.bf16.gmra.mrb[4].mxu1 %v641_v1  ;;  %v670_v59 = vrot.slane %v668_v21, 3  ;;  %v673_v62 = vrot.slane %v671_v30, 4  ;;  %v3178_v25 = vshll.u32 %v2580_v61, 16  ;;  %v3183_v11 = vshrl.u32 %v2950_v22, 16  ;;  %v6895_v1 = vld [vmem:[%s8032_s3 + $0xa0] sm:$0xff]  }
  0x7d   : > { %6210 = vmatprep.mubr.bf16.mxu1 %v658_v38  ;;  %v3173_v52 = vsel %vm1442_vm1, %v3164_v43, %v3172_v41  ;;  %v666_v47 = vor.u32 %v665_v16, %v662_v27  ;;  %v3177_v31 = vrot.slane %v3175_v53, 4  ;;  %v3186_v0 = vshll.u32 %v2950_v22, 16  ;;  %6239 = vmatpush3.bf16.msra.mxu1 %v6891_v37  ;;  %v555_v61 = vld [vmem:[#allocation2 + $0x70] sm:$0xf8]  ;;  %v557_v22 = vld [vmem:[#allocation2 + $0x80] sm:$0xf8] }
  0x7e   : > { %6418 = vmatprep.mubr.bf16.mxu0 %v3173_v52  ;;  %v674_v51 = vor.u32 %v673_v62, %v670_v59  ;;  %v3180_v28 = vrot.slane %v3178_v25, 5  ;;  %v3185_v2 = vrot.slane %v3183_v11, 4  ;;  %v677_v39 = vshrl.u32 %v553_v56, 16  ;;  %6240 = vmatprep.subr.bf16.mxu1 %v6893_v19  ;;  %v6924_v62 = vld [vmem:[%s8031_s2] ss:$0 sm:$0xff]  ;;  %v6899_v52 = vld [vmem:[%s8032_s3 + $0xb0] sm:$0xff]  }
  0x7f   : > { %v3188_v34 = vrot.slane %v3186_v0, 5  ;;  %v680_v45 = vshll.u32 %v553_v56, 16  ;;  %v685_v32 = vshrl.u32 %v7302_v3, 16  ;;  %v688_v36 = vshll.u32 %v7302_v3, 16  ;;  %v6897_v3 = vld [vmem:[%s8032_s3 + $0xa8] sm:$0xff]  }
  0x80   : > { %v675_v44 = vsel %vm573_vm2, %v666_v47, %v674_v51  ;;  %v3181_v14 = vor.u32 %v3180_v28, %v3177_v31  ;;  %v679_v49 = vrot.slane %v677_v39, 3  ;;  %v3192_v37 = vshrl.u32 %v2581_v63, 16  ;;  %v3500_v11 = vld [vmem:[#allocation2 + $0x20] sm:$0xf8]  ;;  %v3501_v39 = vld [vmem:[#allocation2 + $0x28] sm:$0xf] }
  0x81   : > { %v3189_v20 = vor.u32 %v3188_v34, %v3185_v2  ;;  %v682_v42 = vrot.slane %v680_v45, 4  ;;  %v687_v7 = vrot.slane %v685_v32, 3  ;;  %v690_v9 = vrot.slane %v688_v36, 4  ;;  %6241 = vmatpush3.bf16.msra.mxu1 %v6893_v19  ;;  %v559_v45 = vld [vmem:[#allocation2 + $0x90] sm:$0xf8] }
  0x82   : > { %v3194_v13 = vrot.slane %v3192_v37, 4  ;;  %v3195_v17 = vshll.u32 %v2581_v63, 16  ;;  %v3200_v50 = vshrl.u32 %v2951_v60, 16  ;;  %v3203_v46 = vshll.u32 %v2951_v60, 16  ;;  %6242 = vmatprep.subr.bf16.mxu1 %v6895_v1 }
  0x83   : > { %v3190_v23 = vsel %vm1442_vm1, %v3181_v14, %v3189_v20  ;;  %v683_v26 = vor.u32 %v682_v42, %v679_v49  ;;  %v691_v6 = vor.u32 %v690_v9, %v687_v7  ;;  %v694_v15 = vshrl.u32 %v555_v61, 16  ;;  %v3502_v49 = vld [vmem:[#allocation2 + $0x30] sm:$0xf8] }
  0x84   : > { %6211 = vmatmul.mubr.bf16.gmra.mrb[8].mxu1 %v675_v44  ;;  %6419 = vmatmul.mubr.bf16.gmra.mrb[24].mxu0 %v3190_v23  ;;  %v3197_v43 = vrot.slane %v3195_v17, 5  ;;  %v3202_v27 = vrot.slane %v3200_v50, 4  ;;  %v3205_v21 = vrot.slane %v3203_v46, 5  ;;  %v697_v30 = vshll.u32 %v555_v61, 16  ;;  %v3503_v17 = vld [vmem:[#allocation2 + $0x38] sm:$0xf] }
  0x85   : > { %v692_v19 = vsel %vm573_vm2, %v683_v26, %v691_v6  ;;  %v696_v38 = vrot.slane %v694_v15, 3  ;;  %v702_v41 = vshrl.u32 %v7315_v33, 16  ;;  %v705_v16 = vshll.u32 %v7315_v33, 16  ;;  %6243 = vmatpush3.bf16.msra.mxu1 %v6895_v1  ;;  %v561_v26 = vld [vmem:[#allocation2 + $0xa0] sm:$0xf8] }
  0x86   : > { %6214 = vmatprep.mubr.bf16.mxu1 %v692_v19  ;;  %v3198_v53 = vor.u32 %v3197_v43, %v3194_v13  ;;  %v3206_v56 = vor.u32 %v3205_v21, %v3202_v27  ;;  %v699_v59 = vrot.slane %v697_v30, 4  ;;  %v442_v25 = vadd.f32 %v6924_v62, %v7449_v5  ;;  %6244 = vmatprep.subr.bf16.mxu1 %v6897_v3  ;;  %v7529_v27 = vld [vmem:[%s8032_s3 + $0xc0] sm:$0xff]  }
  0x87   : > { %v704_v47 = vrot.slane %v702_v41, 3  ;;  %v707_v31 = vrot.slane %v705_v16, 4  ;;  %v443_v33 = vadd.f32 %v6924_v62, %v7460_v48  ;;  %v711_v0 = vshrl.u32 %v557_v22, 16  ;;  %v6901_v48 = vld [vmem:[%s8032_s3 + $0xb8] sm:$0xff]  }
  0x88   : > { %v3207_v63 = vsel %vm1442_vm1, %v3198_v53, %v3206_v56  ;;  %v700_v51 = vor.u32 %v699_v59, %v696_v38  ;;  %v714_v28 = vshll.u32 %v557_v22, 16  ;;  %v719_v2 = vshrl.u32 %v7326_v29, 16 }
  0x89   : > { %6422 = vmatprep.mubr.bf16.mxu0 %v3207_v63  ;;  %v708_v5 = vor.u32 %v707_v31, %v704_v47  ;;  %v459_v60 = vpack.c.bf16 %v443_v33, %v442_v25  ;;  %v713_v1 = vrot.slane %v711_v0, 3  ;;  %v722_v34 = vshll.u32 %v7326_v29, 16  ;;  %6245 = vmatpush3.bf16.msra.mxu1 %v6897_v3 }
  0x8a   : > { %v716_v32 = vrot.slane %v714_v28, 4  ;;  %v721_v36 = vrot.slane %v719_v2, 3  ;;  %v3533_v44 = vshrl.u32 %v3500_v11, 16  ;;  %v3536_v14 = vshll.u32 %v3500_v11, 16  ;;  %6246 = vmatprep.subr.bf16.mxu1 %v6899_v52  ;;  %v3504_v28 = vld [vmem:[#allocation2 + $0x40] sm:$0xf8] }
  0x8b   : > { %v709_v37 = vsel %vm573_vm2, %v700_v51, %v708_v5  ;;  %v491_v61 = vrot.slane %v459_v60, 4  ;;  %v724_v20 = vrot.slane %v722_v34, 4  ;;  %v3541_v42 = vshrl.u32 %v3501_v39, 16 }
  0x8c   : > { %6215 = vmatmul.mubr.bf16.gmra.mrb[12].mxu1 %v709_v37  ;;  %v717_v7 = vor.u32 %v716_v32, %v713_v1  ;;  %v3535_v29 = vrot.slane %v3533_v44, 3  ;;  %v3538_v9 = vrot.slane %v3536_v14, 4  ;;  %v3544_v13 = vshll.u32 %v3501_v39, 16 }
  0x8d   : > { %538 = vst [vmem:[#allocation2 + $0x108] ss:$-4 sps:$4 sm:$0xff] %v491_v61   ;;  %v725_v50 = vor.u32 %v724_v20, %v721_v36  ;;  %v3543_v46 = vrot.slane %v3541_v42, 3  ;;  %v728_v3 = vshrl.u32 %v559_v45, 16  ;;  %v731_v23 = vshll.u32 %v559_v45, 16  ;;  %6247 = vmatpush3.bf16.msra.mxu1 %v6899_v52 }
  0x8e   : > { %v3539_v6 = vor.u32 %v3538_v9, %v3535_v29  ;;  %v3546_v15 = vrot.slane %v3544_v13, 4  ;;  %v736_v22 = vshrl.u32 %v7345_v8, 16  ;;  %v739_v43 = vshll.u32 %v7345_v8, 16  ;;  %6248 = vmatprep.subr.bf16.mxu1 %v6901_v48  ;;  %v7537_v61 = vld [vmem:[#allocation2 + $0x48] sm:$0xf] }
  0x8f   : > { %v726_v21 = vsel %vm573_vm2, %v717_v7, %v725_v50  ;;  %v730_v30 = vrot.slane %v728_v3, 3  ;;  %v733_v19 = vrot.slane %v731_v23, 4  ;;  %v3550_v38 = vshrl.u32 %v3502_v49, 16  ;;  %v563_v9 = vld [vmem:[#allocation2 + $0xb0] sm:$0xf8] }
  0x90   : > { %6218 = vmatprep.mubr.bf16.mxu1 %v726_v21  ;;  %v3547_v41 = vor.u32 %v3546_v15, %v3543_v46  ;;  %v738_v16 = vrot.slane %v736_v22, 3  ;;  %v741_v53 = vrot.slane %v739_v43, 4  ;;  %v3553_v56 = vshll.u32 %v3502_v49, 16 }
  0x91   : > { %v734_v59 = vor.u32 %v733_v19, %v730_v30  ;;  %v3552_v62 = vrot.slane %v3550_v38, 3  ;;  %v3558_v25 = vshrl.u32 %v3503_v17, 16  ;;  %v3561_v8 = vshll.u32 %v3503_v17, 16  ;;  %6249 = vmatpush3.bf16.msra.mxu1 %v6901_v48  ;;  %v7543_v30 = vld [vmem:[#allocation2 + $0x58] sm:$0xf] }
  0x92   : > { %v3548_v11 = vsel %vm573_vm2, %v3539_v6, %v3547_v41  ;;  %v742_v52 = vor.u32 %v741_v53, %v738_v16  ;;  %v3555_v47 = vrot.slane %v3553_v56, 4  ;;  %v745_v31 = vshrl.u32 %v561_v26, 16  ;;  %6282 = vmatprep.subr.bf16.mxu1 %v7529_v27  ;;  %v3506_v6 = vld [vmem:[#allocation2 + $0x50] sm:$0xf8]  ;;  %v565_v53 = vld [vmem:[#allocation2 + $0xc0] sm:$0xf8] }
  0x93   : > { %v3560_v33 = vrot.slane %v3558_v25, 3  ;;  %v3563_v0 = vrot.slane %v3561_v8, 4  ;;  %v748_v63 = vshll.u32 %v561_v26, 16  ;;  %v753_v51 = vshrl.u32 %v7368_v55, 16 }
  0x94   : > { %v2582_v2 = vld [vmem:[#allocation2 + $0x100] sm:$0xf0]  ;;  %v2952_v39 = vld [vmem:[#allocation2 + $0x108] sm:$0x1f]  ;;  %v743_v5 = vsel %vm573_vm2, %v734_v59, %v742_v52  ;;  %v3556_v60 = vor.u32 %v3555_v47, %v3552_v62  ;;  %v747_v1 = vrot.slane %v745_v31, 3  ;;  %v756_v34 = vshll.u32 %v7368_v55, 16 }
  0x95   : > { %v3209_v45 = vshrl.u32 %v2582_v2, 16  ;;  %v3212_v48 = vshll.u32 %v2582_v2, 16  ;;  %v3217_v32 = vshrl.u32 %v2952_v39, 16  ;;  %v3220_v36 = vshll.u32 %v2952_v39, 16  ;;  %6219 = vmatmul.mubr.bf16.gmra.mrb[16].mxu1 %v743_v5 }
  0x96   : > { %v3564_v44 = vor.u32 %v3563_v0, %v3560_v33  ;;  %v750_v14 = vrot.slane %v748_v63, 4  ;;  %v755_v49 = vrot.slane %v753_v51, 3  ;;  %v758_v37 = vrot.slane %v756_v34, 4 }
  0x97   : > { %v3211_v20 = vrot.slane %v3209_v45, 4  ;;  %v3214_v42 = vrot.slane %v3212_v48, 5  ;;  %v3219_v7 = vrot.slane %v3217_v32, 4  ;;  %v3222_v29 = vrot.slane %v3220_v36, 5 }
  0x98   : > { %v3565_v13 = vsel %vm573_vm2, %v3556_v60, %v3564_v44  ;;  %v751_v17 = vor.u32 %v750_v14, %v747_v1  ;;  %v759_v55 = vor.u32 %v758_v37, %v755_v49  ;;  %v3567_v50 = vshrl.u32 %v3504_v28, 16  ;;  %v3508_v60 = vld [vmem:[#allocation2 + $0x60] sm:$0xf8]  ;;  %v7552_v44 = vld [vmem:[#allocation2 + $0x68] sm:$0xf] }
  0x99   : > { %v3215_v46 = vor.u32 %v3214_v42, %v3211_v20  ;;  %v3223_v3 = vor.u32 %v3222_v29, %v3219_v7  ;;  %v3570_v23 = vshll.u32 %v3504_v28, 16  ;;  %v3575_v26 = vshrl.u32 %v7537_v61, 16  ;;  %v6898_v49 = vld [vmem:[%s8032_s3 + $0x1c8] sm:$0xff]   ;;  %v567_v7 = vld [vmem:[#allocation2 + $0xd0] sm:$0xf8] }
  0x9a   : > { %v760_v15 = vsel %vm573_vm2, %v751_v17, %v759_v55  ;;  %v3569_v22 = vrot.slane %v3567_v50, 3  ;;  %v3578_v43 = vshll.u32 %v7537_v61, 16  ;;  %v762_v21 = vshrl.u32 %v563_v9, 16 }
  0x9b   : > { %v3224_v19 = vsel %vm1442_vm1, %v3215_v46, %v3223_v3  ;;  %6222 = vmatprep.mubr.bf16.mxu1 %v760_v15  ;;  %v3572_v38 = vrot.slane %v3570_v23, 4  ;;  %v3577_v41 = vrot.slane %v3575_v26, 3  ;;  %v765_v16 = vshll.u32 %v563_v9, 16  ;;  %v3510_v26 = vld [vmem:[#allocation2 + $0x70] sm:$0xf8] }
  0x9c   : > { %6423 = vmatmul.mubr.bf16.gmra.mrb[28].mxu0 %v3224_v19  ;;  %v3580_v56 = vrot.slane %v3578_v43, 4  ;;  %v764_v59 = vrot.slane %v762_v21, 3  ;;  %v770_v62 = vshrl.u32 %v7380_v35, 16  ;;  %v773_v25 = vshll.u32 %v7380_v35, 16 }
  0x9d   : > { %6442 = vmatprep.mubr.bf16.mxu0 %v3548_v11  ;;  %v3573_v8 = vor.u32 %v3572_v38, %v3569_v22  ;;  %v767_v52 = vrot.slane %v765_v16, 4  ;;  %v3584_v47 = vshrl.u32 %v3506_v6, 16  ;;  %v3587_v31 = vshll.u32 %v3506_v6, 16  ;;  %v7563_v38 = vld [vmem:[#allocation2 + $0x78] sm:$0xf] }
  0x9e   : > { %v3581_v33 = vor.u32 %v3580_v56, %v3577_v41  ;;  %v772_v0 = vrot.slane %v770_v62, 3  ;;  %v775_v63 = vrot.slane %v773_v25, 4  ;;  %v3592_v51 = vshrl.u32 %v7543_v30, 16  ;;  %v6900_v41 = vld [vmem:[%s8032_s3 + $0x1d0] sm:$0xff]  }
  0x9f   : > { %v768_v28 = vor.u32 %v767_v52, %v764_v59  ;;  %v3586_v2 = vrot.slane %v3584_v47, 3  ;;  %v3589_v39 = vrot.slane %v3587_v31, 4  ;;  %v3595_v5 = vshll.u32 %v7543_v30, 16  ;;  %v569_v59 = vld [vmem:[#allocation2 + $0xe0] sm:$0xf8] }
  0xa0   : > { %v3582_v1 = vsel %vm573_vm2, %v3573_v8, %v3581_v33  ;;  %v776_v34 = vor.u32 %v775_v63, %v772_v0  ;;  %v3594_v35 = vrot.slane %v3592_v51, 3  ;;  %v779_v11 = vshrl.u32 %v565_v53, 16  ;;  %v6902_v63 = vld [vmem:[%s8032_s3 + $0x1d8] sm:$0xff]  }
  0xa1   : > { %v3590_v45 = vor.u32 %v3589_v39, %v3586_v2  ;;  %v3597_v48 = vrot.slane %v3595_v5, 4  ;;  %v782_v32 = vshll.u32 %v565_v53, 16  ;;  %v787_v36 = vshrl.u32 %v7407_v54, 16  ;;  %v3512_v39 = vld [vmem:[#allocation2 + $0x80] sm:$0xf8] }
  0xa2   : > { %v777_v14 = vsel %vm573_vm2, %v768_v28, %v776_v34  ;;  %v781_v37 = vrot.slane %v779_v11, 3  ;;  %v790_v20 = vshll.u32 %v7407_v54, 16  ;;  %v3601_v42 = vshrl.u32 %v3508_v60, 16  ;;  %v7577_v5 = vld [vmem:[#allocation2 + $0x88] sm:$0xf] }
  0xa3   : > { %6223 = vmatmul.mubr.bf16.gmra.mrb[20].mxu1 %v777_v14  ;;  %v3598_v29 = vor.u32 %v3597_v48, %v3594_v35  ;;  %v784_v9 = vrot.slane %v782_v32, 4  ;;  %v789_v17 = vrot.slane %v787_v36, 3  ;;  %v3604_v55 = vshll.u32 %v3508_v60, 16 }
  0xa4   : > { %6443 = vmatmul.mubr.bf16.vlgmr.msra.gmra.mrb[0].mxu0 %v3565_v13  ;;  %v792_v50 = vrot.slane %v790_v20, 4  ;;  %v3603_v46 = vrot.slane %v3601_v42, 3  ;;  %v3609_v3 = vshrl.u32 %v7552_v44, 16  ;;  %v3612_v23 = vshll.u32 %v7552_v44, 16  ;;  %v571_v20 = vld [vmem:[#allocation2 + $0xf0] sm:$0xf8] }
  0xa5   : > { %6475 = vmatpush3.bf16.msra.mxu0 %v7466_v12  ;;  %6446 = vmatprep.mubr.bf16.mxu0 %v3582_v1  ;;  %v3599_v54 = vsel %vm573_vm2, %v3590_v45, %v3598_v29  ;;  %v785_v6 = vor.u32 %v784_v9, %v781_v37  ;;  %v3606_v15 = vrot.slane %v3604_v55, 4  ;;  %v796_v22 = vshrl.u32 %v567_v7, 16 }
  0xa6   : > { %6476 = vmatprep.subr.bf16.mxu0 %v6898_v49  ;;  %v793_v43 = vor.u32 %v792_v50, %v789_v17  ;;  %v3611_v21 = vrot.slane %v3609_v3, 3  ;;  %v3614_v19 = vrot.slane %v3612_v23, 4  ;;  %v799_v13 = vshll.u32 %v567_v7, 16  ;;  %v6904_v17 = vld [vmem:[%s8032_s3 + $0x1e0] sm:$0xff]  }
  0xa7   : > { %v3607_v16 = vor.u32 %v3606_v15, %v3603_v46  ;;  %v798_v53 = vrot.slane %v796_v22, 3  ;;  %v804_v12 = vshrl.u32 %v7426_v24, 16  ;;  %v807_v56 = vshll.u32 %v7426_v24, 16  ;;  %v7588_v15 = vld [vmem:[#allocation2 + $0x98] sm:$0xf] }
  0xa8   : > { %v794_v62 = vsel %vm573_vm2, %v785_v6, %v793_v43  ;;  %v3615_v25 = vor.u32 %v3614_v19, %v3611_v21  ;;  %v801_v8 = vrot.slane %v799_v13, 4  ;;  %v3618_v52 = vshrl.u32 %v3510_v26, 16  ;;  %v3514_v6 = vld [vmem:[#allocation2 + $0x90] sm:$0xf8] }
  0xa9   : > { %6477 = vmatpush3.bf16.msra.mxu0 %v6898_v49  ;;  %6226 = vmatprep.mubr.bf16.mxu1 %v794_v62  ;;  %v806_v47 = vrot.slane %v804_v12, 3  ;;  %v809_v31 = vrot.slane %v807_v56, 4  ;;  %v3621_v33 = vshll.u32 %v3510_v26, 16  ;;  %v3626_v0 = vshrl.u32 %v7563_v38, 16  ;;  %v6906_v12 = vld [vmem:[%s8032_s3 + $0x1e8] sm:$0xff]  }
  0xaa   : > { %v3616_v51 = vsel %vm573_vm2, %v3607_v16, %v3615_v25  ;;  %v802_v24 = vor.u32 %v801_v8, %v798_v53  ;;  %v3620_v28 = vrot.slane %v3618_v52, 3  ;;  %v3629_v2 = vshll.u32 %v7563_v38, 16  ;;  %6478 = vmatprep.subr.bf16.mxu0 %v6900_v41  ;;  %v1426_v8 = vld [vmem:[#allocation2 + $0x8] sm:$0x1f] }
  0xab   : > { %v810_v60 = vor.u32 %v809_v31, %v806_v47  ;;  %v3623_v1 = vrot.slane %v3621_v33, 4  ;;  %v3628_v34 = vrot.slane %v3626_v0, 3  ;;  %v813_v35 = vshrl.u32 %v569_v59, 16 }
  0xac   : > { %6447 = vmatmul.mubr.bf16.gmra.mrb[4].mxu0 %v3599_v54  ;;  %v3631_v11 = vrot.slane %v3629_v2, 4  ;;  %v816_v45 = vshll.u32 %v569_v59, 16  ;;  %v821_v48 = vshrl.u32 %v7443_v18, 16  ;;  %v824_v32 = vshll.u32 %v7443_v18, 16 }
  0xad   : > { %6450 = vmatprep.mubr.bf16.mxu0 %v3616_v51  ;;  %v811_v36 = vsel %vm573_vm2, %v802_v24, %v810_v60  ;;  %v3624_v14 = vor.u32 %v3623_v1, %v3620_v28  ;;  %6479 = vmatpush3.bf16.msra.mxu0 %v6900_v41  ;;  %v815_v49 = vrot.slane %v813_v35, 3  ;;  %v3635_v37 = vshrl.u32 %v3512_v39, 16  ;;  %v3516_v24 = vld [vmem:[#allocation2 + $0xa0] sm:$0xf8]  ;;  %v6908_v35 = vld [vmem:[%s8032_s3 + $0x1f0] sm:$0xff]  }
  0xae   : > { %6227 = vmatmul.mubr.bf16.gmra.mrb[24].mxu1 %v811_v36  ;;  %v3632_v42 = vor.u32 %v3631_v11, %v3628_v34  ;;  %v818_v7 = vrot.slane %v816_v45, 4  ;;  %v823_v29 = vrot.slane %v821_v48, 3  ;;  %v826_v9 = vrot.slane %v824_v32, 4  ;;  %6480 = vmatprep.subr.bf16.mxu0 %v6902_v63  ;;  %v6925_v60 = vld [vmem:[#allocation2] sm:$0xf0] }
  0xaf   : > { %v3637_v55 = vrot.slane %v3635_v37, 3  ;;  %v3638_v18 = vshll.u32 %v3512_v39, 16  ;;  %v3643_v50 = vshrl.u32 %v7577_v5, 16  ;;  %v3646_v46 = vshll.u32 %v7577_v5, 16  ;;  %v7599_v34 = vld [vmem:[#allocation2 + $0xa8] sm:$0xf] }
  0xb0   : > { %v3633_v3 = vsel %vm573_vm2, %v3624_v14, %v3632_v42  ;;  %v819_v23 = vor.u32 %v818_v7, %v815_v49  ;;  %v827_v26 = vor.u32 %v826_v9, %v823_v29  ;;  %v830_v54 = vshrl.u32 %v571_v20, 16  ;;  %v1427_v36 = vld [vmem:[#allocation2 + $0x18] sm:$0x1f]  ;;  %v3518_v42 = vld [vmem:[#allocation2 + $0xb0] sm:$0xf8] }
  0xb1   : > { %v3640_v22 = vrot.slane %v3638_v18, 4  ;;  %v3645_v43 = vrot.slane %v3643_v50, 3  ;;  %v3648_v21 = vrot.slane %v3646_v46, 4  ;;  %v833_v19 = vshll.u32 %v571_v20, 16  ;;  %6481 = vmatpush3.bf16.msra.mxu0 %v6902_v63 }
  0xb2   : > { %v828_v13 = vsel %vm573_vm2, %v819_v23, %v827_v26  ;;  %v832_v41 = vrot.slane %v830_v54, 3  ;;  %v838_v16 = vshrl.u32 %v7457_v40, 16  ;;  %v841_v53 = vshll.u32 %v7457_v40, 16  ;;  %6482 = vmatprep.subr.bf16.mxu0 %v6904_v17 }
  0xb3   : > { %6230 = vmatprep.mubr.bf16.mxu1 %v828_v13  ;;  %v3641_v56 = vor.u32 %v3640_v22, %v3637_v55  ;;  %v3649_v59 = vor.u32 %v3648_v21, %v3645_v43  ;;  %v835_v62 = vrot.slane %v833_v19, 4  ;;  %v3652_v25 = vshrl.u32 %v3514_v6, 16  ;;  %v6910_v55 = vld [vmem:[%s8032_s3 + $0x1f8] sm:$0xff]  }
  0xb4   : > { %6451 = vmatmul.mubr.bf16.gmra.mrb[8].mxu0 %v3633_v3  ;;  %v840_v52 = vrot.slane %v838_v16, 3  ;;  %v843_v47 = vrot.slane %v841_v53, 4  ;;  %v3655_v31 = vshll.u32 %v3514_v6, 16  ;;  %v3660_v33 = vshrl.u32 %v7588_v15, 16  ;;  %v7613_v22 = vld [vmem:[#allocation2 + $0xb8] sm:$0xf] }
  0xb5   : > { %v3650_v0 = vsel %vm573_vm2, %v3641_v56, %v3649_v59  ;;  %v836_v40 = vor.u32 %v835_v62, %v832_v41  ;;  %v3654_v63 = vrot.slane %v3652_v25, 3  ;;  %v3663_v51 = vshll.u32 %v7588_v15, 16  ;;  %6483 = vmatpush3.bf16.msra.mxu0 %v6904_v17  ;;  %v1428_v41 = vld [vmem:[#allocation2 + $0x28] sm:$0x1f]  ;;  %v7619_v59 = vld [vmem:[%s8032_s3 + $0x200] sm:$0xff]  }
  0xb6   : > { %6454 = vmatprep.mubr.bf16.mxu0 %v3650_v0  ;;  %v844_v28 = vor.u32 %v843_v47, %v840_v52  ;;  %v3657_v2 = vrot.slane %v3655_v31, 4  ;;  %v3662_v39 = vrot.slane %v3660_v33, 3  ;;  %v1444_v1 = vshrl.u32 %v6925_v60, 16  ;;  %6484 = vmatprep.subr.bf16.mxu0 %v6906_v12 }
  0xb7   : > { %v3665_v11 = vrot.slane %v3663_v51, 4  ;;  %v1447_v45 = vshll.u32 %v6925_v60, 16  ;;  %v1452_v48 = vshrl.u32 %v1426_v8, 16  ;;  %v1455_v32 = vshll.u32 %v1426_v8, 16  ;;  %v3520_v8 = vld [vmem:[#allocation2 + $0xc0] sm:$0xf8] }
  0xb8   : > { %v845_v14 = vsel %vm573_vm2, %v836_v40, %v844_v28  ;;  %v3658_v49 = vor.u32 %v3657_v2, %v3654_v63  ;;  %v1446_v37 = vrot.slane %v1444_v1, 4  ;;  %v3669_v20 = vshrl.u32 %v3516_v24, 16  ;;  %v6926_v63 = vld [vmem:[#allocation2 + $0x20] sm:$0xf0]  ;;  %v7624_v1 = vld [vmem:[#allocation2 + $0xc8] sm:$0xf] }
  0xb9   : > { %6231 = vmatmul.mubr.bf16.gmra.mrb[28].mxu1 %v845_v14  ;;  %v3666_v7 = vor.u32 %v3665_v11, %v3662_v39  ;;  %v1449_v29 = vrot.slane %v1447_v45, 5  ;;  %v1454_v9 = vrot.slane %v1452_v48, 4  ;;  %v1457_v17 = vrot.slane %v1455_v32, 5  ;;  %6485 = vmatpush3.bf16.msra.mxu0 %v6906_v12 }
  0xba   : > { %v3671_v18 = vrot.slane %v3669_v20, 3  ;;  %v3672_v50 = vshll.u32 %v3516_v24, 16  ;;  %v3677_v46 = vshrl.u32 %v7599_v34, 16  ;;  %v3680_v3 = vshll.u32 %v7599_v34, 16  ;;  %6486 = vmatprep.subr.bf16.mxu0 %v6908_v35 }
  0xbb   : > { %v3667_v23 = vsel %vm573_vm2, %v3658_v49, %v3666_v7  ;;  %v1450_v26 = vor.u32 %v1449_v29, %v1446_v37  ;;  %v1458_v54 = vor.u32 %v1457_v17, %v1454_v9  ;;  %v1467_v6 = vor.u32 %v7186_v58, %v7184_v57 }
  0xbc   : > { %6455 = vmatmul.mubr.bf16.gmra.mrb[12].mxu0 %v3667_v23  ;;  %v3674_v43 = vrot.slane %v3672_v50, 4  ;;  %v3679_v21 = vrot.slane %v3677_v46, 3  ;;  %v3682_v19 = vrot.slane %v3680_v3, 4  ;;  %v1469_v13 = vshrl.u32 %v1427_v36, 16  ;;  %v6927_v50 = vld [vmem:[#allocation2 + $0x30] sm:$0xf0] }
  0xbd   : > { %v1459_v16 = vsel %vm1442_vm1, %v1450_v26, %v1458_v54  ;;  %v1472_v53 = vshll.u32 %v1427_v36, 16  ;;  %v3686_v12 = vshrl.u32 %v3518_v42, 16  ;;  %v3689_v56 = vshll.u32 %v3518_v42, 16  ;;  %6487 = vmatpush3.bf16.msra.mxu0 %v6908_v35  ;;  %v6905_v35 = vld [vmem:[%s8032_s3 + $0xc8] sm:$0xff]   ;;  %v1429_v36 = vld [vmem:[#allocation2 + $0x38] sm:$0x1f] }
  0xbe   : > { %6250 = vmatprep.mubr.bf16.mxu1 %v1459_v16  ;;  %v3675_v57 = vor.u32 %v3674_v43, %v3671_v18  ;;  %v3683_v58 = vor.u32 %v3682_v19, %v3679_v21  ;;  %v1471_v62 = vrot.slane %v1469_v13, 4  ;;  %v3694_v25 = vshrl.u32 %v7613_v22, 16  ;;  %6488 = vmatprep.subr.bf16.mxu0 %v6910_v55  ;;  %v3522_v3 = vld [vmem:[#allocation2 + $0xd0] sm:$0xf8]  ;;  %v7635_v43 = vld [vmem:[#allocation2 + $0xd8] sm:$0xf] }
  0xbf   : > { %v1474_v52 = vrot.slane %v1472_v53, 5  ;;  %v3688_v47 = vrot.slane %v3686_v12, 3  ;;  %v3691_v31 = vrot.slane %v3689_v56, 4  ;;  %v3697_v33 = vshll.u32 %v7613_v22, 16  ;;  %v6907_v21 = vld [vmem:[%s8032_s3 + $0xd0] sm:$0xff]  }
  0xc0   : > { %v3684_v0 = vsel %vm573_vm2, %v3675_v57, %v3683_v58  ;;  %v3696_v40 = vrot.slane %v3694_v25, 3  ;;  %v1478_v51 = vshrl.u32 %v6926_v63, 16  ;;  %v1481_v24 = vshll.u32 %v6926_v63, 16  ;;  %v1430_v16 = vld [vmem:[#allocation2 + $0x48] sm:$0x1f]  ;;  %v6909_v63 = vld [vmem:[%s8032_s3 + $0xd8] sm:$0xff]  }
  0xc1   : > { %6458 = vmatprep.mubr.bf16.mxu0 %v3684_v0  ;;  %v1475_v28 = vor.u32 %v1474_v52, %v1471_v62  ;;  %v3692_v2 = vor.u32 %v3691_v31, %v3688_v47  ;;  %v3699_v39 = vrot.slane %v3697_v33, 4  ;;  %v1486_v60 = vshrl.u32 %v1428_v41, 16  ;;  %6489 = vmatpush3.bf16.msra.mxu0 %v6910_v55  ;;  %v6928_v33 = vld [vmem:[#allocation2 + $0x40] sm:$0xf0] }
  0xc2   : > { %v1480_v11 = vrot.slane %v1478_v51, 4  ;;  %v1483_v45 = vrot.slane %v1481_v24, 5  ;;  %v1489_v48 = vshll.u32 %v1428_v41, 16  ;;  %v3703_v32 = vshrl.u32 %v3520_v8, 16  ;;  %6522 = vmatprep.subr.bf16.mxu0 %v7619_v59 }
  0xc3   : > { %v1476_v14 = vsel %vm1442_vm1, %v1467_v6, %v1475_v28  ;;  %v3700_v49 = vor.u32 %v3699_v39, %v3696_v40  ;;  %v1488_v37 = vrot.slane %v1486_v60, 4  ;;  %v3706_v20 = vshll.u32 %v3520_v8, 16  ;;  %v3524_v40 = vld [vmem:[#allocation2 + $0xe0] sm:$0xf8] }
  0xc4   : > { %6251 = vmatmul.mubr.bf16.vlgmr.msra.gmra.mrb[0].mxu1 %v1476_v14  ;;  %v1484_v42 = vor.u32 %v1483_v45, %v1480_v11  ;;  %v1491_v7 = vrot.slane %v1489_v48, 5  ;;  %v3705_v29 = vrot.slane %v3703_v32, 3  ;;  %v3711_v9 = vshrl.u32 %v7624_v1, 16  ;;  %v7647_v45 = vld [vmem:[#allocation2 + $0xe8] sm:$0xf] }
  0xc5   : > { %v3701_v17 = vsel %vm573_vm2, %v3692_v2, %v3700_v49  ;;  %6283 = vmatpush3.bf16.msra.mxu1 %v7529_v27  ;;  %v3708_v55 = vrot.slane %v3706_v20, 4  ;;  %v3714_v18 = vshll.u32 %v7624_v1, 16  ;;  %v1495_v46 = vshrl.u32 %v6927_v50, 16 }
  0xc6   : > { %6459 = vmatmul.mubr.bf16.gmra.mrb[16].mxu0 %v3701_v17  ;;  %v1492_v23 = vor.u32 %v1491_v7, %v1488_v37  ;;  %v3713_v26 = vrot.slane %v3711_v9, 3  ;;  %v1498_v54 = vshll.u32 %v6927_v50, 16  ;;  %v1503_v6 = vshrl.u32 %v1429_v36, 16  ;;  %6284 = vmatprep.subr.bf16.mxu1 %v6905_v35  ;;  %v6911_v7 = vld [vmem:[%s8032_s3 + $0xe0] sm:$0xff]  }
  0xc7   : > { %v3709_v19 = vor.u32 %v3708_v55, %v3705_v29  ;;  %v3716_v27 = vrot.slane %v3714_v18, 4  ;;  %v1497_v13 = vrot.slane %v1495_v46, 4  ;;  %v1506_v41 = vshll.u32 %v1429_v36, 16  ;;  %v1431_v18 = vld [vmem:[#allocation2 + $0x58] sm:$0x1f] }
  0xc8   : > { %v1493_v53 = vsel %vm1442_vm1, %v1484_v42, %v1492_v23  ;;  %v1500_v12 = vrot.slane %v1498_v54, 5  ;;  %v1505_v56 = vrot.slane %v1503_v6, 4  ;;  %v3720_v57 = vshrl.u32 %v3522_v3, 16  ;;  %v6929_v23 = vld [vmem:[#allocation2 + $0x50] sm:$0xf0] }
  0xc9   : > { %6254 = vmatprep.mubr.bf16.mxu1 %v1493_v53  ;;  %v3717_v58 = vor.u32 %v3716_v27, %v3713_v26  ;;  %v1508_v62 = vrot.slane %v1506_v41, 5  ;;  %v3723_v25 = vshll.u32 %v3522_v3, 16  ;;  %v3728_v8 = vshrl.u32 %v7635_v43, 16  ;;  %6285 = vmatpush3.bf16.msra.mxu1 %v6905_v35  ;;  %v3526_v54 = vld [vmem:[#allocation2 + $0xf0] sm:$0xf8] }
  0xca   : > { %v1501_v52 = vor.u32 %v1500_v12, %v1497_v13  ;;  %v3722_v47 = vrot.slane %v3720_v57, 3  ;;  %v3731_v31 = vshll.u32 %v7635_v43, 16  ;;  %v1512_v0 = vshrl.u32 %v6928_v33, 16  ;;  %6286 = vmatprep.subr.bf16.mxu1 %v6907_v21  ;;  %v7656_v6 = vld [vmem:[#allocation2 + $0xf8] sm:$0xf] }
  0xcb   : > { %v3718_v51 = vsel %vm573_vm2, %v3709_v19, %v3717_v58  ;;  %v1509_v24 = vor.u32 %v1508_v62, %v1505_v56  ;;  %v3725_v28 = vrot.slane %v3723_v25, 4  ;;  %v3730_v2 = vrot.slane %v3728_v8, 3  ;;  %v6913_v56 = vld [vmem:[%s8032_s3 + $0xe8] sm:$0xff]  }
  0xcc   : > { %6462 = vmatprep.mubr.bf16.mxu0 %v3718_v51  ;;  %v3733_v39 = vrot.slane %v3731_v31, 4  ;;  %v1514_v60 = vrot.slane %v1512_v0, 4  ;;  %v1515_v35 = vshll.u32 %v6928_v33, 16  ;;  %v1520_v11 = vshrl.u32 %v1430_v16, 16  ;;  %v1432_v33 = vld [vmem:[#allocation2 + $0x68] sm:$0x1f] }
  0xcd   : > { %v1510_v48 = vsel %vm1442_vm1, %v1501_v52, %v1509_v24  ;;  %v3726_v32 = vor.u32 %v3725_v28, %v3722_v47  ;;  %v1523_v36 = vshll.u32 %v1430_v16, 16  ;;  %v3737_v14 = vshrl.u32 %v3524_v40, 16  ;;  %6287 = vmatpush3.bf16.msra.mxu1 %v6907_v21  ;;  %v3528_v24 = vld [vmem:[#allocation2 + $0x100] sm:$0xf8] }
  0xce   : > { %6255 = vmatmul.mubr.bf16.gmra.mrb[4].mxu1 %v1510_v48  ;;  %v3734_v49 = vor.u32 %v3733_v39, %v3730_v2  ;;  %v1517_v37 = vrot.slane %v1515_v35, 5  ;;  %v1522_v20 = vrot.slane %v1520_v11, 4  ;;  %v3740_v42 = vshll.u32 %v3524_v40, 16  ;;  %6288 = vmatprep.subr.bf16.mxu1 %v6909_v63  ;;  %v6915_v11 = vld [vmem:[%s8032_s3 + $0xf0] sm:$0xff]  }
  0xcf   : > { %v1525_v29 = vrot.slane %v1523_v36, 5  ;;  %v3739_v9 = vrot.slane %v3737_v14, 3  ;;  %v3745_v17 = vshrl.u32 %v7647_v45, 16  ;;  %v3748_v55 = vshll.u32 %v7647_v45, 16 }
  0xd0   : > { %v3735_v50 = vsel %vm573_vm2, %v3726_v32, %v3734_v49  ;;  %v1518_v46 = vor.u32 %v1517_v37, %v1514_v60  ;;  %v3742_v3 = vrot.slane %v3740_v42, 4  ;;  %v1529_v26 = vshrl.u32 %v6929_v23, 16  ;;  %v6930_v60 = vld [vmem:[#allocation2 + $0x60] sm:$0xf0]  ;;  %v7668_v49 = vld [vmem:[#allocation2 + $0x108] sm:$0xf] }
  0xd1   : > { %6463 = vmatmul.mubr.bf16.gmra.mrb[20].mxu0 %v3735_v50  ;;  %v1526_v21 = vor.u32 %v1525_v29, %v1522_v20  ;;  %v3747_v19 = vrot.slane %v3745_v17, 3  ;;  %v3750_v27 = vrot.slane %v3748_v55, 4  ;;  %v1532_v13 = vshll.u32 %v6929_v23, 16  ;;  %6289 = vmatpush3.bf16.msra.mxu1 %v6909_v63  ;;  %v1433_v23 = vld [vmem:[#allocation2 + $0x78] sm:$0x1f] }
  0xd2   : > { %v3743_v41 = vor.u32 %v3742_v3, %v3739_v9  ;;  %v1531_v16 = vrot.slane %v1529_v26, 4  ;;  %v1537_v53 = vshrl.u32 %v1431_v18, 16  ;;  %v1540_v12 = vshll.u32 %v1431_v18, 16  ;;  %6290 = vmatprep.subr.bf16.mxu1 %v6911_v7 }
  0xd3   : > { %v1527_v57 = vsel %vm1442_vm1, %v1518_v46, %v1526_v21  ;;  %v3751_v58 = vor.u32 %v3750_v27, %v3747_v19  ;;  %v1534_v62 = vrot.slane %v1532_v13, 5  ;;  %v3754_v25 = vshrl.u32 %v3526_v54, 16  ;;  %v6931_v19 = vld [vmem:[#allocation2 + $0x70] sm:$0xf0] }
  0xd4   : > { %6258 = vmatprep.mubr.bf16.mxu1 %v1527_v57  ;;  %v1539_v8 = vrot.slane %v1537_v53, 4  ;;  %v1542_v52 = vrot.slane %v1540_v12, 5  ;;  %v3757_v47 = vshll.u32 %v3526_v54, 16  ;;  %v3762_v31 = vshrl.u32 %v7656_v6, 16  ;;  %v3530_v13 = vld [vmem:[#allocation2 + $0x110] sm:$0xf8] }
  0xd5   : > { %v3752_v0 = vsel %vm573_vm2, %v3743_v41, %v3751_v58  ;;  %v1535_v40 = vor.u32 %v1534_v62, %v1531_v16  ;;  %v3756_v63 = vrot.slane %v3754_v25, 3  ;;  %v3765_v51 = vshll.u32 %v7656_v6, 16  ;;  %6291 = vmatpush3.bf16.msra.mxu1 %v6911_v7  ;;  %v6917_v41 = vld [vmem:[%s8032_s3 + $0xf8] sm:$0xff]  }
  0xd6   : > { %6466 = vmatprep.mubr.bf16.mxu0 %v3752_v0  ;;  %v1543_v28 = vor.u32 %v1542_v52, %v1539_v8  ;;  %v3759_v2 = vrot.slane %v3757_v47, 4  ;;  %v3764_v39 = vrot.slane %v3762_v31, 3  ;;  %v1546_v35 = vshrl.u32 %v6930_v60, 16  ;;  %6292 = vmatprep.subr.bf16.mxu1 %v6913_v56  ;;  %v7677_v58 = vld [vmem:[#allocation2 + $0x118] sm:$0xf] }
  0xd7   : > { %v3767_v48 = vrot.slane %v3765_v51, 4  ;;  %v1549_v32 = vshll.u32 %v6930_v60, 16  ;;  %v1554_v36 = vshrl.u32 %v1432_v33, 16  ;;  %v1557_v14 = vshll.u32 %v1432_v33, 16 }
  0xd8   : > { %v1544_v37 = vsel %vm1442_vm1, %v1535_v40, %v1543_v28  ;;  %v3760_v20 = vor.u32 %v3759_v2, %v3756_v63  ;;  %v1548_v42 = vrot.slane %v1546_v35, 4  ;;  %v3771_v7 = vshrl.u32 %v3528_v24, 16  ;;  %v7683_v35 = vld [vmem:[#allocation2 + $0x20] sm:$0xf0] }
  0xd9   : > { %6259 = vmatmul.mubr.bf16.gmra.mrb[8].mxu1 %v1544_v37  ;;  %v3768_v29 = vor.u32 %v3767_v48, %v3764_v39  ;;  %v1551_v9 = vrot.slane %v1549_v32, 5  ;;  %v1556_v17 = vrot.slane %v1554_v36, 4  ;;  %v1559_v55 = vrot.slane %v1557_v14, 5 }
  0xda   : > { %v3773_v18 = vrot.slane %v3771_v7, 3  ;;  %v3774_v50 = vshll.u32 %v3528_v24, 16  ;;  %v3779_v46 = vshrl.u32 %v7668_v49, 16  ;;  %v3782_v3 = vshll.u32 %v7668_v49, 16  ;;  %6293 = vmatpush3.bf16.msra.mxu1 %v6913_v56  ;;  %v1434_v24 = vld [vmem:[#allocation2 + $0x88] sm:$0x1f] }
  0xdb   : > { %v3769_v26 = vsel %vm573_vm2, %v3760_v20, %v3768_v29  ;;  %v1552_v54 = vor.u32 %v1551_v9, %v1548_v42  ;;  %v1560_v21 = vor.u32 %v1559_v55, %v1556_v17  ;;  %v1563_v27 = vshrl.u32 %v6931_v19, 16  ;;  %6294 = vmatprep.subr.bf16.mxu1 %v6915_v11  ;;  %v1435_v29 = vld [vmem:[#allocation2 + $0x98] sm:$0x1f] }
  0xdc   : > { %6467 = vmatmul.mubr.bf16.gmra.mrb[24].mxu0 %v3769_v26  ;;  %v3776_v16 = vrot.slane %v3774_v50, 4  ;;  %v3781_v53 = vrot.slane %v3779_v46, 3  ;;  %v3784_v12 = vrot.slane %v3782_v3, 4  ;;  %v1566_v57 = vshll.u32 %v6931_v19, 16  ;;  %v7690_v50 = vld [vmem:[%s8032_s3 + $0x100] sm:$0xff]  }
  0xdd   : > { %v1561_v56 = vsel %vm1442_vm1, %v1552_v54, %v1560_v21  ;;  %v1565_v62 = vrot.slane %v1563_v27, 4  ;;  %v1571_v25 = vshrl.u32 %v1433_v23, 16  ;;  %v1574_v8 = vshll.u32 %v1433_v23, 16  ;;  %v6934_v54 = vld [vmem:[#allocation2 + $0x28] sm:$0xf] }
  0xde   : > { %6262 = vmatprep.mubr.bf16.mxu1 %v1561_v56  ;;  %v3777_v52 = vor.u32 %v3776_v16, %v3773_v18  ;;  %v3785_v47 = vor.u32 %v3784_v12, %v3781_v53  ;;  %v1568_v31 = vrot.slane %v1566_v57, 5  ;;  %v3788_v33 = vshrl.u32 %v3530_v13, 16  ;;  %6295 = vmatpush3.bf16.msra.mxu1 %v6915_v11  ;;  %v6932_v11 = vld [vmem:[#allocation2 + $0x80] sm:$0xf0]  ;;  %v6935_v19 = vld [vmem:[#allocation2 + $0x90] sm:$0xf0] }
  0xdf   : > { %v1573_v0 = vrot.slane %v1571_v25, 4  ;;  %v1576_v40 = vrot.slane %v1574_v8, 5  ;;  %v3791_v63 = vshll.u32 %v3530_v13, 16  ;;  %v3796_v51 = vshrl.u32 %v7677_v58, 16  ;;  %6296 = vmatprep.subr.bf16.mxu1 %v6917_v41  ;;  %v7693_v16 = vld [vmem:[#allocation2 + $0x30] sm:$0xf0] }
  0xe0   : > { %v3786_v28 = vsel %vm573_vm2, %v3777_v52, %v3785_v47  ;;  %v1569_v2 = vor.u32 %v1568_v31, %v1565_v62  ;;  %v3790_v39 = vrot.slane %v3788_v33, 3  ;;  %v3799_v60 = vshll.u32 %v7677_v58, 16  ;;  %v1436_v62 = vld [vmem:[#allocation2 + $0xa8] sm:$0x1f]  ;;  %v7697_v31 = vld [vmem:[#allocation2 + $0x40] sm:$0xf0] }
  0xe1   : > { %6470 = vmatprep.mubr.bf16.mxu0 %v3786_v28  ;;  %v1577_v48 = vor.u32 %v1576_v40, %v1573_v0  ;;  %v3793_v32 = vrot.slane %v3791_v63, 4  ;;  %v3798_v36 = vrot.slane %v3796_v51, 3  ;;  %v1580_v14 = vshrl.u32 %v6932_v11, 16  ;;  %v6936_v63 = vld [vmem:[#allocation2 + $0x38] sm:$0xf] }
  0xe2   : > { %v3801_v37 = vrot.slane %v3799_v60, 4  ;;  %v1583_v20 = vshll.u32 %v6932_v11, 16  ;;  %v1588_v42 = vshrl.u32 %v1434_v24, 16  ;;  %v1591_v7 = vshll.u32 %v1434_v24, 16  ;;  %6297 = vmatpush3.bf16.msra.mxu1 %v6917_v41  ;;  %v6937_v28 = vld [vmem:[#allocation2 + $0xa0] sm:$0xf0] }
  0xe3   : > { %v1578_v9 = vsel %vm1442_vm1, %v1569_v2, %v1577_v48  ;;  %v3794_v17 = vor.u32 %v3793_v32, %v3790_v39  ;;  %v1582_v55 = vrot.slane %v1580_v14, 4  ;;  %v4126_v18 = vrot.slane %v7683_v35, 4  ;;  %6570 = vmatprep.subr.bf16.mxu1 %v7690_v50  ;;  %v1437_v14 = vld [vmem:[#allocation2 + $0xb8] sm:$0x1f] }
  0xe4   : > { %6263 = vmatmul.mubr.bf16.gmra.mrb[12].mxu1 %v1578_v9  ;;  %v3802_v46 = vor.u32 %v3801_v37, %v3798_v36  ;;  %v1585_v3 = vrot.slane %v1583_v20, 5  ;;  %v1590_v23 = vrot.slane %v1588_v42, 4  ;;  %v1593_v26 = vrot.slane %v1591_v7, 5 }
  0xe5   : > { %v4127_v21 = vrot.slane %v6934_v54, 4  ;;  %v1597_v27 = vshrl.u32 %v6935_v19, 16  ;;  %v1600_v13 = vshll.u32 %v6935_v19, 16  ;;  %v1605_v41 = vshrl.u32 %v1435_v29, 16  ;;  %v1438_v19 = vld [vmem:[#allocation2 + $0xc8] sm:$0x1f] }
  0xe6   : > { %v3803_v53 = vsel %vm573_vm2, %v3794_v17, %v3802_v46  ;;  %v1586_v12 = vor.u32 %v1585_v3, %v1582_v55  ;;  %v1594_v57 = vor.u32 %v1593_v26, %v1590_v23  ;;  %v1608_v56 = vshll.u32 %v1435_v29, 16  ;;  %v7704_v29 = vld [vmem:[#allocation2 + $0x50] sm:$0xf0] }
  0xe7   : > { %6471 = vmatmul.mubr.bf16.gmra.mrb[28].mxu0 %v3803_v53  ;;  %v4128_v25 = vsel %vm926_vm0, %v4126_v18, %v4127_v21  ;;  %v1599_v8 = vrot.slane %v1597_v27, 4  ;;  %v1602_v52 = vrot.slane %v1600_v13, 5  ;;  %v1607_v47 = vrot.slane %v1605_v41, 4  ;;  %v6938_v55 = vld [vmem:[#allocation2 + $0xb0] sm:$0xf0]  ;;  %v6914_v21 = vld [vmem:[%s8032_s3 + $0x208] sm:$0xff]  }
  0xe8   : > { %v1595_v33 = vsel %vm1442_vm1, %v1586_v12, %v1594_v57  ;;  %6490 = vmatprep.mubr.bf16.mxu0 %v4128_v25  ;;  %v1610_v0 = vrot.slane %v1608_v56, 5  ;;  %v4129_v40 = vrot.slane %v7693_v16, 4  ;;  %v4130_v51 = vrot.slane %v6936_v63, 4  ;;  %v6939_v56 = vld [vmem:[#allocation2 + $0xc0] sm:$0xf0] }
  0xe9   : > { %6266 = vmatprep.mubr.bf16.mxu1 %v1595_v33  ;;  %v1603_v24 = vor.u32 %v1602_v52, %v1599_v8  ;;  %v1614_v2 = vshrl.u32 %v6937_v28, 16  ;;  %v1617_v39 = vshll.u32 %v6937_v28, 16  ;;  %v1622_v60 = vshrl.u32 %v1436_v62, 16  ;;  %v7713_v25 = vld [vmem:[#allocation2 + $0x60] sm:$0xf0] }
  0xea   : > { %v1611_v48 = vor.u32 %v1610_v0, %v1607_v47  ;;  %v4131_v32 = vsel %vm926_vm0, %v4129_v40, %v4130_v51  ;;  %v1625_v36 = vshll.u32 %v1436_v62, 16  ;;  %v4132_v11 = vrot.slane %v7697_v31, 4 }
  0xeb   : > { %v1616_v37 = vrot.slane %v1614_v2, 4  ;;  %v1619_v20 = vrot.slane %v1617_v39, 5  ;;  %v1624_v42 = vrot.slane %v1622_v60, 4  ;;  %v4133_v7 = vrot.slane %v7537_v61, 4  ;;  %v7723_v60 = vld [vmem:[#allocation2 + $0x70] sm:$0xf0] }
  0xec   : > { %v1612_v9 = vsel %vm1442_vm1, %v1603_v24, %v1611_v48  ;;  %v1627_v17 = vrot.slane %v1625_v36, 5  ;;  %v1631_v18 = vshrl.u32 %v6938_v55, 16  ;;  %v1634_v46 = vshll.u32 %v6938_v55, 16  ;;  %v6916_v24 = vld [vmem:[%s8032_s3 + $0x210] sm:$0xff]  }
  0xed   : > { %6267 = vmatmul.mubr.bf16.gmra.mrb[16].mxu1 %v1612_v9  ;;  %v1620_v3 = vor.u32 %v1619_v20, %v1616_v37  ;;  %v4134_v23 = vsel %vm926_vm0, %v4132_v11, %v4133_v7  ;;  %v1639_v26 = vshrl.u32 %v1437_v14, 16  ;;  %v1642_v54 = vshll.u32 %v1437_v14, 16  ;;  %v6940_v36 = vld [vmem:[#allocation2 + $0xd0] sm:$0xf0]  ;;  %v1440_v9 = vld [vmem:[#allocation2 + $0xe8] sm:$0x1f] }
  0xee   : > { %v1628_v61 = vor.u32 %v1627_v17, %v1624_v42  ;;  %v1633_v27 = vrot.slane %v1631_v18, 4  ;;  %v1636_v13 = vrot.slane %v1634_v46, 5  ;;  %v4135_v41 = vrot.slane %v7704_v29, 4  ;;  %v6918_v46 = vld [vmem:[%s8032_s3 + $0x218] sm:$0xff]  }
  0xef   : > { %6491 = vmatmul.mubr.bf16.vlgmr.msra.gmra.mrb[0].mxu0 %v4131_v32  ;;  %v1641_v53 = vrot.slane %v1639_v26, 4  ;;  %v1644_v12 = vrot.slane %v1642_v54, 5  ;;  %v4136_v57 = vrot.slane %v7543_v30, 4  ;;  %v1648_v62 = vshrl.u32 %v6939_v56, 16  ;;  %v1439_v30 = vld [vmem:[#allocation2 + $0xd8] sm:$0x1f] }
  0xf0   : > { %6523 = vmatpush3.bf16.msra.mxu0 %v7619_v59  ;;  %v1629_v8 = vsel %vm1442_vm1, %v1620_v3, %v1628_v61  ;;  %6494 = vmatprep.mubr.bf16.mxu0 %v4134_v23  ;;  %v1637_v52 = vor.u32 %v1636_v13, %v1633_v27  ;;  %v1651_v47 = vshll.u32 %v6939_v56, 16  ;;  %v1656_v33 = vshrl.u32 %v1438_v19, 16  ;;  %v6941_v54 = vld [vmem:[#allocation2 + $0xe0] sm:$0xf0] }
  0xf1   : > { %6270 = vmatprep.mubr.bf16.mxu1 %v1629_v8  ;;  %v1645_v0 = vor.u32 %v1644_v12, %v1641_v53  ;;  %v4137_v40 = vsel %vm926_vm0, %v4135_v41, %v4136_v57  ;;  %6524 = vmatprep.subr.bf16.mxu0 %v6914_v21  ;;  %v1650_v63 = vrot.slane %v1648_v62, 4  ;;  %v1659_v51 = vshll.u32 %v1438_v19, 16  ;;  %v7732_v19 = vld [vmem:[#allocation2 + $0x80] sm:$0xf0]  ;;  %v1441_v62 = vld [vmem:[#allocation2 + $0xf8] sm:$0x1f] }
  0xf2   : > { %v1653_v28 = vrot.slane %v1651_v47, 5  ;;  %v1658_v59 = vrot.slane %v1656_v33, 4  ;;  %v4138_v2 = vrot.slane %v7713_v25, 4  ;;  %v4139_v39 = vrot.slane %v7552_v44, 4  ;;  %v7738_v33 = vld [vmem:[#allocation2 + $0x90] sm:$0xf0] }
  0xf3   : > { %v1646_v48 = vsel %vm1442_vm1, %v1637_v52, %v1645_v0  ;;  %v1661_v32 = vrot.slane %v1659_v51, 5  ;;  %v1665_v11 = vshrl.u32 %v6940_v36, 16  ;;  %v1668_v14 = vshll.u32 %v6940_v36, 16 }
  0xf4   : > { %6525 = vmatpush3.bf16.msra.mxu0 %v6914_v21  ;;  %v1654_v37 = vor.u32 %v1653_v28, %v1650_v63  ;;  %v4140_v20 = vsel %vm926_vm0, %v4138_v2, %v4139_v39  ;;  %v1673_v42 = vshrl.u32 %v1439_v30, 16  ;;  %v1676_v7 = vshll.u32 %v1439_v30, 16  ;;  %v6942_v63 = vld [vmem:[#allocation2 + $0xf0] sm:$0xf0] }
  0xf5   : > { %6271 = vmatmul.mubr.bf16.gmra.mrb[20].mxu1 %v1646_v48  ;;  %v1662_v17 = vor.u32 %v1661_v32, %v1658_v59  ;;  %v1667_v55 = vrot.slane %v1665_v11, 4  ;;  %v1670_v18 = vrot.slane %v1668_v14, 5  ;;  %v4141_v44 = vrot.slane %v7723_v60, 4  ;;  %6526 = vmatprep.subr.bf16.mxu0 %v6916_v24  ;;  %v1989_v28 = vld [vmem:[#allocation2 + $0x10] sm:$0xf8] }
  0xf6   : > { %v1675_v3 = vrot.slane %v1673_v42, 4  ;;  %v1678_v23 = vrot.slane %v1676_v7, 5  ;;  %v4142_v26 = vrot.slane %v7563_v38, 4  ;;  %v1682_v21 = vshrl.u32 %v6941_v54, 16  ;;  %v7747_v7 = vld [vmem:[#allocation2 + $0xa0] sm:$0xf0] }
  0xf7   : > { %6495 = vmatmul.mubr.bf16.gmra.mrb[4].mxu0 %v4137_v40  ;;  %v1663_v61 = vsel %vm1442_vm1, %v1654_v37, %v1662_v17  ;;  %v1671_v27 = vor.u32 %v1670_v18, %v1667_v55  ;;  %v1685_v13 = vshll.u32 %v6941_v54, 16  ;;  %v1690_v41 = vshrl.u32 %v1440_v9, 16  ;;  %v6943_v18 = vld [vmem:[#allocation2 + $0x18] sm:$0xf] }
  0xf8   : > { %6274 = vmatprep.mubr.bf16.mxu1 %v1663_v61  ;;  %6498 = vmatprep.mubr.bf16.mxu0 %v4140_v20  ;;  %v1679_v53 = vor.u32 %v1678_v23, %v1675_v3  ;;  %v4143_v12 = vsel %vm926_vm0, %v4141_v44, %v4142_v26  ;;  %v1684_v57 = vrot.slane %v1682_v21, 4  ;;  %v1693_v56 = vshll.u32 %v1440_v9, 16  ;;  %v1991_v3 = vld [vmem:[#allocation2 + $0x20] sm:$0xf8]  ;;  %v6920_v23 = vld [vmem:[%s8032_s3 + $0x228] sm:$0xff]  }
  0xf9   : > { %6527 = vmatpush3.bf16.msra.mxu0 %v6916_v24  ;;  %v1687_v38 = vrot.slane %v1685_v13, 5  ;;  %v1692_v8 = vrot.slane %v1690_v41, 4  ;;  %v4144_v52 = vrot.slane %v7732_v19, 4  ;;  %v4145_v47 = vrot.slane %v7577_v5, 4  ;;  %v6919_v24 = vld [vmem:[%s8032_s3 + $0x220] sm:$0xff]  }
  0xfa   : > { %v1680_v0 = vsel %vm1442_vm1, %v1671_v27, %v1679_v53  ;;  %v1695_v40 = vrot.slane %v1693_v56, 5  ;;  %v1699_v51 = vshrl.u32 %v6942_v63, 16  ;;  %v1702_v30 = vshll.u32 %v6942_v63, 16  ;;  %6528 = vmatprep.subr.bf16.mxu0 %v6918_v46  ;;  %v7754_v21 = vld [vmem:[#allocation2 + $0xb0] sm:$0xf0] }
  0xfb   : > { %v1688_v59 = vor.u32 %v1687_v38, %v1684_v57  ;;  %v4146_v2 = vsel %vm926_vm0, %v4144_v52, %v4145_v47  ;;  %v1707_v39 = vshrl.u32 %v1441_v62, 16  ;;  %v1710_v48 = vshll.u32 %v1441_v62, 16  ;;  %v1993_v62 = vld [vmem:[#allocation2 + $0x30] sm:$0xf8] }
  0xfc   : > { %v1696_v5 = vor.u32 %v1695_v40, %v1692_v8  ;;  %v1701_v32 = vrot.slane %v1699_v51, 4  ;;  %v1704_v36 = vrot.slane %v1702_v30, 5  ;;  %v4147_v11 = vrot.slane %v7738_v33, 4 }
  0xfd   : > { %6275 = vmatmul.mubr.bf16.gmra.mrb[24].mxu1 %v1680_v0  ;;  %v1709_v14 = vrot.slane %v1707_v39, 4  ;;  %v1712_v37 = vrot.slane %v1710_v48, 5  ;;  %v4148_v20 = vrot.slane %v7588_v15, 4  ;;  %6529 = vmatpush3.bf16.msra.mxu0 %v6918_v46  ;;  %v2022_v42 = vshrl.u32 %v1989_v28, 16  ;;  %v7763_v0 = vld [vmem:[#allocation2 + $0xc0] sm:$0xf0] }
  0xfe   : > { %v1697_v9 = vsel %vm1442_vm1, %v1688_v59, %v1696_v5  ;;  %v1705_v17 = vor.u32 %v1704_v36, %v1701_v32  ;;  %v2025_v55 = vshll.u32 %v1989_v28, 16  ;;  %v2030_v44 = vshrl.u32 %v6943_v18, 16  ;;  %6530 = vmatprep.subr.bf16.mxu0 %v6919_v24  ;;  %v6944_v59 = vld [vmem:[#allocation2 + $0x38] sm:$0xf] }
  0xff   : > { %6499 = vmatmul.mubr.bf16.gmra.mrb[8].mxu0 %v4143_v12  ;;  %6278 = vmatprep.mubr.bf16.mxu1 %v1697_v9  ;;  %v1713_v26 = vor.u32 %v1712_v37, %v1709_v14  ;;  %v4149_v15 = vsel %vm926_vm0, %v4147_v11, %v4148_v20  ;;  %v2024_v46 = vrot.slane %v2022_v42, 3  ;;  %v2033_v54 = vshll.u32 %v6943_v18, 16  ;;  %v6922_v36 = vld [vmem:[%s8032_s3 + $0x238] sm:$0xff]   ;;  %v7775_v20 = vld [vmem:[#allocation2 + $0xd0] sm:$0xf0] }
 0x100   : > { %6502 = vmatprep.mubr.bf16.mxu0 %v4146_v2  ;;  %v2027_v61 = vrot.slane %v2025_v55, 4  ;;  %v2032_v27 = vrot.slane %v2030_v44, 3  ;;  %v4150_v13 = vrot.slane %v7747_v7, 4  ;;  %v4151_v41 = vrot.slane %v7599_v34, 4  ;;  %v6921_v34 = vld [vmem:[%s8032_s3 + $0x230] sm:$0xff]  }
 0x101   : > { %v1714_v53 = vsel %vm1442_vm1, %v1705_v17, %v1713_v26  ;;  %v2035_v57 = vrot.slane %v2033_v54, 4  ;;  %v2039_v56 = vshrl.u32 %v1991_v3, 16  ;;  %v2042_v12 = vshll.u32 %v1991_v3, 16  ;;  %6531 = vmatpush3.bf16.msra.mxu0 %v6919_v24  ;;  %v6945_v3 = vld [vmem:[#allocation2 + $0x48] sm:$0xf] }
 0x102   : > { %v2028_v38 = vor.u32 %v2027_v61, %v2024_v46  ;;  %v4152_v8 = vsel %vm926_vm0, %v4150_v13, %v4151_v41  ;;  %v2053_v52 = vor.u32 %v7197_v10, %v7193_v4  ;;  %v4153_v47 = vrot.slane %v7754_v21, 4  ;;  %6532 = vmatprep.subr.bf16.mxu0 %v6920_v23  ;;  %v1995_v4 = vld [vmem:[#allocation2 + $0x40] sm:$0xf8]  ;;  %v1997_v46 = vld [vmem:[#allocation2 + $0x50] sm:$0xf8] }
 0x103   : > { %v2036_v40 = vor.u32 %v2035_v57, %v2032_v27  ;;  %v2041_v63 = vrot.slane %v2039_v56, 3  ;;  %v2044_v51 = vrot.slane %v2042_v12, 4  ;;  %v4154_v30 = vrot.slane %v7613_v22, 4 }
 0x104   : > { %v2056_v28 = vshrl.u32 %v1993_v62, 16  ;;  %v2059_v24 = vshll.u32 %v1993_v62, 16  ;;  %v2064_v2 = vshrl.u32 %v6944_v59, 16  ;;  %v2067_v39 = vshll.u32 %v6944_v59, 16 }
 0x105   : > { %6279 = vmatmul.mubr.bf16.gmra.mrb[28].mxu1 %v1714_v53  ;;  %v2037_v10 = vsel %vm573_vm2, %v2028_v38, %v2036_v40  ;;  %v2045_v48 = vor.u32 %v2044_v51, %v2041_v63  ;;  %v4155_v5 = vsel %vm926_vm0, %v4153_v47, %v4154_v30  ;;  %v4156_v32 = vrot.slane %v7763_v0, 4  ;;  %6533 = vmatpush3.bf16.msra.mxu0 %v6920_v23  ;;  %v6946_v38 = vld [vmem:[#allocation2 + $0x58] sm:$0xf] }
 0x106   : > { %6298 = vmatprep.mubr.bf16.mxu1 %v2037_v10  ;;  %v2058_v22 = vrot.slane %v2056_v28, 3  ;;  %v2061_v11 = vrot.slane %v2059_v24, 4  ;;  %v2066_v14 = vrot.slane %v2064_v2, 3  ;;  %v2069_v37 = vrot.slane %v2067_v39, 4  ;;  %6534 = vmatprep.subr.bf16.mxu0 %v6921_v34  ;;  %v7790_v24 = vld [vmem:[#allocation2 + $0xf0] sm:$0xf0] }
 0x107   : > { %6503 = vmatmul.mubr.bf16.gmra.mrb[12].mxu0 %v4149_v15  ;;  %v2054_v42 = vsel %vm573_vm2, %v2045_v48, %v2053_v52  ;;  %v4157_v9 = vrot.slane %v7624_v1, 4  ;;  %v2073_v17 = vshrl.u32 %v1995_v4, 16  ;;  %v2076_v55 = vshll.u32 %v1995_v4, 16  ;;  %v7781_v15 = vld [vmem:[#allocation2 + $0xe0] sm:$0xf0]  ;;  %v6947_v48 = vld [vmem:[%s8032_s3 + $0x108] sm:$0xff]  }
 0x108   : > { %6506 = vmatprep.mubr.bf16.mxu0 %v4152_v8  ;;  %v2062_v18 = vor.u32 %v2061_v11, %v2058_v22  ;;  %v2070_v44 = vor.u32 %v2069_v37, %v2066_v14  ;;  %v2081_v23 = vshrl.u32 %v6945_v3, 16  ;;  %v2084_v26 = vshll.u32 %v6945_v3, 16  ;;  %v1999_v52 = vld [vmem:[#allocation2 + $0x60] sm:$0xf8]  ;;  %v2001_v10 = vld [vmem:[#allocation2 + $0x70] sm:$0xf8] }
 0x109   : > { %v4158_v54 = vsel %vm926_vm0, %v4156_v32, %v4157_v9  ;;  %v2075_v61 = vrot.slane %v2073_v17, 3  ;;  %v2078_v27 = vrot.slane %v2076_v55, 4  ;;  %v4159_v13 = vrot.slane %v7775_v20, 4  ;;  %6535 = vmatpush3.bf16.msra.mxu0 %v6921_v34  ;;  %v6948_v22 = vld [vmem:[#allocation2 + $0x68] sm:$0xf] }
 0x10a   : > { %v2071_v1 = vsel %vm573_vm2, %v2062_v18, %v2070_v44  ;;  %v2083_v41 = vrot.slane %v2081_v23, 3  ;;  %v2086_v53 = vrot.slane %v2084_v26, 4  ;;  %v4160_v57 = vrot.slane %v7635_v43, 4  ;;  %6536 = vmatprep.subr.bf16.mxu0 %v6922_v36  ;;  %v7800_v18 = vld [vmem:[#allocation2 + $0x100] sm:$0xf0] }
 0x10b   : > { %v2079_v56 = vor.u32 %v2078_v27, %v2075_v61  ;;  %v2090_v12 = vshrl.u32 %v1997_v46, 16  ;;  %v2093_v62 = vshll.u32 %v1997_v46, 16  ;;  %v2098_v8 = vshrl.u32 %v6946_v38, 16  ;;  %v6949_v26 = vld [vmem:[#allocation2 + $0x78] sm:$0xf]  ;;  %v6950_v27 = vld [vmem:[%s8032_s3 + $0x110] sm:$0xff]  }
 0x10c   : > { %v2087_v47 = vor.u32 %v2086_v53, %v2083_v41  ;;  %v7786_v40 = vsel %vm926_vm0, %v4159_v13, %v4160_v57  ;;  %v2101_v63 = vshll.u32 %v6946_v38, 16  ;;  %v4162_v34 = vrot.slane %v7781_v15, 4 }
 0x10d   : > { %6299 = vmatmul.mubr.bf16.vlgmr.msra.gmra.mrb[0].mxu1 %v2054_v42  ;;  %v2092_v51 = vrot.slane %v2090_v12, 3  ;;  %v2095_v30 = vrot.slane %v2093_v62, 4  ;;  %v2100_v28 = vrot.slane %v2098_v8, 3  ;;  %v4163_v43 = vrot.slane %v7647_v45, 4  ;;  %6537 = vmatpush3.bf16.msra.mxu0 %v6922_v36  ;;  %v7811_v12 = vld [vmem:[#allocation2 + $0x110] sm:$0xf0] }
 0x10e   : > { %6578 = vmatpush3.bf16.msra.mxu1 %v7690_v50  ;;  %6302 = vmatprep.mubr.bf16.mxu1 %v2071_v1  ;;  %v2088_v59 = vsel %vm573_vm2, %v2079_v56, %v2087_v47  ;;  %v2103_v2 = vrot.slane %v2101_v63, 4  ;;  %v2107_v39 = vshrl.u32 %v1999_v52, 16  ;;  %v2110_v4 = vshll.u32 %v1999_v52, 16  ;;  %v2005_v47 = vld [vmem:[#allocation2 + $0x90] sm:$0xf8] }
 0x10f   : > { %6507 = vmatmul.mubr.bf16.gmra.mrb[16].mxu0 %v4155_v5  ;;  %6571 = vmatprep.subr.bf16.mxu1 %v6947_v48  ;;  %v2096_v32 = vor.u32 %v2095_v30, %v2092_v51  ;;  %v4164_v45 = vsel %vm926_vm0, %v4162_v34, %v4163_v43  ;;  %v2115_v36 = vshrl.u32 %v6948_v22, 16  ;;  %v2118_v11 = vshll.u32 %v6948_v22, 16  ;;  %v6951_v51 = vld [vmem:[#allocation2 + $0x88] sm:$0xf]  ;;  %v7815_v43 = vld [vmem:[#allocation2 + $0x98] sm:$0xf] }
 0x110   : > { %6510 = vmatprep.mubr.bf16.mxu0 %v4158_v54  ;;  %v2104_v50 = vor.u32 %v2103_v2, %v2100_v28  ;;  %v2109_v14 = vrot.slane %v2107_v39, 3  ;;  %v2112_v37 = vrot.slane %v2110_v4, 4  ;;  %v4165_v42 = vrot.slane %v7790_v24, 4  ;;  %v2003_v54 = vld [vmem:[#allocation2 + $0x80] sm:$0xf8]  ;;  %v6952_v39 = vld [vmem:[%s8032_s3 + $0x118] sm:$0xff]  }
 0x111   : > { %v2117_v9 = vrot.slane %v2115_v36, 3  ;;  %v2120_v17 = vrot.slane %v2118_v11, 4  ;;  %v4166_v5 = vrot.slane %v7656_v6, 4  ;;  %v2124_v55 = vshrl.u32 %v2001_v10, 16 }
 0x112   : > { %6579 = vmatpush3.bf16.msra.mxu1 %v6947_v48  ;;  %v2105_v44 = vsel %vm573_vm2, %v2096_v32, %v2104_v50  ;;  %v2113_v3 = vor.u32 %v2112_v37, %v2109_v14  ;;  %v2127_v23 = vshll.u32 %v2001_v10, 16  ;;  %v2132_v46 = vshrl.u32 %v6949_v26, 16  ;;  %v4448_v14 = vld [vmem:[#allocation2 + $0x28] sm:$0x1f] }
 0x113   : > { %v2121_v61 = vor.u32 %v2120_v17, %v2117_v9  ;;  %6572 = vmatprep.subr.bf16.mxu1 %v6950_v27  ;;  %v7807_v13 = vsel %vm926_vm0, %v4165_v42, %v4166_v5  ;;  %v2126_v6 = vrot.slane %v2124_v55, 3  ;;  %v2135_v1 = vshll.u32 %v6949_v26, 16  ;;  %v2007_v17 = vld [vmem:[#allocation2 + $0xa0] sm:$0xf8] }
 0x114   : > { %v2129_v41 = vrot.slane %v2127_v23, 4  ;;  %v2134_v53 = vrot.slane %v2132_v46, 3  ;;  %v4168_v57 = vrot.slane %v7800_v18, 4  ;;  %v4169_v56 = vrot.slane %v7668_v49, 4 }
 0x115   : > { %6303 = vmatmul.mubr.bf16.gmra.mrb[4].mxu1 %v2088_v59  ;;  %v2122_v62 = vsel %vm573_vm2, %v2113_v3, %v2121_v61  ;;  %v2137_v38 = vrot.slane %v2135_v1, 4  ;;  %v2141_v8 = vshrl.u32 %v2003_v54, 16  ;;  %v2144_v52 = vshll.u32 %v2003_v54, 16  ;;  %v6953_v3 = vld [vmem:[%s8032_s3 + $0x120] sm:$0xff]   ;;  %v7835_v61 = vld [vmem:[#allocation2 + $0xa8] sm:$0xf] }
 0x116   : > { %6306 = vmatprep.mubr.bf16.mxu1 %v2105_v44  ;;  %6580 = vmatpush3.bf16.msra.mxu1 %v6950_v27  ;;  %v2130_v63 = vor.u32 %v2129_v41, %v2126_v6  ;;  %v4170_v34 = vsel %vm926_vm0, %v4168_v57, %v4169_v56  ;;  %v2149_v30 = vshrl.u32 %v6951_v51, 16  ;;  %v2152_v28 = vshll.u32 %v6951_v51, 16 }
 0x117   : > { %6511 = vmatmul.mubr.bf16.gmra.mrb[20].mxu0 %v7786_v40  ;;  %v2138_v49 = vor.u32 %v2137_v38, %v2134_v53  ;;  %v2143_v59 = vrot.slane %v2141_v8, 3  ;;  %v2146_v2 = vrot.slane %v2144_v52, 4  ;;  %6573 = vmatprep.subr.bf16.mxu1 %v6952_v39  ;;  %v4171_v4 = vrot.slane %v7811_v12, 4  ;;  %v4449_v38 = vld [vmem:[#allocation2 + $0x38] sm:$0x1f] }
 0x118   : > { %6514 = vmatprep.mubr.bf16.mxu0 %v4164_v45  ;;  %v2151_v10 = vrot.slane %v2149_v30, 3  ;;  %v2154_v48 = vrot.slane %v2152_v28, 4  ;;  %v4172_v32 = vrot.slane %v7677_v58, 4  ;;  %v2158_v22 = vshrl.u32 %v2005_v47, 16 }
 0x119   : > { %v2139_v36 = vsel %vm573_vm2, %v2130_v63, %v2138_v49  ;;  %v2147_v11 = vor.u32 %v2146_v2, %v2143_v59  ;;  %v2161_v40 = vshll.u32 %v2005_v47, 16  ;;  %v2166_v50 = vshrl.u32 %v7815_v43, 16  ;;  %v2009_v59 = vld [vmem:[#allocation2 + $0xb0] sm:$0xf8] }
 0x11a   : > { %v2155_v37 = vor.u32 %v2154_v48, %v2151_v10  ;;  %v7826_v42 = vsel %vm926_vm0, %v4171_v4, %v4172_v32  ;;  %6581 = vmatpush3.bf16.msra.mxu1 %v6952_v39  ;;  %v2160_v9 = vrot.slane %v2158_v22, 3  ;;  %v2169_v45 = vshll.u32 %v7815_v43, 16  ;;  %v7846_v10 = vld [vmem:[#allocation2 + $0xb8] sm:$0xf] }
 0x11b   : > { %v2163_v5 = vrot.slane %v2161_v40, 4  ;;  %v2168_v55 = vrot.slane %v2166_v50, 3  ;;  %v4465_v58 = vshrl.u32 %v7683_v35, 16  ;;  %v4468_v44 = vshll.u32 %v7683_v35, 16  ;;  %6574 = vmatprep.subr.bf16.mxu1 %v6953_v3 }
 0x11c   : > { %v2156_v23 = vsel %vm573_vm2, %v2147_v11, %v2155_v37  ;;  %v2171_v26 = vrot.slane %v2169_v45, 4  ;;  %v4473_v46 = vshrl.u32 %v4448_v14, 16  ;;  %v4476_v54 = vshll.u32 %v4448_v14, 16  ;;  %v6955_v14 = vld [vmem:[%s8032_s3 + $0x130] sm:$0xff]  }
 0x11d   : > { %6307 = vmatmul.mubr.bf16.gmra.mrb[8].mxu1 %v2122_v62  ;;  %v2164_v27 = vor.u32 %v2163_v5, %v2160_v9  ;;  %v4467_v6 = vrot.slane %v4465_v58, 4  ;;  %v4470_v1 = vrot.slane %v4468_v44, 5  ;;  %v2175_v41 = vshrl.u32 %v2007_v17, 16  ;;  %v6954_v62 = vld [vmem:[%s8032_s3 + $0x128] sm:$0xff]  }
 0x11e   : > { %6310 = vmatprep.mubr.bf16.mxu1 %v2139_v36  ;;  %v2172_v53 = vor.u32 %v2171_v26, %v2168_v55  ;;  %v4475_v35 = vrot.slane %v4473_v46, 4  ;;  %v4478_v57 = vrot.slane %v4476_v54, 5  ;;  %v2178_v56 = vshll.u32 %v2007_v17, 16  ;;  %6582 = vmatpush3.bf16.msra.mxu1 %v6953_v3  ;;  %v4450_v17 = vld [vmem:[#allocation2 + $0x48] sm:$0x1f] }
 0x11f   : > { %6515 = vmatmul.mubr.bf16.gmra.mrb[24].mxu0 %v7807_v13  ;;  %v4471_v8 = vor.u32 %v4470_v1, %v4467_v6  ;;  %v2177_v52 = vrot.slane %v2175_v41, 3  ;;  %v2183_v47 = vshrl.u32 %v7835_v61, 16  ;;  %v2186_v63 = vshll.u32 %v7835_v61, 16  ;;  %6575 = vmatprep.subr.bf16.mxu1 %v6954_v62  ;;  %v2011_v3 = vld [vmem:[#allocation2 + $0xc0] sm:$0xf8] }
 0x120   : > { %6518 = vmatprep.mubr.bf16.mxu0 %v4170_v34  ;;  %v2173_v51 = vsel %vm573_vm2, %v2164_v27, %v2172_v53  ;;  %v4479_v30 = vor.u32 %v4478_v57, %v4475_v35  ;;  %v2180_v28 = vrot.slane %v2178_v56, 4  ;;  %v4482_v49 = vshrl.u32 %v7693_v16, 16  ;;  %v7858_v53 = vld [vmem:[#allocation2 + $0xc8] sm:$0xf]  ;;  %v6956_v35 = vld [vmem:[%s8032_s3 + $0x138] sm:$0xff]  }
 0x121   : > { %v2185_v13 = vrot.slane %v2183_v47, 3  ;;  %v2188_v2 = vrot.slane %v2186_v63, 4  ;;  %v4485_v39 = vshll.u32 %v7693_v16, 16  ;;  %v4490_v4 = vshrl.u32 %v4449_v38, 16 }
 0x122   : > { %v4480_v48 = vsel %vm1442_vm1, %v4471_v8, %v4479_v30  ;;  %v2181_v32 = vor.u32 %v2180_v28, %v2177_v52  ;;  %v4484_v22 = vrot.slane %v4482_v49, 4  ;;  %v4493_v36 = vshll.u32 %v4449_v38, 16  ;;  %6583 = vmatpush3.bf16.msra.mxu1 %v6954_v62 }
 0x123   : > { %v2189_v34 = vor.u32 %v2188_v2, %v2185_v13  ;;  %v4487_v11 = vrot.slane %v4485_v39, 5  ;;  %v4492_v40 = vrot.slane %v4490_v4, 4  ;;  %v2192_v50 = vshrl.u32 %v2009_v59, 16  ;;  %6576 = vmatprep.subr.bf16.mxu1 %v6955_v14  ;;  %v2013_v39 = vld [vmem:[#allocation2 + $0xd0] sm:$0xf8] }
 0x124   : > { %v4495_v37 = vrot.slane %v4493_v36, 5  ;;  %v2195_v16 = vshll.u32 %v2009_v59, 16  ;;  %v2200_v9 = vshrl.u32 %v7846_v10, 16  ;;  %v2203_v45 = vshll.u32 %v7846_v10, 16  ;;  %v7869_v36 = vld [vmem:[#allocation2 + $0xd8] sm:$0xf] }
 0x125   : > { %6311 = vmatmul.mubr.bf16.gmra.mrb[12].mxu1 %v2156_v23  ;;  %v2190_v5 = vsel %vm573_vm2, %v2181_v32, %v2189_v34  ;;  %v4488_v55 = vor.u32 %v4487_v11, %v4484_v22  ;;  %v2194_v58 = vrot.slane %v2192_v50, 3  ;;  %v4499_v44 = vshrl.u32 %v7697_v31, 16 }
 0x126   : > { %6314 = vmatprep.mubr.bf16.mxu1 %v2173_v51  ;;  %v4496_v26 = vor.u32 %v4495_v37, %v4492_v40  ;;  %v2197_v46 = vrot.slane %v2195_v16, 4  ;;  %v2202_v54 = vrot.slane %v2200_v9, 3  ;;  %v2205_v27 = vrot.slane %v2203_v45, 4  ;;  %6584 = vmatpush3.bf16.msra.mxu1 %v6955_v14 }
 0x127   : > { %6519 = vmatmul.mubr.bf16.gmra.mrb[28].mxu0 %v7826_v42  ;;  %v4501_v6 = vrot.slane %v4499_v44, 4  ;;  %v4502_v1 = vshll.u32 %v7697_v31, 16  ;;  %v4507_v41 = vshrl.u32 %v4450_v17, 16  ;;  %v4510_v23 = vshll.u32 %v4450_v17, 16  ;;  %6577 = vmatprep.subr.bf16.mxu1 %v6956_v35  ;;  %v4451_v31 = vld [vmem:[#allocation2 + $0x58] sm:$0x1f] }
 0x128   : > { %6538 = vmatprep.mubr.bf16.mxu0 %v4480_v48  ;;  %v4497_v57 = vsel %vm1442_vm1, %v4488_v55, %v4496_v26  ;;  %v2198_v56 = vor.u32 %v2197_v46, %v2194_v58  ;;  %v2206_v38 = vor.u32 %v2205_v27, %v2202_v54  ;;  %v2209_v8 = vshrl.u32 %v2011_v3, 16  ;;  %v4452_v58 = vld [vmem:[#allocation2 + $0x68] sm:$0x1f]  ;;  %v2015_v46 = vld [vmem:[#allocation2 + $0xe0] sm:$0xf8] }
 0x129   : > { %v4504_v52 = vrot.slane %v4502_v1, 5  ;;  %v4509_v42 = vrot.slane %v4507_v41, 4  ;;  %v4512_v47 = vrot.slane %v4510_v23, 5  ;;  %v2212_v63 = vshll.u32 %v2011_v3, 16 }
 0x12a   : > { %v2207_v62 = vsel %vm573_vm2, %v2198_v56, %v2206_v38  ;;  %v2211_v51 = vrot.slane %v2209_v8, 3  ;;  %v2217_v30 = vshrl.u32 %v7858_v53, 16  ;;  %v2220_v28 = vshll.u32 %v7858_v53, 16  ;;  %6585 = vmatpush3.bf16.msra.mxu1 %v6956_v35  ;;  %v7877_v56 = vld [vmem:[#allocation2 + $0xe8] sm:$0xf] }
 0x12b   : > { %v4505_v49 = vor.u32 %v4504_v52, %v4501_v6  ;;  %v4513_v59 = vor.u32 %v4512_v47, %v4509_v42  ;;  %v2214_v13 = vrot.slane %v2212_v63, 4  ;;  %v4516_v2 = vshrl.u32 %v7704_v29, 16 }
 0x12c   : > { %v2219_v4 = vrot.slane %v2217_v30, 3  ;;  %v2222_v48 = vrot.slane %v2220_v28, 4  ;;  %v4519_v32 = vshll.u32 %v7704_v29, 16  ;;  %v4524_v22 = vshrl.u32 %v4451_v31, 16 }
 0x12d   : > { %6315 = vmatmul.mubr.bf16.gmra.mrb[16].mxu1 %v2190_v5  ;;  %v4514_v34 = vsel %vm1442_vm1, %v4505_v49, %v4513_v59  ;;  %v2215_v11 = vor.u32 %v2214_v13, %v2211_v51  ;;  %v4518_v40 = vrot.slane %v4516_v2, 4  ;;  %v4527_v50 = vshll.u32 %v4451_v31, 16  ;;  %v4453_v51 = vld [vmem:[#allocation2 + $0x78] sm:$0x1f] }
 0x12e   : > { %6318 = vmatprep.mubr.bf16.mxu1 %v2207_v62  ;;  %v2223_v14 = vor.u32 %v2222_v48, %v2219_v4  ;;  %v4521_v37 = vrot.slane %v4519_v32, 5  ;;  %v4526_v16 = vrot.slane %v4524_v22, 4  ;;  %v2226_v9 = vshrl.u32 %v2013_v39, 16  ;;  %v2017_v4 = vld [vmem:[#allocation2 + $0xf0] sm:$0xf8] }
 0x12f   : > { %6539 = vmatmul.mubr.bf16.vlgmr.msra.gmra.mrb[0].mxu0 %v4497_v57  ;;  %v4529_v45 = vrot.slane %v4527_v50, 5  ;;  %v2229_v17 = vshll.u32 %v2013_v39, 16  ;;  %v2234_v55 = vshrl.u32 %v7869_v36, 16  ;;  %v2237_v29 = vshll.u32 %v7869_v36, 16 }
 0x130   : > { %6542 = vmatprep.mubr.bf16.mxu0 %v4514_v34  ;;  %v2224_v5 = vsel %vm573_vm2, %v2215_v11, %v2223_v14  ;;  %v4522_v44 = vor.u32 %v4521_v37, %v4518_v40  ;;  %v2228_v3 = vrot.slane %v2226_v9, 3  ;;  %v4533_v26 = vshrl.u32 %v7713_v25, 16  ;;  %v7885_v11 = vld [vmem:[#allocation2 + $0xf8] sm:$0xf] }
 0x131   : > { %v4530_v54 = vor.u32 %v4529_v45, %v4526_v16  ;;  %v2231_v27 = vrot.slane %v2229_v17, 4  ;;  %v2236_v6 = vrot.slane %v2234_v55, 3  ;;  %v2239_v1 = vrot.slane %v2237_v29, 4 }
 0x132   : > { %v4535_v41 = vrot.slane %v4533_v26, 4  ;;  %v4536_v23 = vshll.u32 %v7713_v25, 16  ;;  %v4541_v35 = vshrl.u32 %v4452_v58, 16  ;;  %v4544_v57 = vshll.u32 %v4452_v58, 16 }
 0x133   : > { %v4531_v38 = vsel %vm1442_vm1, %v4522_v44, %v4530_v54  ;;  %v2232_v8 = vor.u32 %v2231_v27, %v2228_v3  ;;  %v2240_v52 = vor.u32 %v2239_v1, %v2236_v6  ;;  %v2243_v42 = vshrl.u32 %v2015_v46, 16  ;;  %v2019_v54 = vld [vmem:[#allocation2 + $0x100] sm:$0xf8] }
 0x134   : > { %v4538_v47 = vrot.slane %v4536_v23, 5  ;;  %v4543_v63 = vrot.slane %v4541_v35, 4  ;;  %v4546_v31 = vrot.slane %v4544_v57, 5  ;;  %v2246_v62 = vshll.u32 %v2015_v46, 16 }
 0x135   : > { %6319 = vmatmul.mubr.bf16.gmra.mrb[20].mxu1 %v2224_v5  ;;  %v2241_v30 = vsel %vm573_vm2, %v2232_v8, %v2240_v52  ;;  %v2245_v28 = vrot.slane %v2243_v42, 3  ;;  %v2251_v25 = vshrl.u32 %v7877_v56, 16  ;;  %v2254_v49 = vshll.u32 %v7877_v56, 16  ;;  %v7893_v8 = vld [vmem:[#allocation2 + $0x108] sm:$0xf] }
 0x136   : > { %6322 = vmatprep.mubr.bf16.mxu1 %v2241_v30  ;;  %v4539_v59 = vor.u32 %v4538_v47, %v4535_v41  ;;  %v4547_v13 = vor.u32 %v4546_v31, %v4543_v63  ;;  %v2248_v2 = vrot.slane %v2246_v62, 4  ;;  %v4550_v39 = vshrl.u32 %v7723_v60, 16 }
 0x137   : > { %6543 = vmatmul.mubr.bf16.gmra.mrb[4].mxu0 %v4531_v38  ;;  %v2253_v48 = vrot.slane %v2251_v25, 3  ;;  %v2256_v32 = vrot.slane %v2254_v49, 4  ;;  %v4553_v22 = vshll.u32 %v7723_v60, 16  ;;  %v4558_v34 = vshrl.u32 %v4453_v51, 16  ;;  %v4454_v60 = vld [vmem:[#allocation2 + $0x88] sm:$0x1f] }
 0x138   : > { %v4548_v40 = vsel %vm1442_vm1, %v4539_v59, %v4547_v13  ;;  %v2249_v50 = vor.u32 %v2248_v2, %v2245_v28  ;;  %v4552_v14 = vrot.slane %v4550_v39, 4  ;;  %v4561_v37 = vshll.u32 %v4453_v51, 16  ;;  %v4455_v28 = vld [vmem:[#allocation2 + $0x98] sm:$0x1f] }
 0x139   : > { %6546 = vmatprep.mubr.bf16.mxu0 %v4548_v40  ;;  %v2257_v16 = vor.u32 %v2256_v32, %v2253_v48  ;;  %v4555_v9 = vrot.slane %v4553_v22, 5  ;;  %v4560_v45 = vrot.slane %v4558_v34, 4  ;;  %v2260_v17 = vshrl.u32 %v2017_v4, 16 }
 0x13a   : > { %v4563_v55 = vrot.slane %v4561_v37, 5  ;;  %v2263_v29 = vshll.u32 %v2017_v4, 16  ;;  %v2268_v58 = vshrl.u32 %v7885_v11, 16  ;;  %v2271_v5 = vshll.u32 %v7885_v11, 16 }
 0x13b   : > { %v2258_v44 = vsel %vm573_vm2, %v2249_v50, %v2257_v16  ;;  %v4556_v3 = vor.u32 %v4555_v9, %v4552_v14  ;;  %v2262_v26 = vrot.slane %v2260_v17, 3  ;;  %v4567_v46 = vshrl.u32 %v7732_v19, 16  ;;  %v4456_v16 = vld [vmem:[#allocation2 + $0xa8] sm:$0x1f] }
 0x13c   : > { %v4564_v27 = vor.u32 %v4563_v55, %v4560_v45  ;;  %v2265_v6 = vrot.slane %v2263_v29, 4  ;;  %v2270_v1 = vrot.slane %v2268_v58, 3  ;;  %v2273_v41 = vrot.slane %v2271_v5, 4  ;;  %v6957_v55 = vld [vmem:[#allocation2 + $0x90] sm:$0xf0] }
 0x13d   : > { %6323 = vmatmul.mubr.bf16.gmra.mrb[24].mxu1 %v2258_v44  ;;  %v4569_v23 = vrot.slane %v4567_v46, 4  ;;  %v4570_v35 = vshll.u32 %v7732_v19, 16  ;;  %v4575_v57 = vshrl.u32 %v4454_v60, 16  ;;  %v4578_v38 = vshll.u32 %v4454_v60, 16 }
 0x13e   : > { %v4565_v52 = vsel %vm1442_vm1, %v4556_v3, %v4564_v27  ;;  %v2266_v42 = vor.u32 %v2265_v6, %v2262_v26  ;;  %v2274_v47 = vor.u32 %v2273_v41, %v2270_v1  ;;  %v2277_v63 = vshrl.u32 %v2019_v54, 16  ;;  %v4457_v41 = vld [vmem:[#allocation2 + $0xb8] sm:$0x1f] }
 0x13f   : > { %6547 = vmatmul.mubr.bf16.gmra.mrb[8].mxu0 %v4565_v52  ;;  %v4572_v31 = vrot.slane %v4570_v35, 5  ;;  %v4577_v62 = vrot.slane %v4575_v57, 4  ;;  %v4580_v51 = vrot.slane %v4578_v38, 5  ;;  %v2280_v30 = vshll.u32 %v2019_v54, 16 }
 0x140   : > { %v2275_v25 = vsel %vm573_vm2, %v2266_v42, %v2274_v47  ;;  %v2279_v49 = vrot.slane %v2277_v63, 3  ;;  %v2285_v19 = vshrl.u32 %v7893_v8, 16  ;;  %v2288_v59 = vshll.u32 %v7893_v8, 16 }
 0x141   : > { %6326 = vmatprep.mubr.bf16.mxu1 %v2275_v25  ;;  %v4573_v13 = vor.u32 %v4572_v31, %v4569_v23  ;;  %v4581_v2 = vor.u32 %v4580_v51, %v4577_v62  ;;  %v2282_v39 = vrot.slane %v2280_v30, 4  ;;  %v4584_v4 = vshrl.u32 %v7738_v33, 16  ;;  %v4458_v30 = vld [vmem:[#allocation2 + $0xc8] sm:$0x1f] }
 0x142   : > { %v2287_v48 = vrot.slane %v2285_v19, 3  ;;  %v2290_v32 = vrot.slane %v2288_v59, 4  ;;  %v4587_v22 = vshll.u32 %v7738_v33, 16  ;;  %v4592_v34 = vshrl.u32 %v4455_v28, 16 }
 0x143   : > { %v4582_v40 = vsel %vm1442_vm1, %v4573_v13, %v4581_v2  ;;  %v2283_v50 = vor.u32 %v2282_v39, %v2279_v49  ;;  %v4586_v14 = vrot.slane %v4584_v4, 4  ;;  %v4595_v37 = vshll.u32 %v4455_v28, 16  ;;  %v6959_v49 = vld [vmem:[#allocation2 + $0xb0] sm:$0xf0] }
 0x144   : > { %6550 = vmatprep.mubr.bf16.mxu0 %v4582_v40  ;;  %v2291_v9 = vor.u32 %v2290_v32, %v2287_v48  ;;  %v4589_v45 = vrot.slane %v4587_v22, 5  ;;  %v4594_v17 = vrot.slane %v4592_v34, 4  ;;  %v2639_v29 = vrot.slane %v6957_v55, 4  ;;  %v4459_v22 = vld [vmem:[#allocation2 + $0xd8] sm:$0x1f] }
 0x145   : > { %v4597_v58 = vrot.slane %v4595_v37, 5  ;;  %v2640_v5 = vrot.slane %v7815_v43, 4  ;;  %v4601_v60 = vshrl.u32 %v7747_v7, 16  ;;  %v4604_v33 = vshll.u32 %v7747_v7, 16  ;;  %v6958_v43 = vld [vmem:[#allocation2 + $0xa0] sm:$0xf0] }
 0x146   : > { %v2292_v44 = vsel %vm573_vm2, %v2283_v50, %v2291_v9  ;;  %v4590_v3 = vor.u32 %v4589_v45, %v4586_v14  ;;  %v4609_v26 = vshrl.u32 %v4456_v16, 16  ;;  %v4612_v46 = vshll.u32 %v4456_v16, 16  ;;  %v6960_v14 = vld [vmem:[#allocation2 + $0xc0] sm:$0xf0] }
 0x147   : > { %6327 = vmatmul.mubr.bf16.gmra.mrb[28].mxu1 %v2292_v44  ;;  %v4598_v54 = vor.u32 %v4597_v58, %v4594_v17  ;;  %v2641_v27 = vsel %vm926_vm0, %v2639_v29, %v2640_v5  ;;  %v4603_v6 = vrot.slane %v4601_v60, 4  ;;  %v4606_v1 = vrot.slane %v4604_v33, 5  ;;  %v4460_v44 = vld [vmem:[#allocation2 + $0xe8] sm:$0x1f] }
 0x148   : > { %6362 = vmatprep.mubr.bf16.mxu1 %v2641_v27  ;;  %v4611_v23 = vrot.slane %v4609_v26, 4  ;;  %v4614_v35 = vrot.slane %v4612_v46, 5  ;;  %v2642_v57 = vrot.slane %v6958_v43, 4  ;;  %v2643_v38 = vrot.slane %v7835_v61, 4 }
 0x149   : > { %v4599_v7 = vsel %vm1442_vm1, %v4590_v3, %v4598_v54  ;;  %v4607_v52 = vor.u32 %v4606_v1, %v4603_v6  ;;  %v4618_v42 = vshrl.u32 %v7754_v21, 16  ;;  %v4621_v47 = vshll.u32 %v7754_v21, 16 }
 0x14a   : > { %6551 = vmatmul.mubr.bf16.gmra.mrb[12].mxu0 %v4599_v7  ;;  %v4615_v63 = vor.u32 %v4614_v35, %v4611_v23  ;;  %v2644_v31 = vsel %vm926_vm0, %v2642_v57, %v2643_v38  ;;  %v4626_v62 = vshrl.u32 %v4457_v41, 16  ;;  %v4629_v51 = vshll.u32 %v4457_v41, 16 }
 0x14b   : > { %v4620_v28 = vrot.slane %v4618_v42, 4  ;;  %v4623_v25 = vrot.slane %v4621_v47, 5  ;;  %v2645_v19 = vrot.slane %v6959_v49, 4  ;;  %v2646_v61 = vrot.slane %v7846_v10, 4  ;;  %v4461_v42 = vld [vmem:[#allocation2 + $0xf8] sm:$0x1f] }
 0x14c   : > { %v4616_v59 = vsel %vm1442_vm1, %v4607_v52, %v4615_v63  ;;  %v4628_v13 = vrot.slane %v4626_v62, 4  ;;  %v4631_v2 = vrot.slane %v4629_v51, 5  ;;  %v4635_v39 = vshrl.u32 %v7763_v0, 16 }
 0x14d   : > { %6554 = vmatprep.mubr.bf16.mxu0 %v4616_v59  ;;  %v4624_v21 = vor.u32 %v4623_v25, %v4620_v28  ;;  %v2647_v4 = vsel %vm926_vm0, %v2645_v19, %v2646_v61  ;;  %v4638_v48 = vshll.u32 %v7763_v0, 16  ;;  %v4643_v32 = vshrl.u32 %v4458_v30, 16  ;;  %v4462_v61 = vld [vmem:[#allocation2 + $0x108] sm:$0x1f] }
 0x14e   : > { %v4632_v34 = vor.u32 %v4631_v2, %v4628_v13  ;;  %v4637_v40 = vrot.slane %v4635_v39, 4  ;;  %v4646_v50 = vshll.u32 %v4458_v30, 16  ;;  %v2648_v37 = vrot.slane %v6960_v14, 4  ;;  %v6963_v2 = vld [vmem:[#allocation2 + $0xf0] sm:$0xf0] }
 0x14f   : > { %6363 = vmatmul.mubr.bf16.vlgmr.msra.gmra.mrb[16].mxu1 %v2644_v31  ;;  %v4640_v10 = vrot.slane %v4638_v48, 5  ;;  %v4645_v16 = vrot.slane %v4643_v32, 4  ;;  %v2649_v9 = vrot.slane %v7858_v53, 4  ;;  %v4652_v45 = vshrl.u32 %v7775_v20, 16  ;;  %v6961_v53 = vld [vmem:[#allocation2 + $0xd0] sm:$0xf0] }
 0x150   : > { %v4633_v17 = vsel %vm1442_vm1, %v4624_v21, %v4632_v34  ;;  %6366 = vmatprep.mubr.bf16.mxu1 %v2647_v4  ;;  %v4648_v55 = vrot.slane %v4646_v50, 5  ;;  %v4655_v0 = vshll.u32 %v7775_v20, 16  ;;  %v4660_v29 = vshrl.u32 %v4459_v22, 16  ;;  %v6962_v31 = vld [vmem:[#allocation2 + $0xe0] sm:$0xf0] }
 0x151   : > { %v4641_v58 = vor.u32 %v4640_v10, %v4637_v40  ;;  %v2650_v5 = vsel %vm926_vm0, %v2648_v37, %v2649_v9  ;;  %v4654_v60 = vrot.slane %v4652_v45, 4  ;;  %v4663_v33 = vshll.u32 %v4459_v22, 16  ;;  %v4463_v40 = vld [vmem:[#allocation2 + $0x118] sm:$0x1f] }
 0x152   : > { %6555 = vmatmul.mubr.bf16.gmra.mrb[16].mxu0 %v4633_v17  ;;  %v4649_v3 = vor.u32 %v4648_v55, %v4645_v16  ;;  %v4657_v26 = vrot.slane %v4655_v0, 5  ;;  %v4662_v46 = vrot.slane %v4660_v29, 4  ;;  %v2651_v54 = vrot.slane %v6961_v53, 4  ;;  %v6964_v55 = vld [vmem:[#allocation2 + $0x100] sm:$0xf0] }
 0x153   : > { %v4665_v27 = vrot.slane %v4663_v33, 5  ;;  %v2652_v6 = vrot.slane %v7869_v36, 4  ;;  %v4669_v1 = vshrl.u32 %v7781_v15, 16  ;;  %v4672_v20 = vshll.u32 %v7781_v15, 16 }
 0x154   : > { %v4650_v41 = vsel %vm1442_vm1, %v4641_v58, %v4649_v3  ;;  %v4658_v23 = vor.u32 %v4657_v26, %v4654_v60  ;;  %v4677_v35 = vshrl.u32 %v4460_v44, 16  ;;  %v4680_v43 = vshll.u32 %v4460_v44, 16 }
 0x155   : > { %6558 = vmatprep.mubr.bf16.mxu0 %v4650_v41  ;;  %v4666_v57 = vor.u32 %v4665_v27, %v4662_v46  ;;  %v2653_v38 = vsel %vm926_vm0, %v2651_v54, %v2652_v6  ;;  %v4671_v7 = vrot.slane %v4669_v1, 4  ;;  %v4674_v52 = vrot.slane %v4672_v20, 5 }
 0x156   : > { %v4679_v47 = vrot.slane %v4677_v35, 4  ;;  %v4682_v63 = vrot.slane %v4680_v43, 5  ;;  %v2654_v36 = vrot.slane %v6962_v31, 4  ;;  %v4686_v51 = vshrl.u32 %v7790_v24, 16 }
 0x157   : > { %6367 = vmatmul.mubr.bf16.gmra.mrb[20].mxu1 %v2650_v5  ;;  %v4667_v62 = vsel %vm1442_vm1, %v4658_v23, %v4666_v57  ;;  %v4675_v15 = vor.u32 %v4674_v52, %v4671_v7  ;;  %v4689_v30 = vshll.u32 %v7790_v24, 16  ;;  %v2655_v25 = vrot.slane %v7877_v56, 4 }
 0x158   : > { %6370 = vmatprep.mubr.bf16.mxu1 %v2653_v38  ;;  %v4683_v28 = vor.u32 %v4682_v63, %v4679_v47  ;;  %v4694_v49 = vshrl.u32 %v4461_v42, 16  ;;  %v4697_v19 = vshll.u32 %v4461_v42, 16  ;;  %v4688_v59 = vrot.slane %v4686_v51, 4 }
 0x159   : > { %v4691_v13 = vrot.slane %v4689_v30, 5  ;;  %v2657_v39 = vrot.slane %v6963_v2, 4  ;;  %v2658_v21 = vrot.slane %v7885_v11, 4  ;;  %v4703_v24 = vshrl.u32 %v7800_v18, 16 }
 0x15a   : > { %6559 = vmatmul.mubr.bf16.gmra.mrb[20].mxu0 %v4667_v62  ;;  %v4684_v4 = vsel %vm1442_vm1, %v4675_v15, %v4683_v28  ;;  %v4696_v48 = vrot.slane %v4694_v49, 4  ;;  %v4699_v32 = vrot.slane %v4697_v19, 5  ;;  %v4706_v56 = vshll.u32 %v7800_v18, 16  ;;  %v7959_v15 = vld [vmem:[%s8033_s4] ss:$0 sm:$0xff] }
 0x15b   : > { %6562 = vmatprep.mubr.bf16.mxu0 %v4684_v4  ;;  %v4692_v22 = vor.u32 %v4691_v13, %v4688_v59  ;;  %v4711_v34 = vshrl.u32 %v4462_v61, 16  ;;  %v2656_v50 = vsel %vm926_vm0, %v2654_v36, %v2655_v25  ;;  %v4705_v37 = vrot.slane %v4703_v24, 4 }
 0x15c   : > { %v4700_v14 = vor.u32 %v4699_v32, %v4696_v48  ;;  %v4714_v10 = vshll.u32 %v4462_v61, 16  ;;  %v2659_v11 = vsel %vm926_vm0, %v2657_v39, %v2658_v21  ;;  %v4708_v16 = vrot.slane %v4706_v56, 5 }
 0x15d   : > { %v4713_v9 = vrot.slane %v4711_v34, 4  ;;  %v4720_v45 = vshrl.u32 %v7811_v12, 16  ;;  %v2660_v0 = vrot.slane %v6964_v55, 4  ;;  %v4723_v29 = vshll.u32 %v7811_v12, 16 }
 0x15e   : > { %v4716_v17 = vrot.slane %v4714_v10, 5  ;;  %v4728_v58 = vshrl.u32 %v4463_v40, 16  ;;  %v4701_v18 = vsel %vm1442_vm1, %v4692_v22, %v4700_v14  ;;  %v4709_v5 = vor.u32 %v4708_v16, %v4705_v37 }
 0x15f   : > { %6371 = vmatmul.mubr.bf16.gmra.mrb[24].mxu1 %v2656_v50  ;;  %v4722_v60 = vrot.slane %v4720_v45, 4  ;;  %v4731_v33 = vshll.u32 %v4463_v40, 16  ;;  %v2661_v3 = vrot.slane %v7893_v8, 4  ;;  %v4725_v26 = vrot.slane %v4723_v29, 5 }
 0x160   : > { %6374 = vmatprep.mubr.bf16.mxu1 %v2659_v11  ;;  %v4717_v44 = vor.u32 %v4716_v17, %v4713_v9  ;;  %v4730_v46 = vrot.slane %v4728_v58, 4 }
 0x161   : > { %v4733_v53 = vrot.slane %v4731_v33, 5  ;;  %v4726_v27 = vor.u32 %v4725_v26, %v4722_v60  ;;  %v2662_v6 = vsel %vm926_vm0, %v2660_v0, %v2661_v3 }
 0x162   : > { %6563 = vmatmul.mubr.bf16.gmra.mrb[24].mxu0 %v4701_v18  ;;  %v4718_v54 = vsel %vm1442_vm1, %v4709_v5, %v4717_v44 }
 0x163   : > { %6566 = vmatprep.mubr.bf16.mxu0 %v4718_v54  ;;  %v4734_v12 = vor.u32 %v4733_v53, %v4730_v46 }
 0x165   : > { %v4735_v1 = vsel %vm1442_vm1, %v4726_v27, %v4734_v12 }
 0x167   : > { %6375 = vmatmul.mubr.bf16.gmra.mrb[28].mxu1 %v2662_v6 }
 0x16a   : > { %6567 = vmatmul.mubr.bf16.gmra.mrb[28].mxu0 %v4735_v1 }
 0x1e0   : > { %v6300_v20 = vpop.f32.mrb[0].mxu1 }
 0x1e1   : > { %v2408_v41 = vpop.f32.mrb[1].mxu1 }
 0x1e2   : > { %v6301_v23 = vpop.f32.mrb[2].mxu1 }
 0x1e3   : > { %v2411_v35 = vpop.f32.mrb[3].mxu1 }
 0x1e8   : > { %v6304_v8 = vpop.f32.mrb[4].mxu1 }
 0x1e9   : > { %v2424_v43 = vpop.f32.mrb[5].mxu1 }
 0x1ea   : > { %v6305_v57 = vpop.f32.mrb[6].mxu1 }
 0x1eb   : > { %v2427_v38 = vpop.f32.mrb[7].mxu1 }
 0x1f0   : > { %v6308_v7 = vpop.f32.mrb[8].mxu1 }
 0x1f1   : > { %v2440_v52 = vpop.f32.mrb[9].mxu1 }
 0x1f2   : > { %v7944_v42 = vpop.f32.mrb[10].mxu1 }
 0x1f3   : > { %v7946_v47 = vpop.f32.mrb[11].mxu1 }
 0x1f8   : > { %v7948_v63 = vpop.f32.mrb[12].mxu1 }
 0x1f9   : > { %v7950_v31 = vpop.f32.mrb[13].mxu1 }
 0x1fa   : > { %v7952_v36 = vpop.f32.mrb[14].mxu1 }
 0x1fb   : > { %v7954_v62 = vpop.f32.mrb[15].mxu1 }
 0x202   : > { %v6540_v51 = vpop.f32.mrb[0].mxu0 }
 0x203   : > { %v6586_v30 = vadd.f32 %v6540_v51, %v6300_v20  ;;  %v4851_v28 = vpop.f32.mrb[1].mxu0 }
 0x204   : > { %v6587_v25 = vadd.f32 %v4851_v28, %v2408_v41  ;;  %v6541_v49 = vpop.f32.mrb[2].mxu0 }
 0x205   : > { %v5018_v19 = vadd.f32 %v6586_v30, %v7959_v15  ;;  %v6588_v61 = vadd.f32 %v6541_v49, %v6301_v23  ;;  %v4854_v59 = vpop.f32.mrb[3].mxu0 }
 0x206   : > { %v5016_v13 = vadd.f32 %v6587_v25, %v7959_v15  ;;  %v6589_v2 = vadd.f32 %v4854_v59, %v2411_v35 }
 0x207   : > { %v5019_v39 = vadd.f32 %v6588_v61, %v7959_v15  ;;  %v5050_v4 = vmax.f32 %v5018_v19, 0.0 }
 0x208   : > { %v5017_v21 = vadd.f32 %v6589_v2, %v7959_v15  ;;  %v5048_v32 = vmax.f32 %v5016_v13, 0.0 }
 0x209   : > { %v5051_v48 = vmax.f32 %v5019_v39, 0.0 }
 0x20a   : > { %v5049_v24 = vmax.f32 %v5017_v21, 0.0  ;;  %v6544_v22 = vpop.f32.mrb[4].mxu0 }
 0x20b   : > { %v5081_v56 = vpack.c.bf16 %v5051_v48, %v5050_v4  ;;  %v6590_v34 = vadd.f32 %v6544_v22, %v6304_v8  ;;  %v4867_v40 = vpop.f32.mrb[5].mxu0 }
 0x20c   : > { %v5080_v50 = vpack.c.bf16 %v5049_v24, %v5048_v32  ;;  %v6591_v14 = vadd.f32 %v4867_v40, %v2424_v43  ;;  %v6545_v37 = vpop.f32.mrb[6].mxu0 }
 0x20d   : > { %5907 = vst [vmem:[%s7970_s8 + $0x8] sm:$0xff] %v5081_v56   ;;  %v5022_v10 = vadd.f32 %v6590_v34, %v7959_v15  ;;  %v6592_v11 = vadd.f32 %v6545_v37, %v6305_v57  ;;  %v4870_v16 = vpop.f32.mrb[7].mxu0  ;;  %v5242_v9 = vunpack.c.l.bf16 %v5081_v56  ;;  %v5243_v58 = vunpack.c.h.bf16 %v5081_v56 }
 0x20e   : > { %5816 = vst [vmem:[%s7970_s8] sm:$0xff] %v5080_v50   ;;  %v5240_v45 = vunpack.c.l.bf16 %v5080_v50  ;;  %v5241_v17 = vunpack.c.h.bf16 %v5080_v50  ;;  %v6593_v55 = vadd.f32 %v4870_v16, %v2427_v38  ;;  %v5020_v0 = vadd.f32 %v6591_v14, %v7959_v15 }
 0x20f   : > { %v5023_v29 = vadd.f32 %v6592_v11, %v7959_v15  ;;  %v5054_v33 = vmax.f32 %v5022_v10, 0.0  ;;  %v5311_v26 = vmul.f32 %v5242_v9, %v5242_v9  ;;  %v5312_v41 = vmul.f32 %v5243_v58, %v5243_v58 }
 0x210   : > { %v5272_v18 = vadd.f32 %v5241_v17, %v5240_v45  ;;  %v5309_v5 = vmul.f32 %v5240_v45, %v5240_v45  ;;  %v5310_v60 = vmul.f32 %v5241_v17, %v5241_v17  ;;  %v5021_v3 = vadd.f32 %v6593_v55, %v7959_v15 }
 0x211   : > { %v5055_v44 = vmax.f32 %v5023_v29, 0.0  ;;  %v5052_v27 = vmax.f32 %v5020_v0, 0.0 }
 0x212   : > { %v5273_v46 = vadd.f32 %v5272_v18, %v5242_v9  ;;  %v5341_v53 = vadd.f32 %v5310_v60, %v5309_v5  ;;  %v6548_v54 = vpop.f32.mrb[8].mxu0  ;;  %v5053_v6 = vmax.f32 %v5021_v3, 0.0 }
 0x213   : > { %v5083_v12 = vpack.c.bf16 %v5055_v44, %v5054_v33  ;;  %v6594_v1 = vadd.f32 %v6548_v54, %v6308_v7  ;;  %v4883_v20 = vpop.f32.mrb[9].mxu0 }
 0x214   : > { %v5342_v23 = vadd.f32 %v5341_v53, %v5311_v26  ;;  %v5274_v35 = vadd.f32 %v5273_v46, %v5243_v58  ;;  %v6595_v8 = vadd.f32 %v4883_v20, %v2440_v52  ;;  %v6549_v43 = vpop.f32.mrb[10].mxu0  ;;  %v5082_v57 = vpack.c.bf16 %v5053_v6, %v5052_v27 }
 0x215   : > { %5909 = vst [vmem:[%s7970_s8 + $0x18] sm:$0xff] %v5083_v12   ;;  %v5026_v38 = vadd.f32 %v6594_v1, %v7959_v15  ;;  %v4886_v51 = vpop.f32.mrb[11].mxu0  ;;  %v6596_v25 = vadd.f32 %v6549_v43, %v7944_v42  ;;  %v5246_v59 = vunpack.c.l.bf16 %v5083_v12  ;;  %v5247_v13 = vunpack.c.h.bf16 %v5083_v12 }
 0x216   : > { %v5343_v30 = vadd.f32 %v5342_v23, %v5312_v41  ;;  %v5024_v28 = vadd.f32 %v6595_v8, %v7959_v15  ;;  %v6597_v49 = vadd.f32 %v4886_v51, %v7946_v47  ;;  %5908 = vst [vmem:[%s7970_s8 + $0x10] sm:$0xff] %v5082_v57   ;;  %v5244_v7 = vunpack.c.l.bf16 %v5082_v57 }
 0x217   : > { %v5245_v19 = vunpack.c.h.bf16 %v5082_v57  ;;  %v5027_v61 = vadd.f32 %v6596_v25, %v7959_v15  ;;  %v5058_v21 = vmax.f32 %v5026_v38, 0.0  ;;  %v5315_v34 = vmul.f32 %v5246_v59, %v5246_v59 }
 0x218   : > { %v5025_v52 = vadd.f32 %v6597_v49, %v7959_v15  ;;  %v5275_v2 = vadd.f32 %v5274_v35, %v5244_v7  ;;  %v5313_v39 = vmul.f32 %v5244_v7, %v5244_v7  ;;  %v5056_v4 = vmax.f32 %v5024_v28, 0.0 }
 0x219   : > { %v5059_v48 = vmax.f32 %v5027_v61, 0.0  ;;  %v5314_v24 = vmul.f32 %v5245_v19, %v5245_v19  ;;  %v5316_v37 = vmul.f32 %v5247_v13, %v5247_v13 }
 0x21a   : > { %v5057_v32 = vmax.f32 %v5025_v52, 0.0  ;;  %v5276_v42 = vadd.f32 %v5275_v2, %v5245_v19  ;;  %v5344_v47 = vadd.f32 %v5343_v30, %v5313_v39 }
 0x21b   : > { %v5085_v22 = vpack.c.bf16 %v5059_v48, %v5058_v21 }
 0x21c   : > { %v5084_v56 = vpack.c.bf16 %v5057_v32, %v5056_v4  ;;  %v5277_v40 = vadd.f32 %v5276_v42, %v5246_v59  ;;  %v5345_v50 = vadd.f32 %v5344_v47, %v5314_v24 }
 0x21d   : > { %v6552_v14 = vpop.f32.mrb[12].mxu0  ;;  %5911 = vst [vmem:[%s7970_s8 + $0x28] sm:$0xff] %v5085_v22   ;;  %v5250_v18 = vunpack.c.l.bf16 %v5085_v22  ;;  %v5251_v53 = vunpack.c.h.bf16 %v5085_v22 }
 0x21e   : > { %5910 = vst [vmem:[%s7970_s8 + $0x20] sm:$0xff] %v5084_v56   ;;  %v5248_v10 = vunpack.c.l.bf16 %v5084_v56  ;;  %v5249_v11 = vunpack.c.h.bf16 %v5084_v56  ;;  %v4899_v16 = vpop.f32.mrb[13].mxu0  ;;  %v5346_v9 = vadd.f32 %v5345_v50, %v5315_v34  ;;  %v5278_v45 = vadd.f32 %v5277_v40, %v5247_v13 }
 0x21f   : > { %v6598_v17 = vadd.f32 %v6552_v14, %v7948_v63  ;;  %v6599_v55 = vadd.f32 %v4899_v16, %v7950_v31  ;;  %v6553_v0 = vpop.f32.mrb[14].mxu0  ;;  %v5319_v20 = vmul.f32 %v5250_v18, %v5250_v18  ;;  %v5320_v30 = vmul.f32 %v5251_v53, %v5251_v53 }
 0x220   : > { %v5317_v29 = vmul.f32 %v5248_v10, %v5248_v10  ;;  %v4902_v58 = vpop.f32.mrb[15].mxu0  ;;  %v5279_v5 = vadd.f32 %v5278_v45, %v5248_v10  ;;  %v5347_v60 = vadd.f32 %v5346_v9, %v5316_v37  ;;  %v6600_v3 = vadd.f32 %v6553_v0, %v7952_v36 }
 0x221   : > { %v5030_v33 = vadd.f32 %v6598_v17, %v7959_v15  ;;  %v5028_v44 = vadd.f32 %v6599_v55, %v7959_v15  ;;  %v6601_v26 = vadd.f32 %v4902_v58, %v7954_v62  ;;  %v5318_v63 = vmul.f32 %v5249_v11, %v5249_v11 }
 0x222   : > { %v6364_v46 = vpop.f32.mrb[16].mxu1  ;;  %v5280_v54 = vadd.f32 %v5279_v5, %v5249_v11  ;;  %v5348_v27 = vadd.f32 %v5347_v60, %v5317_v29  ;;  %v5031_v12 = vadd.f32 %v6600_v3, %v7959_v15 }
 0x223   : > { %v2842_v31 = vpop.f32.mrb[17].mxu1  ;;  %v5029_v6 = vadd.f32 %v6601_v26, %v7959_v15  ;;  %v5062_v35 = vmax.f32 %v5030_v33, 0.0  ;;  %v5060_v36 = vmax.f32 %v5028_v44, 0.0 }
 0x224   : > { %v6365_v1 = vpop.f32.mrb[18].mxu1  ;;  %v5281_v41 = vadd.f32 %v5280_v54, %v5250_v18  ;;  %v5349_v23 = vadd.f32 %v5348_v27, %v5318_v63  ;;  %v5063_v57 = vmax.f32 %v5031_v12, 0.0 }
 0x225   : > { %v6556_v8 = vpop.f32.mrb[16].mxu0  ;;  %v2845_v43 = vpop.f32.mrb[19].mxu1  ;;  %v5061_v62 = vmax.f32 %v5029_v6, 0.0 }
 0x226   : > { %v6602_v38 = vadd.f32 %v6556_v8, %v6364_v46  ;;  %v4915_v51 = vpop.f32.mrb[17].mxu0  ;;  %v5350_v28 = vadd.f32 %v5349_v23, %v5319_v20  ;;  %v5282_v25 = vadd.f32 %v5281_v41, %v5251_v53  ;;  %v5087_v19 = vpack.c.bf16 %v5063_v57, %v5062_v35 }
 0x227   : > { %v6603_v49 = vadd.f32 %v4915_v51, %v2842_v31  ;;  %v6557_v7 = vpop.f32.mrb[18].mxu0  ;;  %v5086_v61 = vpack.c.bf16 %v5061_v62, %v5060_v36 }
 0x228   : > { %v6604_v52 = vadd.f32 %v6557_v7, %v6365_v1  ;;  %v4918_v59 = vpop.f32.mrb[19].mxu0  ;;  %v5351_v13 = vadd.f32 %v5350_v28, %v5320_v30  ;;  %v5034_v2 = vadd.f32 %v6602_v38, %v7959_v15  ;;  %5913 = vst [vmem:[%s7970_s8 + $0x38] sm:$0xff] %v5087_v19   ;;  %v5254_v22 = vunpack.c.l.bf16 %v5087_v19 }
 0x229   : > { %v5032_v39 = vadd.f32 %v6603_v49, %v7959_v15  ;;  %v6605_v21 = vadd.f32 %v4918_v59, %v2845_v43  ;;  %5912 = vst [vmem:[%s7970_s8 + $0x30] sm:$0xff] %v5086_v61   ;;  %v5252_v4 = vunpack.c.l.bf16 %v5086_v61  ;;  %v5253_v48 = vunpack.c.h.bf16 %v5086_v61 }
 0x22a   : > { %v6368_v32 = vpop.f32.mrb[20].mxu1  ;;  %v5035_v42 = vadd.f32 %v6604_v52, %v7959_v15  ;;  %v5255_v56 = vunpack.c.h.bf16 %v5087_v19  ;;  %v5066_v14 = vmax.f32 %v5034_v2, 0.0  ;;  %v5323_v33 = vmul.f32 %v5254_v22, %v5254_v22 }
 0x22b   : > { %v5033_v24 = vadd.f32 %v6605_v21, %v7959_v15  ;;  %v2858_v47 = vpop.f32.mrb[21].mxu1  ;;  %v5283_v34 = vadd.f32 %v5282_v25, %v5252_v4  ;;  %v5321_v40 = vmul.f32 %v5252_v4, %v5252_v4  ;;  %v5064_v37 = vmax.f32 %v5032_v39, 0.0 }
 0x22c   : > { %v6369_v50 = vpop.f32.mrb[22].mxu1  ;;  %v5067_v10 = vmax.f32 %v5035_v42, 0.0  ;;  %v5322_v17 = vmul.f32 %v5253_v48, %v5253_v48  ;;  %v5324_v27 = vmul.f32 %v5255_v56, %v5255_v56 }
 0x22d   : > { %v5065_v11 = vmax.f32 %v5033_v24, 0.0  ;;  %v6560_v16 = vpop.f32.mrb[20].mxu0  ;;  %v2861_v9 = vpop.f32.mrb[23].mxu1  ;;  %v5284_v45 = vadd.f32 %v5283_v34, %v5253_v48  ;;  %v5352_v55 = vadd.f32 %v5351_v13, %v5321_v40 }
 0x22e   : > { %v6606_v0 = vadd.f32 %v6560_v16, %v6368_v32  ;;  %v4931_v29 = vpop.f32.mrb[21].mxu0  ;;  %v5089_v58 = vpack.c.bf16 %v5067_v10, %v5066_v14 }
 0x22f   : > { %v5088_v18 = vpack.c.bf16 %v5065_v11, %v5064_v37  ;;  %v6607_v5 = vadd.f32 %v4931_v29, %v2858_v47  ;;  %v6561_v60 = vpop.f32.mrb[22].mxu0  ;;  %v5285_v44 = vadd.f32 %v5284_v45, %v5254_v22  ;;  %v5353_v3 = vadd.f32 %v5352_v55, %v5322_v17 }
 0x230   : > { %v6608_v26 = vadd.f32 %v6561_v60, %v6369_v50  ;;  %v4934_v46 = vpop.f32.mrb[23].mxu0  ;;  %5915 = vst [vmem:[%s7970_s8 + $0x48] sm:$0xff] %v5089_v58   ;;  %v5038_v63 = vadd.f32 %v6606_v0, %v7959_v15  ;;  %v5258_v1 = vunpack.c.l.bf16 %v5089_v58  ;;  %v5259_v57 = vunpack.c.h.bf16 %v5089_v58 }
 0x231   : > { %5914 = vst [vmem:[%s7970_s8 + $0x40] sm:$0xff] %v5088_v18   ;;  %v5256_v53 = vunpack.c.l.bf16 %v5088_v18  ;;  %v5257_v54 = vunpack.c.h.bf16 %v5088_v18  ;;  %v5354_v31 = vadd.f32 %v5353_v3, %v5323_v33  ;;  %v5286_v12 = vadd.f32 %v5285_v44, %v5255_v56 }
 0x232   : > { %v6372_v6 = vpop.f32.mrb[24].mxu1  ;;  %v5036_v8 = vadd.f32 %v6607_v5, %v7959_v15  ;;  %v5039_v43 = vadd.f32 %v6608_v26, %v7959_v15  ;;  %v5070_v38 = vmax.f32 %v5038_v63, 0.0  ;;  %v6609_v51 = vadd.f32 %v4934_v46, %v2861_v9 }
 0x233   : > { %v5325_v20 = vmul.f32 %v5256_v53, %v5256_v53  ;;  %v2874_v41 = vpop.f32.mrb[25].mxu1  ;;  %v5287_v23 = vadd.f32 %v5286_v12, %v5256_v53  ;;  %v5355_v35 = vadd.f32 %v5354_v31, %v5324_v27  ;;  %v5326_v62 = vmul.f32 %v5257_v54, %v5257_v54 }
 0x234   : > { %v6373_v36 = vpop.f32.mrb[26].mxu1  ;;  %v5071_v7 = vmax.f32 %v5039_v43, 0.0  ;;  %v5327_v52 = vmul.f32 %v5258_v1, %v5258_v1  ;;  %v5037_v59 = vadd.f32 %v6609_v51, %v7959_v15  ;;  %v5068_v4 = vmax.f32 %v5036_v8, 0.0 }
 0x235   : > { %v6564_v30 = vpop.f32.mrb[24].mxu0  ;;  %v2877_v28 = vpop.f32.mrb[27].mxu1  ;;  %v5288_v25 = vadd.f32 %v5287_v23, %v5257_v54  ;;  %v5356_v49 = vadd.f32 %v5355_v35, %v5325_v20  ;;  %v5328_v56 = vmul.f32 %v5259_v57, %v5259_v57 }
 0x236   : > { %v6610_v19 = vadd.f32 %v6564_v30, %v6372_v6  ;;  %v4947_v61 = vpop.f32.mrb[25].mxu0  ;;  %v5091_v48 = vpack.c.bf16 %v5071_v7, %v5070_v38  ;;  %v5069_v42 = vmax.f32 %v5037_v59, 0.0 }
 0x237   : > { %v6611_v13 = vadd.f32 %v4947_v61, %v2874_v41  ;;  %v6565_v2 = vpop.f32.mrb[26].mxu0  ;;  %v5289_v39 = vadd.f32 %v5288_v25, %v5258_v1  ;;  %v5357_v21 = vadd.f32 %v5356_v49, %v5326_v62 }
 0x238   : > { %v4950_v32 = vpop.f32.mrb[27].mxu0  ;;  %v5042_v24 = vadd.f32 %v6610_v19, %v7959_v15  ;;  %v6612_v47 = vadd.f32 %v6565_v2, %v6373_v36  ;;  %5917 = vst [vmem:[%s7970_s8 + $0x58] sm:$0xff] %v5091_v48   ;;  %v5090_v37 = vpack.c.bf16 %v5069_v42, %v5068_v4  ;;  %v5262_v3 = vunpack.c.l.bf16 %v5091_v48 }
 0x239   : > { %v6613_v22 = vadd.f32 %v4950_v32, %v2877_v28  ;;  %v5358_v34 = vadd.f32 %v5357_v21, %v5327_v52  ;;  %v5290_v40 = vadd.f32 %v5289_v39, %v5259_v57  ;;  %v5040_v50 = vadd.f32 %v6611_v13, %v7959_v15 }
 0x23a   : > { %v6376_v14 = vpop.f32.mrb[28].mxu1  ;;  %v5043_v10 = vadd.f32 %v6612_v47, %v7959_v15  ;;  %5916 = vst [vmem:[%s7970_s8 + $0x50] sm:$0xff] %v5090_v37   ;;  %v5260_v17 = vunpack.c.l.bf16 %v5090_v37  ;;  %v5261_v55 = vunpack.c.h.bf16 %v5090_v37  ;;  %v5074_v0 = vmax.f32 %v5042_v24, 0.0 }
 0x23b   : > { %v2890_v11 = vpop.f32.mrb[29].mxu1  ;;  %v5359_v16 = vadd.f32 %v5358_v34, %v5328_v56  ;;  %v5041_v9 = vadd.f32 %v6613_v22, %v7959_v15  ;;  %v5072_v5 = vmax.f32 %v5040_v50, 0.0  ;;  %v5263_v63 = vunpack.c.h.bf16 %v5091_v48 }
 0x23c   : > { %v6377_v45 = vpop.f32.mrb[30].mxu1  ;;  %v5075_v29 = vmax.f32 %v5043_v10, 0.0  ;;  %v5291_v26 = vadd.f32 %v5290_v40, %v5260_v17  ;;  %v5329_v46 = vmul.f32 %v5260_v17, %v5260_v17  ;;  %v5330_v20 = vmul.f32 %v5261_v55, %v5261_v55 }
 0x23d   : > { %v6568_v58 = vpop.f32.mrb[28].mxu0  ;;  %v2893_v18 = vpop.f32.mrb[31].mxu1  ;;  %v5073_v60 = vmax.f32 %v5041_v9, 0.0  ;;  %v5331_v43 = vmul.f32 %v5262_v3, %v5262_v3  ;;  %v5332_v62 = vmul.f32 %v5263_v63, %v5263_v63 }
 0x23e   : > { %v6614_v33 = vadd.f32 %v6568_v58, %v6376_v14  ;;  %v4963_v44 = vpop.f32.mrb[29].mxu0  ;;  %v5093_v53 = vpack.c.bf16 %v5075_v29, %v5074_v0  ;;  %v5292_v1 = vadd.f32 %v5291_v26, %v5261_v55  ;;  %v5360_v41 = vadd.f32 %v5359_v16, %v5329_v46 }
 0x23f   : > { %v6569_v54 = vpop.f32.mrb[30].mxu0  ;;  %v5092_v27 = vpack.c.bf16 %v5073_v60, %v5072_v5  ;;  %v6615_v31 = vadd.f32 %v4963_v44, %v2890_v11 }
 0x240   : > { %v6616_v12 = vadd.f32 %v6569_v54, %v6377_v45  ;;  %v4966_v6 = vpop.f32.mrb[31].mxu0  ;;  %5919 = vst [vmem:[%s7970_s8 + $0x68] sm:$0xff] %v5093_v53   ;;  %v5046_v35 = vadd.f32 %v6614_v33, %v7959_v15  ;;  %v5293_v36 = vadd.f32 %v5292_v1, %v5262_v3  ;;  %v5361_v57 = vadd.f32 %v5360_v41, %v5330_v20 }
 0x241   : > { %5918 = vst [vmem:[%s7970_s8 + $0x60] sm:$0xff] %v5092_v27   ;;  %v5264_v23 = vunpack.c.l.bf16 %v5092_v27  ;;  %v5044_v8 = vadd.f32 %v6615_v31, %v7959_v15  ;;  %v5265_v38 = vunpack.c.h.bf16 %v5092_v27  ;;  %v6617_v49 = vadd.f32 %v4966_v6, %v2893_v18 }
 0x242   : > { %v5047_v51 = vadd.f32 %v6616_v12, %v7959_v15  ;;  %v5362_v30 = vadd.f32 %v5361_v57, %v5331_v43  ;;  %v5294_v28 = vadd.f32 %v5293_v36, %v5263_v63  ;;  %v5078_v7 = vmax.f32 %v5046_v35, 0.0 }
 0x243   : > { %v5333_v25 = vmul.f32 %v5264_v23, %v5264_v23  ;;  %v5266_v61 = vunpack.c.l.bf16 %v5093_v53  ;;  %v5045_v13 = vadd.f32 %v6617_v49, %v7959_v15  ;;  %v5267_v2 = vunpack.c.h.bf16 %v5093_v53 }
 0x244   : > { %v5079_v19 = vmax.f32 %v5047_v51, 0.0  ;;  %v5295_v52 = vadd.f32 %v5294_v28, %v5264_v23  ;;  %v5363_v59 = vadd.f32 %v5362_v30, %v5332_v62  ;;  %v5334_v39 = vmul.f32 %v5265_v38, %v5265_v38 }
 0x245   : > { %v5076_v32 = vmax.f32 %v5044_v8, 0.0  ;;  %v5077_v42 = vmax.f32 %v5045_v13, 0.0  ;;  %v5335_v24 = vmul.f32 %v5266_v61, %v5266_v61  ;;  %v5336_v34 = vmul.f32 %v5267_v2, %v5267_v2 }
 0x246   : > { %v5095_v21 = vpack.c.bf16 %v5079_v19, %v5078_v7  ;;  %v5296_v4 = vadd.f32 %v5295_v52, %v5265_v38  ;;  %v5364_v48 = vadd.f32 %v5363_v59, %v5333_v25 }
 0x247   : > { %v5094_v56 = vpack.c.bf16 %v5077_v42, %v5076_v32 }
 0x248   : > { %5921 = vst [vmem:[%s7970_s8 + $0x78] sm:$0xff] %v5095_v21   ;;  %v5297_v47 = vadd.f32 %v5296_v4, %v5266_v61  ;;  %v5365_v22 = vadd.f32 %v5364_v48, %v5334_v39  ;;  %v5270_v10 = vunpack.c.l.bf16 %v5095_v21  ;;  %v5271_v9 = vunpack.c.h.bf16 %v5095_v21 }
 0x249   : > { %5920 = vst [vmem:[%s7970_s8 + $0x70] sm:$0xff] %v5094_v56   ;;  %v5268_v50 = vunpack.c.l.bf16 %v5094_v56  ;;  %v5269_v14 = vunpack.c.h.bf16 %v5094_v56 }
 0x24a   : > { %v5366_v40 = vadd.f32 %v5365_v22, %v5335_v24  ;;  %v5298_v37 = vadd.f32 %v5297_v47, %v5267_v2  ;;  %v5339_v0 = vmul.f32 %v5270_v10, %v5270_v10  ;;  %v5340_v18 = vmul.f32 %v5271_v9, %v5271_v9 }
 0x24b   : > { %v5337_v11 = vmul.f32 %v5268_v50, %v5268_v50  ;;  %v5338_v17 = vmul.f32 %v5269_v14, %v5269_v14 }
 0x24c   : > { %v5299_v15 = vadd.f32 %v5298_v37, %v5268_v50  ;;  %v5367_v16 = vadd.f32 %v5366_v40, %v5336_v34 }
 0x24e   : > { %v5300_v45 = vadd.f32 %v5299_v15, %v5269_v14  ;;  %v5368_v55 = vadd.f32 %v5367_v16, %v5337_v11 }
 0x250   : > { %v5301_v29 = vadd.f32 %v5300_v45, %v5270_v10  ;;  %v5369_v58 = vadd.f32 %v5368_v55, %v5338_v17 }
 0x252   : > { %v5302_v5 = vadd.f32 %v5301_v29, %v5271_v9  ;;  %v5370_v60 = vadd.f32 %v5369_v58, %v5339_v0 }
 0x254   : > { %v5303_v33 = vrot.slane %v5302_v5, 4  ;;  %v5371_v44 = vadd.f32 %v5370_v60, %v5340_v18 }
 0x256   : > { %v5304_v3 = vadd.f32 %v5303_v33, %v5302_v5  ;;  %v5372_v26 = vrot.slane %v5371_v44, 4 }
 0x258   : > { %v5305_v46 = vrot.slane %v5304_v3, 2  ;;  %v5373_v53 = vadd.f32 %v5372_v26, %v5371_v44 }
 0x25a   : > { %v5306_v54 = vadd.f32 %v5305_v46, %v5304_v3  ;;  %v5374_v63 = vrot.slane %v5373_v53, 2 }
 0x25c   : > { %v5307_v27 = vrot.slane %v5306_v54, 1  ;;  %v5375_v31 = vadd.f32 %v5374_v63, %v5373_v53 }
 0x25e   : > { %v5376_v12 = vrot.slane %v5375_v31, 1  ;;  %v5308_v6 = vadd.f32 %v5307_v27, %v5306_v54 }
 0x260   : > { %v5377_v1 = vadd.f32 %v5376_v12, %v5375_v31 }
 0x262   : > { %v5379_v20 = vsel %vm5378_vm3, %v5308_v6, %v5377_v1 }
 0x263   : > { %5380 = vst [vmem:[%s262_s11] sm:$0x3] %v5379_v20 }
 0x264 PF: > { %s17_s21 = sadd.s32 1, %s6971_s21  }
 0x265   : > { %p14_p4 = scmp.ge.s32.totalorder %s17_s21, 4  }
 0x267   :  { %16 = sbr.rel (!%p14_p4) target bundleno = 1 (0x1), region = 93 }

// kernel: resnet_block.3
= control target key start
LH: loop header
LB: loop body
LE: loop exit
PB: predicated region body
PF: predicated region fallthrough
CT: control target
= control target key end

     0   :  { %s7822_s24 = smov 0   ;;  %s8974_s0 = inlined_call_operand.vmem [shape: bf16[2,16,16,4], index: 0, kind: input, shape index: {}]   ;;  %s8975_s1 = inlined_call_operand.vmem [shape: bf16[4,256], index: 1, kind: input, shape index: {}]   ;;  %s8976_s2 = inlined_call_operand.vmem [shape: f32[1,256], index: 2, kind: input, shape index: {}]   ;;  %s8977_s3 = inlined_call_operand.vmem [shape: bf16[9,128,128], index: 3, kind: input, shape index: {}]   ;;  %s8978_s4 = inlined_call_operand.vmem [shape: f32[1,128], index: 4, kind: input, shape index: {}]   ;;  %s8979_s5 = inlined_call_operand.vmem [shape: bf16[2,16,16,128], index: 5, kind: output, shape index: {0}]   ;;  %s8980_s6 = inlined_call_operand.vmem [shape: bf16[2,16,16,128], index: 6, kind: output, shape index: {1}]   ;;  %s8981_s7 = inlined_call_operand.vmem [shape: f32[2,4,128], index: 7, kind: output, shape index: {2}]  }
   0x1 LB: > { %s6145_s25 = sadd.s32 4294967295, %s7779_s24   ;;  %p6149_p0 = scmp.ge.s32.totalorder %s7779_s24, 1  ;;  %s7779_s24 = sphi %s7822_s24, %s18_s24  }
   0x2   : > { %p242_p1 = scmp.lt.s32.totalorder %s7779_s24, 3 }
   0x4   : > { %p243_p2 = pnand %p6149_p0, %p242_p1 }
   0x6   : > { %246 = sbr.rel (%p243_p2) target bundleno = 943 (0x3af), region = 40 }
   0xd   : > { %v6173_v0 = vld.sshfl [vmem:[%s8975_s1] sm:$0x33 pattern:$0x76325410]  ;;  %vm524_vm0 = vcmask 1041408   ;;  %v7781_v3 = vmov 0   ;;  %v376_v42 = vlaneseq }
   0xe   : > { %v474_v1 = vcombine.high %v6173_v0, %v6173_v0  ;;  %v526_v2 = vsel %vm524_vm0, %v6173_v0, 0  ;;  %563 = vmatprep.mubr.bf16.mxu0 %v7781_v3  ;;  %303 = vst [vmem:[#allocation2] sm:$0xff] %v7781_v3  ;;  %304 = vst [vmem:[#allocation2 + $0x8] sm:$0xff] %v7781_v3  ;;  %p283_p3 = scmp.lt.s32.totalorder %s6145_s25, 1  ;;  %v7660_v4 = vld [vmem:[%s8977_s3 + $0x40] sm:$0xff]   ;;  %vm475_vm1 = vcmask 31744  }
   0xf   : > { %306 = vst [vmem:[#allocation2 + $0x110] sm:$0xff] %v7781_v3  ;;  %307 = vst [vmem:[#allocation2 + $0x118] sm:$0xff] %v7781_v3  ;;  %v7661_v5 = vld [vmem:[%s8977_s3 + $0x48] sm:$0xff]   ;;  %v7662_v7 = vld [vmem:[%s8977_s3 + $0x50] sm:$0xff]   ;;  %vm1270_vm2 = vcmask 1043456   ;;  %v377_v43 = vshrl.u32 %v376_v42, 7 }
  0x10   : > { %309 = vst [vmem:[#allocation2 + $0x10] sm:$0xf] %v7781_v3  ;;  %310 = vst [vmem:[#allocation2 + $0x20] sm:$0xf] %v7781_v3  ;;  %6174 = vmatprep.subr.msk.bf16.mxu0 %vm524_vm0, %v474_v1  ;;  %s8995_s25 = smov (!%p283_p3, %s6145_s25), 1  ;;  %v7663_v18 = vld [vmem:[%s8977_s3 + $0x58] sm:$0xff]  }
  0x11   : > { %311 = vst [vmem:[#allocation2 + $0x30] sm:$0xf] %v7781_v3  ;;  %312 = vst [vmem:[#allocation2 + $0x40] sm:$0xf] %v7781_v3  ;;  %532 = vmatpush1.bf16.msra.mxu0 %v526_v2  ;;  %s7882_s30 = sshll.u32 %s8995_s25, 7  ;;  %v7664_v19 = vld [vmem:[%s8977_s3 + $0xc0] sm:$0xff]  }
  0x12   : > { %313 = vst [vmem:[#allocation2 + $0x50] sm:$0xf] %v7781_v3  ;;  %314 = vst [vmem:[#allocation2 + $0x60] sm:$0xf] %v7781_v3  ;;  %6931 = vmatprep.subr.bf16.mxu0 %v7660_v4  ;;  %s7888_s10 = scalar_lea.vmem %s8974_s0, %s7882_s30  ;;  %7075 = vmatprep.subr.bf16.mxu1 %v7664_v19  ;;  %v7665_v21 = vld [vmem:[%s8977_s3 + $0x60] sm:$0xff]   ;;  %v7666_v22 = vld [vmem:[%s8977_s3 + $0xc8] sm:$0xff]   ;;  %s8010_s9 = scalar_lea.vmem %s8980_s6, %s7882_s30 }
  0x13   : > { %315 = vst [vmem:[#allocation2 + $0x70] sm:$0xf] %v7781_v3  ;;  %316 = vst [vmem:[#allocation2 + $0x80] sm:$0xf] %v7781_v3  ;;  %v7644_v6 = vld [vmem:[%s7888_s10] sm:$0xff]   ;;  %v7645_v8 = vld [vmem:[%s7888_s10 + $0x8] sm:$0xff]   ;;  %7076 = vmatpush3.bf16.msra.mxu1 %v7664_v19  ;;  %s8877_s22 = scalar_lea.vmem %s8979_s5, %s7882_s30 }
  0x14   : > { %317 = vst [vmem:[#allocation2 + $0x90] sm:$0xf] %v7781_v3  ;;  %318 = vst [vmem:[#allocation2 + $0xa0] sm:$0xf] %v7781_v3  ;;  %6175 = vmatmul.mubr.msk.bf16.vlgmr.msra.gmra.mrb[0].mxu0 %vm475_vm1, %v7644_v6  ;;  %v7646_v9 = vld [vmem:[%s7888_s10 + $0x10] sm:$0xff]   ;;  %v7647_v10 = vld [vmem:[%s7888_s10 + $0x18] sm:$0xff]   ;;  %7077 = vmatprep.subr.bf16.mxu1 %v7666_v22 }
  0x15   : > { %319 = vst [vmem:[#allocation2 + $0xb0] sm:$0xf] %v7781_v3  ;;  %320 = vst [vmem:[#allocation2 + $0xc0] sm:$0xf] %v7781_v3  ;;  %573 = vmatprep.mubr.bf16.mxu0 %v7781_v3  ;;  %6932 = vmatpush3.bf16.msra.mxu0 %v7660_v4  ;;  %v7648_v11 = vld [vmem:[%s7888_s10 + $0x20] sm:$0xff]   ;;  %v7649_v12 = vld [vmem:[%s7888_s10 + $0x28] sm:$0xff]  }
  0x16   : > { %321 = vst [vmem:[#allocation2 + $0xd0] sm:$0xf] %v7781_v3  ;;  %322 = vst [vmem:[#allocation2 + $0xe0] sm:$0xf] %v7781_v3  ;;  %6933 = vmatprep.subr.bf16.mxu0 %v7661_v5  ;;  %v7650_v13 = vld [vmem:[%s7888_s10 + $0x30] sm:$0xff]   ;;  %v7651_v14 = vld [vmem:[%s7888_s10 + $0x38] sm:$0xff]  }
  0x17   : > { %323 = vst [vmem:[#allocation2 + $0xf0] sm:$0xf] %v7781_v3  ;;  %324 = vst [vmem:[#allocation2 + $0x100] sm:$0xf] %v7781_v3  ;;  %v7652_v15 = vld [vmem:[%s7888_s10 + $0x40] sm:$0xff]   ;;  %v7653_v16 = vld [vmem:[%s7888_s10 + $0x48] sm:$0xff]   ;;  %7078 = vmatpush3.bf16.msra.mxu1 %v7666_v22 }
  0x18   : > { %325 = vst [vmem:[#allocation2 + $0x18] sm:$0xf0] %v7781_v3  ;;  %326 = vst [vmem:[#allocation2 + $0x28] sm:$0xf0] %v7781_v3  ;;  %v7654_v17 = vld [vmem:[%s7888_s10 + $0x50] sm:$0xff]   ;;  %v7655_v20 = vld [vmem:[%s7888_s10 + $0x58] sm:$0xff]  }
  0x19   : > { %327 = vst [vmem:[#allocation2 + $0x38] sm:$0xf0] %v7781_v3  ;;  %328 = vst [vmem:[#allocation2 + $0x48] sm:$0xf0] %v7781_v3  ;;  %6934 = vmatpush3.bf16.msra.mxu0 %v7661_v5  ;;  %v7667_v23 = vld [vmem:[%s8977_s3 + $0x68] sm:$0xff]   ;;  %v7668_v24 = vld [vmem:[%s8977_s3 + $0xd0] sm:$0xff]  }
  0x1a   : > { %329 = vst [vmem:[#allocation2 + $0x58] sm:$0xf0] %v7781_v3  ;;  %330 = vst [vmem:[#allocation2 + $0x68] sm:$0xf0] %v7781_v3  ;;  %6935 = vmatprep.subr.bf16.mxu0 %v7662_v7  ;;  %v7656_v25 = vld [vmem:[%s7888_s10 + $0x60] sm:$0xff]   ;;  %7079 = vmatprep.subr.bf16.mxu1 %v7668_v24  ;;  %v7669_v26 = vld [vmem:[%s8977_s3 + $0x70] sm:$0xff]  }
  0x1b   : > { %331 = vst [vmem:[#allocation2 + $0x78] sm:$0xf0] %v7781_v3  ;;  %332 = vst [vmem:[#allocation2 + $0x88] sm:$0xf0] %v7781_v3  ;;  %7080 = vmatpush3.bf16.msra.mxu1 %v7668_v24  ;;  %v7670_v27 = vld [vmem:[%s8977_s3 + $0xd8] sm:$0xff]   ;;  %v7657_v28 = vld [vmem:[%s7888_s10 + $0x68] sm:$0xff]  }
  0x1c   : > { %333 = vst [vmem:[#allocation2 + $0x98] sm:$0xf0] %v7781_v3  ;;  %334 = vst [vmem:[#allocation2 + $0xa8] sm:$0xf0] %v7781_v3  ;;  %6176 = vmatmul.mubr.msk.bf16.gmra.mrb[4].mxu0 %vm475_vm1, %v7645_v8  ;;  %7081 = vmatprep.subr.bf16.mxu1 %v7670_v27  ;;  %v7671_v29 = vld [vmem:[%s8977_s3 + $0x78] sm:$0xff]   ;;  %v7672_v30 = vld [vmem:[%s8977_s3 + $0xe0] sm:$0xff]  }
  0x1d   : > { %335 = vst [vmem:[#allocation2 + $0xb8] sm:$0xf0] %v7781_v3  ;;  %336 = vst [vmem:[#allocation2 + $0xc8] sm:$0xf0] %v7781_v3  ;;  %583 = vmatprep.mubr.bf16.mxu0 %v7781_v3  ;;  %6936 = vmatpush3.bf16.msra.mxu0 %v7662_v7  ;;  %v7673_v31 = vld [vmem:[%s8977_s3 + $0xe8] sm:$0xff]   ;;  %v7658_v32 = vld [vmem:[%s7888_s10 + $0x70] sm:$0xff]  }
  0x1e   : > { %337 = vst [vmem:[#allocation2 + $0xd8] sm:$0xf0] %v7781_v3  ;;  %338 = vst [vmem:[#allocation2 + $0xe8] sm:$0xf0] %v7781_v3  ;;  %6937 = vmatprep.subr.bf16.mxu0 %v7663_v18  ;;  %v7674_v33 = vld [vmem:[%s8977_s3 + $0xf0] sm:$0xff]   ;;  %v7659_v38 = vld [vmem:[%s7888_s10 + $0x78] sm:$0xff]  }
  0x1f   : > { %339 = vst [vmem:[#allocation2 + $0xf8] sm:$0xf0] %v7781_v3  ;;  %340 = vst [vmem:[#allocation2 + $0x108] sm:$0xf0] %v7781_v3  ;;  %7082 = vmatpush3.bf16.msra.mxu1 %v7670_v27  ;;  %v886_v34 = vld [vmem:[#allocation2 + $0x8] sm:$0xf] }
  0x20   : > { %7083 = vmatprep.subr.bf16.mxu1 %v7672_v30  ;;  %v1222_v35 = vld [vmem:[#allocation2] sm:$0xf0]  ;;  %v1272_v37 = vrot.slane %v886_v34, 4  ;;  %v7675_v39 = vld [vmem:[%s8977_s3 + $0xf8] sm:$0xff]   ;;  %v378_v45 = vsub.s32 0, %v377_v43  ;;  %v382_v47 = vsub.s32 1, %v377_v43 }
  0x21   : > { %6938 = vmatpush3.bf16.msra.mxu0 %v7663_v18  ;;  %v1271_v36 = vrot.slane %v1222_v35, 4  ;;  %v7986_v41 = vld [vmem:[%s8977_s3 + $0x100] sm:$0xff]   ;;  %vm917_vm3 = vsmask.f32 4352  ;;  %vm1786_vm4 = vsmask.f32 3328 }
  0x22   : > { %6939 = vmatprep.subr.bf16.mxu0 %v7665_v21  ;;  %v7992_v44 = vld [vmem:[%s8977_s3] sm:$0xff]   ;;  %s6156_s30 = sshll.u32 %s8995_s25, 2  ;;  %vm6020_vm5 = vcmask 1040384   ;;  %vm6023_vm6 = vcmask 1042432  }
  0x23   : > { %7084 = vmatpush3.bf16.msra.mxu1 %v7672_v30  ;;  %v1273_v40 = vsel %vm1270_vm2, %v1271_v36, %v1272_v37  ;;  %v374_v46 = vld [vmem:[%s8976_s2] sm:$0x3]  ;;  %v8017_v19 = vld [vmem:[#allocation2] sm:$0xf8]  ;;  %s301_s10 = scalar_lea.vmem %s8981_s7, %s6156_s30 }
  0x24   : > { %6177 = vmatmul.mubr.msk.bf16.gmra.mrb[8].mxu0 %vm475_vm1, %v7646_v9  ;;  %7085 = vmatprep.subr.bf16.mxu1 %v7673_v31  ;;  %v7998_v48 = vrot.slane %v374_v46, %v378_v45  ;;  %v8000_v49 = vrot.slane %v374_v46, %v382_v47  ;;  %v919_v30 = vshrl.u32 %v8017_v19, 16 }
  0x25   : > { %593 = vmatprep.mubr.bf16.mxu0 %v7781_v3  ;;  %6940 = vmatpush3.bf16.msra.mxu0 %v7665_v21 }
  0x26   : > { %6941 = vmatprep.subr.bf16.mxu0 %v7667_v23 }
  0x27   : > { %7086 = vmatpush3.bf16.msra.mxu1 %v7673_v31 }
  0x28   : > { %7087 = vmatprep.subr.bf16.mxu1 %v7674_v33 }
  0x29   : > { %6942 = vmatpush3.bf16.msra.mxu0 %v7667_v23 }
  0x2a   : > { %6943 = vmatprep.subr.bf16.mxu0 %v7669_v26 }
  0x2b   : > { %7088 = vmatpush3.bf16.msra.mxu1 %v7674_v33 }
  0x2c   : > { %6178 = vmatmul.mubr.msk.bf16.gmra.mrb[12].mxu0 %vm475_vm1, %v7647_v10  ;;  %7089 = vmatprep.subr.bf16.mxu1 %v7675_v39 }
  0x2d   : > { %603 = vmatprep.mubr.bf16.mxu0 %v7781_v3  ;;  %6944 = vmatpush3.bf16.msra.mxu0 %v7669_v26 }
  0x2e   : > { %6945 = vmatprep.subr.bf16.mxu0 %v7671_v29 }
  0x2f   : > { %7090 = vmatpush3.bf16.msra.mxu1 %v7675_v39 }
  0x30   : > { %7123 = vmatprep.subr.bf16.mxu1 %v7986_v41 }
  0x31   : > { %6946 = vmatpush3.bf16.msra.mxu0 %v7671_v29 }
  0x32   : > { %6979 = vmatprep.subr.bf16.mxu0 %v7992_v44 }
  0x34   : > { %6179 = vmatmul.mubr.msk.bf16.gmra.mrb[16].mxu0 %vm475_vm1, %v7648_v11 }
  0x35   : > { %613 = vmatprep.mubr.bf16.mxu0 %v7781_v3 }
  0x3c   : > { %6180 = vmatmul.mubr.msk.bf16.gmra.mrb[20].mxu0 %vm475_vm1, %v7649_v12 }
  0x3d   : > { %623 = vmatprep.mubr.bf16.mxu0 %v7781_v3 }
  0x44   : > { %6181 = vmatmul.mubr.msk.bf16.gmra.mrb[24].mxu0 %vm475_vm1, %v7650_v13 }
  0x45   : > { %633 = vmatprep.mubr.bf16.mxu0 %v7781_v3 }
  0x4c   : > { %6182 = vmatmul.mubr.msk.bf16.gmra.mrb[28].mxu0 %vm475_vm1, %v7651_v14 }
  0x4d   : > { %643 = vmatprep.mubr.bf16.mxu0 %v7781_v3 }
  0x54   : > { %6183 = vmatmul.mubr.msk.bf16.gmra.mrb[32].mxu0 %vm475_vm1, %v7652_v15 }
  0x55   : > { %653 = vmatprep.mubr.bf16.mxu0 %v7781_v3 }
  0x5c   : > { %6184 = vmatmul.mubr.msk.bf16.gmra.mrb[36].mxu0 %vm475_vm1, %v7653_v16 }
  0x5d   : > { %663 = vmatprep.mubr.bf16.mxu0 %v7781_v3 }
  0x64   : > { %6185 = vmatmul.mubr.msk.bf16.gmra.mrb[40].mxu0 %vm475_vm1, %v7654_v17 }
  0x65   : > { %673 = vmatprep.mubr.bf16.mxu0 %v7781_v3 }
  0x6c   : > { %6186 = vmatmul.mubr.msk.bf16.gmra.mrb[44].mxu0 %vm475_vm1, %v7655_v20 }
  0x6d   : > { %683 = vmatprep.mubr.bf16.mxu0 %v7781_v3 }
  0x74   : > { %6187 = vmatmul.mubr.msk.bf16.gmra.mrb[48].mxu0 %vm475_vm1, %v7656_v25 }
  0x75   : > { %693 = vmatprep.mubr.bf16.mxu0 %v7781_v3 }
  0x7c   : > { %6188 = vmatmul.mubr.msk.bf16.gmra.mrb[52].mxu0 %vm475_vm1, %v7657_v28 }
  0x7d   : > { %703 = vmatprep.mubr.bf16.mxu0 %v7781_v3 }
  0x84   : > { %6189 = vmatmul.mubr.msk.bf16.gmra.mrb[56].mxu0 %vm475_vm1, %v7658_v32 }
  0x85   : > { %713 = vmatprep.mubr.bf16.mxu0 %v7781_v3 }
  0x8c   : > { %6190 = vmatmul.mubr.msk.bf16.gmra.mrb[60].mxu0 %vm475_vm1, %v7659_v38 }
  0x8d   : > { %6947 = vmatprep.mubr.bf16.mxu0 %v1273_v40 }
  0xe7   : > { %v565_v50 = vpop.f32.mrb[0].mxu0 }
  0xe8   : > { %v566_v51 = vadd.f32 %v565_v50, %v7998_v48  ;;  %v567_v52 = vpop.f32.mrb[1].mxu0  ;;  %v7681_v50 = vld [vmem:[%s8977_s3 + $0x8] sm:$0xff]  }
  0xe9   : > { %v568_v53 = vadd.f32 %v567_v52, %v8000_v49  ;;  %v569_v54 = vpop.f32.mrb[2].mxu0 }
  0xea   : > { %v570_v55 = vadd.f32 %v569_v54, %v7998_v48  ;;  %v571_v56 = vpop.f32.mrb[3].mxu0  ;;  %v724_v58 = vmax.f32 %v566_v51, 0.0 }
  0xeb   : > { %v572_v57 = vadd.f32 %v571_v56, %v8000_v49  ;;  %v725_v60 = vmax.f32 %v568_v53, 0.0 }
  0xec   : > { %v726_v59 = vmax.f32 %v570_v55, 0.0 }
  0xed   : > { %v727_v61 = vmax.f32 %v572_v57, 0.0 }
  0xee   : > { %v788_v62 = vpack.c.bf16 %v726_v59, %v724_v58 }
  0xef   : > { %v5440_v63 = vpack.c.bf16 %v727_v61, %v725_v60  ;;  %v575_v0 = vpop.f32.mrb[4].mxu0 }
  0xf0   : > { %v820_v1 = vrot.slane %v788_v62, 4  ;;  %v576_v2 = vadd.f32 %v575_v0, %v7998_v48  ;;  %v577_v3 = vpop.f32.mrb[5].mxu0 }
  0xf1   : > { %6609 = vst [vmem:[%s8010_s9] sm:$0xff] %v5440_v63   ;;  %v5776_v4 = vunpack.c.l.bf16 %v5440_v63  ;;  %v5777_v5 = vunpack.c.h.bf16 %v5440_v63  ;;  %v579_v6 = vpop.f32.mrb[6].mxu0  ;;  %v578_v7 = vadd.f32 %v577_v3, %v8000_v49 }
  0xf2   : > { %852 = vst [vmem:[#allocation2 + $0x18] ss:$-4 sps:$4 sm:$0xff] %v820_v1   ;;  %v580_v8 = vadd.f32 %v579_v6, %v7998_v48  ;;  %v581_v9 = vpop.f32.mrb[7].mxu0  ;;  %v728_v10 = vmax.f32 %v576_v2, 0.0 }
  0xf3   : > { %v582_v12 = vadd.f32 %v581_v9, %v8000_v49  ;;  %v5951_v13 = vmul.f32 %v5776_v4, %v5776_v4  ;;  %v5952_v14 = vmul.f32 %v5777_v5, %v5777_v5  ;;  %v729_v15 = vmax.f32 %v578_v7, 0.0 }
  0xf4   : > { %v730_v11 = vmax.f32 %v580_v8, 0.0  ;;  %v5914_v24 = vadd.f32 %v5777_v5, %v5776_v4  ;;  %v7682_v5 = vld [vmem:[%s8977_s3 + $0x10] sm:$0xff]  }
  0xf5   : > { %v731_v17 = vmax.f32 %v582_v12, 0.0  ;;  %v5983_v25 = vadd.f32 %v5952_v14, %v5951_v13 }
  0xf6   : > { %v789_v16 = vpack.c.bf16 %v730_v11, %v728_v10 }
  0xf7   : > { %v585_v18 = vpop.f32.mrb[8].mxu0  ;;  %v5441_v21 = vpack.c.bf16 %v731_v17, %v729_v15 }
  0xf8   : > { %v821_v20 = vrot.slane %v789_v16, 4  ;;  %v586_v22 = vadd.f32 %v585_v18, %v7998_v48  ;;  %v587_v23 = vpop.f32.mrb[9].mxu0 }
  0xf9   : > { %v588_v26 = vadd.f32 %v587_v23, %v8000_v49  ;;  %v589_v27 = vpop.f32.mrb[10].mxu0  ;;  %v888_v28 = vld [vmem:[#allocation2 + $0x18] sm:$0xf]  ;;  %v1223_v29 = vld [vmem:[#allocation2 + $0x10] sm:$0xf0]  ;;  %6700 = vst [vmem:[%s8010_s9 + $0x8] sm:$0xff] %v5441_v21   ;;  %v5778_v31 = vunpack.c.l.bf16 %v5441_v21  ;;  %v5779_v32 = vunpack.c.h.bf16 %v5441_v21 }
  0xfa   : > { %854 = vst [vmem:[#allocation2 + $0x28] ss:$-4 sps:$4 sm:$0xff] %v821_v20   ;;  %v732_v33 = vmax.f32 %v586_v22, 0.0  ;;  %v590_v34 = vadd.f32 %v589_v27, %v7998_v48  ;;  %v591_v35 = vpop.f32.mrb[11].mxu0  ;;  %v2333_v36 = vld [vmem:[#allocation2 + $0x10] sm:$0xf8] }
  0xfb   : > { %v733_v37 = vmax.f32 %v588_v26, 0.0  ;;  %v592_v38 = vadd.f32 %v591_v35, %v8000_v49  ;;  %v1274_v39 = vrot.slane %v1223_v29, 4  ;;  %v1275_v40 = vrot.slane %v888_v28, 4  ;;  %v2334_v42 = vld [vmem:[#allocation2 + $0x18] sm:$0xf] }
  0xfc   : > { %v5915_v43 = vadd.f32 %v5914_v24, %v5778_v31  ;;  %v5953_v45 = vmul.f32 %v5778_v31, %v5778_v31  ;;  %v5954_v46 = vmul.f32 %v5779_v32, %v5779_v32  ;;  %v734_v47 = vmax.f32 %v590_v34, 0.0 }
  0xfd   : > { %v735_v51 = vmax.f32 %v592_v38, 0.0  ;;  %v1276_v52 = vsel %vm1270_vm2, %v1274_v39, %v1275_v40  ;;  %v2366_v53 = vshrl.u32 %v2333_v36, 16  ;;  %v2369_v54 = vshll.u32 %v2333_v36, 16 }
  0xfe   : > { %v5916_v55 = vadd.f32 %v5915_v43, %v5779_v32  ;;  %v5984_v56 = vadd.f32 %v5983_v25, %v5953_v45  ;;  %v790_v57 = vpack.c.bf16 %v734_v47, %v732_v33  ;;  %6948 = vmatmul.mubr.bf16.vlgmr.msra.gmra.mrb[64].mxu0 %v1276_v52  ;;  %v2374_v58 = vshrl.u32 %v2334_v42, 16  ;;  %v7684_v33 = vld [vmem:[%s8977_s3 + $0x18] sm:$0xff]  }
  0xff   : > { %v5442_v59 = vpack.c.bf16 %v735_v51, %v733_v37  ;;  %v595_v60 = vpop.f32.mrb[12].mxu0  ;;  %v2368_v61 = vrot.slane %v2366_v53, 3  ;;  %v2371_v62 = vrot.slane %v2369_v54, 4  ;;  %v2377_v63 = vshll.u32 %v2334_v42, 16  ;;  %6980 = vmatpush3.bf16.msra.mxu0 %v7992_v44 }
 0x100   : > { %v5985_v0 = vadd.f32 %v5984_v56, %v5954_v46  ;;  %v822_v1 = vrot.slane %v790_v57, 4  ;;  %v596_v2 = vadd.f32 %v595_v60, %v7998_v48  ;;  %v597_v3 = vpop.f32.mrb[13].mxu0  ;;  %v2376_v4 = vrot.slane %v2374_v58, 3  ;;  %6981 = vmatprep.subr.bf16.mxu0 %v7681_v50  ;;  %v7685_v57 = vld [vmem:[%s8977_s3 + $0x20] sm:$0xff]  }
 0x101   : > { %6701 = vst [vmem:[%s8010_s9 + $0x10] sm:$0xff] %v5442_v59   ;;  %v5780_v6 = vunpack.c.l.bf16 %v5442_v59  ;;  %v5781_v7 = vunpack.c.h.bf16 %v5442_v59  ;;  %v598_v8 = vadd.f32 %v597_v3, %v8000_v49  ;;  %v599_v9 = vpop.f32.mrb[14].mxu0  ;;  %v2372_v10 = vor.u32 %v2371_v62, %v2368_v61  ;;  %v890_v11 = vld [vmem:[#allocation2 + $0x28] sm:$0xf]  ;;  %v1224_v44 = vld [vmem:[#allocation2 + $0x20] sm:$0xf0] }
 0x102   : > { %856 = vst [vmem:[#allocation2 + $0x38] ss:$-4 sps:$4 sm:$0xff] %v822_v1   ;;  %v736_v12 = vmax.f32 %v596_v2, 0.0  ;;  %v600_v13 = vadd.f32 %v599_v9, %v7998_v48  ;;  %v2379_v14 = vrot.slane %v2377_v63, 4  ;;  %v601_v15 = vpop.f32.mrb[15].mxu0  ;;  %v1277_v16 = vrot.slane %v1224_v44, 4 }
 0x103   : > { %v2335_v17 = vld [vmem:[#allocation2 + $0x20] sm:$0xf8]  ;;  %v5917_v18 = vadd.f32 %v5916_v55, %v5780_v6  ;;  %v5955_v20 = vmul.f32 %v5780_v6, %v5780_v6  ;;  %v5956_v21 = vmul.f32 %v5781_v7, %v5781_v7  ;;  %v737_v22 = vmax.f32 %v598_v8, 0.0  ;;  %6982 = vmatpush3.bf16.msra.mxu0 %v7681_v50  ;;  %v2336_v27 = vld [vmem:[#allocation2 + $0x28] sm:$0xf] }
 0x104   : > { %v738_v23 = vmax.f32 %v600_v13, 0.0  ;;  %v2380_v24 = vor.u32 %v2379_v14, %v2376_v4  ;;  %v602_v25 = vadd.f32 %v601_v15, %v8000_v49  ;;  %v1278_v26 = vrot.slane %v890_v11, 4  ;;  %6983 = vmatprep.subr.bf16.mxu0 %v7682_v5 }
 0x105   : > { %v5918_v28 = vadd.f32 %v5917_v18, %v5781_v7  ;;  %v5986_v29 = vadd.f32 %v5985_v0, %v5955_v20  ;;  %v2383_v31 = vshrl.u32 %v2335_v17, 16  ;;  %v2386_v32 = vshll.u32 %v2335_v17, 16  ;;  %v7677_v18 = vld [vmem:[%s8977_s3 + $0x108] sm:$0xff]  }
 0x106   : > { %v791_v34 = vpack.c.bf16 %v738_v23, %v736_v12  ;;  %v2381_v35 = vsel %vm917_vm3, %v2372_v10, %v2380_v24  ;;  %v739_v36 = vmax.f32 %v602_v25, 0.0  ;;  %v1279_v37 = vsel %vm1270_vm2, %v1277_v16, %v1278_v26  ;;  %v7687_v20 = vld [vmem:[%s8977_s3 + $0x28] sm:$0xff]  }
 0x107   : > { %v5987_v38 = vadd.f32 %v5986_v29, %v5956_v21  ;;  %7091 = vmatprep.mubr.bf16.mxu1 %v2381_v35  ;;  %6951 = vmatprep.mubr.bf16.mxu0 %v1279_v37  ;;  %v605_v39 = vpop.f32.mrb[16].mxu0  ;;  %v2385_v40 = vrot.slane %v2383_v31, 3  ;;  %v2388_v42 = vrot.slane %v2386_v32, 4  ;;  %v2391_v43 = vshrl.u32 %v2336_v27, 16 }
 0x108   : > { %v823_v45 = vrot.slane %v791_v34, 4  ;;  %v5443_v46 = vpack.c.bf16 %v739_v36, %v737_v22  ;;  %v606_v47 = vadd.f32 %v605_v39, %v7998_v48  ;;  %v607_v50 = vpop.f32.mrb[17].mxu0  ;;  %v2394_v51 = vshll.u32 %v2336_v27, 16  ;;  %6984 = vmatpush3.bf16.msra.mxu0 %v7682_v5 }
 0x109   : > { %v608_v52 = vadd.f32 %v607_v50, %v8000_v49  ;;  %v609_v53 = vpop.f32.mrb[18].mxu0  ;;  %v2389_v54 = vor.u32 %v2388_v42, %v2385_v40  ;;  %v2393_v55 = vrot.slane %v2391_v43, 3  ;;  %v1225_v56 = vld [vmem:[#allocation2 + $0x30] sm:$0xf0]  ;;  %6985 = vmatprep.subr.bf16.mxu0 %v7684_v33  ;;  %v922_v58 = vshll.u32 %v8017_v19, 16 }
 0x10a   : > { %858 = vst [vmem:[#allocation2 + $0x48] ss:$-4 sps:$4 sm:$0xff] %v823_v45   ;;  %6702 = vst [vmem:[%s8010_s9 + $0x18] sm:$0xff] %v5443_v46   ;;  %v5782_v59 = vunpack.c.l.bf16 %v5443_v46  ;;  %v5783_v60 = vunpack.c.h.bf16 %v5443_v46  ;;  %v740_v61 = vmax.f32 %v606_v47, 0.0  ;;  %v610_v62 = vadd.f32 %v609_v53, %v7998_v48  ;;  %v611_v63 = vpop.f32.mrb[19].mxu0  ;;  %v7688_v47 = vld [vmem:[%s8977_s3 + $0x30] sm:$0xff]  }
 0x10b   : > { %v892_v0 = vld [vmem:[#allocation2 + $0x38] sm:$0xf]  ;;  %v2337_v1 = vld [vmem:[#allocation2 + $0x30] sm:$0xf8]  ;;  %v741_v2 = vmax.f32 %v608_v52, 0.0  ;;  %v2396_v3 = vrot.slane %v2394_v51, 4  ;;  %v612_v4 = vadd.f32 %v611_v63, %v8000_v49 }
 0x10c   : > { %v1280_v5 = vrot.slane %v1225_v56, 4  ;;  %v5919_v6 = vadd.f32 %v5918_v28, %v5782_v59  ;;  %v5957_v7 = vmul.f32 %v5782_v59, %v5782_v59  ;;  %v5958_v8 = vmul.f32 %v5783_v60, %v5783_v60  ;;  %6986 = vmatpush3.bf16.msra.mxu0 %v7684_v33  ;;  %v2338_v16 = vld [vmem:[#allocation2 + $0x38] sm:$0xf] }
 0x10d   : > { %v742_v9 = vmax.f32 %v610_v62, 0.0  ;;  %v2397_v10 = vor.u32 %v2396_v3, %v2393_v55  ;;  %v743_v11 = vmax.f32 %v612_v4, 0.0  ;;  %v1281_v44 = vrot.slane %v892_v0, 4  ;;  %6987 = vmatprep.subr.bf16.mxu0 %v7685_v57  ;;  %v7680_v4 = vld [vmem:[%s8977_s3 + $0x118] sm:$0xff]  }
 0x10e   : > { %v2400_v12 = vshrl.u32 %v2337_v1, 16  ;;  %v5920_v13 = vadd.f32 %v5919_v6, %v5783_v60  ;;  %v5988_v14 = vadd.f32 %v5987_v38, %v5957_v7  ;;  %v2403_v17 = vshll.u32 %v2337_v1, 16  ;;  %v7678_v38 = vld [vmem:[%s8977_s3 + $0x110] sm:$0xff]  }
 0x10f   : > { %v792_v15 = vpack.c.bf16 %v742_v9, %v740_v61  ;;  %v2398_v21 = vsel %vm917_vm3, %v2389_v54, %v2397_v10  ;;  %v5444_v22 = vpack.c.bf16 %v743_v11, %v741_v2  ;;  %v1282_v23 = vsel %vm1270_vm2, %v1280_v5, %v1281_v44  ;;  %v615_v24 = vpop.f32.mrb[20].mxu0  ;;  %v7690_v10 = vld [vmem:[%s8977_s3 + $0x38] sm:$0xff]  }
 0x110   : > { %v2402_v25 = vrot.slane %v2400_v12, 3  ;;  %v5989_v26 = vadd.f32 %v5988_v14, %v5958_v8  ;;  %7092 = vmatmul.mubr.bf16.vlgmr.msra.gmra.mrb[0].mxu1 %v2398_v21  ;;  %6952 = vmatmul.mubr.bf16.gmra.mrb[68].mxu0 %v1282_v23  ;;  %v616_v28 = vadd.f32 %v615_v24, %v7998_v48  ;;  %v617_v29 = vpop.f32.mrb[21].mxu0  ;;  %v2405_v31 = vrot.slane %v2403_v17, 4  ;;  %v7683_v21 = vld [vmem:[%s8977_s3 + $0x120] sm:$0xff]  }
 0x111   : > { %v824_v27 = vrot.slane %v792_v15, 4  ;;  %6703 = vst [vmem:[%s8010_s9 + $0x20] sm:$0xff] %v5444_v22   ;;  %v5784_v32 = vunpack.c.l.bf16 %v5444_v22  ;;  %v5785_v33 = vunpack.c.h.bf16 %v5444_v22  ;;  %v618_v34 = vadd.f32 %v617_v29, %v8000_v49  ;;  %v619_v35 = vpop.f32.mrb[22].mxu0  ;;  %v894_v37 = vld [vmem:[#allocation2 + $0x48] sm:$0xf]  ;;  %7124 = vmatpush3.bf16.msra.mxu1 %v7986_v41  ;;  %6988 = vmatpush3.bf16.msra.mxu0 %v7685_v57 }
 0x112   : > { %v2408_v36 = vshrl.u32 %v2338_v16, 16  ;;  %v744_v39 = vmax.f32 %v616_v28, 0.0  ;;  %v620_v40 = vadd.f32 %v619_v35, %v7998_v48  ;;  %v2406_v42 = vor.u32 %v2405_v31, %v2402_v25  ;;  %v621_v45 = vpop.f32.mrb[23].mxu0  ;;  %v1226_v46 = vld [vmem:[#allocation2 + $0x40] sm:$0xf0]  ;;  %7125 = vmatprep.subr.bf16.mxu1 %v7677_v18  ;;  %6989 = vmatprep.subr.bf16.mxu0 %v7687_v20 }
 0x113   : > { %860 = vst [vmem:[#allocation2 + $0x58] ss:$-4 sps:$4 sm:$0xff] %v824_v27   ;;  %v2411_v43 = vshll.u32 %v2338_v16, 16  ;;  %v5921_v41 = vadd.f32 %v5920_v13, %v5784_v32  ;;  %v5959_v50 = vmul.f32 %v5784_v32, %v5784_v32  ;;  %v5960_v51 = vmul.f32 %v5785_v33, %v5785_v33  ;;  %v2339_v53 = vld [vmem:[#allocation2 + $0x40] sm:$0xf8] }
 0x114   : > { %v745_v52 = vmax.f32 %v618_v34, 0.0  ;;  %v746_v54 = vmax.f32 %v620_v40, 0.0  ;;  %v2410_v55 = vrot.slane %v2408_v36, 3  ;;  %v622_v57 = vadd.f32 %v621_v45, %v8000_v49  ;;  %v2340_v59 = vld [vmem:[#allocation2 + $0x48] sm:$0xf] }
 0x115   : > { %v2413_v56 = vrot.slane %v2411_v43, 4  ;;  %v5922_v60 = vadd.f32 %v5921_v41, %v5785_v33  ;;  %v5990_v61 = vadd.f32 %v5989_v26, %v5959_v50  ;;  %v1283_v62 = vrot.slane %v1226_v46, 4  ;;  %7126 = vmatpush3.bf16.msra.mxu1 %v7677_v18  ;;  %6990 = vmatpush3.bf16.msra.mxu0 %v7687_v20  ;;  %v7686_v50 = vld [vmem:[%s8977_s3 + $0x128] sm:$0xff]  }
 0x116   : > { %v1284_v63 = vrot.slane %v894_v37, 4  ;;  %v793_v0 = vpack.c.bf16 %v746_v54, %v744_v39  ;;  %v747_v2 = vmax.f32 %v622_v57, 0.0  ;;  %v2417_v3 = vshrl.u32 %v2339_v53, 16  ;;  %7127 = vmatprep.subr.bf16.mxu1 %v7678_v38  ;;  %6991 = vmatprep.subr.bf16.mxu0 %v7688_v47 }
 0x117   : > { %v2414_v1 = vor.u32 %v2413_v56, %v2410_v55  ;;  %v5991_v5 = vadd.f32 %v5990_v61, %v5960_v51  ;;  %v625_v7 = vpop.f32.mrb[24].mxu0  ;;  %v2420_v8 = vshll.u32 %v2339_v53, 16  ;;  %v2425_v9 = vshrl.u32 %v2340_v59, 16 }
 0x118   : > { %v1285_v6 = vsel %vm1270_vm2, %v1283_v62, %v1284_v63  ;;  %v825_v11 = vrot.slane %v793_v0, 4  ;;  %v5445_v12 = vpack.c.bf16 %v747_v2, %v745_v52  ;;  %v626_v13 = vadd.f32 %v625_v7, %v7998_v48  ;;  %v627_v14 = vpop.f32.mrb[25].mxu0  ;;  %v8098_v63 = vld [vmem:[%s8977_s3 + $0x80] sm:$0xff]  }
 0x119   : > { %v2415_v44 = vsel %vm917_vm3, %v2406_v42, %v2414_v1  ;;  %6955 = vmatprep.mubr.bf16.mxu0 %v1285_v6  ;;  %v628_v15 = vadd.f32 %v627_v14, %v8000_v49  ;;  %v629_v16 = vpop.f32.mrb[26].mxu0  ;;  %v2419_v17 = vrot.slane %v2417_v3, 3  ;;  %v2422_v18 = vrot.slane %v2420_v8, 4  ;;  %7128 = vmatpush3.bf16.msra.mxu1 %v7678_v38 }
 0x11a   : > { %7095 = vmatprep.mubr.bf16.mxu1 %v2415_v44  ;;  %v2427_v20 = vrot.slane %v2425_v9, 3  ;;  %862 = vst [vmem:[#allocation2 + $0x68] ss:$-4 sps:$4 sm:$0xff] %v825_v11   ;;  %6704 = vst [vmem:[%s8010_s9 + $0x28] sm:$0xff] %v5445_v12   ;;  %v5786_v22 = vunpack.c.l.bf16 %v5445_v12  ;;  %v5787_v23 = vunpack.c.h.bf16 %v5445_v12  ;;  %v748_v24 = vmax.f32 %v626_v13, 0.0  ;;  %v631_v26 = vpop.f32.mrb[27].mxu0  ;;  %7129 = vmatprep.subr.bf16.mxu1 %v7680_v4 }
 0x11b   : > { %v630_v25 = vadd.f32 %v629_v16, %v7998_v48  ;;  %v896_v27 = vld [vmem:[#allocation2 + $0x58] sm:$0xf]  ;;  %v1227_v28 = vld [vmem:[#allocation2 + $0x50] sm:$0xf0]  ;;  %6992 = vmatpush3.bf16.msra.mxu0 %v7688_v47  ;;  %v749_v29 = vmax.f32 %v628_v15, 0.0  ;;  %v2423_v31 = vor.u32 %v2422_v18, %v2419_v17  ;;  %v2428_v32 = vshll.u32 %v2340_v59, 16 }
 0x11c   : > { %v632_v33 = vadd.f32 %v631_v26, %v8000_v49  ;;  %v2341_v34 = vld [vmem:[#allocation2 + $0x50] sm:$0xf8]  ;;  %6993 = vmatprep.subr.bf16.mxu0 %v7690_v10  ;;  %v5923_v35 = vadd.f32 %v5922_v60, %v5786_v22  ;;  %v5961_v36 = vmul.f32 %v5786_v22, %v5786_v22  ;;  %v5962_v37 = vmul.f32 %v5787_v23, %v5787_v23  ;;  %v2342_v55 = vld [vmem:[#allocation2 + $0x58] sm:$0xf] }
 0x11d   : > { %v750_v38 = vmax.f32 %v630_v25, 0.0  ;;  %v2430_v39 = vrot.slane %v2428_v32, 4  ;;  %v1286_v42 = vrot.slane %v1227_v28, 4  ;;  %v1287_v43 = vrot.slane %v896_v27, 4  ;;  %7130 = vmatpush3.bf16.msra.mxu1 %v7680_v4  ;;  %v7691_v32 = vld [vmem:[%s8977_s3 + $0x138] sm:$0xff]  }
 0x11e   : > { %v751_v40 = vmax.f32 %v632_v33, 0.0  ;;  %v5924_v45 = vadd.f32 %v5923_v35, %v5787_v23  ;;  %v5992_v46 = vadd.f32 %v5991_v5, %v5961_v36  ;;  %v2434_v47 = vshrl.u32 %v2341_v34, 16  ;;  %7131 = vmatprep.subr.bf16.mxu1 %v7683_v21  ;;  %v7689_v5 = vld [vmem:[%s8977_s3 + $0x130] sm:$0xff]  }
 0x11f   : > { %v794_v41 = vpack.c.bf16 %v750_v38, %v748_v24  ;;  %6994 = vmatpush3.bf16.msra.mxu0 %v7690_v10  ;;  %v2431_v51 = vor.u32 %v2430_v39, %v2427_v20  ;;  %v1288_v53 = vsel %vm1270_vm2, %v1286_v42, %v1287_v43  ;;  %v635_v54 = vpop.f32.mrb[28].mxu0  ;;  %v2437_v56 = vshll.u32 %v2341_v34, 16 }
 0x120   : > { %v5446_v52 = vpack.c.bf16 %v751_v40, %v749_v29  ;;  %v5993_v57 = vadd.f32 %v5992_v46, %v5962_v37  ;;  %6956 = vmatmul.mubr.bf16.gmra.mrb[72].mxu0 %v1288_v53  ;;  %v636_v60 = vadd.f32 %v635_v54, %v7998_v48  ;;  %v637_v61 = vpop.f32.mrb[29].mxu0  ;;  %v8093_v62 = vrot.slane %v2434_v47, 3  ;;  %7027 = vmatprep.subr.bf16.mxu0 %v8098_v63 }
 0x121   : > { %v826_v59 = vrot.slane %v794_v41, 4  ;;  %v2432_v0 = vsel %vm917_vm3, %v2423_v31, %v2431_v51  ;;  %v638_v3 = vadd.f32 %v637_v61, %v8000_v49  ;;  %v639_v4 = vpop.f32.mrb[30].mxu0  ;;  %7132 = vmatpush3.bf16.msra.mxu1 %v7683_v21  ;;  %v2439_v8 = vrot.slane %v2437_v56, 4  ;;  %v1228_v11 = vld [vmem:[#allocation2 + $0x60] sm:$0xf0] }
 0x122   : > { %6705 = vst [vmem:[%s8010_s9 + $0x30] sm:$0xff] %v5446_v52   ;;  %v5788_v1 = vunpack.c.l.bf16 %v5446_v52  ;;  %v5789_v2 = vunpack.c.h.bf16 %v5446_v52  ;;  %7096 = vmatmul.mubr.bf16.gmra.mrb[4].mxu1 %v2432_v0  ;;  %v752_v6 = vmax.f32 %v636_v60, 0.0  ;;  %v640_v7 = vadd.f32 %v639_v4, %v7998_v48  ;;  %v641_v10 = vpop.f32.mrb[31].mxu0  ;;  %7133 = vmatprep.subr.bf16.mxu1 %v7686_v50  ;;  %v898_v15 = vld [vmem:[#allocation2 + $0x68] sm:$0xf] }
 0x123   : > { %864 = vst [vmem:[#allocation2 + $0x78] ss:$-4 sps:$4 sm:$0xff] %v826_v59   ;;  %v2442_v9 = vshrl.u32 %v2342_v55, 16  ;;  %v753_v14 = vmax.f32 %v638_v3, 0.0  ;;  %v2343_v16 = vld [vmem:[#allocation2 + $0x60] sm:$0xf8]  ;;  %v2440_v18 = vor.u32 %v2439_v8, %v8093_v62  ;;  %v642_v25 = vadd.f32 %v641_v10, %v8000_v49 }
 0x124   : > { %v5925_v44 = vadd.f32 %v5924_v45, %v5788_v1  ;;  %v5963_v12 = vmul.f32 %v5788_v1, %v5788_v1  ;;  %v5964_v13 = vmul.f32 %v5789_v2, %v5789_v2  ;;  %v754_v17 = vmax.f32 %v640_v7, 0.0  ;;  %v2344_v22 = vld [vmem:[#allocation2 + $0x68] sm:$0xf]  ;;  %v7692_v59 = vld [vmem:[%s8977_s3 + $0x140] sm:$0xff]  }
 0x125   : > { %v2444_v20 = vrot.slane %v2442_v9, 3  ;;  %v2445_v21 = vshll.u32 %v2342_v55, 16  ;;  %v1289_v26 = vrot.slane %v1228_v11, 4  ;;  %7134 = vmatpush3.bf16.msra.mxu1 %v7686_v50  ;;  %v1290_v29 = vrot.slane %v898_v15, 4 }
 0x126   : > { %v5926_v23 = vadd.f32 %v5925_v44, %v5789_v2  ;;  %v5994_v24 = vadd.f32 %v5993_v57, %v5963_v12  ;;  %v795_v27 = vpack.c.bf16 %v754_v17, %v752_v6  ;;  %v2451_v31 = vshrl.u32 %v2343_v16, 16  ;;  %7135 = vmatprep.subr.bf16.mxu1 %v7689_v5 }
 0x127   : > { %v2447_v28 = vrot.slane %v2445_v21, 4  ;;  %v755_v34 = vmax.f32 %v642_v25, 0.0  ;;  %v645_v35 = vpop.f32.mrb[32].mxu0  ;;  %v2454_v36 = vshll.u32 %v2343_v16, 16  ;;  %v2459_v37 = vshrl.u32 %v2344_v22, 16 }
 0x128   : > { %v5995_v33 = vadd.f32 %v5994_v24, %v5964_v13  ;;  %v827_v38 = vrot.slane %v795_v27, 4  ;;  %v1291_v40 = vsel %vm1270_vm2, %v1289_v26, %v1290_v29  ;;  %v646_v42 = vadd.f32 %v645_v35, %v7998_v48  ;;  %v647_v43 = vpop.f32.mrb[33].mxu0 }
 0x129   : > { %v2448_v39 = vor.u32 %v2447_v28, %v2444_v20  ;;  %v5447_v45 = vpack.c.bf16 %v755_v34, %v753_v14  ;;  %6959 = vmatprep.mubr.bf16.mxu0 %v1291_v40  ;;  %v648_v46 = vadd.f32 %v647_v43, %v8000_v49  ;;  %v649_v41 = vpop.f32.mrb[34].mxu0  ;;  %v2453_v47 = vrot.slane %v2451_v31, 3  ;;  %7136 = vmatpush3.bf16.msra.mxu1 %v7689_v5 }
 0x12a   : > { %v2456_v50 = vrot.slane %v2454_v36, 4  ;;  %v900_v51 = vld [vmem:[#allocation2 + $0x78] sm:$0xf]  ;;  %866 = vst [vmem:[#allocation2 + $0x88] ss:$-4 sps:$4 sm:$0xff] %v827_v38   ;;  %v756_v53 = vmax.f32 %v646_v42, 0.0  ;;  %v650_v54 = vadd.f32 %v649_v41, %v7998_v48  ;;  %7137 = vmatprep.subr.bf16.mxu1 %v7691_v32 }
 0x12b   : > { %v2449_v52 = vsel %vm917_vm3, %v2440_v18, %v2448_v39  ;;  %v2461_v55 = vrot.slane %v2459_v37, 3  ;;  %v651_v56 = vpop.f32.mrb[35].mxu0  ;;  %v1229_v57 = vld [vmem:[#allocation2 + $0x70] sm:$0xf0]  ;;  %6706 = vst [vmem:[%s8010_s9 + $0x38] sm:$0xff] %v5447_v45   ;;  %v5790_v60 = vunpack.c.l.bf16 %v5447_v45  ;;  %v5791_v61 = vunpack.c.h.bf16 %v5447_v45 }
 0x12c   : > { %7099 = vmatprep.mubr.bf16.mxu1 %v2449_v52  ;;  %v757_v62 = vmax.f32 %v648_v46, 0.0  ;;  %v2457_v0 = vor.u32 %v2456_v50, %v2453_v47  ;;  %v2345_v1 = vld [vmem:[#allocation2 + $0x70] sm:$0xf8]  ;;  %v758_v2 = vmax.f32 %v650_v54, 0.0  ;;  %v2462_v3 = vshll.u32 %v2344_v22, 16 }
 0x12d   : > { %v652_v4 = vadd.f32 %v651_v56, %v8000_v49  ;;  %v1292_v5 = vrot.slane %v1229_v57, 4  ;;  %v5927_v6 = vadd.f32 %v5926_v23, %v5790_v60  ;;  %v5965_v7 = vmul.f32 %v5790_v60, %v5790_v60  ;;  %7138 = vmatpush3.bf16.msra.mxu1 %v7691_v32  ;;  %v2346_v24 = vld [vmem:[#allocation2 + $0x78] sm:$0xf] }
 0x12e   : > { %v5966_v8 = vmul.f32 %v5791_v61, %v5791_v61  ;;  %v1293_v9 = vrot.slane %v900_v51, 4  ;;  %v796_v10 = vpack.c.bf16 %v758_v2, %v756_v53  ;;  %v2464_v11 = vrot.slane %v2462_v3, 4  ;;  %7171 = vmatprep.subr.bf16.mxu1 %v7692_v59 }
 0x12f   : > { %v759_v44 = vmax.f32 %v652_v4, 0.0  ;;  %v2468_v12 = vshrl.u32 %v2345_v1, 16  ;;  %v5928_v13 = vadd.f32 %v5927_v6, %v5791_v61  ;;  %v5996_v14 = vadd.f32 %v5995_v33, %v5965_v7  ;;  %v655_v16 = vpop.f32.mrb[36].mxu0 }
 0x130   : > { %v1294_v15 = vsel %vm1270_vm2, %v1292_v5, %v1293_v9  ;;  %v2471_v17 = vshll.u32 %v2345_v1, 16  ;;  %v828_v18 = vrot.slane %v796_v10, 4  ;;  %v2465_v20 = vor.u32 %v2464_v11, %v2461_v55  ;;  %v657_v23 = vpop.f32.mrb[37].mxu0 }
 0x131   : > { %v5448_v21 = vpack.c.bf16 %v759_v44, %v757_v62  ;;  %6960 = vmatmul.mubr.bf16.gmra.mrb[76].mxu0 %v1294_v15  ;;  %v656_v22 = vadd.f32 %v655_v16, %v7998_v48  ;;  %v5997_v25 = vadd.f32 %v5996_v14, %v5966_v8  ;;  %v658_v26 = vadd.f32 %v657_v23, %v8000_v49  ;;  %v659_v27 = vpop.f32.mrb[38].mxu0  ;;  %v1230_v36 = vld [vmem:[#allocation2 + $0x80] sm:$0xf0]  ;;  %v8129_v42 = vld [vmem:[#allocation2 + $0x88] sm:$0xf] }
 0x132   : > { %v2470_v28 = vrot.slane %v2468_v12, 3  ;;  %v2473_v29 = vrot.slane %v2471_v17, 4  ;;  %868 = vst [vmem:[#allocation2 + $0x98] ss:$-4 sps:$4 sm:$0xff] %v828_v18   ;;  %v2466_v31 = vsel %vm917_vm3, %v2457_v0, %v2465_v20  ;;  %v661_v35 = vpop.f32.mrb[39].mxu0  ;;  %v660_v38 = vadd.f32 %v659_v27, %v7998_v48 }
 0x133   : > { %6707 = vst [vmem:[%s8010_s9 + $0x40] sm:$0xff] %v5448_v21   ;;  %v5792_v32 = vunpack.c.l.bf16 %v5448_v21  ;;  %v5793_v33 = vunpack.c.h.bf16 %v5448_v21  ;;  %v760_v34 = vmax.f32 %v656_v22, 0.0  ;;  %7100 = vmatmul.mubr.bf16.gmra.mrb[8].mxu1 %v2466_v31  ;;  %v761_v37 = vmax.f32 %v658_v26, 0.0  ;;  %v2347_v47 = vld [vmem:[#allocation2 + $0x80] sm:$0xf8] }
 0x134   : > { %v2474_v39 = vor.u32 %v2473_v29, %v2470_v28  ;;  %v2476_v40 = vshrl.u32 %v2346_v24, 16  ;;  %v2479_v41 = vshll.u32 %v2346_v24, 16  ;;  %v762_v50 = vmax.f32 %v660_v38, 0.0  ;;  %v2348_v6 = vld [vmem:[#allocation2 + $0x88] sm:$0xf] }
 0x135   : > { %v5929_v43 = vadd.f32 %v5928_v13, %v5792_v32  ;;  %v5967_v45 = vmul.f32 %v5792_v32, %v5792_v32  ;;  %v5968_v46 = vmul.f32 %v5793_v33, %v5793_v33  ;;  %v662_v52 = vadd.f32 %v661_v35, %v8000_v49 }
 0x136   : > { %v2478_v51 = vrot.slane %v2476_v40, 3  ;;  %v1295_v53 = vrot.slane %v1230_v36, 4  ;;  %v2481_v56 = vrot.slane %v2479_v41, 4  ;;  %v1296_v57 = vrot.slane %v8129_v42, 4 }
 0x137   : > { %v5930_v54 = vadd.f32 %v5929_v43, %v5793_v33  ;;  %v5998_v55 = vadd.f32 %v5997_v25, %v5967_v45  ;;  %v797_v59 = vpack.c.bf16 %v762_v50, %v760_v34  ;;  %v763_v60 = vmax.f32 %v662_v52, 0.0  ;;  %v665_v61 = vpop.f32.mrb[40].mxu0 }
 0x138   : > { %v2485_v62 = vshrl.u32 %v2347_v47, 16  ;;  %v2488_v0 = vshll.u32 %v2347_v47, 16  ;;  %v2482_v2 = vor.u32 %v2481_v56, %v2478_v51  ;;  %v1297_v3 = vsel %vm1270_vm2, %v1295_v53, %v1296_v57  ;;  %v667_v5 = vpop.f32.mrb[41].mxu0 }
 0x139   : > { %v5999_v1 = vadd.f32 %v5998_v55, %v5968_v46  ;;  %v666_v4 = vadd.f32 %v665_v61, %v7998_v48  ;;  %v829_v7 = vrot.slane %v797_v59, 4  ;;  %v5449_v8 = vpack.c.bf16 %v763_v60, %v761_v37  ;;  %6963 = vmatprep.mubr.bf16.mxu0 %v1297_v3  ;;  %v669_v10 = vpop.f32.mrb[42].mxu0  ;;  %v1231_v21 = vld [vmem:[#allocation2 + $0x90] sm:$0xf0]  ;;  %v8140_v26 = vld [vmem:[#allocation2 + $0x98] sm:$0xf] }
 0x13a   : > { %v668_v9 = vadd.f32 %v667_v5, %v8000_v49  ;;  %v2487_v11 = vrot.slane %v2485_v62, 3  ;;  %v2483_v44 = vsel %vm917_vm3, %v2474_v39, %v2482_v2  ;;  %v670_v13 = vadd.f32 %v669_v10, %v7998_v48  ;;  %v671_v15 = vpop.f32.mrb[43].mxu0  ;;  %v2349_v27 = vld [vmem:[#allocation2 + $0x90] sm:$0xf8]  ;;  %v8144_v51 = vld [vmem:[#allocation2 + $0x98] sm:$0xf] }
 0x13b   : > { %v764_v12 = vmax.f32 %v666_v4, 0.0  ;;  %v2490_v14 = vrot.slane %v2488_v0, 4  ;;  %870 = vst [vmem:[#allocation2 + $0xa8] ss:$-4 sps:$4 sm:$0xff] %v829_v7   ;;  %7103 = vmatprep.mubr.bf16.mxu1 %v2483_v44  ;;  %6708 = vst [vmem:[%s8010_s9 + $0x48] sm:$0xff] %v5449_v8   ;;  %v5794_v16 = vunpack.c.l.bf16 %v5449_v8  ;;  %v5795_v17 = vunpack.c.h.bf16 %v5449_v8 }
 0x13c   : > { %v765_v18 = vmax.f32 %v668_v9, 0.0  ;;  %v2493_v20 = vshrl.u32 %v2348_v6, 16  ;;  %v766_v22 = vmax.f32 %v670_v13, 0.0  ;;  %v2496_v24 = vshll.u32 %v2348_v6, 16 }
 0x13d   : > { %v2491_v23 = vor.u32 %v2490_v14, %v2487_v11  ;;  %v672_v25 = vadd.f32 %v671_v15, %v8000_v49  ;;  %v5931_v28 = vadd.f32 %v5930_v54, %v5794_v16  ;;  %v5969_v29 = vmul.f32 %v5794_v16, %v5794_v16 }
 0x13e   : > { %v5970_v31 = vmul.f32 %v5795_v17, %v5795_v17  ;;  %v2495_v32 = vrot.slane %v2493_v20, 3  ;;  %v798_v33 = vpack.c.bf16 %v766_v22, %v764_v12  ;;  %v2498_v34 = vrot.slane %v2496_v24, 4 }
 0x13f   : > { %v767_v35 = vmax.f32 %v672_v25, 0.0  ;;  %v1298_v36 = vrot.slane %v1231_v21, 4  ;;  %v5932_v37 = vadd.f32 %v5931_v28, %v5795_v17  ;;  %v6000_v38 = vadd.f32 %v5999_v1, %v5969_v29  ;;  %v675_v40 = vpop.f32.mrb[44].mxu0 }
 0x140   : > { %v1299_v39 = vrot.slane %v8140_v26, 4  ;;  %v2502_v43 = vshrl.u32 %v2349_v27, 16  ;;  %v830_v45 = vrot.slane %v798_v33, 4  ;;  %v2499_v46 = vor.u32 %v2498_v34, %v2495_v32  ;;  %v677_v50 = vpop.f32.mrb[45].mxu0 }
 0x141   : > { %v5450_v41 = vpack.c.bf16 %v767_v35, %v765_v18  ;;  %v676_v47 = vadd.f32 %v675_v40, %v7998_v48  ;;  %v6001_v52 = vadd.f32 %v6000_v38, %v5970_v31  ;;  %v678_v54 = vadd.f32 %v677_v50, %v8000_v49  ;;  %v679_v55 = vpop.f32.mrb[46].mxu0 }
 0x142   : > { %v1300_v53 = vsel %vm1270_vm2, %v1298_v36, %v1299_v39  ;;  %v2504_v56 = vrot.slane %v2502_v43, 3  ;;  %872 = vst [vmem:[#allocation2 + $0xb8] ss:$-4 sps:$4 sm:$0xff] %v830_v45   ;;  %v2500_v57 = vsel %vm917_vm3, %v2491_v23, %v2499_v46  ;;  %v681_v62 = vpop.f32.mrb[47].mxu0  ;;  %v680_v1 = vadd.f32 %v679_v55, %v7998_v48  ;;  %v1232_v4 = vld [vmem:[#allocation2 + $0xa0] sm:$0xf0] }
 0x143   : > { %6709 = vst [vmem:[%s8010_s9 + $0x50] sm:$0xff] %v5450_v41   ;;  %v5796_v59 = vunpack.c.l.bf16 %v5450_v41  ;;  %v5797_v60 = vunpack.c.h.bf16 %v5450_v41  ;;  %6964 = vmatmul.mubr.bf16.gmra.mrb[80].mxu0 %v1300_v53  ;;  %v768_v61 = vmax.f32 %v676_v47, 0.0  ;;  %7104 = vmatmul.mubr.bf16.gmra.mrb[12].mxu1 %v2500_v57  ;;  %v769_v0 = vmax.f32 %v678_v54, 0.0  ;;  %v8153_v9 = vld [vmem:[#allocation2 + $0xa8] sm:$0xf] }
 0x144   : > { %v2505_v2 = vshll.u32 %v2349_v27, 16  ;;  %v2510_v3 = vshrl.u32 %v8144_v51, 16  ;;  %v2513_v8 = vshll.u32 %v8144_v51, 16  ;;  %v770_v10 = vmax.f32 %v680_v1, 0.0  ;;  %v2351_v13 = vld [vmem:[#allocation2 + $0xa0] sm:$0xf8] }
 0x145   : > { %v5933_v5 = vadd.f32 %v5932_v37, %v5796_v59  ;;  %v5971_v6 = vmul.f32 %v5796_v59, %v5796_v59  ;;  %v5972_v7 = vmul.f32 %v5797_v60, %v5797_v60  ;;  %v682_v12 = vadd.f32 %v681_v62, %v8000_v49  ;;  %v8160_v36 = vld [vmem:[#allocation2 + $0xa8] sm:$0xf] }
 0x146   : > { %v2507_v11 = vrot.slane %v2505_v2, 4  ;;  %v2512_v44 = vrot.slane %v2510_v3, 3  ;;  %v2515_v16 = vrot.slane %v2513_v8, 4  ;;  %v1301_v17 = vrot.slane %v1232_v4, 4 }
 0x147   : > { %v5934_v14 = vadd.f32 %v5933_v5, %v5797_v60  ;;  %v6002_v15 = vadd.f32 %v6001_v52, %v5971_v6  ;;  %v799_v18 = vpack.c.bf16 %v770_v10, %v768_v61  ;;  %v771_v21 = vmax.f32 %v682_v12, 0.0  ;;  %v685_v23 = vpop.f32.mrb[48].mxu0 }
 0x148   : > { %v2508_v20 = vor.u32 %v2507_v11, %v2504_v56  ;;  %v1302_v22 = vrot.slane %v8153_v9, 4  ;;  %v2516_v25 = vor.u32 %v2515_v16, %v2512_v44  ;;  %v686_v27 = vadd.f32 %v685_v23, %v7998_v48  ;;  %v687_v28 = vpop.f32.mrb[49].mxu0 }
 0x149   : > { %v6003_v24 = vadd.f32 %v6002_v15, %v5972_v7  ;;  %v2519_v29 = vshrl.u32 %v2351_v13, 16  ;;  %v831_v31 = vrot.slane %v799_v18, 4  ;;  %v5451_v32 = vpack.c.bf16 %v771_v21, %v769_v0  ;;  %v689_v35 = vpop.f32.mrb[50].mxu0  ;;  %v1233_v55 = vld [vmem:[#allocation2 + $0xb0] sm:$0xf0] }
 0x14a   : > { %v1303_v33 = vsel %vm1270_vm2, %v1301_v17, %v1302_v22  ;;  %v688_v34 = vadd.f32 %v687_v28, %v8000_v49  ;;  %v2517_v37 = vsel %vm917_vm3, %v2508_v20, %v2516_v25  ;;  %v772_v38 = vmax.f32 %v686_v27, 0.0  ;;  %v691_v43 = vpop.f32.mrb[51].mxu0  ;;  %v8168_v61 = vld [vmem:[#allocation2 + $0xb8] sm:$0xf]  ;;  %v2353_v3 = vld [vmem:[#allocation2 + $0xb0] sm:$0xf8] }
 0x14b   : > { %6967 = vmatprep.mubr.bf16.mxu0 %v1303_v33  ;;  %v690_v39 = vadd.f32 %v689_v35, %v7998_v48  ;;  %v2521_v40 = vrot.slane %v2519_v29, 3  ;;  %874 = vst [vmem:[#allocation2 + $0xc8] ss:$-4 sps:$4 sm:$0xff] %v831_v31   ;;  %7107 = vmatprep.mubr.bf16.mxu1 %v2517_v37  ;;  %6710 = vst [vmem:[%s8010_s9 + $0x58] sm:$0xff] %v5451_v32   ;;  %v5798_v45 = vunpack.c.l.bf16 %v5451_v32  ;;  %v5799_v46 = vunpack.c.h.bf16 %v5451_v32 }
 0x14c   : > { %v773_v41 = vmax.f32 %v688_v34, 0.0  ;;  %v2522_v47 = vshll.u32 %v2351_v13, 16  ;;  %v2527_v52 = vshrl.u32 %v8160_v36, 16  ;;  %v2530_v53 = vshll.u32 %v8160_v36, 16 }
 0x14d   : > { %v774_v50 = vmax.f32 %v690_v39, 0.0  ;;  %v692_v54 = vadd.f32 %v691_v43, %v8000_v49  ;;  %v5935_v56 = vadd.f32 %v5934_v14, %v5798_v45  ;;  %v5973_v57 = vmul.f32 %v5798_v45, %v5798_v45 }
 0x14e   : > { %v5974_v59 = vmul.f32 %v5799_v46, %v5799_v46  ;;  %v2524_v60 = vrot.slane %v2522_v47, 4  ;;  %v2529_v0 = vrot.slane %v2527_v52, 3  ;;  %v2532_v1 = vrot.slane %v2530_v53, 4 }
 0x14f   : > { %v800_v62 = vpack.c.bf16 %v774_v50, %v772_v38  ;;  %v775_v2 = vmax.f32 %v692_v54, 0.0  ;;  %v5936_v4 = vadd.f32 %v5935_v56, %v5799_v46  ;;  %v6004_v5 = vadd.f32 %v6003_v24, %v5973_v57  ;;  %v695_v8 = vpop.f32.mrb[52].mxu0  ;;  %v8176_v24 = vld [vmem:[#allocation2 + $0xb8] sm:$0xf] }
 0x150   : > { %v2525_v6 = vor.u32 %v2524_v60, %v2521_v40  ;;  %v1304_v7 = vrot.slane %v1233_v55, 4  ;;  %v2533_v11 = vor.u32 %v2532_v1, %v2529_v0  ;;  %v1305_v12 = vrot.slane %v8168_v61, 4  ;;  %v697_v13 = vpop.f32.mrb[53].mxu0 }
 0x151   : > { %v832_v10 = vrot.slane %v800_v62, 4  ;;  %v5452_v44 = vpack.c.bf16 %v775_v2, %v773_v41  ;;  %v6005_v14 = vadd.f32 %v6004_v5, %v5974_v59  ;;  %v696_v15 = vadd.f32 %v695_v8, %v7998_v48  ;;  %v699_v17 = vpop.f32.mrb[54].mxu0 }
 0x152   : > { %v698_v16 = vadd.f32 %v697_v13, %v8000_v49  ;;  %v2536_v18 = vshrl.u32 %v2353_v3, 16  ;;  %v2534_v20 = vsel %vm917_vm3, %v2525_v6, %v2533_v11  ;;  %v1306_v23 = vsel %vm1270_vm2, %v1304_v7, %v1305_v12  ;;  %v701_v25 = vpop.f32.mrb[55].mxu0  ;;  %v1234_v32 = vld [vmem:[#allocation2 + $0xc0] sm:$0xf0]  ;;  %v8182_v45 = vld [vmem:[#allocation2 + $0xc8] sm:$0xf] }
 0x153   : > { %876 = vst [vmem:[#allocation2 + $0xd8] ss:$-4 sps:$4 sm:$0xff] %v832_v10   ;;  %6711 = vst [vmem:[%s8010_s9 + $0x60] sm:$0xff] %v5452_v44   ;;  %v5800_v21 = vunpack.c.l.bf16 %v5452_v44  ;;  %v5801_v22 = vunpack.c.h.bf16 %v5452_v44  ;;  %7108 = vmatmul.mubr.bf16.gmra.mrb[16].mxu1 %v2534_v20  ;;  %6968 = vmatmul.mubr.bf16.gmra.mrb[84].mxu0 %v1306_v23  ;;  %v776_v27 = vmax.f32 %v696_v15, 0.0  ;;  %v700_v29 = vadd.f32 %v699_v17, %v7998_v48  ;;  %v2355_v57 = vld [vmem:[#allocation2 + $0xc0] sm:$0xf8] }
 0x154   : > { %v777_v28 = vmax.f32 %v698_v16, 0.0  ;;  %v2538_v31 = vrot.slane %v2536_v18, 3  ;;  %v2539_v37 = vshll.u32 %v2353_v3, 16  ;;  %v2544_v39 = vshrl.u32 %v8176_v24, 16  ;;  %v8187_v7 = vld [vmem:[#allocation2 + $0xc8] sm:$0xf] }
 0x155   : > { %v5937_v33 = vadd.f32 %v5936_v4, %v5800_v21  ;;  %v5975_v34 = vmul.f32 %v5800_v21, %v5800_v21  ;;  %v5976_v35 = vmul.f32 %v5801_v22, %v5801_v22  ;;  %v778_v38 = vmax.f32 %v700_v29, 0.0 }
 0x156   : > { %v2547_v40 = vshll.u32 %v8176_v24, 16  ;;  %v702_v43 = vadd.f32 %v701_v25, %v8000_v49  ;;  %v2541_v47 = vrot.slane %v2539_v37, 4  ;;  %v1307_v50 = vrot.slane %v1234_v32, 4 }
 0x157   : > { %v5938_v46 = vadd.f32 %v5937_v33, %v5801_v22  ;;  %v6006_v41 = vadd.f32 %v6005_v14, %v5975_v34  ;;  %v801_v52 = vpack.c.bf16 %v778_v38, %v776_v27  ;;  %v2546_v53 = vrot.slane %v2544_v39, 3  ;;  %v705_v56 = vpop.f32.mrb[56].mxu0 }
 0x158   : > { %v2549_v54 = vrot.slane %v2547_v40, 4  ;;  %v779_v55 = vmax.f32 %v702_v43, 0.0  ;;  %v2542_v60 = vor.u32 %v2541_v47, %v2538_v31  ;;  %v1308_v62 = vrot.slane %v8182_v45, 4  ;;  %v707_v1 = vpop.f32.mrb[57].mxu0 }
 0x159   : > { %v6007_v59 = vadd.f32 %v6006_v41, %v5976_v35  ;;  %v706_v0 = vadd.f32 %v705_v56, %v7998_v48  ;;  %v833_v2 = vrot.slane %v801_v52, 4  ;;  %v708_v5 = vadd.f32 %v707_v1, %v8000_v49  ;;  %v709_v6 = vpop.f32.mrb[58].mxu0 }
 0x15a   : > { %v2550_v3 = vor.u32 %v2549_v54, %v2546_v53  ;;  %v5453_v4 = vpack.c.bf16 %v779_v55, %v777_v28  ;;  %v1309_v8 = vsel %vm1270_vm2, %v1307_v50, %v1308_v62  ;;  %v710_v11 = vadd.f32 %v709_v6, %v7998_v48  ;;  %v711_v12 = vpop.f32.mrb[59].mxu0  ;;  %v1235_v22 = vld [vmem:[#allocation2 + $0xd0] sm:$0xf0]  ;;  %v8195_v29 = vld [vmem:[#allocation2 + $0xd8] sm:$0xf] }
 0x15b   : > { %v780_v10 = vmax.f32 %v706_v0, 0.0  ;;  %v2553_v44 = vshrl.u32 %v2355_v57, 16  ;;  %878 = vst [vmem:[#allocation2 + $0xe8] ss:$-4 sps:$4 sm:$0xff] %v833_v2   ;;  %6971 = vmatprep.mubr.bf16.mxu0 %v1309_v8  ;;  %v781_v16 = vmax.f32 %v708_v5, 0.0  ;;  %v2556_v20 = vshll.u32 %v2355_v57, 16 }
 0x15c   : > { %v2551_v13 = vsel %vm917_vm3, %v2542_v60, %v2550_v3  ;;  %6712 = vst [vmem:[%s8010_s9 + $0x68] sm:$0xff] %v5453_v4   ;;  %v5802_v14 = vunpack.c.l.bf16 %v5453_v4  ;;  %v5803_v15 = vunpack.c.h.bf16 %v5453_v4  ;;  %v782_v17 = vmax.f32 %v710_v11, 0.0  ;;  %v2357_v43 = vld [vmem:[#allocation2 + $0xd0] sm:$0xf8]  ;;  %v8203_v0 = vld [vmem:[#allocation2 + $0xd8] sm:$0xf] }
 0x15d   : > { %7111 = vmatprep.mubr.bf16.mxu1 %v2551_v13  ;;  %v2555_v18 = vrot.slane %v2553_v44, 3  ;;  %v2561_v21 = vshrl.u32 %v8187_v7, 16  ;;  %v2564_v28 = vshll.u32 %v8187_v7, 16  ;;  %v2558_v32 = vrot.slane %v2556_v20, 4 }
 0x15e   : > { %v5939_v23 = vadd.f32 %v5938_v46, %v5802_v14  ;;  %v5977_v25 = vmul.f32 %v5802_v14, %v5802_v14  ;;  %v5978_v27 = vmul.f32 %v5803_v15, %v5803_v15  ;;  %v802_v31 = vpack.c.bf16 %v782_v17, %v780_v10 }
 0x15f   : > { %v2563_v33 = vrot.slane %v2561_v21, 3  ;;  %v712_v34 = vadd.f32 %v711_v12, %v8000_v49  ;;  %v2566_v38 = vrot.slane %v2564_v28, 4  ;;  %v1310_v39 = vrot.slane %v1235_v22, 4  ;;  %v715_v40 = vpop.f32.mrb[60].mxu0 }
 0x160   : > { %v5940_v35 = vadd.f32 %v5939_v23, %v5803_v15  ;;  %v6008_v37 = vadd.f32 %v6007_v59, %v5977_v25  ;;  %v834_v41 = vrot.slane %v802_v31, 4  ;;  %v2559_v47 = vor.u32 %v2558_v32, %v2555_v18  ;;  %v717_v52 = vpop.f32.mrb[61].mxu0 }
 0x161   : > { %v783_v46 = vmax.f32 %v712_v34, 0.0  ;;  %v1311_v50 = vrot.slane %v8195_v29, 4  ;;  %v2567_v54 = vor.u32 %v2566_v38, %v2563_v33  ;;  %v716_v55 = vadd.f32 %v715_v40, %v7998_v48  ;;  %v719_v57 = vpop.f32.mrb[62].mxu0 }
 0x162   : > { %v6009_v53 = vadd.f32 %v6008_v37, %v5978_v27  ;;  %v718_v56 = vadd.f32 %v717_v52, %v8000_v49  ;;  %880 = vst [vmem:[#allocation2 + $0xf8] ss:$-4 sps:$4 sm:$0xff] %v834_v41   ;;  %v720_v62 = vadd.f32 %v719_v57, %v7998_v48  ;;  %v2570_v1 = vshrl.u32 %v2357_v43, 16  ;;  %v721_v2 = vpop.f32.mrb[63].mxu0  ;;  %v1236_v15 = vld [vmem:[#allocation2 + $0xe0] sm:$0xf0] }
 0x163   : > { %v5454_v59 = vpack.c.bf16 %v783_v46, %v781_v16  ;;  %v1312_v60 = vsel %vm1270_vm2, %v1310_v39, %v1311_v50  ;;  %v2568_v3 = vsel %vm917_vm3, %v2559_v47, %v2567_v54  ;;  %v784_v4 = vmax.f32 %v716_v55, 0.0  ;;  %v8210_v21 = vld [vmem:[#allocation2 + $0xe8] sm:$0xf]  ;;  %v2359_v22 = vld [vmem:[#allocation2 + $0xe0] sm:$0xf8] }
 0x164   : > { %6972 = vmatmul.mubr.bf16.gmra.mrb[88].mxu0 %v1312_v60  ;;  %v785_v5 = vmax.f32 %v718_v56, 0.0  ;;  %v2573_v6 = vshll.u32 %v2357_v43, 16  ;;  %7112 = vmatmul.mubr.bf16.gmra.mrb[20].mxu1 %v2568_v3  ;;  %v786_v11 = vmax.f32 %v720_v62, 0.0  ;;  %v2572_v44 = vrot.slane %v2570_v1, 3  ;;  %v8212_v31 = vld [vmem:[#allocation2 + $0xe8] sm:$0xf] }
 0x165   : > { %6713 = vst [vmem:[%s8010_s9 + $0x70] sm:$0xff] %v5454_v59   ;;  %v5804_v8 = vunpack.c.l.bf16 %v5454_v59  ;;  %v5805_v10 = vunpack.c.h.bf16 %v5454_v59  ;;  %v2578_v13 = vshrl.u32 %v8203_v0, 16  ;;  %v2581_v48 = vshll.u32 %v8203_v0, 16 }
 0x166   : > { %v2575_v12 = vrot.slane %v2573_v6, 4  ;;  %v722_v14 = vadd.f32 %v721_v2, %v8000_v49  ;;  %v803_v20 = vpack.c.bf16 %v786_v11, %v784_v4  ;;  %v1313_v37 = vrot.slane %v1236_v15, 4 }
 0x167   : > { %v5941_v16 = vadd.f32 %v5940_v35, %v5804_v8  ;;  %v5979_v17 = vmul.f32 %v5804_v8, %v5804_v8  ;;  %v5980_v18 = vmul.f32 %v5805_v10, %v5805_v10  ;;  %v2580_v25 = vrot.slane %v2578_v13, 3 }
 0x168   : > { %v2576_v23 = vor.u32 %v2575_v12, %v2572_v44  ;;  %v2583_v27 = vrot.slane %v2581_v48, 4  ;;  %v787_v28 = vmax.f32 %v722_v14, 0.0  ;;  %v835_v34 = vrot.slane %v803_v20, 4 }
 0x169   : > { %v5942_v32 = vadd.f32 %v5941_v16, %v5805_v10  ;;  %v6010_v33 = vadd.f32 %v6009_v53, %v5979_v17  ;;  %v1314_v35 = vrot.slane %v8210_v21, 4  ;;  %v2587_v39 = vshrl.u32 %v2359_v22, 16  ;;  %v1237_v46 = vld [vmem:[#allocation2 + $0xf0] sm:$0xf0]  ;;  %v8220_v55 = vld [vmem:[#allocation2 + $0xf8] sm:$0xf] }
 0x16a   : > { %v2584_v49 = vor.u32 %v2583_v27, %v2580_v25  ;;  %v5455_v38 = vpack.c.bf16 %v787_v28, %v785_v5  ;;  %882 = vst [vmem:[#allocation2 + $0x108] ss:$-4 sps:$4 sm:$0xff] %v835_v34   ;;  %v2590_v43 = vshll.u32 %v2359_v22, 16  ;;  %v2595_v41 = vshrl.u32 %v8212_v31, 16  ;;  %v2361_v56 = vld [vmem:[#allocation2 + $0xf0] sm:$0xf8] }
 0x16b   : > { %v6011_v40 = vadd.f32 %v6010_v33, %v5980_v18  ;;  %v2598_v47 = vshll.u32 %v8212_v31, 16  ;;  %v1315_v54 = vsel %vm1270_vm2, %v1313_v37, %v1314_v35  ;;  %v2589_v57 = vrot.slane %v2587_v39, 3  ;;  %v8222_v1 = vld [vmem:[#allocation2 + $0xf8] sm:$0xf] }
 0x16c   : > { %v2585_v50 = vsel %vm917_vm3, %v2576_v23, %v2584_v49  ;;  %6714 = vst [vmem:[%s8010_s9 + $0x78] sm:$0xff] %v5455_v38   ;;  %v5806_v52 = vunpack.c.l.bf16 %v5455_v38  ;;  %v5807_v53 = vunpack.c.h.bf16 %v5455_v38  ;;  %6975 = vmatprep.mubr.bf16.mxu0 %v1315_v54  ;;  %v2592_v59 = vrot.slane %v2590_v43, 4  ;;  %v887_v23 = vld [vmem:[#allocation2 + $0x10] sm:$0xf8] }
 0x16d   : > { %7115 = vmatprep.mubr.bf16.mxu1 %v2585_v50  ;;  %v2597_v60 = vrot.slane %v2595_v41, 3  ;;  %v2600_v62 = vrot.slane %v2598_v47, 4  ;;  %v1316_v5 = vrot.slane %v1237_v46, 4  ;;  %v1317_v10 = vrot.slane %v8220_v55, 4  ;;  %v889_v41 = vld [vmem:[#allocation2 + $0x20] sm:$0xf8] }
 0x16e   : > { %v5943_v2 = vadd.f32 %v5942_v32, %v5806_v52  ;;  %v5981_v3 = vmul.f32 %v5806_v52, %v5806_v52  ;;  %v5982_v4 = vmul.f32 %v5807_v53, %v5807_v53  ;;  %v2593_v6 = vor.u32 %v2592_v59, %v2589_v57  ;;  %v7732_v32 = vld [vmem:[#allocation2 + $0x8] sm:$0xf]  ;;  %v7733_v50 = vld [vmem:[#allocation2 + $0x18] sm:$0xf] }
 0x16f   : > { %v2601_v8 = vor.u32 %v2600_v62, %v2597_v60  ;;  %v2604_v11 = vshrl.u32 %v2361_v56, 16  ;;  %v2607_v13 = vshll.u32 %v2361_v56, 16  ;;  %v2612_v48 = vshrl.u32 %v8222_v1, 16 }
 0x170   : > { %v8225_v44 = vadd.f32 %v5943_v2, %v5807_v53  ;;  %v6012_v12 = vadd.f32 %v6011_v40, %v5981_v3  ;;  %v1318_v15 = vsel %vm1270_vm2, %v1316_v5, %v1317_v10  ;;  %v2615_v17 = vshll.u32 %v8222_v1, 16  ;;  %v7734_v5 = vld [vmem:[#allocation2 + $0x28] sm:$0xf] }
 0x171   : > { %v2602_v14 = vsel %vm917_vm3, %v2593_v6, %v2601_v8  ;;  %v2606_v16 = vrot.slane %v2604_v11, 3  ;;  %6976 = vmatmul.mubr.bf16.gmra.mrb[92].mxu0 %v1318_v15  ;;  %v2609_v20 = vrot.slane %v2607_v13, 4  ;;  %v2614_v22 = vrot.slane %v2612_v48, 3  ;;  %v2363_v59 = vld [vmem:[#allocation2 + $0x100] sm:$0xf8]  ;;  %v7697_v13 = vld [vmem:[%s8977_s3 + $0x88] sm:$0xff]  }
 0x172   : > { %8984 = vst [vmem:[#allocation3_spill] sm:$0xff] %v8225_v44  ;;  %v8231_v18 = vadd.f32 %v6012_v12, %v5982_v4  ;;  %7116 = vmatmul.mubr.bf16.gmra.mrb[24].mxu1 %v2602_v14  ;;  %v2617_v25 = vrot.slane %v2615_v17, 4  ;;  %v921_v27 = vrot.slane %v919_v30, 3  ;;  %v924_v28 = vrot.slane %v922_v58, 4  ;;  %v8239_v8 = vld [vmem:[#allocation2 + $0x108] sm:$0xf] }
 0x173   : > { %v927_v33 = vshrl.u32 %v7732_v32, 16  ;;  %v2610_v34 = vor.u32 %v2609_v20, %v2606_v16  ;;  %v930_v37 = vshll.u32 %v7732_v32, 16  ;;  %v936_v35 = vshrl.u32 %v887_v23, 16  ;;  %v8241_v12 = vld [vmem:[#allocation2 + $0x10] sm:$0xf0] }
 0x174   : > { %8985 = vst [vmem:[#allocation4_spill] sm:$0xff] %v8231_v18  ;;  %v2618_v49 = vor.u32 %v2617_v25, %v2614_v22  ;;  %v925_v39 = vor.u32 %v924_v28, %v921_v27  ;;  %v939_v43 = vshll.u32 %v887_v23, 16  ;;  %v944_v52 = vshrl.u32 %v7733_v50, 16  ;;  %v891_v16 = vld [vmem:[#allocation2 + $0x30] sm:$0xf8] }
 0x175   : > { %v929_v38 = vrot.slane %v927_v33, 3  ;;  %v932_v40 = vrot.slane %v930_v37, 4  ;;  %v938_v46 = vrot.slane %v936_v35, 3  ;;  %v947_v30 = vshll.u32 %v7733_v50, 16  ;;  %v7735_v32 = vld [vmem:[#allocation2 + $0x18] sm:$0xf] }
 0x176   : > { %v2619_v47 = vsel %vm917_vm3, %v2610_v34, %v2618_v49  ;;  %v941_v58 = vrot.slane %v939_v43, 4  ;;  %v946_v53 = vrot.slane %v944_v52, 3  ;;  %v953_v56 = vshrl.u32 %v889_v41, 16  ;;  %v893_v35 = vld [vmem:[#allocation2 + $0x40] sm:$0xf8] }
 0x177   : > { %7119 = vmatprep.mubr.bf16.mxu1 %v2619_v47  ;;  %v933_v19 = vor.u32 %v932_v40, %v929_v38  ;;  %v949_v54 = vrot.slane %v947_v30, 4  ;;  %v956_v57 = vshll.u32 %v889_v41, 16  ;;  %v961_v6 = vshrl.u32 %v7734_v5, 16  ;;  %v7736_v47 = vld [vmem:[#allocation2 + $0x38] sm:$0xf] }
 0x178   : > { %v942_v62 = vor.u32 %v941_v58, %v938_v46  ;;  %v955_v3 = vrot.slane %v953_v56, 3  ;;  %v964_v10 = vshll.u32 %v7734_v5, 16  ;;  %v2621_v11 = vshrl.u32 %v2363_v59, 16  ;;  %v7700_v5 = vld [vmem:[%s8977_s3 + $0x98] sm:$0xff]  }
 0x179   : > { %v934_v60 = vsel %vm917_vm3, %v925_v39, %v933_v19  ;;  %v950_v2 = vor.u32 %v949_v54, %v946_v53  ;;  %v958_v4 = vrot.slane %v956_v57, 4  ;;  %v963_v14 = vrot.slane %v961_v6, 3  ;;  %v7698_v39 = vld [vmem:[%s8977_s3 + $0x90] sm:$0xff]   ;;  %v8256_v19 = vld [vmem:[#allocation2 + $0x20] sm:$0xf0] }
 0x17a   : > { %6995 = vmatprep.mubr.bf16.mxu0 %v934_v60  ;;  %v2624_v15 = vshll.u32 %v2363_v59, 16  ;;  %v966_v20 = vrot.slane %v964_v10, 4  ;;  %v2623_v22 = vrot.slane %v2621_v11, 3  ;;  %v2629_v23 = vshrl.u32 %v8239_v8, 16  ;;  %v8258_v57 = vld [vmem:[#allocation2 + $0x30] sm:$0xf0] }
 0x17b   : > { %v951_v48 = vsel %vm917_vm3, %v942_v62, %v950_v2  ;;  %v959_v17 = vor.u32 %v958_v4, %v955_v3  ;;  %v2632_v27 = vshll.u32 %v8239_v8, 16  ;;  %v2959_v28 = vrot.slane %v8241_v12, 4  ;;  %v7737_v62 = vld [vmem:[#allocation2 + $0x48] sm:$0xf]  ;;  %v895_v4 = vld [vmem:[#allocation2 + $0x50] sm:$0xf8] }
 0x17c   : > { %6996 = vmatmul.mubr.bf16.vlgmr.msra.gmra.mrb[64].mxu0 %v951_v48  ;;  %v2626_v25 = vrot.slane %v2624_v15, 4  ;;  %v2960_v33 = vrot.slane %v7735_v32, 4  ;;  %v967_v34 = vor.u32 %v966_v20, %v963_v14  ;;  %v2631_v37 = vrot.slane %v2629_v23, 3  ;;  %v7739_v23 = vld [vmem:[#allocation2 + $0x38] sm:$0xf] }
 0x17d   : > { %7028 = vmatpush3.bf16.msra.mxu0 %v8098_v63  ;;  %v970_v49 = vshrl.u32 %v891_v16, 16  ;;  %v973_v38 = vshll.u32 %v891_v16, 16  ;;  %v2634_v43 = vrot.slane %v2632_v27, 4  ;;  %v978_v46 = vshrl.u32 %v7736_v47, 16  ;;  %v7738_v16 = vld [vmem:[#allocation2 + $0x28] sm:$0xf] }
 0x17e   : > { %7029 = vmatprep.subr.bf16.mxu0 %v7697_v13  ;;  %v2627_v40 = vor.u32 %v2626_v25, %v2623_v22  ;;  %v2961_v41 = vsel %vm1270_vm2, %v2959_v28, %v2960_v33  ;;  %v968_v50 = vsel %vm917_vm3, %v959_v17, %v967_v34  ;;  %v981_v30 = vshll.u32 %v7736_v47, 16  ;;  %v897_v28 = vld [vmem:[#allocation2 + $0x60] sm:$0xf8] }
 0x17f   : > { %v972_v52 = vrot.slane %v970_v49, 3  ;;  %v975_v63 = vrot.slane %v973_v38, 4  ;;  %6999 = vmatprep.mubr.bf16.mxu0 %v968_v50  ;;  %v2635_v58 = vor.u32 %v2634_v43, %v2631_v37  ;;  %v980_v53 = vrot.slane %v978_v46, 3  ;;  %v7701_v49 = vld [vmem:[%s8977_s3 + $0xa0] sm:$0xff]  }
 0x180   : > { %v987_v54 = vshrl.u32 %v893_v35, 16  ;;  %v990_v56 = vshll.u32 %v893_v35, 16  ;;  %v983_v60 = vrot.slane %v981_v30, 4  ;;  %v995_v2 = vshrl.u32 %v7737_v62, 16  ;;  %v8272_v47 = vld [vmem:[#allocation2 + $0x40] sm:$0xf0] }
 0x181   : > { %7030 = vmatpush3.bf16.msra.mxu0 %v7697_v13  ;;  %v976_v59 = vor.u32 %v975_v63, %v972_v52  ;;  %v998_v3 = vshll.u32 %v7737_v62, 16  ;;  %v2636_v6 = vsel %vm917_vm3, %v2627_v40, %v2635_v58  ;;  %v2962_v48 = vrot.slane %v8256_v19, 4  ;;  %v7740_v40 = vld [vmem:[#allocation2 + $0x58] sm:$0xf]  ;;  %v8275_v63 = vld [vmem:[#allocation2 + $0x50] sm:$0xf0] }
 0x182   : > { %7031 = vmatprep.subr.bf16.mxu0 %v7698_v39  ;;  %v989_v10 = vrot.slane %v987_v54, 3  ;;  %v992_v11 = vrot.slane %v990_v56, 4  ;;  %7120 = vmatmul.mubr.bf16.gmra.mrb[28].mxu1 %v2636_v6  ;;  %v984_v14 = vor.u32 %v983_v60, %v980_v53  ;;  %v997_v13 = vrot.slane %v995_v2, 3  ;;  %v7741_v53 = vld [vmem:[#allocation2 + $0x68] sm:$0xf] }
 0x183   : > { %v1000_v15 = vrot.slane %v998_v3, 4  ;;  %v2963_v17 = vrot.slane %v7738_v16, 4  ;;  %7139 = vmatprep.mubr.bf16.mxu1 %v2961_v41  ;;  %v2965_v22 = vrot.slane %v8258_v57, 4  ;;  %v2966_v25 = vrot.slane %v7739_v23, 4  ;;  %v7693_v3 = vld [vmem:[%s8977_s3 + $0x148] sm:$0xff]   ;;  %v7744_v23 = vld [vmem:[%s8977_s3 + $0x140] sm:$0xff]  }
 0x184   : > { %v993_v20 = vor.u32 %v992_v11, %v989_v10  ;;  %v1004_v27 = vshrl.u32 %v895_v4, 16  ;;  %v985_v32 = vsel %vm917_vm3, %v976_v59, %v984_v14  ;;  %v1007_v37 = vshll.u32 %v895_v4, 16  ;;  %v899_v59 = vld [vmem:[#allocation2 + $0x70] sm:$0xf8]  ;;  %v7743_v16 = vld [vmem:[#allocation2 + $0x58] sm:$0xf] }
 0x185   : > { %7032 = vmatpush3.bf16.msra.mxu0 %v7698_v39  ;;  %v1001_v33 = vor.u32 %v1000_v15, %v997_v13  ;;  %v2964_v34 = vsel %vm1270_vm2, %v2962_v48, %v2963_v17  ;;  %v2967_v38 = vsel %vm1270_vm2, %v2965_v22, %v2966_v25  ;;  %v1012_v43 = vshrl.u32 %v7740_v40, 16  ;;  %v7742_v48 = vld [vmem:[#allocation2 + $0x48] sm:$0xf]  ;;  %v901_v22 = vld [vmem:[#allocation2 + $0x80] sm:$0xf8] }
 0x186   : > { %7033 = vmatprep.subr.bf16.mxu0 %v7700_v5  ;;  %7000 = vmatmul.mubr.bf16.gmra.mrb[68].mxu0 %v985_v32  ;;  %v1006_v35 = vrot.slane %v1004_v27, 3  ;;  %v1015_v41 = vshll.u32 %v7740_v40, 16  ;;  %v1009_v46 = vrot.slane %v1007_v37, 4  ;;  %v1021_v50 = vshrl.u32 %v897_v28, 16  ;;  %v7703_v13 = vld [vmem:[%s8977_s3 + $0xa8] sm:$0xff]  }
 0x187   : > { %v1002_v39 = vsel %vm917_vm3, %v993_v20, %v1001_v33  ;;  %v1024_v52 = vshll.u32 %v897_v28, 16  ;;  %v1014_v30 = vrot.slane %v1012_v43, 3  ;;  %v1029_v54 = vshrl.u32 %v7741_v53, 16  ;;  %v7745_v37 = vld [vmem:[#allocation2 + $0x78] sm:$0xf]  ;;  %v7694_v43 = vld [vmem:[%s8977_s3 + $0x150] sm:$0xff]  }
 0x188   : > { %7003 = vmatprep.mubr.bf16.mxu0 %v1002_v39  ;;  %v1017_v58 = vrot.slane %v1015_v41, 4  ;;  %v1032_v56 = vshll.u32 %v7741_v53, 16  ;;  %v1010_v60 = vor.u32 %v1009_v46, %v1006_v35  ;;  %v1023_v62 = vrot.slane %v1021_v50, 3  ;;  %v8294_v41 = vld [vmem:[#allocation2 + $0x60] sm:$0xf0] }
 0x189   : > { %7034 = vmatpush3.bf16.msra.mxu0 %v7700_v5  ;;  %v1026_v2 = vrot.slane %v1024_v52, 4  ;;  %v2968_v4 = vrot.slane %v8272_v47, 4  ;;  %v1031_v10 = vrot.slane %v1029_v54, 3  ;;  %v2969_v14 = vrot.slane %v7742_v48, 4  ;;  %v8297_v52 = vld [vmem:[#allocation2 + $0x70] sm:$0xf0] }
 0x18a   : > { %7035 = vmatprep.subr.bf16.mxu0 %v7701_v49  ;;  %v1018_v6 = vor.u32 %v1017_v58, %v1014_v30  ;;  %v1034_v11 = vrot.slane %v1032_v56, 4  ;;  %7140 = vmatmul.mubr.bf16.vlgmr.msra.gmra.mrb[0].mxu1 %v2964_v34  ;;  %v2971_v15 = vrot.slane %v8275_v63, 4  ;;  %v2972_v17 = vrot.slane %v7743_v16, 4  ;;  %v7704_v30 = vld [vmem:[%s8977_s3 + $0xb0] sm:$0xff]  }
 0x18b   : > { %v1027_v5 = vor.u32 %v1026_v2, %v1023_v62  ;;  %v1038_v20 = vshrl.u32 %v899_v59, 16  ;;  %7172 = vmatpush3.bf16.msra.mxu1 %v7744_v23  ;;  %7143 = vmatprep.mubr.bf16.mxu1 %v2967_v38  ;;  %v2970_v28 = vsel %vm1270_vm2, %v2968_v4, %v2969_v14  ;;  %v1041_v32 = vshll.u32 %v899_v59, 16  ;;  %v903_v56 = vld [vmem:[#allocation2 + $0x90] sm:$0xf8]  ;;  %v7696_v14 = vld [vmem:[%s8977_s3 + $0x158] sm:$0xff]  }
 0x18c   : > { %v1019_v25 = vsel %vm917_vm3, %v1010_v60, %v1018_v6  ;;  %v1035_v27 = vor.u32 %v1034_v11, %v1031_v10  ;;  %7173 = vmatprep.subr.bf16.mxu1 %v7693_v3  ;;  %v2973_v33 = vsel %vm1270_vm2, %v2971_v15, %v2972_v17  ;;  %v1046_v35 = vshrl.u32 %v7745_v37, 16  ;;  %v7746_v11 = vld [vmem:[#allocation2 + $0x68] sm:$0xf]  ;;  %v905_v17 = vld [vmem:[#allocation2 + $0xa0] sm:$0xf8] }
 0x18d   : > { %v1040_v34 = vrot.slane %v1038_v20, 3  ;;  %v1049_v40 = vshll.u32 %v7745_v37, 16  ;;  %7036 = vmatpush3.bf16.msra.mxu0 %v7701_v49  ;;  %v1043_v39 = vrot.slane %v1041_v32, 4  ;;  %v1055_v46 = vshrl.u32 %v901_v22, 16  ;;  %v7706_v20 = vld [vmem:[%s8977_s3 + $0xb8] sm:$0xff]  }
 0x18e   : > { %7004 = vmatmul.mubr.bf16.gmra.mrb[72].mxu0 %v1019_v25  ;;  %v1036_v38 = vsel %vm917_vm3, %v1027_v5, %v1035_v27  ;;  %v1058_v50 = vshll.u32 %v901_v22, 16  ;;  %7037 = vmatprep.subr.bf16.mxu0 %v7703_v13  ;;  %v1048_v58 = vrot.slane %v1046_v35, 3  ;;  %v1063_v54 = vshrl.u32 %v8129_v42, 16 }
 0x18f   : > { %7007 = vmatprep.mubr.bf16.mxu0 %v1036_v38  ;;  %v1051_v53 = vrot.slane %v1049_v40, 4  ;;  %v1066_v49 = vshll.u32 %v8129_v42, 16  ;;  %7174 = vmatpush3.bf16.msra.mxu1 %v7693_v3  ;;  %v1044_v59 = vor.u32 %v1043_v39, %v1040_v34  ;;  %v1057_v60 = vrot.slane %v1055_v46, 3  ;;  %v7747_v3 = vld [vmem:[#allocation2 + $0x78] sm:$0xf] }
 0x190   : > { %v1060_v62 = vrot.slane %v1058_v50, 4  ;;  %v2974_v2 = vrot.slane %v8294_v41, 4  ;;  %v1065_v6 = vrot.slane %v1063_v54, 3  ;;  %7175 = vmatprep.subr.bf16.mxu1 %v7694_v43  ;;  %v2975_v48 = vrot.slane %v7746_v11, 4  ;;  %v8319_v40 = vld [vmem:[#allocation2 + $0x90] sm:$0xf0] }
 0x191   : > { %v1052_v4 = vor.u32 %v1051_v53, %v1048_v58  ;;  %v1068_v10 = vrot.slane %v1066_v49, 4  ;;  %7038 = vmatpush3.bf16.msra.mxu0 %v7703_v13  ;;  %v2977_v42 = vrot.slane %v8297_v52, 4  ;;  %v2978_v15 = vrot.slane %v7747_v3, 4  ;;  %v8314_v13 = vld [vmem:[#allocation2 + $0x80] sm:$0xf0] }
 0x192   : > { %v1061_v5 = vor.u32 %v1060_v62, %v1057_v60  ;;  %v1072_v16 = vshrl.u32 %v903_v56, 16  ;;  %7039 = vmatprep.subr.bf16.mxu0 %v7704_v30  ;;  %7144 = vmatmul.mubr.bf16.gmra.mrb[4].mxu1 %v2970_v28  ;;  %v2976_v25 = vsel %vm1270_vm2, %v2974_v2, %v2975_v48  ;;  %v1075_v27 = vshll.u32 %v903_v56, 16  ;;  %v907_v50 = vld [vmem:[#allocation2 + $0xb0] sm:$0xf8]  ;;  %v8330_v54 = vld [vmem:[%s8977_s3 + $0x200] sm:$0xff]  }
 0x193   : > { %v1053_v22 = vsel %vm917_vm3, %v1044_v59, %v1052_v4  ;;  %v1069_v23 = vor.u32 %v1068_v10, %v1065_v6  ;;  %7147 = vmatprep.mubr.bf16.mxu1 %v2973_v33  ;;  %7176 = vmatpush3.bf16.msra.mxu1 %v7694_v43  ;;  %v2979_v32 = vsel %vm1270_vm2, %v2977_v42, %v2978_v15  ;;  %v1080_v37 = vshrl.u32 %v8140_v26, 16  ;;  %v7699_v33 = vld [vmem:[%s8977_s3 + $0x160] sm:$0xff]   ;;  %v7748_v4 = vld [vmem:[#allocation2 + $0x88] sm:$0xf] }
 0x194   : > { %v1074_v34 = vrot.slane %v1072_v16, 3  ;;  %v1083_v35 = vshll.u32 %v8140_v26, 16  ;;  %v1077_v38 = vrot.slane %v1075_v27, 4  ;;  %v1089_v39 = vshrl.u32 %v905_v17, 16  ;;  %7177 = vmatprep.subr.bf16.mxu1 %v7696_v14  ;;  %v7702_v42 = vld [vmem:[%s8977_s3 + $0x168] sm:$0xff]  }
 0x195   : > { %v1070_v28 = vsel %vm917_vm3, %v1061_v5, %v1069_v23  ;;  %v1092_v46 = vshll.u32 %v905_v17, 16  ;;  %7040 = vmatpush3.bf16.msra.mxu0 %v7704_v30  ;;  %v1082_v43 = vrot.slane %v1080_v37, 3  ;;  %v1097_v53 = vshrl.u32 %v8153_v9, 16  ;;  %v909_v5 = vld [vmem:[#allocation2 + $0xc0] sm:$0xf8] }
 0x196   : > { %7008 = vmatmul.mubr.bf16.gmra.mrb[76].mxu0 %v1053_v22  ;;  %v1085_v58 = vrot.slane %v1083_v35, 4  ;;  %v1100_v26 = vshll.u32 %v8153_v9, 16  ;;  %7041 = vmatprep.subr.bf16.mxu0 %v7706_v20  ;;  %v1078_v49 = vor.u32 %v1077_v38, %v1074_v34  ;;  %v1091_v56 = vrot.slane %v1089_v39, 3  ;;  %v8344_v27 = vld [vmem:[#allocation2 + $0xa0] sm:$0xf0] }
 0x197   : > { %7011 = vmatprep.mubr.bf16.mxu0 %v1070_v28  ;;  %v1094_v59 = vrot.slane %v1092_v46, 4  ;;  %v2980_v60 = vrot.slane %v8314_v13, 4  ;;  %v1099_v62 = vrot.slane %v1097_v53, 3  ;;  %v2981_v6 = vrot.slane %v7748_v4, 4  ;;  %7178 = vmatpush3.bf16.msra.mxu1 %v7696_v14  ;;  %v8347_v28 = vld [vmem:[#allocation2 + $0xb0] sm:$0xf0] }
 0x198   : > { %v1086_v30 = vor.u32 %v1085_v58, %v1082_v43  ;;  %v1102_v2 = vrot.slane %v1100_v26, 4  ;;  %v2983_v9 = vrot.slane %v8319_v40, 4  ;;  %v2984_v11 = vrot.slane %v8144_v51, 4  ;;  %7179 = vmatprep.subr.bf16.mxu1 %v7699_v33 }
 0x199   : > { %v1095_v10 = vor.u32 %v1094_v59, %v1091_v56  ;;  %v1106_v48 = vshrl.u32 %v907_v50, 16  ;;  %7042 = vmatpush3.bf16.msra.mxu0 %v7706_v20  ;;  %v2982_v16 = vsel %vm1270_vm2, %v2980_v60, %v2981_v6  ;;  %v1109_v17 = vshll.u32 %v907_v50, 16  ;;  %v911_v50 = vld [vmem:[#allocation2 + $0xd0] sm:$0xf8] }
 0x19a   : > { %v1087_v3 = vsel %vm917_vm3, %v1078_v49, %v1086_v30  ;;  %v1103_v15 = vor.u32 %v1102_v2, %v1099_v62  ;;  %7315 = vmatprep.subr.bf16.mxu0 %v8330_v54  ;;  %7148 = vmatmul.mubr.bf16.gmra.mrb[8].mxu1 %v2976_v25  ;;  %v2985_v14 = vsel %vm1270_vm2, %v2983_v9, %v2984_v11  ;;  %v1114_v22 = vshrl.u32 %v8168_v61, 16  ;;  %v7705_v25 = vld [vmem:[%s8977_s3 + $0x170] sm:$0xff]   ;;  %v913_v62 = vld [vmem:[#allocation2 + $0xe0] sm:$0xf8]  ;;  %v7707_v9 = vld [vmem:[%s8977_s3 + $0x178] sm:$0xff]  }
 0x19b   : > { %v1108_v51 = vrot.slane %v1106_v48, 3  ;;  %v1117_v23 = vshll.u32 %v8168_v61, 16  ;;  %7151 = vmatprep.mubr.bf16.mxu1 %v2979_v32  ;;  %v1111_v34 = vrot.slane %v1109_v17, 4  ;;  %v1123_v37 = vshrl.u32 %v909_v5, 16  ;;  %7180 = vmatpush3.bf16.msra.mxu1 %v7699_v33 }
 0x19c   : > { %v1104_v20 = vsel %vm917_vm3, %v1095_v10, %v1103_v15  ;;  %v1126_v35 = vshll.u32 %v909_v5, 16  ;;  %v1116_v38 = vrot.slane %v1114_v22, 3  ;;  %v1131_v46 = vshrl.u32 %v8182_v45, 16  ;;  %7181 = vmatprep.subr.bf16.mxu1 %v7702_v42  ;;  %v8366_v5 = vld [vmem:[#allocation2 + $0xc0] sm:$0xf0] }
 0x19d   : > { %v1119_v39 = vrot.slane %v1117_v23, 4  ;;  %v1134_v61 = vshll.u32 %v8182_v45, 16  ;;  %v1112_v32 = vor.u32 %v1111_v34, %v1108_v51  ;;  %v1125_v43 = vrot.slane %v1123_v37, 3  ;;  %v8369_v51 = vld [vmem:[#allocation2 + $0xd0] sm:$0xf0] }
 0x19e   : > { %7012 = vmatmul.mubr.bf16.gmra.mrb[80].mxu0 %v1087_v3  ;;  %v1128_v58 = vrot.slane %v1126_v35, 4  ;;  %v2986_v33 = vrot.slane %v8344_v27, 4  ;;  %v1133_v26 = vrot.slane %v1131_v46, 3  ;;  %v2987_v56 = vrot.slane %v8160_v36, 4  ;;  %v915_v37 = vld [vmem:[#allocation2 + $0xf0] sm:$0xf8] }
 0x19f   : > { %7015 = vmatprep.mubr.bf16.mxu0 %v1104_v20  ;;  %v1120_v53 = vor.u32 %v1119_v39, %v1116_v38  ;;  %v1136_v49 = vrot.slane %v1134_v61, 4  ;;  %v2989_v60 = vrot.slane %v8347_v28, 4  ;;  %v2990_v30 = vrot.slane %v8176_v24, 4  ;;  %7182 = vmatpush3.bf16.msra.mxu1 %v7702_v42  ;;  %v8377_v39 = vld [vmem:[%s8977_s3 + $0x180] sm:$0xff]  }
 0x1a0   : > { %v1129_v59 = vor.u32 %v1128_v58, %v1125_v43  ;;  %v1140_v45 = vshrl.u32 %v911_v50, 16  ;;  %v2988_v6 = vsel %vm1270_vm2, %v2986_v33, %v2987_v56  ;;  %v1143_v10 = vshll.u32 %v911_v50, 16  ;;  %7183 = vmatprep.subr.bf16.mxu1 %v7705_v25  ;;  %v8382_v58 = vld [vmem:[#allocation2 + $0xe0] sm:$0xf0]  ;;  %v8386_v56 = vld [vmem:[#allocation2 + $0xf0] sm:$0xf0] }
 0x1a1   : > { %v1121_v2 = vsel %vm917_vm3, %v1112_v32, %v1120_v53  ;;  %v1137_v4 = vor.u32 %v1136_v49, %v1133_v26  ;;  %v2991_v36 = vsel %vm1270_vm2, %v2989_v60, %v2990_v30  ;;  %v1148_v48 = vshrl.u32 %v8195_v29, 16 }
 0x1a2   : > { %v1142_v11 = vrot.slane %v1140_v45, 3  ;;  %v1151_v24 = vshll.u32 %v8195_v29, 16  ;;  %7152 = vmatmul.mubr.bf16.gmra.mrb[12].mxu1 %v2982_v16  ;;  %v1145_v3 = vrot.slane %v1143_v10, 4  ;;  %v1157_v15 = vshrl.u32 %v913_v62, 16 }
 0x1a3   : > { %v1138_v42 = vsel %vm917_vm3, %v1129_v59, %v1137_v4  ;;  %v1160_v17 = vshll.u32 %v913_v62, 16  ;;  %7155 = vmatprep.mubr.bf16.mxu1 %v2985_v14  ;;  %v1150_v22 = vrot.slane %v1148_v48, 3  ;;  %v1165_v20 = vshrl.u32 %v8210_v21, 16  ;;  %7184 = vmatpush3.bf16.msra.mxu1 %v7705_v25  ;;  %v1770_v4 = vld [vmem:[#allocation2 + $0x8] sm:$0x1f] }
 0x1a4   : > { %v1153_v23 = vrot.slane %v1151_v24, 4  ;;  %v1168_v34 = vshll.u32 %v8210_v21, 16  ;;  %v1146_v29 = vor.u32 %v1145_v3, %v1142_v11  ;;  %v1159_v35 = vrot.slane %v1157_v15, 3  ;;  %7185 = vmatprep.subr.bf16.mxu1 %v7707_v9  ;;  %v1771_v15 = vld [vmem:[#allocation2 + $0x18] sm:$0x1f] }
 0x1a5   : > { %v1162_v38 = vrot.slane %v1160_v17, 4  ;;  %v2992_v16 = vrot.slane %v8366_v5, 4  ;;  %v1167_v46 = vrot.slane %v1165_v20, 3  ;;  %v2993_v50 = vrot.slane %v8187_v7, 4 }
 0x1a6   : > { %7016 = vmatmul.mubr.bf16.gmra.mrb[84].mxu0 %v1121_v2  ;;  %v1154_v14 = vor.u32 %v1153_v23, %v1150_v22  ;;  %v1170_v61 = vrot.slane %v1168_v34, 4  ;;  %v2995_v25 = vrot.slane %v8369_v51, 4  ;;  %v2996_v32 = vrot.slane %v8203_v0, 4  ;;  %v7750_v34 = vld [vmem:[#allocation2 + $0x10] sm:$0xf0] }
 0x1a7   : > { %7019 = vmatprep.mubr.bf16.mxu0 %v1138_v42  ;;  %v1163_v21 = vor.u32 %v1162_v38, %v1159_v35  ;;  %v1174_v43 = vshrl.u32 %v915_v37, 16  ;;  %v2994_v26 = vsel %vm1270_vm2, %v2992_v16, %v2993_v50  ;;  %v1177_v49 = vshll.u32 %v915_v37, 16  ;;  %7186 = vmatpush3.bf16.msra.mxu1 %v7707_v9  ;;  %v7749_v42 = vld [vmem:[#allocation2] sm:$0xf0]  ;;  %v1772_v16 = vld [vmem:[#allocation2 + $0x28] sm:$0x1f] }
 0x1a8   : > { %v1155_v33 = vsel %vm917_vm3, %v1146_v29, %v1154_v14  ;;  %v1171_v53 = vor.u32 %v1170_v61, %v1167_v46  ;;  %v2997_v7 = vsel %vm1270_vm2, %v2995_v25, %v2996_v32  ;;  %v1182_v60 = vshrl.u32 %v8220_v55, 16  ;;  %7219 = vmatprep.subr.bf16.mxu1 %v8377_v39 }
 0x1a9   : > { %v1176_v59 = vrot.slane %v1174_v43, 3  ;;  %v1185_v30 = vshll.u32 %v8220_v55, 16  ;;  %v1179_v45 = vrot.slane %v1177_v49, 4  ;;  %v2998_v62 = vrot.slane %v8382_v58, 4  ;;  %v7751_v43 = vld [vmem:[#allocation2 + $0x20] sm:$0xf0] }
 0x1aa   : > { %v1172_v0 = vsel %vm917_vm3, %v1163_v21, %v1171_v53  ;;  %v2999_v2 = vrot.slane %v8212_v31, 4  ;;  %7156 = vmatmul.mubr.bf16.gmra.mrb[16].mxu1 %v2988_v6  ;;  %v1184_v10 = vrot.slane %v1182_v60, 3  ;;  %v3001_v11 = vrot.slane %v8386_v56, 4  ;;  %v8404_v21 = vld [vmem:[#allocation2 + $0x100] sm:$0xf0] }
 0x1ab   : > { %v1187_v9 = vrot.slane %v1185_v30, 4  ;;  %v3002_v48 = vrot.slane %v8222_v1, 4  ;;  %7159 = vmatprep.mubr.bf16.mxu1 %v2991_v36  ;;  %v1180_v24 = vor.u32 %v1179_v45, %v1176_v59  ;;  %v1788_v3 = vshrl.u32 %v7749_v42, 16 }
 0x1ac   : > { %v8398_v55 = vsel %vm1270_vm2, %v2998_v62, %v2999_v2  ;;  %v1791_v6 = vshll.u32 %v7749_v42, 16  ;;  %v1796_v22 = vshrl.u32 %v1770_v4, 16  ;;  %v1799_v20 = vshll.u32 %v1770_v4, 16  ;;  %v3281_v4 = vld [vmem:[#allocation2 + $0x18] sm:$0x1f] }
 0x1ad   : > { %v1188_v17 = vor.u32 %v1187_v9, %v1184_v10  ;;  %v8401_v31 = vsel %vm1270_vm2, %v3001_v11, %v3002_v48  ;;  %v1790_v23 = vrot.slane %v1788_v3, 4  ;;  %v1805_v1 = vshrl.u32 %v7750_v34, 16 }
 0x1ae   : > { %7020 = vmatmul.mubr.bf16.gmra.mrb[88].mxu0 %v1155_v33  ;;  %v1808_v36 = vshll.u32 %v7750_v34, 16  ;;  %v1793_v29 = vrot.slane %v1791_v6, 5  ;;  %v1798_v35 = vrot.slane %v1796_v22, 4  ;;  %v1813_v38 = vshrl.u32 %v1771_v15, 16 }
 0x1af   : > { %7023 = vmatprep.mubr.bf16.mxu0 %v1172_v0  ;;  %v1189_v37 = vsel %vm917_vm3, %v1180_v24, %v1188_v17  ;;  %v1801_v14 = vrot.slane %v1799_v20, 5  ;;  %v1807_v46 = vrot.slane %v1805_v1, 4  ;;  %v1816_v50 = vshll.u32 %v1771_v15, 16 }
 0x1b0   : > { %v1810_v61 = vrot.slane %v1808_v36, 5  ;;  %v1794_v25 = vor.u32 %v1793_v29, %v1790_v23  ;;  %v1815_v32 = vrot.slane %v1813_v38, 4  ;;  %v1822_v33 = vshrl.u32 %v7751_v43, 16 }
 0x1b1   : > { %v1825_v53 = vshll.u32 %v7751_v43, 16  ;;  %v1802_v49 = vor.u32 %v1801_v14, %v1798_v35  ;;  %v1818_v60 = vrot.slane %v1816_v50, 5  ;;  %v1830_v30 = vshrl.u32 %v1772_v16, 16 }
 0x1b2   : > { %v1811_v59 = vor.u32 %v1810_v61, %v1807_v46  ;;  %7160 = vmatmul.mubr.bf16.gmra.mrb[20].mxu1 %v2994_v26  ;;  %v1824_v0 = vrot.slane %v1822_v33, 4  ;;  %v1833_v62 = vshll.u32 %v1772_v16, 16  ;;  %v3004_v2 = vrot.slane %v8404_v21, 4  ;;  %v1773_v26 = vld [vmem:[#allocation2 + $0x38] sm:$0x1f] }
 0x1b3   : > { %v1827_v45 = vrot.slane %v1825_v53, 5  ;;  %7163 = vmatprep.mubr.bf16.mxu1 %v2997_v7  ;;  %v1803_v10 = vsel %vm1786_vm4, %v1794_v25, %v1802_v49  ;;  %v1819_v9 = vor.u32 %v1818_v60, %v1815_v32  ;;  %v1832_v11 = vrot.slane %v1830_v30, 4  ;;  %v7753_v32 = vld [vmem:[#allocation2 + $0x40] sm:$0xf0]  ;;  %v3282_v60 = vld [vmem:[#allocation2 + $0x28] sm:$0x1f] }
 0x1b4   : > { %v3005_v48 = vrot.slane %v8239_v8, 4  ;;  %v1835_v42 = vrot.slane %v1833_v62, 5  ;;  %v3298_v3 = vshrl.u32 %v8241_v12, 16  ;;  %v3301_v15 = vshll.u32 %v8241_v12, 16  ;;  %v7752_v8 = vld [vmem:[#allocation2 + $0x30] sm:$0xf0] }
 0x1b5   : > { %v1828_v24 = vor.u32 %v1827_v45, %v1824_v0  ;;  %v1820_v17 = vsel %vm1786_vm4, %v1811_v59, %v1819_v9  ;;  %v3306_v7 = vshrl.u32 %v3281_v4, 16  ;;  %v3309_v22 = vshll.u32 %v3281_v4, 16  ;;  %v1774_v12 = vld [vmem:[#allocation2 + $0x48] sm:$0x1f] }
 0x1b6   : > { %7024 = vmatmul.mubr.bf16.gmra.mrb[92].mxu0 %v1189_v37  ;;  %v8413_v6 = vsel %vm1270_vm2, %v3004_v2, %v3005_v48  ;;  %v1836_v23 = vor.u32 %v1835_v42, %v1832_v11  ;;  %v3300_v20 = vrot.slane %v3298_v3, 4  ;;  %v3303_v34 = vrot.slane %v3301_v15, 5  ;;  %v7713_v2 = vld [vmem:[%s8977_s3 + $0x208] sm:$0xff]   ;;  %v3283_v42 = vld [vmem:[#allocation2 + $0x38] sm:$0x1f] }
 0x1b7   : > { %7043 = vmatprep.mubr.bf16.mxu0 %v1803_v10  ;;  %v1839_v1 = vshrl.u32 %v7752_v8, 16  ;;  %v3308_v36 = vrot.slane %v3306_v7, 4  ;;  %v3311_v29 = vrot.slane %v3309_v22, 5  ;;  %v1842_v35 = vshll.u32 %v7752_v8, 16  ;;  %v1775_v22 = vld [vmem:[#allocation2 + $0x58] sm:$0x1f] }
 0x1b8   : > { %v1847_v38 = vshrl.u32 %v1773_v26, 16  ;;  %v1837_v37 = vsel %vm1786_vm4, %v1828_v24, %v1836_v23  ;;  %v3304_v16 = vor.u32 %v3303_v34, %v3300_v20  ;;  %v1850_v46 = vshll.u32 %v1773_v26, 16 }
 0x1b9   : > { %v1841_v14 = vrot.slane %v1839_v1, 4  ;;  %v3312_v61 = vor.u32 %v3311_v29, %v3308_v36  ;;  %v1844_v50 = vrot.slane %v1842_v35, 5  ;;  %v1856_v43 = vshrl.u32 %v7753_v32, 16 }
 0x1ba   : > { %v1849_v25 = vrot.slane %v1847_v38, 4  ;;  %7164 = vmatmul.mubr.bf16.gmra.mrb[24].mxu1 %v8398_v55  ;;  %v1852_v33 = vrot.slane %v1850_v46, 5  ;;  %v1859_v53 = vshll.u32 %v7753_v32, 16  ;;  %v1864_v49 = vshrl.u32 %v1774_v12, 16 }
 0x1bb   : > { %v1867_v59 = vshll.u32 %v1774_v12, 16  ;;  %7167 = vmatprep.mubr.bf16.mxu1 %v8401_v31  ;;  %v3313_v30 = vsel %vm1786_vm4, %v3304_v16, %v3312_v61  ;;  %v1845_v0 = vor.u32 %v1844_v50, %v1841_v14  ;;  %v1858_v45 = vrot.slane %v1856_v43, 4  ;;  %v1776_v61 = vld [vmem:[#allocation2 + $0x68] sm:$0x1f] }
 0x1bc   : > { %v3315_v62 = vshrl.u32 %v8256_v19, 16  ;;  %v1853_v4 = vor.u32 %v1852_v33, %v1849_v25  ;;  %v1861_v10 = vrot.slane %v1859_v53, 5  ;;  %v1866_v55 = vrot.slane %v1864_v49, 4  ;;  %v7716_v33 = vld [vmem:[%s8977_s3 + $0x218] sm:$0xff]  }
 0x1bd   : > { %v1869_v9 = vrot.slane %v1867_v59, 5  ;;  %v3318_v48 = vshll.u32 %v8256_v19, 16  ;;  %v3323_v24 = vshrl.u32 %v3282_v60, 16  ;;  %v3326_v31 = vshll.u32 %v3282_v60, 16  ;;  %v7714_v19 = vld [vmem:[%s8977_s3 + $0x210] sm:$0xff]  }
 0x1be   : > { %7044 = vmatmul.mubr.bf16.vlgmr.msra.gmra.mrb[64].mxu0 %v1820_v17  ;;  %v3317_v11 = vrot.slane %v3315_v62, 4  ;;  %v1854_v3 = vsel %vm1786_vm4, %v1845_v0, %v1853_v4  ;;  %v1862_v15 = vor.u32 %v1861_v10, %v1858_v45  ;;  %v3332_v7 = vshrl.u32 %v8258_v57, 16  ;;  %v7755_v59 = vld [vmem:[#allocation2 + $0x60] sm:$0xf0] }
 0x1bf   : > { %7047 = vmatprep.mubr.bf16.mxu0 %v1837_v37  ;;  %v1870_v26 = vor.u32 %v1869_v9, %v1866_v55  ;;  %7316 = vmatpush3.bf16.msra.mxu0 %v8330_v54  ;;  %v3320_v23 = vrot.slane %v3318_v48, 5  ;;  %v3325_v20 = vrot.slane %v3323_v24, 4  ;;  %v3328_v34 = vrot.slane %v3326_v31, 5  ;;  %v7754_v37 = vld [vmem:[#allocation2 + $0x50] sm:$0xf0] }
 0x1c0   : > { %v3335_v17 = vshll.u32 %v8258_v57, 16  ;;  %7317 = vmatprep.subr.bf16.mxu0 %v7713_v2  ;;  %v3334_v1 = vrot.slane %v3332_v7, 4  ;;  %v3340_v36 = vshrl.u32 %v3283_v42, 16  ;;  %v3343_v29 = vshll.u32 %v3283_v42, 16  ;;  %v3285_v42 = vld [vmem:[#allocation2 + $0x58] sm:$0x1f] }
 0x1c1   : > { %v1871_v8 = vsel %vm1786_vm4, %v1862_v15, %v1870_v26  ;;  %v3321_v35 = vor.u32 %v3320_v23, %v3317_v11  ;;  %v3329_v38 = vor.u32 %v3328_v34, %v3325_v20  ;;  %v1873_v54 = vshrl.u32 %v7754_v37, 16  ;;  %v7717_v23 = vld [vmem:[%s8977_s3 + $0x220] sm:$0xff]  }
 0x1c2   : > { %v3337_v12 = vrot.slane %v3335_v17, 5  ;;  %7168 = vmatmul.mubr.bf16.gmra.mrb[28].mxu1 %v8413_v6  ;;  %v3342_v16 = vrot.slane %v3340_v36, 4  ;;  %v3345_v14 = vrot.slane %v3343_v29, 5  ;;  %v1876_v57 = vshll.u32 %v7754_v37, 16 }
 0x1c3   : > { %v1881_v46 = vshrl.u32 %v1775_v22, 16  ;;  %7318 = vmatpush3.bf16.msra.mxu0 %v7713_v2  ;;  %7187 = vmatprep.mubr.bf16.mxu1 %v3313_v30  ;;  %v3330_v50 = vsel %vm1786_vm4, %v3321_v35, %v3329_v38  ;;  %v1875_v32 = vrot.slane %v1873_v54, 4  ;;  %v1884_v43 = vshll.u32 %v1775_v22, 16  ;;  %v3284_v2 = vld [vmem:[#allocation2 + $0x48] sm:$0x1f] }
 0x1c4   : > { %v3338_v25 = vor.u32 %v3337_v12, %v3334_v1  ;;  %7319 = vmatprep.subr.bf16.mxu0 %v7714_v19  ;;  %v3346_v53 = vor.u32 %v3345_v14, %v3342_v16  ;;  %v1878_v49 = vrot.slane %v1876_v57, 5  ;;  %v1890_v60 = vshrl.u32 %v7755_v59, 16  ;;  %v1777_v35 = vld [vmem:[#allocation2 + $0x78] sm:$0x1f]  ;;  %v7719_v54 = vld [vmem:[%s8977_s3 + $0x228] sm:$0xff]  }
 0x1c5   : > { %v1883_v6 = vrot.slane %v1881_v46, 4  ;;  %v1886_v0 = vrot.slane %v1884_v43, 5  ;;  %v1893_v45 = vshll.u32 %v7755_v59, 16  ;;  %v1898_v62 = vshrl.u32 %v1776_v61, 16  ;;  %v7756_v46 = vld [vmem:[#allocation2 + $0x70] sm:$0xf0] }
 0x1c6   : > { %7048 = vmatmul.mubr.bf16.gmra.mrb[68].mxu0 %v1854_v3  ;;  %v1901_v30 = vshll.u32 %v1776_v61, 16  ;;  %v3347_v4 = vsel %vm1786_vm4, %v3338_v25, %v3346_v53  ;;  %v1879_v10 = vor.u32 %v1878_v49, %v1875_v32  ;;  %v1892_v55 = vrot.slane %v1890_v60, 4  ;;  %v7709_v3 = vld [vmem:[%s8977_s3 + $0x188] sm:$0xff]  }
 0x1c7   : > { %7051 = vmatprep.mubr.bf16.mxu0 %v1871_v8  ;;  %v3349_v9 = vshrl.u32 %v8272_v47, 16  ;;  %7320 = vmatpush3.bf16.msra.mxu0 %v7714_v19  ;;  %v1887_v11 = vor.u32 %v1886_v0, %v1883_v6  ;;  %v1895_v48 = vrot.slane %v1893_v45, 5  ;;  %v1900_v24 = vrot.slane %v1898_v62, 4  ;;  %v1778_v43 = vld [vmem:[#allocation2 + $0x88] sm:$0x1f] }
 0x1c8   : > { %v1903_v31 = vrot.slane %v1901_v30, 5  ;;  %7321 = vmatprep.subr.bf16.mxu0 %v7716_v33  ;;  %v3352_v26 = vshll.u32 %v8272_v47, 16  ;;  %v3357_v7 = vshrl.u32 %v3284_v2, 16  ;;  %v3360_v22 = vshll.u32 %v3284_v2, 16  ;;  %v7757_v45 = vld [vmem:[#allocation2 + $0x80] sm:$0xf0] }
 0x1c9   : > { %v3351_v15 = vrot.slane %v3349_v9, 4  ;;  %v1888_v20 = vsel %vm1786_vm4, %v1879_v10, %v1887_v11  ;;  %v1896_v34 = vor.u32 %v1895_v48, %v1892_v55  ;;  %v3366_v19 = vshrl.u32 %v8275_v63, 16  ;;  %v3286_v30 = vld [vmem:[#allocation2 + $0x68] sm:$0x1f]  ;;  %v7712_v9 = vld [vmem:[%s8977_s3 + $0x198] sm:$0xff]   ;;  %v7720_v11 = vld [vmem:[%s8977_s3 + $0x230] sm:$0xff]  }
 0x1ca   : > { %v1904_v17 = vor.u32 %v1903_v31, %v1900_v24  ;;  %7188 = vmatmul.mubr.bf16.vlgmr.msra.gmra.mrb[0].mxu1 %v3330_v50  ;;  %v3354_v8 = vrot.slane %v3352_v26, 5  ;;  %v3359_v1 = vrot.slane %v3357_v7, 4  ;;  %v3362_v36 = vrot.slane %v3360_v22, 5 }
 0x1cb   : > { %v3369_v29 = vshll.u32 %v8275_v63, 16  ;;  %7322 = vmatpush3.bf16.msra.mxu0 %v7716_v33  ;;  %7220 = vmatpush3.bf16.msra.mxu1 %v8377_v39  ;;  %v3368_v38 = vrot.slane %v3366_v19, 4  ;;  %v3374_v12 = vshrl.u32 %v3285_v42, 16  ;;  %v3377_v37 = vshll.u32 %v3285_v42, 16  ;;  %v7710_v39 = vld [vmem:[%s8977_s3 + $0x190] sm:$0xff]  }
 0x1cc   : > { %7191 = vmatprep.mubr.bf16.mxu1 %v3347_v4  ;;  %v1905_v47 = vsel %vm1786_vm4, %v1896_v34, %v1904_v17  ;;  %7221 = vmatprep.subr.bf16.mxu1 %v7709_v3  ;;  %v3355_v16 = vor.u32 %v3354_v8, %v3351_v15  ;;  %v3363_v14 = vor.u32 %v3362_v36, %v3359_v1  ;;  %v1907_v63 = vshrl.u32 %v7756_v46, 16  ;;  %v3287_v17 = vld [vmem:[#allocation2 + $0x78] sm:$0x1f] }
 0x1cd   : > { %v3371_v57 = vrot.slane %v3369_v29, 5  ;;  %7323 = vmatprep.subr.bf16.mxu0 %v7717_v23  ;;  %v3376_v61 = vrot.slane %v3374_v12, 4  ;;  %v3379_v50 = vrot.slane %v3377_v37, 5  ;;  %v1910_v25 = vshll.u32 %v7756_v46, 16  ;;  %v7715_v29 = vld [vmem:[%s8977_s3 + $0x1a0] sm:$0xff]  }
 0x1ce   : > { %7052 = vmatmul.mubr.bf16.gmra.mrb[72].mxu0 %v1888_v20  ;;  %v1915_v32 = vshrl.u32 %v1777_v35, 16  ;;  %v3364_v33 = vsel %vm1786_vm4, %v3355_v16, %v3363_v14  ;;  %v1909_v49 = vrot.slane %v1907_v63, 4  ;;  %v1918_v6 = vshll.u32 %v1777_v35, 16  ;;  %v1779_v37 = vld [vmem:[#allocation2 + $0x98] sm:$0x1f] }
 0x1cf   : > { %7055 = vmatprep.mubr.bf16.mxu0 %v1905_v47  ;;  %v3372_v53 = vor.u32 %v3371_v57, %v3368_v38  ;;  %7324 = vmatpush3.bf16.msra.mxu0 %v7717_v23  ;;  %v3380_v59 = vor.u32 %v3379_v50, %v3376_v61  ;;  %v1912_v60 = vrot.slane %v1910_v25, 5  ;;  %v1924_v62 = vshrl.u32 %v7757_v45, 16  ;;  %v7758_v61 = vld [vmem:[#allocation2 + $0x90] sm:$0xf0]  ;;  %v1780_v25 = vld [vmem:[#allocation2 + $0xa8] sm:$0x1f] }
 0x1d0   : > { %7222 = vmatpush3.bf16.msra.mxu1 %v7709_v3  ;;  %v1917_v0 = vrot.slane %v1915_v32, 4  ;;  %7325 = vmatprep.subr.bf16.mxu0 %v7719_v54  ;;  %v1920_v2 = vrot.slane %v1918_v6, 5  ;;  %v1927_v4 = vshll.u32 %v7757_v45, 16  ;;  %v1932_v10 = vshrl.u32 %v1778_v43, 16 }
 0x1d1   : > { %v1935_v55 = vshll.u32 %v1778_v43, 16  ;;  %7223 = vmatprep.subr.bf16.mxu1 %v7710_v39  ;;  %v3381_v48 = vsel %vm1786_vm4, %v3372_v53, %v3380_v59  ;;  %v1913_v24 = vor.u32 %v1912_v60, %v1909_v49  ;;  %v1926_v31 = vrot.slane %v1924_v62, 4 }
 0x1d2   : > { %v3383_v42 = vshrl.u32 %v8294_v41, 16  ;;  %7192 = vmatmul.mubr.bf16.gmra.mrb[4].mxu1 %v3364_v33  ;;  %v1921_v3 = vor.u32 %v1920_v2, %v1917_v0  ;;  %v1929_v15 = vrot.slane %v1927_v4, 5  ;;  %v1934_v26 = vrot.slane %v1932_v10, 4 }
 0x1d3   : > { %v1937_v7 = vrot.slane %v1935_v55, 5  ;;  %7326 = vmatpush3.bf16.msra.mxu0 %v7719_v54  ;;  %7195 = vmatprep.mubr.bf16.mxu1 %v3381_v48  ;;  %v3386_v23 = vshll.u32 %v8294_v41, 16  ;;  %v3391_v20 = vshrl.u32 %v3286_v30, 16  ;;  %v3394_v34 = vshll.u32 %v3286_v30, 16  ;;  %v7722_v41 = vld [vmem:[%s8977_s3 + $0x238] sm:$0xff]  }
 0x1d4   : > { %v3385_v22 = vrot.slane %v3383_v42, 4  ;;  %7224 = vmatpush3.bf16.msra.mxu1 %v7710_v39  ;;  %v1922_v19 = vsel %vm1786_vm4, %v1913_v24, %v1921_v3  ;;  %v1930_v8 = vor.u32 %v1929_v15, %v1926_v31  ;;  %v3400_v36 = vshrl.u32 %v8297_v52, 16  ;;  %7327 = vmatprep.subr.bf16.mxu0 %v7720_v11  ;;  %v7759_v30 = vld [vmem:[#allocation2 + $0xa0] sm:$0xf0]  ;;  %v7721_v3 = vld [vmem:[%s8977_s3 + $0x1b0] sm:$0xff]  }
 0x1d5   : > { %v1938_v1 = vor.u32 %v1937_v7, %v1934_v26  ;;  %7225 = vmatprep.subr.bf16.mxu1 %v7712_v9  ;;  %v3388_v35 = vrot.slane %v3386_v23, 5  ;;  %v3393_v47 = vrot.slane %v3391_v20, 4  ;;  %v3396_v38 = vrot.slane %v3394_v34, 5 }
 0x1d6   : > { %7056 = vmatmul.mubr.bf16.gmra.mrb[76].mxu0 %v1922_v19  ;;  %v3403_v12 = vshll.u32 %v8297_v52, 16  ;;  %v3402_v16 = vrot.slane %v3400_v36, 4  ;;  %v3408_v14 = vshrl.u32 %v3287_v17, 16  ;;  %v3411_v57 = vshll.u32 %v3287_v17, 16  ;;  %v7718_v52 = vld [vmem:[%s8977_s3 + $0x1a8] sm:$0xff]  }
 0x1d7   : > { %v1939_v54 = vsel %vm1786_vm4, %v1930_v8, %v1938_v1  ;;  %7328 = vmatpush3.bf16.msra.mxu0 %v7720_v11  ;;  %v3389_v46 = vor.u32 %v3388_v35, %v3385_v22  ;;  %v3397_v63 = vor.u32 %v3396_v38, %v3393_v47  ;;  %v1941_v50 = vshrl.u32 %v7758_v61, 16  ;;  %v3288_v11 = vld [vmem:[#allocation2 + $0x88] sm:$0x1f]  ;;  %v3289_v19 = vld [vmem:[#allocation2 + $0x98] sm:$0x1f] }
 0x1d8   : > { %7059 = vmatprep.mubr.bf16.mxu0 %v1939_v54  ;;  %v3405_v39 = vrot.slane %v3403_v12, 5  ;;  %7226 = vmatpush3.bf16.msra.mxu1 %v7712_v9  ;;  %v3410_v32 = vrot.slane %v3408_v14, 4  ;;  %v3413_v43 = vrot.slane %v3411_v57, 5  ;;  %v1944_v33 = vshll.u32 %v7758_v61, 16 }
 0x1d9   : > { %v1949_v53 = vshrl.u32 %v1779_v37, 16  ;;  %7227 = vmatprep.subr.bf16.mxu1 %v7715_v29  ;;  %7329 = vmatprep.subr.bf16.mxu0 %v7722_v41  ;;  %v3398_v49 = vsel %vm1786_vm4, %v3389_v46, %v3397_v63  ;;  %v1943_v59 = vrot.slane %v1941_v50, 4  ;;  %v1952_v60 = vshll.u32 %v1779_v37, 16 }
 0x1da   : > { %v3406_v6 = vor.u32 %v3405_v39, %v3402_v16  ;;  %7196 = vmatmul.mubr.bf16.gmra.mrb[8].mxu1 %v3398_v49  ;;  %v3414_v0 = vor.u32 %v3413_v43, %v3410_v32  ;;  %v1946_v45 = vrot.slane %v1944_v33, 5  ;;  %v1958_v2 = vshrl.u32 %v7759_v30, 16  ;;  %v7760_v39 = vld [vmem:[#allocation2 + $0xb0] sm:$0xf0]  ;;  %v1782_v43 = vld [vmem:[#allocation2 + $0xc8] sm:$0x1f] }
 0x1db   : > { %v1951_v62 = vrot.slane %v1949_v53, 4  ;;  %7330 = vmatpush3.bf16.msra.mxu0 %v7722_v41  ;;  %v1954_v4 = vrot.slane %v1952_v60, 5  ;;  %v1961_v10 = vshll.u32 %v7759_v30, 16  ;;  %v1966_v55 = vshrl.u32 %v1780_v25, 16  ;;  %v1781_v41 = vld [vmem:[#allocation2 + $0xb8] sm:$0x1f] }
 0x1dc   : > { %v1969_v9 = vshll.u32 %v1780_v25, 16  ;;  %7228 = vmatpush3.bf16.msra.mxu1 %v7715_v29  ;;  %v3415_v48 = vsel %vm1786_vm4, %v3406_v6, %v3414_v0  ;;  %v1947_v24 = vor.u32 %v1946_v45, %v1943_v59  ;;  %v1960_v31 = vrot.slane %v1958_v2, 4  ;;  %v8498_v6 = vld [vmem:[%s8977_s3 + $0x1c0] sm:$0xff]  }
 0x1dd   : > { %v3417_v42 = vshrl.u32 %v8314_v13, 16  ;;  %7229 = vmatprep.subr.bf16.mxu1 %v7718_v52  ;;  %7199 = vmatprep.mubr.bf16.mxu1 %v3415_v48  ;;  %v1955_v15 = vor.u32 %v1954_v4, %v1951_v62  ;;  %v1963_v26 = vrot.slane %v1961_v10, 5  ;;  %v1968_v7 = vrot.slane %v1966_v55, 4  ;;  %v7761_v45 = vld [vmem:[#allocation2 + $0xc0] sm:$0xf0] }
 0x1de   : > { %v1971_v22 = vrot.slane %v1969_v9, 5  ;;  %v3420_v20 = vshll.u32 %v8314_v13, 16  ;;  %v3425_v34 = vshrl.u32 %v3288_v11, 16  ;;  %v3428_v17 = vshll.u32 %v3288_v11, 16  ;;  %v7723_v13 = vld [vmem:[%s8977_s3 + $0x1b8] sm:$0xff]  }
 0x1df   : > { %v3419_v23 = vrot.slane %v3417_v42, 4  ;;  %v1956_v8 = vsel %vm1786_vm4, %v1947_v24, %v1955_v15  ;;  %v1964_v1 = vor.u32 %v1963_v26, %v1960_v31  ;;  %v3434_v29 = vshrl.u32 %v8319_v40, 16  ;;  %v3290_v55 = vld [vmem:[#allocation2 + $0xa8] sm:$0x1f] }
 0x1e0   : > { %v1972_v36 = vor.u32 %v1971_v22, %v1968_v7  ;;  %7230 = vmatpush3.bf16.msra.mxu1 %v7718_v52  ;;  %7060 = vmatmul.mubr.bf16.gmra.mrb[80].mxu0 %v1956_v8  ;;  %v3422_v35 = vrot.slane %v3420_v20, 5  ;;  %v3427_v47 = vrot.slane %v3425_v34, 4  ;;  %v3430_v38 = vrot.slane %v3428_v17, 5  ;;  %v3291_v20 = vld [vmem:[#allocation2 + $0xb8] sm:$0x1f] }
 0x1e1   : > { %v3437_v12 = vshll.u32 %v8319_v40, 16  ;;  %7231 = vmatprep.subr.bf16.mxu1 %v7721_v3  ;;  %v3436_v54 = vrot.slane %v3434_v29, 4  ;;  %v3442_v16 = vshrl.u32 %v3289_v19, 16  ;;  %v3445_v14 = vshll.u32 %v3289_v19, 16 }
 0x1e2   : > { %v1973_v37 = vsel %vm1786_vm4, %v1964_v1, %v1972_v36  ;;  %v3423_v57 = vor.u32 %v3422_v35, %v3419_v23  ;;  %v3431_v46 = vor.u32 %v3430_v38, %v3427_v47  ;;  %v1975_v61 = vshrl.u32 %v7760_v39, 16  ;;  %v1783_v35 = vld [vmem:[#allocation2 + $0xd8] sm:$0x1f] }
 0x1e3   : > { %7063 = vmatprep.mubr.bf16.mxu0 %v1973_v37  ;;  %v3439_v63 = vrot.slane %v3437_v12, 5  ;;  %v3444_v50 = vrot.slane %v3442_v16, 4  ;;  %v3447_v25 = vrot.slane %v3445_v14, 5  ;;  %v1978_v32 = vshll.u32 %v7760_v39, 16  ;;  %v7762_v16 = vld [vmem:[#allocation2 + $0xd0] sm:$0xf0] }
 0x1e4   : > { %v1983_v40 = vshrl.u32 %v1781_v41, 16  ;;  %7232 = vmatpush3.bf16.msra.mxu1 %v7721_v3  ;;  %v3432_v33 = vsel %vm1786_vm4, %v3423_v57, %v3431_v46  ;;  %v1977_v52 = vrot.slane %v1975_v61, 4  ;;  %v1986_v49 = vshll.u32 %v1781_v41, 16  ;;  %v1784_v61 = vld [vmem:[#allocation2 + $0xe8] sm:$0x1f] }
 0x1e5   : > { %v3440_v53 = vor.u32 %v3439_v63, %v3436_v54  ;;  %7233 = vmatprep.subr.bf16.mxu1 %v7723_v13  ;;  %7200 = vmatmul.mubr.bf16.gmra.mrb[12].mxu1 %v3432_v33  ;;  %v3448_v59 = vor.u32 %v3447_v25, %v3444_v50  ;;  %v1980_v60 = vrot.slane %v1978_v32, 5  ;;  %v1992_v62 = vshrl.u32 %v7761_v45, 16 }
 0x1e6   : > { %v1985_v0 = vrot.slane %v1983_v40, 4  ;;  %v1988_v30 = vrot.slane %v1986_v49, 5  ;;  %v1995_v2 = vshll.u32 %v7761_v45, 16  ;;  %v2000_v4 = vshrl.u32 %v1782_v43, 16  ;;  %v3292_v45 = vld [vmem:[#allocation2 + $0xc8] sm:$0x1f] }
 0x1e7   : > { %v2003_v10 = vshll.u32 %v1782_v43, 16  ;;  %v3449_v9 = vsel %vm1786_vm4, %v3440_v53, %v3448_v59  ;;  %v1981_v11 = vor.u32 %v1980_v60, %v1977_v52  ;;  %v1994_v48 = vrot.slane %v1992_v62, 4  ;;  %v7763_v53 = vld [vmem:[#allocation2 + $0xe0] sm:$0xf0] }
 0x1e8   : > { %v3451_v24 = vshrl.u32 %v8344_v27, 16  ;;  %7234 = vmatpush3.bf16.msra.mxu1 %v7723_v13  ;;  %7203 = vmatprep.mubr.bf16.mxu1 %v3449_v9  ;;  %v1989_v31 = vor.u32 %v1988_v30, %v1985_v0  ;;  %v1997_v42 = vrot.slane %v1995_v2, 5  ;;  %v2002_v3 = vrot.slane %v2000_v4, 4 }
 0x1e9   : > { %v2005_v15 = vrot.slane %v2003_v10, 5  ;;  %7267 = vmatprep.subr.bf16.mxu1 %v8498_v6  ;;  %v3454_v7 = vshll.u32 %v8344_v27, 16  ;;  %v3459_v22 = vshrl.u32 %v3290_v55, 16  ;;  %v3462_v23 = vshll.u32 %v3290_v55, 16 }
 0x1ea   : > { %v3453_v26 = vrot.slane %v3451_v24, 4  ;;  %v1990_v34 = vsel %vm1786_vm4, %v1981_v11, %v1989_v31  ;;  %v1998_v17 = vor.u32 %v1997_v42, %v1994_v48  ;;  %v3468_v8 = vshrl.u32 %v8347_v28, 16 }
 0x1eb   : > { %v2006_v19 = vor.u32 %v2005_v15, %v2002_v3  ;;  %7064 = vmatmul.mubr.bf16.gmra.mrb[84].mxu0 %v1990_v34  ;;  %v3456_v1 = vrot.slane %v3454_v7, 5  ;;  %v3461_v36 = vrot.slane %v3459_v22, 4  ;;  %v3464_v29 = vrot.slane %v3462_v23, 5  ;;  %v3293_v3 = vld [vmem:[#allocation2 + $0xd8] sm:$0x1f] }
 0x1ec   : > { %v3471_v41 = vshll.u32 %v8347_v28, 16  ;;  %v3470_v38 = vrot.slane %v3468_v8, 4  ;;  %v3476_v27 = vshrl.u32 %v3291_v20, 16  ;;  %v3479_v12 = vshll.u32 %v3291_v20, 16 }
 0x1ed   : > { %v2007_v47 = vsel %vm1786_vm4, %v1998_v17, %v2006_v19  ;;  %v3457_v13 = vor.u32 %v3456_v1, %v3453_v26  ;;  %v3465_v37 = vor.u32 %v3464_v29, %v3461_v36  ;;  %v2009_v14 = vshrl.u32 %v7762_v16, 16  ;;  %v1785_v19 = vld [vmem:[#allocation2 + $0xf8] sm:$0x1f] }
 0x1ee   : > { %7067 = vmatprep.mubr.bf16.mxu0 %v2007_v47  ;;  %v3473_v54 = vrot.slane %v3471_v41, 5  ;;  %v3478_v57 = vrot.slane %v3476_v27, 4  ;;  %v3481_v46 = vrot.slane %v3479_v12, 5  ;;  %v2012_v63 = vshll.u32 %v7762_v16, 16  ;;  %v7764_v47 = vld [vmem:[#allocation2 + $0xf0] sm:$0xf0] }
 0x1ef   : > { %v2017_v39 = vshrl.u32 %v1783_v35, 16  ;;  %v3466_v50 = vsel %vm1786_vm4, %v3457_v13, %v3465_v37  ;;  %v2011_v25 = vrot.slane %v2009_v14, 4  ;;  %v2020_v32 = vshll.u32 %v1783_v35, 16  ;;  %v8516_v27 = vld [vmem:[#allocation2 + $0x20] sm:$0xf0] }
 0x1f0   : > { %v3474_v28 = vor.u32 %v3473_v54, %v3470_v38  ;;  %7204 = vmatmul.mubr.bf16.gmra.mrb[16].mxu1 %v3466_v50  ;;  %v3482_v40 = vor.u32 %v3481_v46, %v3478_v57  ;;  %v2014_v43 = vrot.slane %v2012_v63, 5  ;;  %v2026_v52 = vshrl.u32 %v7763_v53, 16  ;;  %v4792_v16 = vld [vmem:[#allocation2 + $0x28] sm:$0x1f] }
 0x1f1   : > { %v2019_v33 = vrot.slane %v2017_v39, 4  ;;  %v2022_v49 = vrot.slane %v2020_v32, 5  ;;  %v2029_v59 = vshll.u32 %v7763_v53, 16  ;;  %v2034_v60 = vshrl.u32 %v1784_v61, 16 }
 0x1f2   : > { %v2037_v0 = vshll.u32 %v1784_v61, 16  ;;  %v3483_v62 = vsel %vm1786_vm4, %v3474_v28, %v3482_v40  ;;  %v2015_v30 = vor.u32 %v2014_v43, %v2011_v25  ;;  %v2028_v2 = vrot.slane %v2026_v52, 4  ;;  %v3294_v43 = vld [vmem:[#allocation2 + $0xe8] sm:$0x1f] }
 0x1f3   : > { %v3485_v4 = vshrl.u32 %v8366_v5, 16  ;;  %7207 = vmatprep.mubr.bf16.mxu1 %v3483_v62  ;;  %v2023_v10 = vor.u32 %v2022_v49, %v2019_v33  ;;  %v2031_v55 = vrot.slane %v2029_v59, 5  ;;  %v2036_v9 = vrot.slane %v2034_v60, 4 }
 0x1f4   : > { %v2039_v11 = vrot.slane %v2037_v0, 5  ;;  %v3488_v24 = vshll.u32 %v8366_v5, 16  ;;  %v3493_v31 = vshrl.u32 %v3292_v45, 16  ;;  %v3496_v42 = vshll.u32 %v3292_v45, 16 }
 0x1f5   : > { %v3487_v48 = vrot.slane %v3485_v4, 4  ;;  %v2024_v15 = vsel %vm1786_vm4, %v2015_v30, %v2023_v10  ;;  %v2032_v26 = vor.u32 %v2031_v55, %v2028_v2  ;;  %v3502_v22 = vshrl.u32 %v8369_v51, 16  ;;  %v3295_v10 = vld [vmem:[#allocation2 + $0xf8] sm:$0x1f] }
 0x1f6   : > { %v2040_v7 = vor.u32 %v2039_v11, %v2036_v9  ;;  %7068 = vmatmul.mubr.bf16.gmra.mrb[88].mxu0 %v2024_v15  ;;  %v3490_v23 = vrot.slane %v3488_v24, 5  ;;  %v3495_v20 = vrot.slane %v3493_v31, 4  ;;  %v3498_v34 = vrot.slane %v3496_v42, 5  ;;  %v8526_v24 = vld [vmem:[#allocation2 + $0x30] sm:$0xf0] }
 0x1f7   : > { %v3505_v17 = vshll.u32 %v8369_v51, 16  ;;  %v3504_v1 = vrot.slane %v3502_v22, 4  ;;  %v3510_v5 = vshrl.u32 %v3293_v3, 16  ;;  %v3513_v36 = vshll.u32 %v3293_v3, 16 }
 0x1f8   : > { %v2041_v8 = vsel %vm1786_vm4, %v2032_v26, %v2040_v7  ;;  %v3491_v29 = vor.u32 %v3490_v23, %v3487_v48  ;;  %v3499_v41 = vor.u32 %v3498_v34, %v3495_v20  ;;  %v2043_v38 = vshrl.u32 %v7764_v47, 16  ;;  %v4793_v26 = vld [vmem:[#allocation2 + $0x38] sm:$0x1f] }
 0x1f9   : > { %7071 = vmatprep.mubr.bf16.mxu0 %v2041_v8  ;;  %v3507_v35 = vrot.slane %v3505_v17, 5  ;;  %v3512_v12 = vrot.slane %v3510_v5, 4  ;;  %v3515_v13 = vrot.slane %v3513_v36, 5  ;;  %v2046_v37 = vshll.u32 %v7764_v47, 16  ;;  %v8531_v8 = vld [vmem:[#allocation2 + $0x40] sm:$0xf0] }
 0x1fa   : > { %v2051_v54 = vshrl.u32 %v1785_v19, 16  ;;  %v3500_v51 = vsel %vm1786_vm4, %v3491_v29, %v3499_v41  ;;  %v2045_v57 = vrot.slane %v2043_v38, 4  ;;  %v2054_v46 = vshll.u32 %v1785_v19, 16 }
 0x1fb   : > { %v3508_v14 = vor.u32 %v3507_v35, %v3504_v1  ;;  %7208 = vmatmul.mubr.bf16.gmra.mrb[20].mxu1 %v3500_v51  ;;  %v3516_v63 = vor.u32 %v3515_v13, %v3512_v12  ;;  %v2048_v39 = vrot.slane %v2046_v37, 5  ;;  %v4809_v50 = vshrl.u32 %v8516_v27, 16 }
 0x1fc   : > { %v2053_v61 = vrot.slane %v2051_v54, 4  ;;  %v2056_v28 = vrot.slane %v2054_v46, 5  ;;  %v4812_v25 = vshll.u32 %v8516_v27, 16  ;;  %v4817_v32 = vshrl.u32 %v4792_v16, 16  ;;  %v3296_v46 = vld [vmem:[#allocation2 + $0x108] sm:$0x1f] }
 0x1fd   : > { %v4820_v40 = vshll.u32 %v4792_v16, 16  ;;  %v3517_v33 = vsel %vm1786_vm4, %v3508_v14, %v3516_v63  ;;  %v2049_v53 = vor.u32 %v2048_v39, %v2045_v57  ;;  %v4811_v52 = vrot.slane %v4809_v50, 4 }
 0x1fe   : > { %v3519_v49 = vshrl.u32 %v8382_v58, 16  ;;  %7211 = vmatprep.mubr.bf16.mxu1 %v3517_v33  ;;  %v2057_v59 = vor.u32 %v2056_v28, %v2053_v61  ;;  %v4814_v60 = vrot.slane %v4812_v25, 5  ;;  %v4819_v0 = vrot.slane %v4817_v32, 4  ;;  %v3844_v28 = vld [vmem:[#allocation2 + $0x20] sm:$0xf8] }
 0x1ff   : > { %v4822_v45 = vrot.slane %v4820_v40, 5  ;;  %v3522_v30 = vshll.u32 %v8382_v58, 16  ;;  %v3527_v2 = vshrl.u32 %v3294_v43, 16  ;;  %v3530_v4 = vshll.u32 %v3294_v43, 16 }
 0x200   : > { %v3521_v62 = vrot.slane %v3519_v49, 4  ;;  %v2058_v55 = vsel %vm1786_vm4, %v2049_v53, %v2057_v59  ;;  %v4815_v9 = vor.u32 %v4814_v60, %v4811_v52  ;;  %v3536_v48 = vshrl.u32 %v8386_v56, 16  ;;  %v8540_v59 = vld [vmem:[#allocation2 + $0x28] sm:$0xf] }
 0x201   : > { %v4823_v11 = vor.u32 %v4822_v45, %v4819_v0  ;;  %7072 = vmatmul.mubr.bf16.gmra.mrb[92].mxu0 %v2058_v55  ;;  %v3524_v31 = vrot.slane %v3522_v30, 5  ;;  %v3529_v42 = vrot.slane %v3527_v2, 4  ;;  %v3532_v3 = vrot.slane %v3530_v4, 5  ;;  %v8543_v30 = vld [vmem:[#allocation2 + $0x50] sm:$0xf0] }
 0x202   : > { %v3539_v15 = vshll.u32 %v8386_v56, 16  ;;  %v3538_v7 = vrot.slane %v3536_v48, 4  ;;  %v3544_v22 = vshrl.u32 %v3295_v10, 16  ;;  %v3547_v23 = vshll.u32 %v3295_v10, 16  ;;  %v4794_v56 = vld [vmem:[#allocation2 + $0x48] sm:$0x1f] }
 0x203   : > { %v4824_v58 = vsel %vm1786_vm4, %v4815_v9, %v4823_v11  ;;  %v3525_v20 = vor.u32 %v3524_v31, %v3521_v62  ;;  %v3533_v34 = vor.u32 %v3532_v3, %v3529_v42  ;;  %v4826_v19 = vshrl.u32 %v8526_v24, 16  ;;  %v4795_v9 = vld [vmem:[#allocation2 + $0x58] sm:$0x1f] }
 0x204   : > { %7331 = vmatprep.mubr.bf16.mxu0 %v4824_v58  ;;  %v3541_v17 = vrot.slane %v3539_v15, 5  ;;  %v3546_v1 = vrot.slane %v3544_v22, 4  ;;  %v3549_v5 = vrot.slane %v3547_v23, 5  ;;  %v4829_v36 = vshll.u32 %v8526_v24, 16  ;;  %v8549_v58 = vld [vmem:[#allocation2 + $0x60] sm:$0xf0] }
 0x205   : > { %v4834_v29 = vshrl.u32 %v4793_v26, 16  ;;  %v3534_v41 = vsel %vm1786_vm4, %v3525_v20, %v3533_v34  ;;  %v4828_v47 = vrot.slane %v4826_v19, 4  ;;  %v4837_v38 = vshll.u32 %v4793_v26, 16  ;;  %v4796_v34 = vld [vmem:[#allocation2 + $0x68] sm:$0x1f] }
 0x206   : > { %v3542_v35 = vor.u32 %v3541_v17, %v3538_v7  ;;  %7212 = vmatmul.mubr.bf16.gmra.mrb[24].mxu1 %v3534_v41  ;;  %v3550_v12 = vor.u32 %v3549_v5, %v3546_v1  ;;  %v4831_v13 = vrot.slane %v4829_v36, 5  ;;  %v4843_v54 = vshrl.u32 %v8531_v8, 16  ;;  %v3846_v36 = vld [vmem:[#allocation2 + $0x30] sm:$0xf8] }
 0x207   : > { %v4836_v37 = vrot.slane %v4834_v29, 4  ;;  %v4839_v16 = vrot.slane %v4837_v38, 5  ;;  %v4846_v51 = vshll.u32 %v8531_v8, 16  ;;  %v4851_v14 = vshrl.u32 %v4794_v56, 16 }
 0x208   : > { %v4854_v57 = vshll.u32 %v4794_v56, 16  ;;  %v3551_v63 = vsel %vm1786_vm4, %v3542_v35, %v3550_v12  ;;  %v4832_v39 = vor.u32 %v4831_v13, %v4828_v47  ;;  %v4845_v61 = vrot.slane %v4843_v54, 4 }
 0x209   : > { %v3553_v50 = vshrl.u32 %v8404_v21, 16  ;;  %7215 = vmatprep.mubr.bf16.mxu1 %v3551_v63  ;;  %v4840_v25 = vor.u32 %v4839_v16, %v4836_v37  ;;  %v4848_v32 = vrot.slane %v4846_v51, 5  ;;  %v4853_v40 = vrot.slane %v4851_v14, 4  ;;  %v8555_v37 = vld [vmem:[#allocation2 + $0x38] sm:$0xf] }
 0x20a   : > { %v4856_v43 = vrot.slane %v4854_v57, 5  ;;  %v3556_v53 = vshll.u32 %v8404_v21, 16  ;;  %v3561_v52 = vshrl.u32 %v3296_v46, 16  ;;  %v3564_v49 = vshll.u32 %v3296_v46, 16  ;;  %v3848_v57 = vld [vmem:[#allocation2 + $0x40] sm:$0xf8] }
 0x20b   : > { %v3555_v33 = vrot.slane %v3553_v50, 4  ;;  %v4841_v60 = vsel %vm1786_vm4, %v4832_v39, %v4840_v25  ;;  %v4849_v0 = vor.u32 %v4848_v32, %v4845_v61  ;;  %v3877_v62 = vshrl.u32 %v3844_v28, 16 }
 0x20c   : > { %v4857_v45 = vor.u32 %v4856_v43, %v4853_v40  ;;  %7332 = vmatmul.mubr.bf16.vlgmr.msra.gmra.mrb[96].mxu0 %v4841_v60  ;;  %v3558_v2 = vrot.slane %v3556_v53, 5  ;;  %v3563_v4 = vrot.slane %v3561_v52, 4  ;;  %v3566_v10 = vrot.slane %v3564_v49, 5  ;;  %v8560_v40 = vld [vmem:[#allocation2 + $0x48] sm:$0xf] }
 0x20d   : > { %v3880_v55 = vshll.u32 %v3844_v28, 16  ;;  %v3879_v21 = vrot.slane %v3877_v62, 3  ;;  %v3885_v48 = vshrl.u32 %v8540_v59, 16  ;;  %v3888_v31 = vshll.u32 %v8540_v59, 16  ;;  %v8563_v49 = vld [vmem:[#allocation2 + $0x70] sm:$0xf0] }
 0x20e   : > { %v4858_v11 = vsel %vm1786_vm4, %v4849_v0, %v4857_v45  ;;  %v3559_v42 = vor.u32 %v3558_v2, %v3555_v33  ;;  %v3567_v3 = vor.u32 %v3566_v10, %v3563_v4  ;;  %v4860_v26 = vshrl.u32 %v8543_v30, 16  ;;  %v4797_v2 = vld [vmem:[#allocation2 + $0x78] sm:$0x1f] }
 0x20f   : > { %7335 = vmatprep.mubr.bf16.mxu0 %v4858_v11  ;;  %v3882_v15 = vrot.slane %v3880_v55, 4  ;;  %v3887_v7 = vrot.slane %v3885_v48, 3  ;;  %v3890_v22 = vrot.slane %v3888_v31, 4  ;;  %v4863_v23 = vshll.u32 %v8543_v30, 16 }
 0x210   : > { %v4868_v20 = vshrl.u32 %v4795_v9, 16  ;;  %v3568_v17 = vsel %vm1786_vm4, %v3559_v42, %v3567_v3  ;;  %v4862_v1 = vrot.slane %v4860_v26, 4  ;;  %v4871_v5 = vshll.u32 %v4795_v9, 16  ;;  %v8569_v42 = vld [vmem:[#allocation2 + $0x80] sm:$0xf0] }
 0x211   : > { %v3883_v19 = vor.u32 %v3882_v15, %v3879_v21  ;;  %7216 = vmatmul.mubr.bf16.gmra.mrb[28].mxu1 %v3568_v17  ;;  %v3891_v29 = vor.u32 %v3890_v22, %v3887_v7  ;;  %v4865_v56 = vrot.slane %v4863_v23, 5  ;;  %v4877_v35 = vshrl.u32 %v8549_v58, 16  ;;  %v4798_v3 = vld [vmem:[#allocation2 + $0x88] sm:$0x1f] }
 0x212   : > { %v4870_v41 = vrot.slane %v4868_v20, 4  ;;  %v4873_v47 = vrot.slane %v4871_v5, 5  ;;  %v4880_v38 = vshll.u32 %v8549_v58, 16  ;;  %v4885_v12 = vshrl.u32 %v4796_v34, 16  ;;  %v7725_v23 = vld [vmem:[%s8977_s3 + $0x1c8] sm:$0xff]  }
 0x213   : > { %v4888_v13 = vshll.u32 %v4796_v34, 16  ;;  %v3892_v54 = vsel %vm917_vm3, %v3883_v19, %v3891_v29  ;;  %v4866_v16 = vor.u32 %v4865_v56, %v4862_v1  ;;  %v4879_v51 = vrot.slane %v4877_v35, 4  ;;  %v3850_v1 = vld [vmem:[#allocation2 + $0x50] sm:$0xf8] }
 0x214   : > { %v3894_v14 = vshrl.u32 %v3846_v36, 16  ;;  %7235 = vmatprep.mubr.bf16.mxu1 %v3892_v54  ;;  %v4874_v46 = vor.u32 %v4873_v47, %v4870_v41  ;;  %v4882_v63 = vrot.slane %v4880_v38, 5  ;;  %v4887_v39 = vrot.slane %v4885_v12, 4  ;;  %v8579_v12 = vld [vmem:[#allocation2 + $0x58] sm:$0xf] }
 0x215   : > { %v4890_v61 = vrot.slane %v4888_v13, 5  ;;  %v3897_v28 = vshll.u32 %v3846_v36, 16  ;;  %v3902_v25 = vshrl.u32 %v8555_v37, 16  ;;  %v3905_v32 = vshll.u32 %v8555_v37, 16 }
 0x216   : > { %v3896_v50 = vrot.slane %v3894_v14, 3  ;;  %v4875_v43 = vsel %vm1786_vm4, %v4866_v16, %v4874_v46  ;;  %v4883_v33 = vor.u32 %v4882_v63, %v4879_v51  ;;  %v3911_v52 = vshrl.u32 %v3848_v57, 16  ;;  %v3852_v14 = vld [vmem:[#allocation2 + $0x60] sm:$0xf8] }
 0x217   : > { %v4891_v53 = vor.u32 %v4890_v61, %v4887_v39  ;;  %7336 = vmatmul.mubr.bf16.gmra.mrb[100].mxu0 %v4875_v43  ;;  %v3899_v60 = vrot.slane %v3897_v28, 4  ;;  %v3904_v0 = vrot.slane %v3902_v25, 3  ;;  %v3907_v45 = vrot.slane %v3905_v32, 4  ;;  %v8587_v32 = vld [vmem:[#allocation2 + $0x68] sm:$0xf] }
 0x218   : > { %v3914_v62 = vshll.u32 %v3848_v57, 16  ;;  %v3913_v10 = vrot.slane %v3911_v52, 3  ;;  %v3919_v55 = vshrl.u32 %v8560_v40, 16  ;;  %v3922_v9 = vshll.u32 %v8560_v40, 16  ;;  %v7726_v57 = vld [vmem:[%s8977_s3 + $0x1d0] sm:$0xff]  }
 0x219   : > { %v4892_v4 = vsel %vm1786_vm4, %v4883_v33, %v4891_v53  ;;  %v3900_v11 = vor.u32 %v3899_v60, %v3896_v50  ;;  %v3908_v21 = vor.u32 %v3907_v45, %v3904_v0  ;;  %v4894_v31 = vshrl.u32 %v8563_v49, 16  ;;  %v8590_v60 = vld [vmem:[#allocation2 + $0x90] sm:$0xf0]  ;;  %v4799_v0 = vld [vmem:[#allocation2 + $0x98] sm:$0x1f] }
 0x21a   : > { %7339 = vmatprep.mubr.bf16.mxu0 %v4892_v4  ;;  %v3916_v48 = vrot.slane %v3914_v62, 4  ;;  %v3921_v15 = vrot.slane %v3919_v55, 3  ;;  %v3924_v26 = vrot.slane %v3922_v9, 4  ;;  %v4897_v7 = vshll.u32 %v8563_v49, 16 }
 0x21b   : > { %v4902_v22 = vshrl.u32 %v4797_v2, 16  ;;  %v3909_v20 = vsel %vm917_vm3, %v3900_v11, %v3908_v21  ;;  %v4896_v17 = vrot.slane %v4894_v31, 4  ;;  %v4905_v19 = vshll.u32 %v4797_v2, 16 }
 0x21c   : > { %v3917_v34 = vor.u32 %v3916_v48, %v3913_v10  ;;  %7236 = vmatmul.mubr.bf16.vlgmr.msra.gmra.mrb[0].mxu1 %v3909_v20  ;;  %v3925_v5 = vor.u32 %v3924_v26, %v3921_v15  ;;  %v4899_v36 = vrot.slane %v4897_v7, 5  ;;  %v4911_v56 = vshrl.u32 %v8569_v42, 16  ;;  %v7727_v10 = vld [vmem:[%s8977_s3 + $0x1d8] sm:$0xff]   ;;  %v8599_v26 = vld [vmem:[#allocation2 + $0xa0] sm:$0xf0] }
 0x21d   : > { %v4904_v29 = vrot.slane %v4902_v22, 4  ;;  %7268 = vmatpush3.bf16.msra.mxu1 %v8498_v6  ;;  %v4907_v41 = vrot.slane %v4905_v19, 5  ;;  %v4914_v35 = vshll.u32 %v8569_v42, 16  ;;  %v4919_v47 = vshrl.u32 %v4798_v3, 16 }
 0x21e   : > { %v4922_v38 = vshll.u32 %v4798_v3, 16  ;;  %v3926_v13 = vsel %vm917_vm3, %v3917_v34, %v3925_v5  ;;  %v4900_v54 = vor.u32 %v4899_v36, %v4896_v17  ;;  %v4913_v16 = vrot.slane %v4911_v56, 4  ;;  %7269 = vmatprep.subr.bf16.mxu1 %v7725_v23  ;;  %v4800_v34 = vld [vmem:[#allocation2 + $0xa8] sm:$0x1f]  ;;  %v3854_v36 = vld [vmem:[#allocation2 + $0x70] sm:$0xf8] }
 0x21f   : > { %v3928_v51 = vshrl.u32 %v3850_v1, 16  ;;  %7239 = vmatprep.mubr.bf16.mxu1 %v3926_v13  ;;  %v4908_v6 = vor.u32 %v4907_v41, %v4904_v29  ;;  %v4916_v46 = vrot.slane %v4914_v35, 5  ;;  %v4921_v63 = vrot.slane %v4919_v47, 4  ;;  %v7728_v29 = vld [vmem:[%s8977_s3 + $0x1e0] sm:$0xff]  }
 0x220   : > { %v4924_v39 = vrot.slane %v4922_v38, 5  ;;  %v3931_v50 = vshll.u32 %v3850_v1, 16  ;;  %v3936_v28 = vshrl.u32 %v8579_v12, 16  ;;  %v3939_v25 = vshll.u32 %v8579_v12, 16 }
 0x221   : > { %v3930_v61 = vrot.slane %v3928_v51, 3  ;;  %v4909_v43 = vsel %vm1786_vm4, %v4900_v54, %v4908_v6  ;;  %v4917_v33 = vor.u32 %v4916_v46, %v4913_v16  ;;  %7270 = vmatpush3.bf16.msra.mxu1 %v7725_v23  ;;  %v3945_v52 = vshrl.u32 %v3852_v14, 16  ;;  %v8608_v51 = vld [vmem:[#allocation2 + $0x78] sm:$0xf] }
 0x222   : > { %v4925_v53 = vor.u32 %v4924_v39, %v4921_v63  ;;  %7340 = vmatmul.mubr.bf16.gmra.mrb[104].mxu0 %v4909_v43  ;;  %v3933_v45 = vrot.slane %v3931_v50, 4  ;;  %v3938_v62 = vrot.slane %v3936_v28, 3  ;;  %v3941_v2 = vrot.slane %v3939_v25, 4  ;;  %7271 = vmatprep.subr.bf16.mxu1 %v7726_v57  ;;  %v3856_v63 = vld [vmem:[#allocation2 + $0x80] sm:$0xf8]  ;;  %v7729_v25 = vld [vmem:[%s8977_s3 + $0x1e8] sm:$0xff]  }
 0x223   : > { %v3948_v4 = vshll.u32 %v3852_v14, 16  ;;  %v3947_v9 = vrot.slane %v3945_v52, 3  ;;  %v3953_v11 = vshrl.u32 %v8587_v32, 16  ;;  %v3956_v21 = vshll.u32 %v8587_v32, 16 }
 0x224   : > { %v4926_v55 = vsel %vm1786_vm4, %v4917_v33, %v4925_v53  ;;  %v3934_v48 = vor.u32 %v3933_v45, %v3930_v61  ;;  %v3942_v31 = vor.u32 %v3941_v2, %v3938_v62  ;;  %v4928_v15 = vshrl.u32 %v8590_v60, 16 }
 0x225   : > { %7343 = vmatprep.mubr.bf16.mxu0 %v4926_v55  ;;  %v3950_v3 = vrot.slane %v3948_v4, 4  ;;  %v3955_v7 = vrot.slane %v3953_v11, 3  ;;  %v3958_v22 = vrot.slane %v3956_v21, 4  ;;  %v4931_v23 = vshll.u32 %v8590_v60, 16  ;;  %7272 = vmatpush3.bf16.msra.mxu1 %v7726_v57 }
 0x226   : > { %v4936_v20 = vshrl.u32 %v4799_v0, 16  ;;  %v3943_v17 = vsel %vm917_vm3, %v3934_v48, %v3942_v31  ;;  %v4930_v1 = vrot.slane %v4928_v15, 4  ;;  %v4939_v5 = vshll.u32 %v4799_v0, 16  ;;  %7273 = vmatprep.subr.bf16.mxu1 %v7727_v10  ;;  %v8616_v0 = vld [vmem:[#allocation2 + $0x88] sm:$0xf] }
 0x227   : > { %v3951_v19 = vor.u32 %v3950_v3, %v3947_v9  ;;  %7240 = vmatmul.mubr.bf16.gmra.mrb[4].mxu1 %v3943_v17  ;;  %v3959_v56 = vor.u32 %v3958_v22, %v3955_v7  ;;  %v4933_v41 = vrot.slane %v4931_v23, 5  ;;  %v4945_v47 = vshrl.u32 %v8599_v26, 16  ;;  %v4801_v48 = vld [vmem:[#allocation2 + $0xb8] sm:$0x1f]  ;;  %v7730_v22 = vld [vmem:[%s8977_s3 + $0x1f0] sm:$0xff]  }
 0x228   : > { %v4938_v35 = vrot.slane %v4936_v20, 4  ;;  %v4941_v38 = vrot.slane %v4939_v5, 5  ;;  %v4948_v13 = vshll.u32 %v8599_v26, 16  ;;  %v4953_v54 = vshrl.u32 %v4800_v34, 16 }
 0x229   : > { %v4956_v16 = vshll.u32 %v4800_v34, 16  ;;  %v3960_v14 = vsel %vm917_vm3, %v3951_v19, %v3959_v56  ;;  %v4934_v57 = vor.u32 %v4933_v41, %v4930_v1  ;;  %v4947_v6 = vrot.slane %v4945_v47, 4  ;;  %7274 = vmatpush3.bf16.msra.mxu1 %v7727_v10  ;;  %v8619_v10 = vld [vmem:[#allocation2 + $0xb0] sm:$0xf0]  ;;  %v8629_v56 = vld [vmem:[#allocation2 + $0x98] sm:$0xf] }
 0x22a   : > { %v3962_v46 = vshrl.u32 %v3854_v36, 16  ;;  %7243 = vmatprep.mubr.bf16.mxu1 %v3960_v14  ;;  %v4942_v39 = vor.u32 %v4941_v38, %v4938_v35  ;;  %v4950_v61 = vrot.slane %v4948_v13, 5  ;;  %v4955_v50 = vrot.slane %v4953_v54, 4  ;;  %7275 = vmatprep.subr.bf16.mxu1 %v7728_v29  ;;  %v3858_v19 = vld [vmem:[#allocation2 + $0x90] sm:$0xf8] }
 0x22b   : > { %v4958_v28 = vrot.slane %v4956_v16, 5  ;;  %v3965_v33 = vshll.u32 %v3854_v36, 16  ;;  %v3970_v53 = vshrl.u32 %v8608_v51, 16  ;;  %v3973_v52 = vshll.u32 %v8608_v51, 16  ;;  %v3860_v13 = vld [vmem:[#allocation2 + $0xa0] sm:$0xf8] }
 0x22c   : > { %v3964_v43 = vrot.slane %v3962_v46, 3  ;;  %v4943_v45 = vsel %vm1786_vm4, %v4934_v57, %v4942_v39  ;;  %v4951_v62 = vor.u32 %v4950_v61, %v4947_v6  ;;  %v3979_v4 = vshrl.u32 %v3856_v63, 16  ;;  %v7731_v6 = vld [vmem:[%s8977_s3 + $0x1f8] sm:$0xff]  }
 0x22d   : > { %v4959_v2 = vor.u32 %v4958_v28, %v4955_v50  ;;  %7344 = vmatmul.mubr.bf16.gmra.mrb[108].mxu0 %v4943_v45  ;;  %v3967_v55 = vrot.slane %v3965_v33, 4  ;;  %v3972_v9 = vrot.slane %v3970_v53, 3  ;;  %v3975_v11 = vrot.slane %v3973_v52, 4  ;;  %7276 = vmatpush3.bf16.msra.mxu1 %v7728_v29  ;;  %v8637_v50 = vld [vmem:[#allocation2 + $0xa8] sm:$0xf] }
 0x22e   : > { %v3982_v21 = vshll.u32 %v3856_v63, 16  ;;  %v3981_v3 = vrot.slane %v3979_v4, 3  ;;  %v3987_v15 = vshrl.u32 %v8616_v0, 16  ;;  %v3990_v7 = vshll.u32 %v8616_v0, 16  ;;  %7277 = vmatprep.subr.bf16.mxu1 %v7729_v25  ;;  %v3862_v53 = vld [vmem:[#allocation2 + $0xb0] sm:$0xf8] }
 0x22f   : > { %v4960_v31 = vsel %vm1786_vm4, %v4951_v62, %v4959_v2  ;;  %v3968_v23 = vor.u32 %v3967_v55, %v3964_v43  ;;  %v3976_v20 = vor.u32 %v3975_v11, %v3972_v9  ;;  %v4962_v17 = vshrl.u32 %v8619_v10, 16 }
 0x230   : > { %7347 = vmatprep.mubr.bf16.mxu0 %v4960_v31  ;;  %v3984_v34 = vrot.slane %v3982_v21, 4  ;;  %v3989_v1 = vrot.slane %v3987_v15, 3  ;;  %v3992_v5 = vrot.slane %v3990_v7, 4  ;;  %v4965_v36 = vshll.u32 %v8619_v10, 16  ;;  %v8642_v21 = vld [vmem:[#allocation2 + $0xb8] sm:$0xf] }
 0x231   : > { %v4970_v29 = vshrl.u32 %v4801_v48, 16  ;;  %v3977_v41 = vsel %vm917_vm3, %v3968_v23, %v3976_v20  ;;  %v4964_v47 = vrot.slane %v4962_v17, 4  ;;  %v4973_v38 = vshll.u32 %v4801_v48, 16  ;;  %7278 = vmatpush3.bf16.msra.mxu1 %v7729_v25  ;;  %v3864_v7 = vld [vmem:[#allocation2 + $0xc0] sm:$0xf8] }
 0x232   : > { %v3985_v35 = vor.u32 %v3984_v34, %v3981_v3  ;;  %7244 = vmatmul.mubr.bf16.gmra.mrb[8].mxu1 %v3977_v41  ;;  %v3993_v54 = vor.u32 %v3992_v5, %v3989_v1  ;;  %v4967_v16 = vrot.slane %v4965_v36, 5  ;;  %v3996_v57 = vshrl.u32 %v3858_v19, 16  ;;  %7279 = vmatprep.subr.bf16.mxu1 %v7730_v22  ;;  %v8645_v17 = vld [vmem:[#allocation2 + $0xc8] sm:$0xf] }
 0x233   : > { %v4972_v14 = vrot.slane %v4970_v29, 4  ;;  %v4975_v46 = vrot.slane %v4973_v38, 5  ;;  %v3999_v63 = vshll.u32 %v3858_v19, 16  ;;  %v4004_v39 = vshrl.u32 %v8629_v56, 16  ;;  %v3866_v38 = vld [vmem:[#allocation2 + $0xd0] sm:$0xf8] }
 0x234   : > { %v4007_v61 = vshll.u32 %v8629_v56, 16  ;;  %v3994_v28 = vsel %vm917_vm3, %v3985_v35, %v3993_v54  ;;  %v4968_v25 = vor.u32 %v4967_v16, %v4964_v47  ;;  %v3998_v43 = vrot.slane %v3996_v57, 3 }
 0x235   : > { %v4013_v33 = vshrl.u32 %v3860_v13, 16  ;;  %7247 = vmatprep.mubr.bf16.mxu1 %v3994_v28  ;;  %v4976_v52 = vor.u32 %v4975_v46, %v4972_v14  ;;  %v4001_v45 = vrot.slane %v3999_v63, 4  ;;  %v4006_v62 = vrot.slane %v4004_v39, 3  ;;  %7280 = vmatpush3.bf16.msra.mxu1 %v7730_v22  ;;  %v8657_v46 = vld [vmem:[#allocation2 + $0xd8] sm:$0xf] }
 0x236   : > { %v4009_v2 = vrot.slane %v4007_v61, 4  ;;  %v4016_v55 = vshll.u32 %v3860_v13, 16  ;;  %v4021_v9 = vshrl.u32 %v8637_v50, 16  ;;  %v4024_v11 = vshll.u32 %v8637_v50, 16  ;;  %7281 = vmatprep.subr.bf16.mxu1 %v7731_v6  ;;  %v8653_v13 = vld [vmem:[%s8977_s3 + $0x200] sm:$0xff]  }
 0x237   : > { %v4015_v4 = vrot.slane %v4013_v33, 3  ;;  %v4977_v48 = vsel %vm1786_vm4, %v4968_v25, %v4976_v52  ;;  %v4002_v31 = vor.u32 %v4001_v45, %v3998_v43  ;;  %v4030_v15 = vshrl.u32 %v3862_v53, 16  ;;  %v3868_v28 = vld [vmem:[#allocation2 + $0xe0] sm:$0xf8] }
 0x238   : > { %v4010_v3 = vor.u32 %v4009_v2, %v4006_v62  ;;  %7348 = vmatmul.mubr.bf16.gmra.mrb[112].mxu0 %v4977_v48  ;;  %v4018_v23 = vrot.slane %v4016_v55, 4  ;;  %v4023_v20 = vrot.slane %v4021_v9, 3  ;;  %v4026_v34 = vrot.slane %v4024_v11, 4 }
 0x239   : > { %v4033_v22 = vshll.u32 %v3862_v53, 16  ;;  %v4032_v1 = vrot.slane %v4030_v15, 3  ;;  %v4038_v5 = vshrl.u32 %v8642_v21, 16  ;;  %v4041_v36 = vshll.u32 %v8642_v21, 16  ;;  %7282 = vmatpush3.bf16.msra.mxu1 %v7731_v6 }
 0x23a   : > { %v4011_v19 = vsel %vm917_vm3, %v4002_v31, %v4010_v3  ;;  %v4019_v29 = vor.u32 %v4018_v23, %v4015_v4  ;;  %v4027_v41 = vor.u32 %v4026_v34, %v4023_v20  ;;  %v4047_v47 = vshrl.u32 %v3864_v7, 16  ;;  %7363 = vmatprep.subr.bf16.mxu1 %v8653_v13  ;;  %v8663_v4 = vld [vmem:[#allocation2 + $0xe8] sm:$0xf]  ;;  %v3870_v31 = vld [vmem:[#allocation2 + $0xf0] sm:$0xf8] }
 0x23b   : > { %7248 = vmatmul.mubr.bf16.gmra.mrb[12].mxu1 %v4011_v19  ;;  %v4035_v35 = vrot.slane %v4033_v22, 4  ;;  %v4040_v54 = vrot.slane %v4038_v5, 3  ;;  %v4043_v16 = vrot.slane %v4041_v36, 4  ;;  %v4050_v14 = vshll.u32 %v3864_v7, 16 }
 0x23c   : > { %v4055_v57 = vshrl.u32 %v8645_v17, 16  ;;  %v4028_v6 = vsel %vm917_vm3, %v4019_v29, %v4027_v41  ;;  %v4049_v39 = vrot.slane %v4047_v47, 3  ;;  %v4058_v61 = vshll.u32 %v8645_v17, 16  ;;  %v3872_v41 = vld [vmem:[#allocation2 + $0x100] sm:$0xf8] }
 0x23d   : > { %v4036_v63 = vor.u32 %v4035_v35, %v4032_v1  ;;  %7251 = vmatprep.mubr.bf16.mxu1 %v4028_v6  ;;  %v4044_v25 = vor.u32 %v4043_v16, %v4040_v54  ;;  %v4052_v43 = vrot.slane %v4050_v14, 4  ;;  %v4064_v53 = vshrl.u32 %v3866_v38, 16  ;;  %v8668_v1 = vld [vmem:[#allocation2 + $0xf8] sm:$0xf]  ;;  %v8671_v16 = vld [vmem:[#allocation2 + $0x108] sm:$0xf] }
 0x23e   : > { %v4057_v33 = vrot.slane %v4055_v57, 3  ;;  %v4060_v52 = vrot.slane %v4058_v61, 4  ;;  %v4067_v45 = vshll.u32 %v3866_v38, 16  ;;  %v4072_v62 = vshrl.u32 %v8657_v46, 16 }
 0x23f   : > { %v4075_v2 = vshll.u32 %v8657_v46, 16  ;;  %v4045_v55 = vsel %vm917_vm3, %v4036_v63, %v4044_v25  ;;  %v4053_v9 = vor.u32 %v4052_v43, %v4049_v39  ;;  %v4066_v11 = vrot.slane %v4064_v53, 3  ;;  %v3874_v43 = vld [vmem:[#allocation2 + $0x110] sm:$0xf8] }
 0x240   : > { %v4081_v48 = vshrl.u32 %v3868_v28, 16  ;;  %v4061_v3 = vor.u32 %v4060_v52, %v4057_v33  ;;  %v4069_v15 = vrot.slane %v4067_v45, 4  ;;  %v4074_v7 = vrot.slane %v4072_v62, 3 }
 0x241   : > { %v4077_v23 = vrot.slane %v4075_v2, 4  ;;  %v4084_v34 = vshll.u32 %v3868_v28, 16  ;;  %v4089_v22 = vshrl.u32 %v8663_v4, 16  ;;  %v4092_v19 = vshll.u32 %v8663_v4, 16 }
 0x242   : > { %v4083_v20 = vrot.slane %v4081_v48, 3  ;;  %v4062_v5 = vsel %vm917_vm3, %v4053_v9, %v4061_v3  ;;  %v4070_v36 = vor.u32 %v4069_v15, %v4066_v11  ;;  %v4098_v29 = vshrl.u32 %v3870_v31, 16 }
 0x243   : > { %7252 = vmatmul.mubr.bf16.gmra.mrb[16].mxu1 %v4045_v55  ;;  %v4086_v35 = vrot.slane %v4084_v34, 4  ;;  %v4091_v47 = vrot.slane %v4089_v22, 3  ;;  %v4094_v38 = vrot.slane %v4092_v19, 4  ;;  %v4101_v54 = vshll.u32 %v3870_v31, 16  ;;  %v8677_v55 = vld [vmem:[#allocation2 + $0x118] sm:$0xf] }
 0x244   : > { %7255 = vmatprep.mubr.bf16.mxu1 %v4062_v5  ;;  %v4078_v14 = vor.u32 %v4077_v23, %v4074_v7  ;;  %v4100_v57 = vrot.slane %v4098_v29, 3  ;;  %v4106_v6 = vshrl.u32 %v8668_v1, 16  ;;  %v4109_v63 = vshll.u32 %v8668_v1, 16 }
 0x245   : > { %v4087_v39 = vor.u32 %v4086_v35, %v4083_v20  ;;  %v4095_v61 = vor.u32 %v4094_v38, %v4091_v47  ;;  %v4103_v28 = vrot.slane %v4101_v54, 4  ;;  %v4115_v25 = vshrl.u32 %v3872_v41, 16 }
 0x246   : > { %v4108_v33 = vrot.slane %v4106_v6, 3  ;;  %v4111_v53 = vrot.slane %v4109_v63, 4  ;;  %v4118_v52 = vshll.u32 %v3872_v41, 16  ;;  %v4123_v45 = vshrl.u32 %v8671_v16, 16 }
 0x247   : > { %v4117_v62 = vrot.slane %v4115_v25, 3  ;;  %v4126_v2 = vshll.u32 %v8671_v16, 16  ;;  %v4079_v9 = vsel %vm917_vm3, %v4070_v36, %v4078_v14  ;;  %v4132_v31 = vshrl.u32 %v3874_v43, 16 }
 0x248   : > { %v4120_v11 = vrot.slane %v4118_v52, 4  ;;  %v4125_v48 = vrot.slane %v4123_v45, 3  ;;  %v4104_v3 = vor.u32 %v4103_v28, %v4100_v57  ;;  %v4112_v15 = vor.u32 %v4111_v53, %v4108_v33 }
 0x249   : > { %v4128_v7 = vrot.slane %v4126_v2, 4  ;;  %v4135_v23 = vshll.u32 %v3874_v43, 16  ;;  %v4096_v20 = vsel %vm917_vm3, %v4087_v39, %v4095_v61  ;;  %v4140_v34 = vshrl.u32 %v8677_v55, 16 }
 0x24a   : > { %v4143_v22 = vshll.u32 %v8677_v55, 16  ;;  %v4121_v19 = vor.u32 %v4120_v11, %v4117_v62  ;;  %v4134_v29 = vrot.slane %v4132_v31, 3  ;;  %v4113_v36 = vsel %vm917_vm3, %v4104_v3, %v4112_v15  ;;  %v7772_v31 = vld [vmem:[%s8977_s3 + $0x238] sm:$0xff]  }
 0x24b   : > { %7256 = vmatmul.mubr.bf16.gmra.mrb[20].mxu1 %v4079_v9  ;;  %v4129_v5 = vor.u32 %v4128_v7, %v4125_v48  ;;  %v4137_v41 = vrot.slane %v4135_v23, 4  ;;  %v4142_v35 = vrot.slane %v4140_v34, 3  ;;  %v4479_v38 = vrot.slane %v8543_v30, 4  ;;  %v4432_v48 = vld [vmem:[#allocation2 + $0xc0] sm:$0xf0] }
 0x24c   : > { %7259 = vmatprep.mubr.bf16.mxu1 %v4096_v20  ;;  %v4145_v47 = vrot.slane %v4143_v22, 4  ;;  %v4480_v54 = vrot.slane %v8579_v12, 4  ;;  %v4482_v6 = vrot.slane %v8549_v58, 4  ;;  %v4483_v63 = vrot.slane %v8587_v32, 4  ;;  %v4433_v23 = vld [vmem:[#allocation2 + $0xd0] sm:$0xf0] }
 0x24d   : > { %v4130_v14 = vsel %vm917_vm3, %v4121_v19, %v4129_v5  ;;  %v4138_v57 = vor.u32 %v4137_v41, %v4134_v29  ;;  %v4485_v61 = vrot.slane %v8563_v49, 4  ;;  %v4486_v28 = vrot.slane %v8608_v51, 4  ;;  %v4434_v20 = vld [vmem:[#allocation2 + $0xe0] sm:$0xf0] }
 0x24e   : > { %v4481_v39 = vsel %vm1270_vm2, %v4479_v38, %v4480_v54  ;;  %v4488_v25 = vrot.slane %v8569_v42, 4  ;;  %v4484_v43 = vsel %vm1270_vm2, %v4482_v6, %v4483_v63  ;;  %v4489_v30 = vrot.slane %v8616_v0, 4  ;;  %v8752_v63 = vld [vmem:[#allocation2 + $0x110] sm:$0xf0] }
 0x24f   : > { %v4491_v12 = vrot.slane %v8590_v60, 4  ;;  %v4492_v33 = vrot.slane %v8629_v56, 4  ;;  %v4487_v58 = vsel %vm1270_vm2, %v4485_v61, %v4486_v28  ;;  %v4494_v32 = vrot.slane %v8599_v26, 4 }
 0x250   : > { %v4495_v53 = vrot.slane %v8637_v50, 4  ;;  %v4497_v49 = vrot.slane %v8619_v10, 4  ;;  %v4146_v51 = vor.u32 %v4145_v47, %v4142_v35  ;;  %v4490_v42 = vsel %vm1270_vm2, %v4488_v25, %v4489_v30  ;;  %v4802_v35 = vld [vmem:[#allocation2 + $0xc8] sm:$0x1f]  ;;  %v4803_v25 = vld [vmem:[#allocation2 + $0xd8] sm:$0x1f] }
 0x251   : > { %v4493_v52 = vsel %vm1270_vm2, %v4491_v12, %v4492_v33  ;;  %v4498_v0 = vrot.slane %v8642_v21, 4  ;;  %v4470_v45 = vrot.slane %v8516_v27, 4  ;;  %v4471_v26 = vrot.slane %v8540_v59, 4  ;;  %v7766_v59 = vld [vmem:[%s8977_s3 + $0x208] sm:$0xff]  }
 0x252   : > { %v4496_v60 = vsel %vm1270_vm2, %v4494_v32, %v4495_v53  ;;  %v4147_v50 = vsel %vm917_vm3, %v4138_v57, %v4146_v51  ;;  %v4473_v62 = vrot.slane %v8526_v24, 4  ;;  %v4474_v2 = vrot.slane %v8555_v37, 4  ;;  %v7767_v24 = vld [vmem:[%s8977_s3 + $0x210] sm:$0xff]   ;;  %v7769_v37 = vld [vmem:[%s8977_s3 + $0x220] sm:$0xff]  }
 0x253   : > { %7260 = vmatmul.mubr.bf16.gmra.mrb[24].mxu1 %v4113_v36  ;;  %v4499_v56 = vsel %vm1270_vm2, %v4497_v49, %v4498_v0  ;;  %v4472_v10 = vsel %vm1270_vm2, %v4470_v45, %v4471_v26  ;;  %v4476_v21 = vrot.slane %v8531_v8, 4  ;;  %v4477_v9 = vrot.slane %v8560_v40, 4  ;;  %v7768_v8 = vld [vmem:[%s8977_s3 + $0x218] sm:$0xff]   ;;  %v7770_v40 = vld [vmem:[%s8977_s3 + $0x228] sm:$0xff]   ;;  %v8744_v36 = vld [vmem:[#allocation2 + $0xf0] sm:$0xf0] }
 0x254   : > { %7263 = vmatprep.mubr.bf16.mxu1 %v4130_v14  ;;  %v4475_v11 = vsel %vm1270_vm2, %v4473_v62, %v4474_v2  ;;  %v4500_v3 = vrot.slane %v4432_v48, 4  ;;  %v4501_v15 = vrot.slane %v8645_v17, 4  ;;  %v4503_v34 = vrot.slane %v4433_v23, 4  ;;  %v8746_v17 = vld [vmem:[#allocation2 + $0x100] sm:$0xf0] }
 0x255   : > { %v4478_v27 = vsel %vm1270_vm2, %v4476_v21, %v4477_v9  ;;  %v4504_v22 = vrot.slane %v8657_v46, 4  ;;  %v4506_v19 = vrot.slane %v4434_v20, 4  ;;  %v4507_v5 = vrot.slane %v8663_v4, 4 }
 0x256   : > { %v4502_v7 = vsel %vm1270_vm2, %v4500_v3, %v4501_v15  ;;  %v4509_v47 = vrot.slane %v8744_v36, 4  ;;  %v4510_v38 = vrot.slane %v8668_v1, 4  ;;  %v4512_v46 = vrot.slane %v8746_v17, 4 }
 0x257   : > { %v4505_v29 = vsel %vm1270_vm2, %v4503_v34, %v4504_v22  ;;  %v4508_v41 = vsel %vm1270_vm2, %v4506_v19, %v4507_v5  ;;  %v4513_v54 = vrot.slane %v8671_v16, 4  ;;  %v4979_v4 = vshrl.u32 %v4432_v48, 16 }
 0x258   : > { %v4982_v14 = vshll.u32 %v4432_v48, 16  ;;  %v4987_v57 = vshrl.u32 %v4802_v35, 16  ;;  %v4990_v6 = vshll.u32 %v4802_v35, 16  ;;  %v4511_v61 = vsel %vm1270_vm2, %v4509_v47, %v4510_v38 }
 0x259   : > { %v4514_v28 = vsel %vm1270_vm2, %v4512_v46, %v4513_v54  ;;  %v4981_v1 = vrot.slane %v4979_v4, 4  ;;  %v4515_v32 = vrot.slane %v8752_v63, 4  ;;  %v4516_v53 = vrot.slane %v8677_v55, 4  ;;  %v4807_v54 = vld [vmem:[#allocation2 + $0x118] sm:$0x1f] }
 0x25a   : > { %v4984_v12 = vrot.slane %v4982_v14, 5  ;;  %v4989_v16 = vrot.slane %v4987_v57, 4  ;;  %v4992_v33 = vrot.slane %v4990_v6, 5  ;;  %v4996_v51 = vshrl.u32 %v4433_v23, 16 }
 0x25b   : > { %7264 = vmatmul.mubr.bf16.gmra.mrb[28].mxu1 %v4147_v50  ;;  %v5007_v0 = vshll.u32 %v4803_v25, 16  ;;  %v4517_v62 = vsel %vm1270_vm2, %v4515_v32, %v4516_v53  ;;  %v5075_v32 = vshll.u32 %v4807_v54, 16 }
 0x25c   : > { %7283 = vmatprep.mubr.bf16.mxu1 %v4472_v10  ;;  %v4985_v50 = vor.u32 %v4984_v12, %v4981_v1  ;;  %v4993_v10 = vor.u32 %v4992_v33, %v4989_v16  ;;  %v4998_v2 = vrot.slane %v4996_v51, 4  ;;  %v5064_v12 = vshrl.u32 %v8752_v63, 16 }
 0x25d   : > { %v5067_v16 = vshll.u32 %v8752_v63, 16  ;;  %v5072_v33 = vshrl.u32 %v4807_v54, 16 }
 0x263   : > { %7284 = vmatmul.mubr.bf16.vlgmr.msra.gmra.mrb[0].mxu1 %v4475_v11  ;;  %v5009_v11 = vrot.slane %v5007_v0, 5 }
 0x264   : > { %7371 = vmatpush3.bf16.msra.mxu1 %v8653_v13  ;;  %7287 = vmatprep.mubr.bf16.mxu1 %v4478_v27  ;;  %v7771_v13 = vld [vmem:[%s8977_s3 + $0x230] sm:$0xff]  }
 0x265   : > { %7364 = vmatprep.subr.bf16.mxu1 %v7766_v59 }
 0x268   : > { %7372 = vmatpush3.bf16.msra.mxu1 %v7766_v59 }
 0x269   : > { %7365 = vmatprep.subr.bf16.mxu1 %v7767_v24 }
 0x26b   : > { %7288 = vmatmul.mubr.bf16.gmra.mrb[4].mxu1 %v4481_v39 }
 0x26c   : > { %7291 = vmatprep.mubr.bf16.mxu1 %v4484_v43  ;;  %7373 = vmatpush3.bf16.msra.mxu1 %v7767_v24  ;;  %v4804_v43 = vld [vmem:[#allocation2 + $0xe8] sm:$0x1f] }
 0x26d   : > { %7366 = vmatprep.subr.bf16.mxu1 %v7768_v8  ;;  %v5021_v45 = vshrl.u32 %v4804_v43, 16  ;;  %v5024_v26 = vshll.u32 %v4804_v43, 16 }
 0x26f   : > { %v5023_v24 = vrot.slane %v5021_v45, 4  ;;  %v5074_v45 = vrot.slane %v5072_v33, 4 }
 0x270   : > { %7374 = vmatpush3.bf16.msra.mxu1 %v7768_v8  ;;  %v5026_v8 = vrot.slane %v5024_v26, 5  ;;  %v5077_v26 = vrot.slane %v5075_v32, 5 }
 0x271   : > { %7367 = vmatprep.subr.bf16.mxu1 %v7769_v37 }
 0x272   : > { %v5027_v22 = vor.u32 %v5026_v8, %v5023_v24 }
 0x273   : > { %7292 = vmatmul.mubr.bf16.gmra.mrb[8].mxu1 %v4487_v58 }
 0x274   : > { %7295 = vmatprep.mubr.bf16.mxu1 %v4490_v42  ;;  %7375 = vmatpush3.bf16.msra.mxu1 %v7769_v37  ;;  %v4999_v42 = vshll.u32 %v4433_v23, 16  ;;  %v5030_v23 = vshrl.u32 %v8744_v36, 16 }
 0x275   : > { %7368 = vmatprep.subr.bf16.mxu1 %v7770_v40 }
 0x276   : > { %v5001_v21 = vrot.slane %v4999_v42, 5  ;;  %v5032_v38 = vrot.slane %v5030_v23, 4 }
 0x278   : > { %7376 = vmatpush3.bf16.msra.mxu1 %v7770_v40  ;;  %v4994_v40 = vsel %vm1786_vm4, %v4985_v50, %v4993_v10  ;;  %v5002_v15 = vor.u32 %v5001_v21, %v4998_v2 }
 0x279   : > { %7369 = vmatprep.subr.bf16.mxu1 %v7771_v13 }
 0x27b   : > { %7296 = vmatmul.mubr.bf16.gmra.mrb[12].mxu1 %v4493_v52  ;;  %v5004_v52 = vshrl.u32 %v4803_v25, 16 }
 0x27c   : > { %7299 = vmatprep.mubr.bf16.mxu1 %v4496_v60  ;;  %7377 = vmatpush3.bf16.msra.mxu1 %v7771_v13  ;;  %v5013_v60 = vshrl.u32 %v4434_v20, 16  ;;  %v4805_v13 = vld [vmem:[#allocation2 + $0xf8] sm:$0x1f] }
 0x27d   : > { %7370 = vmatprep.subr.bf16.mxu1 %v7772_v31  ;;  %v5006_v9 = vrot.slane %v5004_v52, 4  ;;  %v5038_v19 = vshrl.u32 %v4805_v13, 16  ;;  %v5041_v5 = vshll.u32 %v4805_v13, 16 }
 0x27e   : > { %v5015_v55 = vrot.slane %v5013_v60, 4  ;;  %v5066_v60 = vrot.slane %v5064_v12, 4 }
 0x27f   : > { %v5043_v6 = vrot.slane %v5041_v5, 5 }
 0x280   : > { %7378 = vmatpush3.bf16.msra.mxu1 %v7772_v31  ;;  %v4806_v31 = vld [vmem:[#allocation2 + $0x108] sm:$0x1f] }
 0x281   : > { %v5055_v35 = vshrl.u32 %v4806_v31, 16  ;;  %v5058_v47 = vshll.u32 %v4806_v31, 16 }
 0x283   : > { %7300 = vmatmul.mubr.bf16.gmra.mrb[16].mxu1 %v4499_v56  ;;  %v5016_v56 = vshll.u32 %v4434_v20, 16  ;;  %v5033_v20 = vshll.u32 %v8744_v36, 16  ;;  %v5040_v36 = vrot.slane %v5038_v19, 4  ;;  %v5057_v43 = vrot.slane %v5055_v35, 4 }
 0x284   : > { %7303 = vmatprep.mubr.bf16.mxu1 %v4502_v7  ;;  %v5010_v7 = vor.u32 %v5009_v11, %v5006_v9  ;;  %v5078_v9 = vor.u32 %v5077_v26, %v5074_v45  ;;  %v8863_v45 = vld [vmem:[%s8978_s4] ss:$0 sm:$0xff] }
 0x285   : > { %v5018_v59 = vrot.slane %v5016_v56, 5  ;;  %v5035_v46 = vrot.slane %v5033_v20, 5  ;;  %v5044_v42 = vor.u32 %v5043_v6, %v5040_v36  ;;  %v5069_v56 = vrot.slane %v5067_v16, 5 }
 0x286   : > { %v5011_v14 = vsel %vm1786_vm4, %v5002_v15, %v5010_v7 }
 0x287   : > { %v5019_v34 = vor.u32 %v5018_v59, %v5015_v55  ;;  %v5036_v51 = vor.u32 %v5035_v46, %v5032_v38  ;;  %v5070_v21 = vor.u32 %v5069_v56, %v5066_v60 }
 0x289   : > { %v5028_v57 = vsel %vm1786_vm4, %v5019_v34, %v5027_v22  ;;  %v5045_v10 = vsel %vm1786_vm4, %v5036_v51, %v5044_v42  ;;  %v5079_v55 = vsel %vm1786_vm4, %v5070_v21, %v5078_v9 }
 0x28b   : > { %7304 = vmatmul.mubr.bf16.gmra.mrb[20].mxu1 %v4505_v29  ;;  %v5047_v29 = vshrl.u32 %v8746_v17, 16 }
 0x28c   : > { %7307 = vmatprep.mubr.bf16.mxu1 %v4508_v41  ;;  %v5050_v41 = vshll.u32 %v8746_v17, 16  ;;  %v5060_v17 = vrot.slane %v5058_v47, 5 }
 0x28e   : > { %v5052_v25 = vrot.slane %v5050_v41, 5  ;;  %v5061_v0 = vor.u32 %v5060_v17, %v5057_v43 }
 0x291   : > { %v8754_v39 = vpop.f32.mrb[64].mxu0 }
 0x292   : > { %v8758_v30 = vpop.f32.mrb[65].mxu0 }
 0x293   : > { %7308 = vmatmul.mubr.bf16.gmra.mrb[24].mxu1 %v4511_v61  ;;  %v8760_v58 = vpop.f32.mrb[66].mxu0 }
 0x294   : > { %7311 = vmatprep.mubr.bf16.mxu1 %v4514_v28  ;;  %v8764_v49 = vpop.f32.mrb[67].mxu0  ;;  %v5049_v28 = vrot.slane %v5047_v29, 4 }
 0x296   : > { %v5053_v52 = vor.u32 %v5052_v25, %v5049_v28 }
 0x298   : > { %v5062_v63 = vsel %vm1786_vm4, %v5053_v52, %v5061_v0 }
 0x299   : > { %v8767_v27 = vpop.f32.mrb[68].mxu0 }
 0x29a   : > { %v8769_v37 = vpop.f32.mrb[69].mxu0 }
 0x29b   : > { %7312 = vmatmul.mubr.bf16.gmra.mrb[28].mxu1 %v4517_v62  ;;  %v8772_v48 = vpop.f32.mrb[70].mxu0 }
 0x29c   : > { %7351 = vmatprep.mubr.bf16.mxu1 %v4994_v40  ;;  %v8774_v3 = vpop.f32.mrb[71].mxu0 }
 0x2a1   : > { %v8780_v4 = vpop.f32.mrb[72].mxu0 }
 0x2a2   : > { %v8784_v61 = vpop.f32.mrb[73].mxu0 }
 0x2a3   : > { %7352 = vmatmul.mubr.bf16.vlgmr.msra.gmra.mrb[20].mxu1 %v5011_v14  ;;  %v8786_v1 = vpop.f32.mrb[74].mxu0 }
 0x2a4   : > { %7355 = vmatprep.mubr.bf16.mxu1 %v5028_v57  ;;  %v8790_v53 = vpop.f32.mrb[75].mxu0 }
 0x2a9   : > { %v8792_v50 = vpop.f32.mrb[76].mxu0 }
 0x2aa   : > { %v8795_v62 = vpop.f32.mrb[77].mxu0 }
 0x2ab   : > { %7356 = vmatmul.mubr.bf16.gmra.mrb[24].mxu1 %v5045_v10  ;;  %v8798_v2 = vpop.f32.mrb[78].mxu0 }
 0x2ac   : > { %7359 = vmatprep.mubr.bf16.mxu1 %v5062_v63  ;;  %v8800_v11 = vpop.f32.mrb[79].mxu0 }
 0x2b3   : > { %7360 = vmatmul.mubr.bf16.gmra.mrb[28].mxu1 %v5079_v55  ;;  %v8803_v59 = vpop.f32.mrb[80].mxu0 }
 0x2b4   : > { %v8805_v24 = vpop.f32.mrb[81].mxu0 }
 0x2b5   : > { %v8807_v8 = vpop.f32.mrb[82].mxu0 }
 0x2b6   : > { %v8809_v40 = vpop.f32.mrb[83].mxu0 }
 0x2be   : > { %v8811_v13 = vpop.f32.mrb[84].mxu0 }
 0x2bf   : > { %v8813_v31 = vpop.f32.mrb[85].mxu0 }
 0x2c0   : > { %v8815_v15 = vpop.f32.mrb[86].mxu0 }
 0x2c1   : > { %v8817_v7 = vpop.f32.mrb[87].mxu0 }
 0x2c9   : > { %v8819_v23 = vpop.f32.mrb[88].mxu0 }
 0x2ca   : > { %v8821_v20 = vpop.f32.mrb[89].mxu0 }
 0x2cb   : > { %v8823_v34 = vpop.f32.mrb[90].mxu0 }
 0x2cc   : > { %v8825_v22 = vpop.f32.mrb[91].mxu0 }
 0x2d4   : > { %v8827_v19 = vpop.f32.mrb[92].mxu0 }
 0x2d5   : > { %v8829_v5 = vpop.f32.mrb[93].mxu0 }
 0x2d6   : > { %8986 = vst [vmem:[#allocation5_spill] sm:$0xff] %v8829_v5  ;;  %v8831_v29 = vpop.f32.mrb[94].mxu0 }
 0x2d7   : > { %8987 = vst [vmem:[#allocation6_spill] sm:$0xff] %v8831_v29  ;;  %v8833_v41 = vpop.f32.mrb[95].mxu0 }
 0x2d8   : > { %8988 = vst [vmem:[#allocation7_spill] sm:$0xff] %v8833_v41 }
 0x2df   : > { %v7333_v35 = vpop.f32.mrb[96].mxu0 }
 0x2e0   : > { %v5195_v47 = vpop.f32.mrb[97].mxu0 }
 0x2e1   : > { %v7334_v38 = vpop.f32.mrb[98].mxu0 }
 0x2e2   : > { %v5198_v46 = vpop.f32.mrb[99].mxu0 }
 0x2ea   : > { %v7337_v54 = vpop.f32.mrb[100].mxu0 }
 0x2eb   : > { %v5211_v14 = vpop.f32.mrb[101].mxu0 }
 0x2ec   : > { %v7338_v57 = vpop.f32.mrb[102].mxu0 }
 0x2ed   : > { %v5214_v36 = vpop.f32.mrb[103].mxu0 }
 0x2f5   : > { %v8835_v6 = vpop.f32.mrb[104].mxu0 }
 0x2f6   : > { %v8837_v28 = vpop.f32.mrb[105].mxu0 }
 0x2f7   : > { %v8839_v25 = vpop.f32.mrb[106].mxu0 }
 0x2f8   : > { %v8841_v43 = vpop.f32.mrb[107].mxu0 }
 0x300   : > { %v8843_v17 = vpop.f32.mrb[108].mxu0 }
 0x301   : > { %v8845_v12 = vpop.f32.mrb[109].mxu0 }
 0x302   : > { %v8847_v16 = vpop.f32.mrb[110].mxu0 }
 0x303   : > { %v8849_v33 = vpop.f32.mrb[111].mxu0 }
 0x30b   : > { %v8851_v32 = vpop.f32.mrb[112].mxu0 }
 0x30c   : > { %v8853_v51 = vpop.f32.mrb[113].mxu0 }
 0x30d   : > { %v8855_v42 = vpop.f32.mrb[114].mxu0 }
 0x30e   : > { %v8857_v52 = vpop.f32.mrb[115].mxu0 }
 0x336   : > { %v7285_v0 = vpop.f32.mrb[0].mxu1 }
 0x337   : > { %v7379_v60 = vadd.f32 %v7285_v0, %v8754_v39  ;;  %v4633_v56 = vpop.f32.mrb[1].mxu1 }
 0x338   : > { %v7381_v26 = vadd.f32 %v4633_v56, %v8758_v30  ;;  %v7286_v10 = vpop.f32.mrb[2].mxu1 }
 0x339   : > { %v7380_v63 = vadd.f32 %v7379_v60, %v7333_v35  ;;  %v7383_v21 = vadd.f32 %v7286_v10, %v8760_v58  ;;  %v4636_v9 = vpop.f32.mrb[3].mxu1 }
 0x33a   : > { %v7382_v55 = vadd.f32 %v7381_v26, %v5195_v47  ;;  %v7385_v18 = vadd.f32 %v4636_v9, %v8764_v49 }
 0x33b   : > { %v5362_v44 = vadd.f32 %v7380_v63, %v8863_v45  ;;  %v7384_v39 = vadd.f32 %v7383_v21, %v7334_v38 }
 0x33c   : > { %v5360_v0 = vadd.f32 %v7382_v55, %v8863_v45  ;;  %v7386_v41 = vadd.f32 %v7385_v18, %v5198_v46 }
 0x33d   : > { %v5363_v29 = vadd.f32 %v7384_v39, %v8863_v45  ;;  %v5394_v56 = vmax.f32 %v5362_v44, 0.0 }
 0x33e   : > { %v5361_v5 = vadd.f32 %v7386_v41, %v8863_v45  ;;  %v7289_v30 = vpop.f32.mrb[4].mxu1  ;;  %v5392_v10 = vmax.f32 %v5360_v0, 0.0 }
 0x33f   : > { %v5395_v35 = vmax.f32 %v5363_v29, 0.0  ;;  %v7387_v58 = vadd.f32 %v7289_v30, %v8767_v27  ;;  %v4649_v60 = vpop.f32.mrb[5].mxu1 }
 0x340   : > { %v5393_v49 = vmax.f32 %v5361_v5, 0.0  ;;  %v7389_v18 = vadd.f32 %v4649_v60, %v8769_v37  ;;  %v7290_v47 = vpop.f32.mrb[6].mxu1 }
 0x341   : > { %v5425_v38 = vpack.c.bf16 %v5395_v35, %v5394_v56  ;;  %v7388_v41 = vadd.f32 %v7387_v58, %v7337_v54  ;;  %v7391_v44 = vadd.f32 %v7290_v47, %v8772_v48  ;;  %v4652_v29 = vpop.f32.mrb[7].mxu1 }
 0x342   : > { %v5424_v46 = vpack.c.bf16 %v5393_v49, %v5392_v10  ;;  %v7390_v27 = vadd.f32 %v7389_v18, %v5211_v14  ;;  %v7393_v26 = vadd.f32 %v4652_v29, %v8774_v3 }
 0x343   : > { %6685 = vst [vmem:[%s8877_s22 + $0x8] sm:$0xff] %v5425_v38   ;;  %v5746_v63 = vunpack.c.l.bf16 %v5425_v38  ;;  %v5747_v21 = vunpack.c.h.bf16 %v5425_v38  ;;  %v5366_v9 = vadd.f32 %v7388_v41, %v8863_v45  ;;  %v7392_v55 = vadd.f32 %v7391_v44, %v7338_v57 }
 0x344   : > { %6529 = vst [vmem:[%s8877_s22] sm:$0xff] %v5424_v46   ;;  %v5744_v5 = vunpack.c.l.bf16 %v5424_v46  ;;  %v5745_v39 = vunpack.c.h.bf16 %v5424_v46  ;;  %v5364_v37 = vadd.f32 %v7390_v27, %v8863_v45  ;;  %v7394_v0 = vadd.f32 %v7393_v26, %v5214_v36 }
 0x345   : > { %v5847_v54 = vmul.f32 %v5746_v63, %v5746_v63  ;;  %v5367_v48 = vadd.f32 %v7392_v55, %v8863_v45  ;;  %v5848_v30 = vmul.f32 %v5747_v21, %v5747_v21  ;;  %v5398_v58 = vmax.f32 %v5366_v9, 0.0 }
 0x346   : > { %v5808_v56 = vadd.f32 %v5745_v39, %v5744_v5  ;;  %v5845_v14 = vmul.f32 %v5744_v5, %v5744_v5  ;;  %v5846_v35 = vmul.f32 %v5745_v39, %v5745_v39  ;;  %v7293_v3 = vpop.f32.mrb[8].mxu1  ;;  %v5365_v10 = vadd.f32 %v7394_v0, %v8863_v45 }
 0x347   : > { %v5399_v60 = vmax.f32 %v5367_v48, 0.0  ;;  %v7395_v57 = vadd.f32 %v7293_v3, %v8780_v4  ;;  %v4665_v49 = vpop.f32.mrb[9].mxu1  ;;  %v5396_v38 = vmax.f32 %v5364_v37, 0.0 }
 0x348   : > { %v5809_v18 = vadd.f32 %v5808_v56, %v5746_v63  ;;  %v5877_v47 = vadd.f32 %v5846_v35, %v5845_v14  ;;  %v7397_v36 = vadd.f32 %v4665_v49, %v8784_v61  ;;  %v7294_v41 = vpop.f32.mrb[10].mxu1  ;;  %v5397_v29 = vmax.f32 %v5365_v10, 0.0 }
 0x349   : > { %v5427_v44 = vpack.c.bf16 %v5399_v60, %v5398_v58  ;;  %v7396_v46 = vadd.f32 %v7395_v57, %v8835_v6  ;;  %v7399_v27 = vadd.f32 %v7294_v41, %v8786_v1  ;;  %v4668_v26 = vpop.f32.mrb[11].mxu1 }
 0x34a   : > { %v5878_v9 = vadd.f32 %v5877_v47, %v5847_v54  ;;  %v5810_v55 = vadd.f32 %v5809_v18, %v5747_v21  ;;  %v7398_v4 = vadd.f32 %v7397_v36, %v8837_v28  ;;  %v7401_v5 = vadd.f32 %v4668_v26, %v8790_v53 }
 0x34b   : > { %6687 = vst [vmem:[%s8877_s22 + $0x18] sm:$0xff] %v5427_v44   ;;  %v5750_v63 = vunpack.c.l.bf16 %v5427_v44  ;;  %v5426_v39 = vpack.c.bf16 %v5397_v29, %v5396_v38  ;;  %v5370_v61 = vadd.f32 %v7396_v46, %v8863_v45  ;;  %v7400_v6 = vadd.f32 %v7399_v27, %v8839_v25 }
 0x34c   : > { %v5879_v37 = vadd.f32 %v5878_v9, %v5848_v30  ;;  %v5368_v0 = vadd.f32 %v7398_v4, %v8863_v45  ;;  %v7402_v48 = vadd.f32 %v7401_v5, %v8841_v43  ;;  %v5751_v1 = vunpack.c.h.bf16 %v5427_v44 }
 0x34d   : > { %6686 = vst [vmem:[%s8877_s22 + $0x10] sm:$0xff] %v5426_v39   ;;  %v5748_v54 = vunpack.c.l.bf16 %v5426_v39  ;;  %v5749_v21 = vunpack.c.h.bf16 %v5426_v39  ;;  %v5851_v56 = vmul.f32 %v5750_v63, %v5750_v63  ;;  %v5402_v28 = vmax.f32 %v5370_v61, 0.0 }
 0x34e   : > { %v5371_v53 = vadd.f32 %v7400_v6, %v8863_v45  ;;  %v5369_v14 = vadd.f32 %v7402_v48, %v8863_v45  ;;  %v7297_v35 = vpop.f32.mrb[12].mxu1  ;;  %v5400_v30 = vmax.f32 %v5368_v0, 0.0  ;;  %v5852_v39 = vmul.f32 %v5751_v1, %v5751_v1 }
 0x34f   : > { %v5811_v3 = vadd.f32 %v5810_v55, %v5748_v54  ;;  %v5849_v58 = vmul.f32 %v5748_v54, %v5748_v54  ;;  %v7403_v60 = vadd.f32 %v7297_v35, %v8792_v50  ;;  %v4681_v10 = vpop.f32.mrb[13].mxu1  ;;  %v5850_v25 = vmul.f32 %v5749_v21, %v5749_v21 }
 0x350   : > { %v5403_v57 = vmax.f32 %v5371_v53, 0.0  ;;  %v5401_v43 = vmax.f32 %v5369_v14, 0.0  ;;  %v7405_v49 = vadd.f32 %v4681_v10, %v8795_v62  ;;  %v7298_v18 = vpop.f32.mrb[14].mxu1 }
 0x351   : > { %v5812_v47 = vadd.f32 %v5811_v3, %v5749_v21  ;;  %v5880_v38 = vadd.f32 %v5879_v37, %v5849_v58  ;;  %v7404_v36 = vadd.f32 %v7403_v60, %v8843_v17  ;;  %v7407_v41 = vadd.f32 %v7298_v18, %v8798_v2  ;;  %v4684_v44 = vpop.f32.mrb[15].mxu1 }
 0x352   : > { %v5429_v29 = vpack.c.bf16 %v5403_v57, %v5402_v28  ;;  %v5428_v46 = vpack.c.bf16 %v5401_v43, %v5400_v30  ;;  %v7406_v50 = vadd.f32 %v7405_v49, %v8845_v12  ;;  %v7409_v27 = vadd.f32 %v4684_v44, %v8800_v11 }
 0x353   : > { %v5813_v26 = vadd.f32 %v5812_v47, %v5750_v63  ;;  %v5881_v9 = vadd.f32 %v5880_v38, %v5850_v25  ;;  %v5374_v55 = vadd.f32 %v7404_v36, %v8863_v45  ;;  %v7408_v62 = vadd.f32 %v7407_v41, %v8847_v16 }
 0x354   : > { %6689 = vst [vmem:[%s8877_s22 + $0x28] sm:$0xff] %v5429_v29   ;;  %v5754_v4 = vunpack.c.l.bf16 %v5429_v29  ;;  %6688 = vst [vmem:[%s8877_s22 + $0x20] sm:$0xff] %v5428_v46   ;;  %v5752_v5 = vunpack.c.l.bf16 %v5428_v46  ;;  %v5753_v17 = vunpack.c.h.bf16 %v5428_v46  ;;  %v5755_v37 = vunpack.c.h.bf16 %v5429_v29 }
 0x355   : > { %v5882_v2 = vadd.f32 %v5881_v9, %v5851_v56  ;;  %v5814_v61 = vadd.f32 %v5813_v26, %v5751_v1  ;;  %v5406_v6 = vmax.f32 %v5374_v55, 0.0  ;;  %v5372_v12 = vadd.f32 %v7406_v50, %v8863_v45 }
 0x356   : > { %v5853_v0 = vmul.f32 %v5752_v5, %v5752_v5  ;;  %v7301_v11 = vpop.f32.mrb[16].mxu1  ;;  %v5855_v63 = vmul.f32 %v5754_v4, %v5754_v4  ;;  %v5375_v21 = vadd.f32 %v7408_v62, %v8863_v45  ;;  %v5854_v28 = vmul.f32 %v5753_v17, %v5753_v17 }
 0x357   : > { %v5815_v48 = vadd.f32 %v5814_v61, %v5752_v5  ;;  %v5883_v54 = vadd.f32 %v5882_v2, %v5852_v39  ;;  %v4697_v16 = vpop.f32.mrb[17].mxu1  ;;  %v7410_v53 = vadd.f32 %v7409_v27, %v8849_v33  ;;  %v7411_v14 = vadd.f32 %v7301_v11, %v8803_v59 }
 0x358   : > { %v7413_v56 = vadd.f32 %v4697_v16, %v8805_v24  ;;  %v7302_v1 = vpop.f32.mrb[18].mxu1  ;;  %v5407_v58 = vmax.f32 %v5375_v21, 0.0  ;;  %v5404_v18 = vmax.f32 %v5372_v12, 0.0  ;;  %v5856_v36 = vmul.f32 %v5755_v37, %v5755_v37 }
 0x359   : > { %v5816_v35 = vadd.f32 %v5815_v48, %v5753_v17  ;;  %v5884_v3 = vadd.f32 %v5883_v54, %v5853_v0  ;;  %v7415_v30 = vadd.f32 %v7302_v1, %v8807_v8  ;;  %v4700_v60 = vpop.f32.mrb[19].mxu1  ;;  %v5373_v10 = vadd.f32 %v7410_v53, %v8863_v45 }
 0x35a   : > { %v7412_v25 = vadd.f32 %v7411_v14, %v8851_v32  ;;  %v7414_v57 = vadd.f32 %v7413_v56, %v8853_v51  ;;  %v7417_v33 = vadd.f32 %v4700_v60, %v8809_v40  ;;  %v5431_v24 = vpack.c.bf16 %v5407_v58, %v5406_v6 }
 0x35b   : > { %v5817_v43 = vadd.f32 %v5816_v35, %v5754_v4  ;;  %v5885_v59 = vadd.f32 %v5884_v3, %v5854_v28  ;;  %v7416_v49 = vadd.f32 %v7415_v30, %v8855_v42  ;;  %v5405_v47 = vmax.f32 %v5373_v10, 0.0 }
 0x35c   : > { %v5378_v8 = vadd.f32 %v7412_v25, %v8863_v45  ;;  %v7418_v38 = vadd.f32 %v7417_v33, %v8857_v52  ;;  %6691 = vst [vmem:[%s8877_s22 + $0x38] sm:$0xff] %v5431_v24   ;;  %v5376_v51 = vadd.f32 %v7414_v57, %v8863_v45  ;;  %v5758_v55 = vunpack.c.l.bf16 %v5431_v24 }
 0x35d   : > { %v5886_v41 = vadd.f32 %v5885_v59, %v5855_v63  ;;  %v5818_v32 = vadd.f32 %v5817_v43, %v5755_v37  ;;  %v5430_v44 = vpack.c.bf16 %v5405_v47, %v5404_v18  ;;  %v5379_v40 = vadd.f32 %v7416_v49, %v8863_v45 }
 0x35e   : > { %v5377_v46 = vadd.f32 %v7418_v38, %v8863_v45  ;;  %v5410_v27 = vmax.f32 %v5378_v8, 0.0  ;;  %v5408_v52 = vmax.f32 %v5376_v51, 0.0  ;;  %v5759_v17 = vunpack.c.h.bf16 %v5431_v24 }
 0x35f   : > { %v5887_v29 = vadd.f32 %v5886_v41, %v5856_v36  ;;  %6690 = vst [vmem:[%s8877_s22 + $0x30] sm:$0xff] %v5430_v44   ;;  %v5756_v42 = vunpack.c.l.bf16 %v5430_v44  ;;  %v5757_v50 = vunpack.c.h.bf16 %v5430_v44  ;;  %v5411_v26 = vmax.f32 %v5379_v40, 0.0 }
 0x360   : > { %v5409_v9 = vmax.f32 %v5377_v46, 0.0  ;;  %v5859_v6 = vmul.f32 %v5758_v55, %v5758_v55  ;;  %v5860_v63 = vmul.f32 %v5759_v17, %v5759_v17 }
 0x361   : > { %v5819_v62 = vadd.f32 %v5818_v32, %v5756_v42  ;;  %v5857_v4 = vmul.f32 %v5756_v42, %v5756_v42  ;;  %v5433_v5 = vpack.c.bf16 %v5411_v26, %v5410_v27  ;;  %v5858_v61 = vmul.f32 %v5757_v50, %v5757_v50 }
 0x362   : > { %v5432_v39 = vpack.c.bf16 %v5409_v9, %v5408_v52 }
 0x363   : > { %v5820_v2 = vadd.f32 %v5819_v62, %v5757_v50  ;;  %v5888_v37 = vadd.f32 %v5887_v29, %v5857_v4  ;;  %6693 = vst [vmem:[%s8877_s22 + $0x48] sm:$0xff] %v5433_v5   ;;  %v5762_v28 = vunpack.c.l.bf16 %v5433_v5  ;;  %v5763_v56 = vunpack.c.h.bf16 %v5433_v5 }
 0x364   : > { %6692 = vst [vmem:[%s8877_s22 + $0x40] sm:$0xff] %v5432_v39   ;;  %v5760_v0 = vunpack.c.l.bf16 %v5432_v39  ;;  %v5761_v54 = vunpack.c.h.bf16 %v5432_v39 }
 0x365   : > { %v5821_v12 = vadd.f32 %v5820_v2, %v5758_v55  ;;  %v5889_v11 = vadd.f32 %v5888_v37, %v5858_v61  ;;  %v5863_v58 = vmul.f32 %v5762_v28, %v5762_v28  ;;  %v5864_v10 = vmul.f32 %v5763_v56, %v5763_v56 }
 0x366   : > { %v5861_v16 = vmul.f32 %v5760_v0, %v5760_v0  ;;  %v5862_v35 = vmul.f32 %v5761_v54, %v5761_v54 }
 0x367   : > { %v5890_v48 = vadd.f32 %v5889_v11, %v5859_v6  ;;  %v5822_v21 = vadd.f32 %v5821_v12, %v5759_v17 }
 0x369   : > { %v5823_v53 = vadd.f32 %v5822_v21, %v5760_v0  ;;  %v5891_v14 = vadd.f32 %v5890_v48, %v5860_v63 }
 0x36b   : > { %v5824_v1 = vadd.f32 %v5823_v53, %v5761_v54  ;;  %v5892_v3 = vadd.f32 %v5891_v14, %v5861_v16  ;;  %v8989_v14 = vld [vmem:[#allocation5_spill] sm:$0xff] }
 0x36d   : > { %v5893_v30 = vadd.f32 %v5892_v3, %v5862_v35  ;;  %v5825_v60 = vadd.f32 %v5824_v1, %v5762_v28 }
 0x36f   : > { %v5826_v25 = vadd.f32 %v5825_v60, %v5763_v56  ;;  %v5894_v57 = vadd.f32 %v5893_v30, %v5863_v58 }
 0x371   : > { %v5895_v33 = vadd.f32 %v5894_v57, %v5864_v10 }
 0x376   : > { %v7353_v43 = vpop.f32.mrb[20].mxu1 }
 0x377   : > { %v7419_v59 = vadd.f32 %v7353_v43, %v8811_v13  ;;  %v5275_v24 = vpop.f32.mrb[21].mxu1 }
 0x378   : > { %v7420_v49 = vadd.f32 %v5275_v24, %v8813_v31  ;;  %v7354_v18 = vpop.f32.mrb[22].mxu1 }
 0x379   : > { %v5382_v47 = vadd.f32 %v7419_v59, %v8863_v45  ;;  %v7421_v8 = vadd.f32 %v7354_v18, %v8815_v15  ;;  %v5278_v38 = vpop.f32.mrb[23].mxu1 }
 0x37a   : > { %v5380_v36 = vadd.f32 %v7420_v49, %v8863_v45  ;;  %v7422_v41 = vadd.f32 %v5278_v38, %v8817_v7 }
 0x37b   : > { %v5383_v32 = vadd.f32 %v7421_v8, %v8863_v45  ;;  %v5414_v13 = vmax.f32 %v5382_v47, 0.0  ;;  %v8991_v8 = vld [vmem:[#allocation7_spill] sm:$0xff] }
 0x37c   : > { %v5381_v51 = vadd.f32 %v7422_v41, %v8863_v45  ;;  %v5412_v40 = vmax.f32 %v5380_v36, 0.0 }
 0x37d   : > { %v5415_v44 = vmax.f32 %v5383_v32, 0.0 }
 0x37e   : > { %v5413_v31 = vmax.f32 %v5381_v51, 0.0  ;;  %v7357_v29 = vpop.f32.mrb[24].mxu1 }
 0x37f   : > { %v5435_v46 = vpack.c.bf16 %v5415_v44, %v5414_v13  ;;  %v7423_v42 = vadd.f32 %v7357_v29, %v8819_v23  ;;  %v5291_v15 = vpop.f32.mrb[25].mxu1 }
 0x380   : > { %v5434_v50 = vpack.c.bf16 %v5413_v31, %v5412_v40  ;;  %v7424_v27 = vadd.f32 %v5291_v15, %v8821_v20  ;;  %v7358_v26 = vpop.f32.mrb[26].mxu1 }
 0x381   : > { %6695 = vst [vmem:[%s8877_s22 + $0x58] sm:$0xff] %v5435_v46   ;;  %v5386_v7 = vadd.f32 %v7423_v42, %v8863_v45  ;;  %v7425_v52 = vadd.f32 %v7358_v26, %v8823_v34  ;;  %v5294_v9 = vpop.f32.mrb[27].mxu1  ;;  %v5766_v17 = vunpack.c.l.bf16 %v5435_v46  ;;  %v5767_v20 = vunpack.c.h.bf16 %v5435_v46 }
 0x382   : > { %6694 = vst [vmem:[%s8877_s22 + $0x50] sm:$0xff] %v5434_v50   ;;  %v5764_v55 = vunpack.c.l.bf16 %v5434_v50  ;;  %v5765_v62 = vunpack.c.h.bf16 %v5434_v50  ;;  %v7426_v4 = vadd.f32 %v5294_v9, %v8825_v22  ;;  %v5384_v5 = vadd.f32 %v7424_v27, %v8863_v45 }
 0x383   : > { %v5387_v23 = vadd.f32 %v7425_v52, %v8863_v45  ;;  %v5418_v61 = vmax.f32 %v5386_v7, 0.0  ;;  %v5867_v16 = vmul.f32 %v5766_v17, %v5766_v17  ;;  %v5868_v35 = vmul.f32 %v5767_v20, %v5767_v20 }
 0x384   : > { %v5827_v39 = vadd.f32 %v5826_v25, %v5764_v55  ;;  %v5865_v2 = vmul.f32 %v5764_v55, %v5764_v55  ;;  %v5385_v0 = vadd.f32 %v7426_v4, %v8863_v45  ;;  %v5866_v6 = vmul.f32 %v5765_v62, %v5765_v62  ;;  %v8990_v25 = vld [vmem:[#allocation6_spill] sm:$0xff] }
 0x385   : > { %v5419_v37 = vmax.f32 %v5387_v23, 0.0  ;;  %v5416_v63 = vmax.f32 %v5384_v5, 0.0 }
 0x386   : > { %v5828_v34 = vadd.f32 %v5827_v39, %v5765_v62  ;;  %v5896_v12 = vadd.f32 %v5895_v33, %v5865_v2  ;;  %v7361_v11 = vpop.f32.mrb[28].mxu1  ;;  %v5417_v22 = vmax.f32 %v5385_v0, 0.0  ;;  %v8993_v39 = vld [vmem:[#allocation4_spill] sm:$0xff] }
 0x387   : > { %v5437_v48 = vpack.c.bf16 %v5419_v37, %v5418_v61  ;;  %v7427_v54 = vadd.f32 %v7361_v11, %v8827_v19  ;;  %v5307_v21 = vpop.f32.mrb[29].mxu1  ;;  %v6014_v2 = vrot.slane %v8993_v39, 4 }
 0x388   : > { %v5829_v28 = vadd.f32 %v5828_v34, %v5766_v17  ;;  %v5897_v53 = vadd.f32 %v5896_v12, %v5866_v6  ;;  %v7428_v56 = vadd.f32 %v5307_v21, %v8989_v14  ;;  %v7362_v1 = vpop.f32.mrb[30].mxu1  ;;  %v5436_v3 = vpack.c.bf16 %v5417_v22, %v5416_v63  ;;  %v8992_v17 = vld [vmem:[#allocation3_spill] sm:$0xff] }
 0x389   : > { %6697 = vst [vmem:[%s8877_s22 + $0x68] sm:$0xff] %v5437_v48   ;;  %v5310_v58 = vpop.f32.mrb[31].mxu1  ;;  %v5390_v10 = vadd.f32 %v7427_v54, %v8863_v45  ;;  %v7429_v57 = vadd.f32 %v7362_v1, %v8990_v25  ;;  %v5770_v43 = vunpack.c.l.bf16 %v5437_v48  ;;  %v5771_v36 = vunpack.c.h.bf16 %v5437_v48 }
 0x38a   : > { %v5898_v30 = vadd.f32 %v5897_v53, %v5867_v16  ;;  %v5830_v60 = vadd.f32 %v5829_v28, %v5767_v20  ;;  %6696 = vst [vmem:[%s8877_s22 + $0x60] sm:$0xff] %v5436_v3   ;;  %v5768_v33 = vunpack.c.l.bf16 %v5436_v3  ;;  %v5769_v19 = vunpack.c.h.bf16 %v5436_v3 }
 0x38b   : > { %v5391_v24 = vadd.f32 %v7429_v57, %v8863_v45  ;;  %v5388_v47 = vadd.f32 %v7428_v56, %v8863_v45  ;;  %v7430_v38 = vadd.f32 %v5310_v58, %v8991_v8  ;;  %v5422_v41 = vmax.f32 %v5390_v10, 0.0 }
 0x38c   : > { %v5899_v59 = vadd.f32 %v5898_v30, %v5868_v35  ;;  %v5831_v49 = vadd.f32 %v5830_v60, %v5768_v33  ;;  %v5869_v18 = vmul.f32 %v5768_v33, %v5768_v33  ;;  %v5870_v13 = vmul.f32 %v5769_v19, %v5769_v19 }
 0x38d   : > { %v5423_v32 = vmax.f32 %v5391_v24, 0.0  ;;  %v5389_v40 = vadd.f32 %v7430_v38, %v8863_v45  ;;  %v5871_v31 = vmul.f32 %v5770_v43, %v5770_v43  ;;  %v5420_v15 = vmax.f32 %v5388_v47, 0.0 }
 0x38e   : > { %v5832_v51 = vadd.f32 %v5831_v49, %v5769_v19  ;;  %v5900_v44 = vadd.f32 %v5899_v59, %v5869_v18  ;;  %v5872_v27 = vmul.f32 %v5771_v36, %v5771_v36  ;;  %v5945_v45 = vrot.slane %v8992_v17, 4 }
 0x38f   : > { %v5439_v29 = vpack.c.bf16 %v5423_v32, %v5422_v41  ;;  %v5421_v50 = vmax.f32 %v5389_v40, 0.0  ;;  %v6015_v63 = vadd.f32 %v6014_v2, %v8993_v39 }
 0x390   : > { %v5833_v46 = vadd.f32 %v5832_v51, %v5770_v43  ;;  %v5901_v42 = vadd.f32 %v5900_v44, %v5870_v13  ;;  %v5946_v11 = vadd.f32 %v5945_v45, %v8992_v17 }
 0x391   : > { %6699 = vst [vmem:[%s8877_s22 + $0x78] sm:$0xff] %v5439_v29   ;;  %v5438_v7 = vpack.c.bf16 %v5421_v50, %v5420_v15  ;;  %v5774_v4 = vunpack.c.l.bf16 %v5439_v29  ;;  %v5775_v20 = vunpack.c.h.bf16 %v5439_v29  ;;  %v6016_v53 = vrot.slane %v6015_v63, 2 }
 0x392   : > { %v5902_v26 = vadd.f32 %v5901_v42, %v5871_v31  ;;  %v5834_v52 = vadd.f32 %v5833_v46, %v5771_v36  ;;  %v5947_v28 = vrot.slane %v5946_v11, 2 }
 0x393   : > { %6698 = vst [vmem:[%s8877_s22 + $0x70] sm:$0xff] %v5438_v7   ;;  %v5772_v9 = vunpack.c.l.bf16 %v5438_v7  ;;  %v5773_v55 = vunpack.c.h.bf16 %v5438_v7  ;;  %v5875_v34 = vmul.f32 %v5774_v4, %v5774_v4  ;;  %v5876_v48 = vmul.f32 %v5775_v20, %v5775_v20 }
 0x394   : > { %v5903_v62 = vadd.f32 %v5902_v26, %v5872_v27  ;;  %v5948_v3 = vadd.f32 %v5947_v28, %v5946_v11  ;;  %v6017_v58 = vadd.f32 %v6016_v53, %v6015_v63 }
 0x395   : > { %v5835_v5 = vadd.f32 %v5834_v52, %v5772_v9  ;;  %v5873_v23 = vmul.f32 %v5772_v9, %v5772_v9  ;;  %v5874_v37 = vmul.f32 %v5773_v55, %v5773_v55 }
 0x396   : > { %v5949_v57 = vrot.slane %v5948_v3, 1  ;;  %v6018_v33 = vrot.slane %v6017_v58, 1 }
 0x397   : > { %v5836_v61 = vadd.f32 %v5835_v5, %v5773_v55  ;;  %v5904_v0 = vadd.f32 %v5903_v62, %v5873_v23 }
 0x398   : > { %v5950_v24 = vadd.f32 %v5949_v57, %v5948_v3  ;;  %v6019_v49 = vadd.f32 %v6018_v33, %v6017_v58 }
 0x399   : > { %v5837_v6 = vadd.f32 %v5836_v61, %v5774_v4  ;;  %v5905_v12 = vadd.f32 %v5904_v0, %v5874_v37 }
 0x39b   : > { %v5838_v22 = vadd.f32 %v5837_v6, %v5775_v20  ;;  %v5906_v54 = vadd.f32 %v5905_v12, %v5875_v34 }
 0x39d   : > { %v5839_v21 = vrot.slane %v5838_v22, 4  ;;  %v5907_v16 = vadd.f32 %v5906_v54, %v5876_v48 }
 0x39f   : > { %v5840_v14 = vadd.f32 %v5839_v21, %v5838_v22  ;;  %v5908_v56 = vrot.slane %v5907_v16, 4 }
 0x3a1   : > { %v5841_v1 = vrot.slane %v5840_v14, 2  ;;  %v5909_v35 = vadd.f32 %v5908_v56, %v5907_v16 }
 0x3a3   : > { %v5842_v30 = vadd.f32 %v5841_v1, %v5840_v14  ;;  %v5910_v60 = vrot.slane %v5909_v35, 2 }
 0x3a5   : > { %v5843_v10 = vrot.slane %v5842_v30, 1  ;;  %v5911_v25 = vadd.f32 %v5910_v60, %v5909_v35 }
 0x3a7   : > { %v5912_v19 = vrot.slane %v5911_v25, 1  ;;  %v5844_v43 = vadd.f32 %v5843_v10, %v5842_v30 }
 0x3a9   : > { %v5913_v59 = vadd.f32 %v5912_v19, %v5911_v25 }
 0x3ab   : > { %v6021_v18 = vsel %vm6020_vm5, %v5844_v43, %v5913_v59 }
 0x3ac   : > { %v6022_v47 = vsel %vm524_vm0, %v6021_v18, %v5950_v24 }
 0x3ad   : > { %v6024_v8 = vsel %vm6023_vm6, %v6022_v47, %v6019_v49 }
 0x3ae   : > { %6025 = vst [vmem:[%s301_s10] sm:$0xf] %v6024_v8 }
 0x3af PF: > { %s18_s24 = sadd.s32 1, %s7779_s24  }
 0x3b0   : > { %p15_p4 = scmp.ge.s32.totalorder %s18_s24, 4  }
 0x3b2   :  { %17 = sbr.rel (!%p15_p4) target bundleno = 1 (0x1), region = 105 }

</bundles_post_ra>
